<compile_context>
chip_gen: v5e
topology: v5e:2x2
jax: 0.10.0
libtpu: 0.0.40
codegen_flags: <defaults>
</compile_context>

<pallas_src>
import functools

import jax
import jax.numpy as jnp
from jax.experimental import pallas as pl
from jax.experimental.pallas import tpu as pltpu

# Explicit scoped-VMEM budget with headroom: exceeds v5e's 16 MiB default scope,
# well under v7x's 64 MiB physical VMEM.
_VMEM_LIMIT = 32 * 1024 * 1024


def _round_up(x, m):
    return ((x + m - 1) // m) * m


def _cdiv(a, b):
    return (a + b - 1) // b


def _largest_k_tile(K, max_tk):
    """Largest multiple-of-128 divisor of K that is <= max_tk (K % 128 == 0)."""
    q = K // 128
    best = 128
    for d in range(1, q + 1):
        if q % d == 0 and 128 * d <= max_tk:
            best = 128 * d
    return best


# ----------------------------------------------------------------------------
# Pallas kernels
# ----------------------------------------------------------------------------

def _conv_relu_mgrid_kernel(p_ref, w_ref, b_ref, o_ref):
    # Grid over M row tiles. p: [TM, K] bf16 im2col rows; w: [K, Cout] bf16
    # (block-invariant / resident); b: [1, Cout] f32.
    acc = jnp.dot(p_ref[...], w_ref[...], preferred_element_type=jnp.float32)
    o_ref[...] = jnp.maximum(acc + b_ref[...], 0.0).astype(o_ref.dtype)


def _conv_relu_kgrid_kernel(p_ref, w_ref, b_ref, o_ref, acc_ref):
    # Grid over the K (reduction) axis for tiny-M matmuls: the weight stream is
    # double-buffered against MXU work; f32 VMEM accumulator.
    k = pl.program_id(0)

    @pl.when(k == 0)
    def _():
        acc_ref[...] = jnp.zeros_like(acc_ref)

    acc_ref[...] += jnp.dot(p_ref[...], w_ref[...],
                            preferred_element_type=jnp.float32)

    @pl.when(k == pl.num_programs(0) - 1)
    def _():
        o_ref[...] = jnp.maximum(acc_ref[...] + b_ref[...], 0.0).astype(o_ref.dtype)


def _lpips_dist_kernel(f1_ref, f2_ref, w_ref, o_ref, acc_ref, *, inv_hw, hw, thw):
    # Grid = (N, hw_tiles).  f*: [1, THW, C] bf16 flattened-feature tile;
    # w: [1, 1, C] f32 lin weights; o: [1, 1, 1] f32; acc: [1, 1] f32 running
    # spatial sum.  Partial last HW tile is masked in-kernel.
    t = pl.program_id(1)

    @pl.when(t == 0)
    def _():
        acc_ref[...] = jnp.zeros_like(acc_ref)

    eps = 1e-10
    f1 = f1_ref[...].astype(jnp.float32)
    f2 = f2_ref[...].astype(jnp.float32)
    # Channel unit-normalization; rsqrt runs on the (otherwise idle) EUP slot.
    n1 = f1 * jax.lax.rsqrt(jnp.sum(f1 * f1, axis=-1, keepdims=True) + eps)
    n2 = f2 * jax.lax.rsqrt(jnp.sum(f2 * f2, axis=-1, keepdims=True) + eps)
    d = (n1 - n2) ** 2
    wd = jnp.sum(d * w_ref[...], axis=-1)                        # [1, THW]
    # Mask rows beyond the true HW extent (partial last tile / garbage rows).
    row = t * thw + jax.lax.broadcasted_iota(jnp.int32, (1, thw), 1)
    wd = jnp.where(row < hw, wd, 0.0)
    acc_ref[...] += jnp.sum(wd, axis=-1, keepdims=True)          # [1, 1]

    @pl.when(t == pl.num_programs(1) - 1)
    def _():
        o_ref[...] = (acc_ref[...] * inv_hw).reshape(1, 1, 1)    # spatial mean


# ----------------------------------------------------------------------------
# pallas_call wrappers
# ----------------------------------------------------------------------------

def conv_relu(patches, w2d, bias2d, *, tile_m=512, tile_k_max=1024):
    """Conv-as-matmul + bias + ReLU.

    Large M: tiled over M rows ("parallel" axis, partial last block masked by
    Pallas -> no HBM pad copy).  Small M: tiled over K with an f32 VMEM
    accumulator so the weight DMA is pipelined against MXU work.
    """
    M, K = patches.shape
    Cout = w2d.shape[1]
    m_tiles = _cdiv(M, tile_m)

    if m_tiles > 1:
        return pl.pallas_call(
            _conv_relu_mgrid_kernel,
            grid=(m_tiles,),
            in_specs=[pl.BlockSpec((tile_m, K), lambda i: (i, 0)),
                      pl.BlockSpec((K, Cout), lambda i: (0, 0)),
                      pl.BlockSpec((1, Cout), lambda i: (0, 0))],
            out_specs=pl.BlockSpec((tile_m, Cout), lambda i: (i, 0)),
            out_shape=jax.ShapeDtypeStruct((M, Cout), jnp.bfloat16),
            compiler_params=pltpu.CompilerParams(
                dimension_semantics=("parallel",),
                vmem_limit_bytes=_VMEM_LIMIT),
        )(patches, w2d, bias2d)

    # Small-M path: grid over K (reduction), accumulate in VMEM.
    tk = _largest_k_tile(K, tile_k_max)
    return pl.pallas_call(
        _conv_relu_kgrid_kernel,
        grid=(K // tk,),
        in_specs=[pl.BlockSpec((M, tk), lambda k: (0, k)),
                  pl.BlockSpec((tk, Cout), lambda k: (k, 0)),
                  pl.BlockSpec((1, Cout), lambda k: (0, 0))],
        out_specs=pl.BlockSpec((M, Cout), lambda k: (0, 0)),
        out_shape=jax.ShapeDtypeStruct((M, Cout), jnp.bfloat16),
        scratch_shapes=[pltpu.VMEM((M, Cout), jnp.float32)],
        compiler_params=pltpu.CompilerParams(
            dimension_semantics=("arbitrary",),
            vmem_limit_bytes=_VMEM_LIMIT),
    )(patches, w2d, bias2d)


def _lpips_dist_xla(f1, f2, w):
    """Plain-XLA per-layer LPIPS distance for tiny layers (launch overhead)."""
    eps = 1e-10
    f1 = f1.astype(jnp.float32)
    f2 = f2.astype(jnp.float32)
    n1 = f1 * jax.lax.rsqrt(jnp.sum(f1 * f1, axis=-1, keepdims=True) + eps)
    n2 = f2 * jax.lax.rsqrt(jnp.sum(f2 * f2, axis=-1, keepdims=True) + eps)
    d = (n1 - n2) ** 2
    return jnp.mean(jnp.sum(d * w, axis=-1), axis=-1, keepdims=True)   # [N, 1]


def lpips_layer_dist(f1, f2, w, *, tile_hw=512):
    """Per-layer LPIPS distance; grid = (batch, HW tiles)."""
    N, HW, C = f1.shape
    if HW <= 16:
        # relu3-5 at small images: 1-9 spatial positions -> pure launch overhead
        # as a Pallas call; keep in XLA.
        return _lpips_dist_xla(f1, f2, w)

    thw = min(tile_hw, _round_up(HW, 8))
    kernel = functools.partial(_lpips_dist_kernel,
                               inv_hw=1.0 / float(HW), hw=HW, thw=thw)
    out = pl.pallas_call(
        kernel,
        grid=(N, _cdiv(HW, thw)),
        in_specs=[pl.BlockSpec((1, thw, C), lambda n, t: (n, t, 0)),
                  pl.BlockSpec((1, thw, C), lambda n, t: (n, t, 0)),
                  pl.BlockSpec((1, 1, C), lambda n, t: (0, 0, 0))],
        out_specs=pl.BlockSpec((1, 1, 1), lambda n, t: (n, 0, 0)),
        out_shape=jax.ShapeDtypeStruct((N, 1, 1), jnp.float32),
        scratch_shapes=[pltpu.VMEM((1, 1), jnp.float32)],
        compiler_params=pltpu.CompilerParams(
            dimension_semantics=("parallel", "arbitrary"),
            vmem_limit_bytes=_VMEM_LIMIT),
    )(f1, f2, w)
    return out.reshape(N, 1)


# ----------------------------------------------------------------------------
# Glue: im2col / pooling (XLA), parameter setup, network orchestration.
# ----------------------------------------------------------------------------

def _im2col(x, k, stride, pad, k_padded):
    """x: NHWC bf16 -> (N*Ho*Wo, k_padded) bf16 patch rows (K zero-padded)."""
    N, H, W, C = x.shape
    xp = jnp.pad(x, ((0, 0), (pad, pad), (pad, pad), (0, 0)))
    Ho = (H + 2 * pad - k) // stride + 1
    Wo = (W + 2 * pad - k) // stride + 1
    cols = []
    for dy in range(k):
        for dx in range(k):
            cols.append(xp[:, dy:dy + stride * (Ho - 1) + 1:stride,
                           dx:dx + stride * (Wo - 1) + 1:stride, :])
    patches = jnp.stack(cols, axis=3).reshape(N * Ho * Wo, k * k * C)
    if k_padded > k * k * C:
        patches = jnp.pad(patches, ((0, 0), (0, k_padded - k * k * C)))
    return patches, Ho, Wo


def _maxpool(x, k, stride):
    """3x3/s2 max-pool via pairwise maxima over strided views (no 9x stack)."""
    N, H, W, C = x.shape
    Ho = (H - k) // stride + 1
    Wo = (W - k) // stride + 1
    out = None
    for dy in range(k):
        for dx in range(k):
            v = x[:, dy:dy + stride * (Ho - 1) + 1:stride,
                  dx:dx + stride * (Wo - 1) + 1:stride, :]
            out = v if out is None else jnp.maximum(out, v)
    return out


_ALEX_CHS = (64, 192, 384, 256, 256)


def init_params(key):
    """Deterministic synthetic AlexNet + LPIPS-lin parameters (bf16 conv weights)."""
    def conv_p(k, kernel, cin, cout, cout_pad=None):
        kw, kb = jax.random.split(k)
        w = jax.random.normal(kw, (kernel, kernel, cin, cout), jnp.float32)
        w = w / jnp.sqrt(float(kernel * kernel * cin))
        w2d = w.reshape(kernel * kernel * cin, cout)
        kp = _round_up(kernel * kernel * cin, 128)      # MXU/lane-aligned K
        w2d = jnp.pad(w2d, ((0, kp - kernel * kernel * cin), (0, 0)))
        b = jax.random.normal(kb, (1, cout), jnp.float32) * 0.1
        if cout_pad is not None and cout_pad > cout:
            # Lane-dense output: zero weight columns / zero bias -> the padded
            # channels are exactly 0 after ReLU and do not affect LPIPS.
            w2d = jnp.pad(w2d, ((0, 0), (0, cout_pad - cout)))
            b = jnp.pad(b, ((0, 0), (0, cout_pad - cout)))
        return w2d.astype(jnp.bfloat16), b

    keys = jax.random.split(key, 10)
    params = {}
    params['w1'], params['b1'] = conv_p(keys[0], 11, 3, 64, cout_pad=128)
    params['w2'], params['b2'] = conv_p(keys[1], 5, 64, 192)
    params['w3'], params['b3'] = conv_p(keys[2], 3, 192, 384)
    params['w4'], params['b4'] = conv_p(keys[3], 3, 384, 256)
    params['w5'], params['b5'] = conv_p(keys[4], 3, 256, 256)
    # LPIPS NetLinLayer weights: 1x1 conv [1, C, 1, 1] -> stored as [1, 1, C] f32.
    lin = []
    for i, c in enumerate(_ALEX_CHS):
        l = jnp.abs(jax.random.normal(keys[5 + i], (1, 1, c), jnp.float32)) * 0.1
        if i == 0:
            # relu1 features carry 64 zero pad channels -> zero lin weights there.
            l = jnp.pad(l, ((0, 0), (0, 0), (0, 128 - c)))
        lin.append(l)
    params['lin'] = lin
    # LPIPS ScalingLayer constants (fixed, from the reference implementation).
    params['shift'] = jnp.array([-0.030, -0.088, -0.188],
                                jnp.float32).reshape(1, 1, 1, 3)
    params['inv_scale'] = (1.0 / jnp.array([0.458, 0.448, 0.450],
                                           jnp.float32)).reshape(1, 1, 1, 3)
    return params


def _alexnet_feats(x_nhwc, params):
    """AlexNet 'features' trunk; returns relu1..relu5 activations (NHWC, bf16).

    relu1 carries 128 channels (last 64 are exact zeros from the lane-dense
    padding); they are sliced away after the maxpool, before conv2.
    """
    N = x_nhwc.shape[0]
    feats = []
    # conv1 (11x11, stride 4, pad 2) + ReLU  (Cout padded 64 -> 128, lane-dense)
    p, Ho, Wo = _im2col(x_nhwc, 11, 4, 2, params['w1'].shape[0])
    h = conv_relu(p, params['w1'], params['b1']).reshape(N, Ho, Wo, 128)
    feats.append(h)
    # maxpool 3x3 stride 2, then drop the zero pad channels (small tensor copy)
    h = _maxpool(h, 3, 2)[..., :64]
    # conv2 (5x5, pad 2) + ReLU
    p, Ho, Wo = _im2col(h, 5, 1, 2, params['w2'].shape[0])
    h = conv_relu(p, params['w2'], params['b2']).reshape(N, Ho, Wo, 192)
    feats.append(h)
    # maxpool 3x3 stride 2
    h = _maxpool(h, 3, 2)
    # conv3 (3x3, pad 1) + ReLU
    p, Ho, Wo = _im2col(h, 3, 1, 1, params['w3'].shape[0])
    h = conv_relu(p, params['w3'], params['b3']).reshape(N, Ho, Wo, 384)
    feats.append(h)
    # conv4 (3x3, pad 1) + ReLU
    p, Ho, Wo = _im2col(h, 3, 1, 1, params['w4'].shape[0])
    h = conv_relu(p, params['w4'], params['b4']).reshape(N, Ho, Wo, 256)
    feats.append(h)
    # conv5 (3x3, pad 1) + ReLU
    p, Ho, Wo = _im2col(h, 3, 1, 1, params['w5'].shape[0])
    h = conv_relu(p, params['w5'], params['b5']).reshape(N, Ho, Wo, 256)
    feats.append(h)
    return feats


def lpips_forward(params, img1_nchw, img2_nchw):
    """LPIPS.forward: NCHW float32 images in [0, 1] -> [N, 1, 1, 1] distance."""
    if img1_nchw.shape != img2_nchw.shape:
        raise ValueError('Image shapes are different.')
    # TODO(synk): crop_border for border_crop_size != 0 not implemented (default 0).
    N = img1_nchw.shape[0]
    # Both images share one trunk pass (batch-concat) -> half the kernel launches.
    x = jnp.concatenate([img1_nchw, img2_nchw], axis=0).astype(jnp.float32)
    x = jnp.transpose(x, (0, 2, 3, 1))                       # NCHW -> NHWC
    # [0,1] -> [-1,1] then ScalingLayer, fused into one XLA affine on the tiny
    # 3-channel image.
    x = (2.0 * x - 1.0 - params['shift']) * params['inv_scale']
    x = x.astype(jnp.bfloat16)

    feats = _alexnet_feats(x, params)

    total = jnp.zeros((N, 1), jnp.float32)
    for idx, f in enumerate(feats):
        n2, ho, wo, c = f.shape
        f1 = f[:N].reshape(N, ho * wo, c)
        f2 = f[N:].reshape(N, ho * wo, c)
        total = total + lpips_layer_dist(f1, f2, params['lin'][idx])
    return total.reshape(N, 1, 1, 1)


if __name__ == "__main__":
    key = jax.random.PRNGKey(0)
    k_params, k1, k2 = jax.random.split(key, 3)
    params = init_params(k_params)

    # Small NCHW float32 images in [0, 1], consistent with _preprocess_imgs.
    # 64x64 exercises the M-gridded conv path, the K-gridded small-M conv path,
    # and the batch-parallel Pallas distance kernel.
    img1 = jax.random.uniform(k1, (2, 3, 64, 64), jnp.float32)
    img2 = jax.random.uniform(k2, (2, 3, 64, 64), jnp.float32)

    fwd = jax.jit(functools.partial(lpips_forward, params))
    out = fwd(img1, img2)
    out = jax.block_until_ready(out)
    assert out.shape == (2, 1, 1, 1)
    assert bool(jnp.all(jnp.isfinite(out)))
    print("KERNEL_OK")
</pallas_src>

<mosaic_0001>
module attributes {stable_mosaic.version = 11 : i64} {
  func.func @_conv_relu_mgrid_kernel(%arg0: i32, %arg1: memref<512x384xbf16, #tpu.memory_space<vmem>>, %arg2: memref<384x128xbf16, #tpu.memory_space<vmem>>, %arg3: memref<1x128xf32, #tpu.memory_space<vmem>>, %arg4: memref<512x128xbf16, #tpu.memory_space<vmem>>) attributes {dimension_semantics = [#tpu.dimension_semantics<parallel>], iteration_bounds = array<i64: 2>, scalar_prefetch = 0 : i64, scratch_operands = 0 : i64, tpu.core_type = #tpu.core_type<tc>, window_params = [{transform_indices = @transform_0, window_bounds = array<i64: 512, 384>}, {pipeline_mode = #tpu.pipeline_mode<synchronous>, transform_indices = @transform_1, window_bounds = array<i64: 384, 128>}, {pipeline_mode = #tpu.pipeline_mode<synchronous>, transform_indices = @transform_2, window_bounds = array<i64: 1, 128>}, {transform_indices = @transform_3, window_bounds = array<i64: 512, 128>}]} {
    %c0 = arith.constant 0 : index
    %c0_0 = arith.constant 0 : index
    %0 = vector.load %arg1[%c0, %c0_0] : memref<512x384xbf16, #tpu.memory_space<vmem>>, vector<512x384xbf16>
    %c0_1 = arith.constant 0 : index
    %c0_2 = arith.constant 0 : index
    %1 = vector.load %arg2[%c0_1, %c0_2] : memref<384x128xbf16, #tpu.memory_space<vmem>>, vector<384x128xbf16>
    %cst = arith.constant dense<0.000000e+00> : vector<512x128xf32>
    %2 = tpu.matmul %0, %1, %cst {dimension_numbers = #tpu.dot_dimension_numbers<[1], [0], [0], [1], [0, 0, 1, 1], [], []>} : vector<512x384xbf16>, vector<384x128xbf16>, vector<512x128xf32> -> vector<512x128xf32>
    %c0_3 = arith.constant 0 : index
    %c0_4 = arith.constant 0 : index
    %3 = vector.load %arg3[%c0_3, %c0_4] : memref<1x128xf32, #tpu.memory_space<vmem>>, vector<1x128xf32>
    %4 = vector.broadcast %3 : vector<1x128xf32> to vector<512x128xf32>
    %5 = arith.addf %2, %4 : vector<512x128xf32>
    %cst_5 = arith.constant 0.000000e+00 : f32
    %6 = vector.broadcast %cst_5 : f32 to vector<512x128xf32>
    %7 = arith.maximumf %5, %6 : vector<512x128xf32>
    %8 = arith.truncf %7 : vector<512x128xf32> to vector<512x128xbf16>
    %c0_6 = arith.constant 0 : index
    %c0_7 = arith.constant 0 : index
    %9 = vector.load %arg4[%c0_6, %c0_7] : memref<512x128xbf16, #tpu.memory_space<vmem>>, vector<512x128xbf16>
    tpu.vector_store %arg4[%c0_6, %c0_7], %8 {strides = array<i32>} : memref<512x128xbf16, #tpu.memory_space<vmem>>, vector<512x128xbf16>,
    return
  }
  func.func @transform_0(%arg0: i32) -> (i32, i32) {
    %c0_i32 = arith.constant 0 : i32
    %c0_i32_0 = arith.constant 0 : i32
    return %arg0, %c0_i32 : i32, i32
  }
  func.func @transform_1(%arg0: i32) -> (i32, i32) {
    %c0_i32 = arith.constant 0 : i32
    %c0_i32_0 = arith.constant 0 : i32
    %c0_i32_1 = arith.constant 0 : i32
    return %c0_i32, %c0_i32_0 : i32, i32
  }
  func.func @transform_2(%arg0: i32) -> (i32, i32) {
    %c0_i32 = arith.constant 0 : i32
    %c0_i32_0 = arith.constant 0 : i32
    %c0_i32_1 = arith.constant 0 : i32
    return %c0_i32, %c0_i32_0 : i32, i32
  }
  func.func @transform_3(%arg0: i32) -> (i32, i32) {
    %c0_i32 = arith.constant 0 : i32
    %c0_i32_0 = arith.constant 0 : i32
    return %arg0, %c0_i32 : i32, i32
  }
}

module attributes {stable_mosaic.version = 11 : i64} {
  func.func @_conv_relu_kgrid_kernel(%arg0: i32, %arg1: memref<196x128xbf16, #tpu.memory_space<vmem>>, %arg2: memref<128x192xbf16, #tpu.memory_space<vmem>>, %arg3: memref<1x192xf32, #tpu.memory_space<vmem>>, %arg4: memref<196x192xbf16, #tpu.memory_space<vmem>>, %arg5: memref<196x192xf32, #tpu.memory_space<vmem>>) attributes {dimension_semantics = [#tpu.dimension_semantics<arbitrary>], iteration_bounds = array<i64: 13>, scalar_prefetch = 0 : i64, scratch_operands = 1 : i64, tpu.core_type = #tpu.core_type<tc>, window_params = [{transform_indices = @transform_0, window_bounds = array<i64: 196, 128>}, {transform_indices = @transform_1, window_bounds = array<i64: 128, 192>}, {pipeline_mode = #tpu.pipeline_mode<synchronous>, transform_indices = @transform_2, window_bounds = array<i64: 1, 192>}, {pipeline_mode = #tpu.pipeline_mode<synchronous>, transform_indices = @transform_3, window_bounds = array<i64: 196, 192>}]} {
    %c0_i32 = arith.constant 0 : i32
    %0 = arith.cmpi eq, %arg0, %c0_i32 : i32
    %1 = arith.extui %0 : i1 to i32
    %c0_i32_0 = arith.constant 0 : i32
    %2 = arith.cmpi ne, %1, %c0_i32_0 : i32
    scf.if %2 {
      %cst_9 = arith.constant 0.000000e+00 : f32
      %12 = vector.broadcast %cst_9 : f32 to vector<196x192xf32>
      %c0_10 = arith.constant 0 : index
      %c0_11 = arith.constant 0 : index
      %13 = vector.load %arg5[%c0_10, %c0_11] : memref<196x192xf32, #tpu.memory_space<vmem>>, vector<196x192xf32>
      tpu.vector_store %arg5[%c0_10, %c0_11], %12 {strides = array<i32>} : memref<196x192xf32, #tpu.memory_space<vmem>>, vector<196x192xf32>,
    } else {
    }
    %c0 = arith.constant 0 : index
    %c0_1 = arith.constant 0 : index
    %3 = vector.load %arg5[%c0, %c0_1] : memref<196x192xf32, #tpu.memory_space<vmem>>, vector<196x192xf32>
    %c0_2 = arith.constant 0 : index
    %c0_3 = arith.constant 0 : index
    %4 = vector.load %arg1[%c0_2, %c0_3] : memref<196x128xbf16, #tpu.memory_space<vmem>>, vector<196x128xbf16>
    %c0_4 = arith.constant 0 : index
    %c0_5 = arith.constant 0 : index
    %5 = vector.load %arg2[%c0_4, %c0_5] : memref<128x192xbf16, #tpu.memory_space<vmem>>, vector<128x192xbf16>
    %cst = arith.constant dense<0.000000e+00> : vector<196x192xf32>
    %6 = tpu.matmul %4, %5, %cst {dimension_numbers = #tpu.dot_dimension_numbers<[1], [0], [0], [1], [0, 0, 1, 1], [], []>} : vector<196x128xbf16>, vector<128x192xbf16>, vector<196x192xf32> -> vector<196x192xf32>
    %7 = arith.addf %3, %6 : vector<196x192xf32>
    %c0_6 = arith.constant 0 : index
    %c0_7 = arith.constant 0 : index
    %8 = vector.load %arg5[%c0_6, %c0_7] : memref<196x192xf32, #tpu.memory_space<vmem>>, vector<196x192xf32>
    tpu.vector_store %arg5[%c0_6, %c0_7], %7 {strides = array<i32>} : memref<196x192xf32, #tpu.memory_space<vmem>>, vector<196x192xf32>,
    %c12_i32 = arith.constant 12 : i32
    %9 = arith.cmpi eq, %arg0, %c12_i32 : i32
    %10 = arith.extui %9 : i1 to i32
    %c0_i32_8 = arith.constant 0 : i32
    %11 = arith.cmpi ne, %10, %c0_i32_8 : i32
    scf.if %11 {
      %c0_9 = arith.constant 0 : index
      %c0_10 = arith.constant 0 : index
      %12 = vector.load %arg5[%c0_9, %c0_10] : memref<196x192xf32, #tpu.memory_space<vmem>>, vector<196x192xf32>
      %c0_11 = arith.constant 0 : index
      %c0_12 = arith.constant 0 : index
      %13 = vector.load %arg3[%c0_11, %c0_12] : memref<1x192xf32, #tpu.memory_space<vmem>>, vector<1x192xf32>
      %14 = vector.broadcast %13 : vector<1x192xf32> to vector<196x192xf32>
      %15 = arith.addf %12, %14 : vector<196x192xf32>
      %cst_13 = arith.constant 0.000000e+00 : f32
      %16 = vector.broadcast %cst_13 : f32 to vector<196x192xf32>
      %17 = arith.maximumf %15, %16 : vector<196x192xf32>
      %18 = arith.truncf %17 : vector<196x192xf32> to vector<196x192xbf16>
      %c0_14 = arith.constant 0 : index
      %c0_15 = arith.constant 0 : index
      %19 = vector.load %arg4[%c0_14, %c0_15] : memref<196x192xbf16, #tpu.memory_space<vmem>>, vector<196x192xbf16>
      tpu.vector_store %arg4[%c0_14, %c0_15], %18 {strides = array<i32>} : memref<196x192xbf16, #tpu.memory_space<vmem>>, vector<196x192xbf16>,
    } else {
    }
    return
  }
  func.func @transform_0(%arg0: i32) -> (i32, i32) {
    %c0_i32 = arith.constant 0 : i32
    %c0_i32_0 = arith.constant 0 : i32
    return %c0_i32, %arg0 : i32, i32
  }
  func.func @transform_1(%arg0: i32) -> (i32, i32) {
    %c0_i32 = arith.constant 0 : i32
    %c0_i32_0 = arith.constant 0 : i32
    return %arg0, %c0_i32 : i32, i32
  }
  func.func @transform_2(%arg0: i32) -> (i32, i32) {
    %c0_i32 = arith.constant 0 : i32
    %c0_i32_0 = arith.constant 0 : i32
    %c0_i32_1 = arith.constant 0 : i32
    return %c0_i32, %c0_i32_0 : i32, i32
  }
  func.func @transform_3(%arg0: i32) -> (i32, i32) {
    %c0_i32 = arith.constant 0 : i32
    %c0_i32_0 = arith.constant 0 : i32
    %c0_i32_1 = arith.constant 0 : i32
    return %c0_i32, %c0_i32_0 : i32, i32
  }
}

module attributes {stable_mosaic.version = 11 : i64} {
  func.func @_conv_relu_kgrid_kernel(%arg0: i32, %arg1: memref<36x896xbf16, #tpu.memory_space<vmem>>, %arg2: memref<896x384xbf16, #tpu.memory_space<vmem>>, %arg3: memref<1x384xf32, #tpu.memory_space<vmem>>, %arg4: memref<36x384xbf16, #tpu.memory_space<vmem>>, %arg5: memref<36x384xf32, #tpu.memory_space<vmem>>) attributes {dimension_semantics = [#tpu.dimension_semantics<arbitrary>], iteration_bounds = array<i64: 2>, scalar_prefetch = 0 : i64, scratch_operands = 1 : i64, tpu.core_type = #tpu.core_type<tc>, window_params = [{transform_indices = @transform_0, window_bounds = array<i64: 36, 896>}, {transform_indices = @transform_1, window_bounds = array<i64: 896, 384>}, {pipeline_mode = #tpu.pipeline_mode<synchronous>, transform_indices = @transform_2, window_bounds = array<i64: 1, 384>}, {pipeline_mode = #tpu.pipeline_mode<synchronous>, transform_indices = @transform_3, window_bounds = array<i64: 36, 384>}]} {
    %c0_i32 = arith.constant 0 : i32
    %0 = arith.cmpi eq, %arg0, %c0_i32 : i32
    %1 = arith.extui %0 : i1 to i32
    %c0_i32_0 = arith.constant 0 : i32
    %2 = arith.cmpi ne, %1, %c0_i32_0 : i32
    scf.if %2 {
      %cst_9 = arith.constant 0.000000e+00 : f32
      %12 = vector.broadcast %cst_9 : f32 to vector<36x384xf32>
      %c0_10 = arith.constant 0 : index
      %c0_11 = arith.constant 0 : index
      %13 = vector.load %arg5[%c0_10, %c0_11] : memref<36x384xf32, #tpu.memory_space<vmem>>, vector<36x384xf32>
      tpu.vector_store %arg5[%c0_10, %c0_11], %12 {strides = array<i32>} : memref<36x384xf32, #tpu.memory_space<vmem>>, vector<36x384xf32>,
    } else {
    }
    %c0 = arith.constant 0 : index
    %c0_1 = arith.constant 0 : index
    %3 = vector.load %arg5[%c0, %c0_1] : memref<36x384xf32, #tpu.memory_space<vmem>>, vector<36x384xf32>
    %c0_2 = arith.constant 0 : index
    %c0_3 = arith.constant 0 : index
    %4 = vector.load %arg1[%c0_2, %c0_3] : memref<36x896xbf16, #tpu.memory_space<vmem>>, vector<36x896xbf16>
    %c0_4 = arith.constant 0 : index
    %c0_5 = arith.constant 0 : index
    %5 = vector.load %arg2[%c0_4, %c0_5] : memref<896x384xbf16, #tpu.memory_space<vmem>>, vector<896x384xbf16>
    %cst = arith.constant dense<0.000000e+00> : vector<36x384xf32>
    %6 = tpu.matmul %4, %5, %cst {dimension_numbers = #tpu.dot_dimension_numbers<[1], [0], [0], [1], [0, 0, 1, 1], [], []>} : vector<36x896xbf16>, vector<896x384xbf16>, vector<36x384xf32> -> vector<36x384xf32>
    %7 = arith.addf %3, %6 : vector<36x384xf32>
    %c0_6 = arith.constant 0 : index
    %c0_7 = arith.constant 0 : index
    %8 = vector.load %arg5[%c0_6, %c0_7] : memref<36x384xf32, #tpu.memory_space<vmem>>, vector<36x384xf32>
    tpu.vector_store %arg5[%c0_6, %c0_7], %7 {strides = array<i32>} : memref<36x384xf32, #tpu.memory_space<vmem>>, vector<36x384xf32>,
    %c1_i32 = arith.constant 1 : i32
    %9 = arith.cmpi eq, %arg0, %c1_i32 : i32
    %10 = arith.extui %9 : i1 to i32
    %c0_i32_8 = arith.constant 0 : i32
    %11 = arith.cmpi ne, %10, %c0_i32_8 : i32
    scf.if %11 {
      %c0_9 = arith.constant 0 : index
      %c0_10 = arith.constant 0 : index
      %12 = vector.load %arg5[%c0_9, %c0_10] : memref<36x384xf32, #tpu.memory_space<vmem>>, vector<36x384xf32>
      %c0_11 = arith.constant 0 : index
      %c0_12 = arith.constant 0 : index
      %13 = vector.load %arg3[%c0_11, %c0_12] : memref<1x384xf32, #tpu.memory_space<vmem>>, vector<1x384xf32>
      %14 = vector.broadcast %13 : vector<1x384xf32> to vector<36x384xf32>
      %15 = arith.addf %12, %14 : vector<36x384xf32>
      %cst_13 = arith.constant 0.000000e+00 : f32
      %16 = vector.broadcast %cst_13 : f32 to vector<36x384xf32>
      %17 = arith.maximumf %15, %16 : vector<36x384xf32>
      %18 = arith.truncf %17 : vector<36x384xf32> to vector<36x384xbf16>
      %c0_14 = arith.constant 0 : index
      %c0_15 = arith.constant 0 : index
      %19 = vector.load %arg4[%c0_14, %c0_15] : memref<36x384xbf16, #tpu.memory_space<vmem>>, vector<36x384xbf16>
      tpu.vector_store %arg4[%c0_14, %c0_15], %18 {strides = array<i32>} : memref<36x384xbf16, #tpu.memory_space<vmem>>, vector<36x384xbf16>,
    } else {
    }
    return
  }
  func.func @transform_0(%arg0: i32) -> (i32, i32) {
    %c0_i32 = arith.constant 0 : i32
    %c0_i32_0 = arith.constant 0 : i32
    return %c0_i32, %arg0 : i32, i32
  }
  func.func @transform_1(%arg0: i32) -> (i32, i32) {
    %c0_i32 = arith.constant 0 : i32
    %c0_i32_0 = arith.constant 0 : i32
    return %arg0, %c0_i32 : i32, i32
  }
  func.func @transform_2(%arg0: i32) -> (i32, i32) {
    %c0_i32 = arith.constant 0 : i32
    %c0_i32_0 = arith.constant 0 : i32
    %c0_i32_1 = arith.constant 0 : i32
    return %c0_i32, %c0_i32_0 : i32, i32
  }
  func.func @transform_3(%arg0: i32) -> (i32, i32) {
    %c0_i32 = arith.constant 0 : i32
    %c0_i32_0 = arith.constant 0 : i32
    %c0_i32_1 = arith.constant 0 : i32
    return %c0_i32, %c0_i32_0 : i32, i32
  }
}

module attributes {stable_mosaic.version = 11 : i64} {
  func.func @_conv_relu_kgrid_kernel(%arg0: i32, %arg1: memref<36x384xbf16, #tpu.memory_space<vmem>>, %arg2: memref<384x256xbf16, #tpu.memory_space<vmem>>, %arg3: memref<1x256xf32, #tpu.memory_space<vmem>>, %arg4: memref<36x256xbf16, #tpu.memory_space<vmem>>, %arg5: memref<36x256xf32, #tpu.memory_space<vmem>>) attributes {dimension_semantics = [#tpu.dimension_semantics<arbitrary>], iteration_bounds = array<i64: 9>, scalar_prefetch = 0 : i64, scratch_operands = 1 : i64, tpu.core_type = #tpu.core_type<tc>, window_params = [{transform_indices = @transform_0, window_bounds = array<i64: 36, 384>}, {transform_indices = @transform_1, window_bounds = array<i64: 384, 256>}, {pipeline_mode = #tpu.pipeline_mode<synchronous>, transform_indices = @transform_2, window_bounds = array<i64: 1, 256>}, {pipeline_mode = #tpu.pipeline_mode<synchronous>, transform_indices = @transform_3, window_bounds = array<i64: 36, 256>}]} {
    %c0_i32 = arith.constant 0 : i32
    %0 = arith.cmpi eq, %arg0, %c0_i32 : i32
    %1 = arith.extui %0 : i1 to i32
    %c0_i32_0 = arith.constant 0 : i32
    %2 = arith.cmpi ne, %1, %c0_i32_0 : i32
    scf.if %2 {
      %cst_9 = arith.constant 0.000000e+00 : f32
      %12 = vector.broadcast %cst_9 : f32 to vector<36x256xf32>
      %c0_10 = arith.constant 0 : index
      %c0_11 = arith.constant 0 : index
      %13 = vector.load %arg5[%c0_10, %c0_11] : memref<36x256xf32, #tpu.memory_space<vmem>>, vector<36x256xf32>
      tpu.vector_store %arg5[%c0_10, %c0_11], %12 {strides = array<i32>} : memref<36x256xf32, #tpu.memory_space<vmem>>, vector<36x256xf32>,
    } else {
    }
    %c0 = arith.constant 0 : index
    %c0_1 = arith.constant 0 : index
    %3 = vector.load %arg5[%c0, %c0_1] : memref<36x256xf32, #tpu.memory_space<vmem>>, vector<36x256xf32>
    %c0_2 = arith.constant 0 : index
    %c0_3 = arith.constant 0 : index
    %4 = vector.load %arg1[%c0_2, %c0_3] : memref<36x384xbf16, #tpu.memory_space<vmem>>, vector<36x384xbf16>
    %c0_4 = arith.constant 0 : index
    %c0_5 = arith.constant 0 : index
    %5 = vector.load %arg2[%c0_4, %c0_5] : memref<384x256xbf16, #tpu.memory_space<vmem>>, vector<384x256xbf16>
    %cst = arith.constant dense<0.000000e+00> : vector<36x256xf32>
    %6 = tpu.matmul %4, %5, %cst {dimension_numbers = #tpu.dot_dimension_numbers<[1], [0], [0], [1], [0, 0, 1, 1], [], []>} : vector<36x384xbf16>, vector<384x256xbf16>, vector<36x256xf32> -> vector<36x256xf32>
    %7 = arith.addf %3, %6 : vector<36x256xf32>
    %c0_6 = arith.constant 0 : index
    %c0_7 = arith.constant 0 : index
    %8 = vector.load %arg5[%c0_6, %c0_7] : memref<36x256xf32, #tpu.memory_space<vmem>>, vector<36x256xf32>
    tpu.vector_store %arg5[%c0_6, %c0_7], %7 {strides = array<i32>} : memref<36x256xf32, #tpu.memory_space<vmem>>, vector<36x256xf32>,
    %c8_i32 = arith.constant 8 : i32
    %9 = arith.cmpi eq, %arg0, %c8_i32 : i32
    %10 = arith.extui %9 : i1 to i32
    %c0_i32_8 = arith.constant 0 : i32
    %11 = arith.cmpi ne, %10, %c0_i32_8 : i32
    scf.if %11 {
      %c0_9 = arith.constant 0 : index
      %c0_10 = arith.constant 0 : index
      %12 = vector.load %arg5[%c0_9, %c0_10] : memref<36x256xf32, #tpu.memory_space<vmem>>, vector<36x256xf32>
      %c0_11 = arith.constant 0 : index
      %c0_12 = arith.constant 0 : index
      %13 = vector.load %arg3[%c0_11, %c0_12] : memref<1x256xf32, #tpu.memory_space<vmem>>, vector<1x256xf32>
      %14 = vector.broadcast %13 : vector<1x256xf32> to vector<36x256xf32>
      %15 = arith.addf %12, %14 : vector<36x256xf32>
      %cst_13 = arith.constant 0.000000e+00 : f32
      %16 = vector.broadcast %cst_13 : f32 to vector<36x256xf32>
      %17 = arith.maximumf %15, %16 : vector<36x256xf32>
      %18 = arith.truncf %17 : vector<36x256xf32> to vector<36x256xbf16>
      %c0_14 = arith.constant 0 : index
      %c0_15 = arith.constant 0 : index
      %19 = vector.load %arg4[%c0_14, %c0_15] : memref<36x256xbf16, #tpu.memory_space<vmem>>, vector<36x256xbf16>
      tpu.vector_store %arg4[%c0_14, %c0_15], %18 {strides = array<i32>} : memref<36x256xbf16, #tpu.memory_space<vmem>>, vector<36x256xbf16>,
    } else {
    }
    return
  }
  func.func @transform_0(%arg0: i32) -> (i32, i32) {
    %c0_i32 = arith.constant 0 : i32
    %c0_i32_0 = arith.constant 0 : i32
    return %c0_i32, %arg0 : i32, i32
  }
  func.func @transform_1(%arg0: i32) -> (i32, i32) {
    %c0_i32 = arith.constant 0 : i32
    %c0_i32_0 = arith.constant 0 : i32
    return %arg0, %c0_i32 : i32, i32
  }
  func.func @transform_2(%arg0: i32) -> (i32, i32) {
    %c0_i32 = arith.constant 0 : i32
    %c0_i32_0 = arith.constant 0 : i32
    %c0_i32_1 = arith.constant 0 : i32
    return %c0_i32, %c0_i32_0 : i32, i32
  }
  func.func @transform_3(%arg0: i32) -> (i32, i32) {
    %c0_i32 = arith.constant 0 : i32
    %c0_i32_0 = arith.constant 0 : i32
    %c0_i32_1 = arith.constant 0 : i32
    return %c0_i32, %c0_i32_0 : i32, i32
  }
}

module attributes {stable_mosaic.version = 11 : i64} {
  func.func @_conv_relu_kgrid_kernel(%arg0: i32, %arg1: memref<36x768xbf16, #tpu.memory_space<vmem>>, %arg2: memref<768x256xbf16, #tpu.memory_space<vmem>>, %arg3: memref<1x256xf32, #tpu.memory_space<vmem>>, %arg4: memref<36x256xbf16, #tpu.memory_space<vmem>>, %arg5: memref<36x256xf32, #tpu.memory_space<vmem>>) attributes {dimension_semantics = [#tpu.dimension_semantics<arbitrary>], iteration_bounds = array<i64: 3>, scalar_prefetch = 0 : i64, scratch_operands = 1 : i64, tpu.core_type = #tpu.core_type<tc>, window_params = [{transform_indices = @transform_0, window_bounds = array<i64: 36, 768>}, {transform_indices = @transform_1, window_bounds = array<i64: 768, 256>}, {pipeline_mode = #tpu.pipeline_mode<synchronous>, transform_indices = @transform_2, window_bounds = array<i64: 1, 256>}, {pipeline_mode = #tpu.pipeline_mode<synchronous>, transform_indices = @transform_3, window_bounds = array<i64: 36, 256>}]} {
    %c0_i32 = arith.constant 0 : i32
    %0 = arith.cmpi eq, %arg0, %c0_i32 : i32
    %1 = arith.extui %0 : i1 to i32
    %c0_i32_0 = arith.constant 0 : i32
    %2 = arith.cmpi ne, %1, %c0_i32_0 : i32
    scf.if %2 {
      %cst_9 = arith.constant 0.000000e+00 : f32
      %12 = vector.broadcast %cst_9 : f32 to vector<36x256xf32>
      %c0_10 = arith.constant 0 : index
      %c0_11 = arith.constant 0 : index
      %13 = vector.load %arg5[%c0_10, %c0_11] : memref<36x256xf32, #tpu.memory_space<vmem>>, vector<36x256xf32>
      tpu.vector_store %arg5[%c0_10, %c0_11], %12 {strides = array<i32>} : memref<36x256xf32, #tpu.memory_space<vmem>>, vector<36x256xf32>,
    } else {
    }
    %c0 = arith.constant 0 : index
    %c0_1 = arith.constant 0 : index
    %3 = vector.load %arg5[%c0, %c0_1] : memref<36x256xf32, #tpu.memory_space<vmem>>, vector<36x256xf32>
    %c0_2 = arith.constant 0 : index
    %c0_3 = arith.constant 0 : index
    %4 = vector.load %arg1[%c0_2, %c0_3] : memref<36x768xbf16, #tpu.memory_space<vmem>>, vector<36x768xbf16>
    %c0_4 = arith.constant 0 : index
    %c0_5 = arith.constant 0 : index
    %5 = vector.load %arg2[%c0_4, %c0_5] : memref<768x256xbf16, #tpu.memory_space<vmem>>, vector<768x256xbf16>
    %cst = arith.constant dense<0.000000e+00> : vector<36x256xf32>
    %6 = tpu.matmul %4, %5, %cst {dimension_numbers = #tpu.dot_dimension_numbers<[1], [0], [0], [1], [0, 0, 1, 1], [], []>} : vector<36x768xbf16>, vector<768x256xbf16>, vector<36x256xf32> -> vector<36x256xf32>
    %7 = arith.addf %3, %6 : vector<36x256xf32>
    %c0_6 = arith.constant 0 : index
    %c0_7 = arith.constant 0 : index
    %8 = vector.load %arg5[%c0_6, %c0_7] : memref<36x256xf32, #tpu.memory_space<vmem>>, vector<36x256xf32>
    tpu.vector_store %arg5[%c0_6, %c0_7], %7 {strides = array<i32>} : memref<36x256xf32, #tpu.memory_space<vmem>>, vector<36x256xf32>,
    %c2_i32 = arith.constant 2 : i32
    %9 = arith.cmpi eq, %arg0, %c2_i32 : i32
    %10 = arith.extui %9 : i1 to i32
    %c0_i32_8 = arith.constant 0 : i32
    %11 = arith.cmpi ne, %10, %c0_i32_8 : i32
    scf.if %11 {
      %c0_9 = arith.constant 0 : index
      %c0_10 = arith.constant 0 : index
      %12 = vector.load %arg5[%c0_9, %c0_10] : memref<36x256xf32, #tpu.memory_space<vmem>>, vector<36x256xf32>
      %c0_11 = arith.constant 0 : index
      %c0_12 = arith.constant 0 : index
      %13 = vector.load %arg3[%c0_11, %c0_12] : memref<1x256xf32, #tpu.memory_space<vmem>>, vector<1x256xf32>
      %14 = vector.broadcast %13 : vector<1x256xf32> to vector<36x256xf32>
      %15 = arith.addf %12, %14 : vector<36x256xf32>
      %cst_13 = arith.constant 0.000000e+00 : f32
      %16 = vector.broadcast %cst_13 : f32 to vector<36x256xf32>
      %17 = arith.maximumf %15, %16 : vector<36x256xf32>
      %18 = arith.truncf %17 : vector<36x256xf32> to vector<36x256xbf16>
      %c0_14 = arith.constant 0 : index
      %c0_15 = arith.constant 0 : index
      %19 = vector.load %arg4[%c0_14, %c0_15] : memref<36x256xbf16, #tpu.memory_space<vmem>>, vector<36x256xbf16>
      tpu.vector_store %arg4[%c0_14, %c0_15], %18 {strides = array<i32>} : memref<36x256xbf16, #tpu.memory_space<vmem>>, vector<36x256xbf16>,
    } else {
    }
    return
  }
  func.func @transform_0(%arg0: i32) -> (i32, i32) {
    %c0_i32 = arith.constant 0 : i32
    %c0_i32_0 = arith.constant 0 : i32
    return %c0_i32, %arg0 : i32, i32
  }
  func.func @transform_1(%arg0: i32) -> (i32, i32) {
    %c0_i32 = arith.constant 0 : i32
    %c0_i32_0 = arith.constant 0 : i32
    return %arg0, %c0_i32 : i32, i32
  }
  func.func @transform_2(%arg0: i32) -> (i32, i32) {
    %c0_i32 = arith.constant 0 : i32
    %c0_i32_0 = arith.constant 0 : i32
    %c0_i32_1 = arith.constant 0 : i32
    return %c0_i32, %c0_i32_0 : i32, i32
  }
  func.func @transform_3(%arg0: i32) -> (i32, i32) {
    %c0_i32 = arith.constant 0 : i32
    %c0_i32_0 = arith.constant 0 : i32
    %c0_i32_1 = arith.constant 0 : i32
    return %c0_i32, %c0_i32_0 : i32, i32
  }
}

module attributes {stable_mosaic.version = 11 : i64} {
  func.func @_lpips_dist_kernel(%arg0: i32, %arg1: i32, %arg2: memref<1x56x192xbf16, #tpu.memory_space<vmem>>, %arg3: memref<1x56x192xbf16, #tpu.memory_space<vmem>>, %arg4: memref<1x1x192xf32, #tpu.memory_space<vmem>>, %arg5: memref<1x1x1xf32, #tpu.memory_space<vmem>>, %arg6: memref<1x1xf32, #tpu.memory_space<vmem>>) attributes {dimension_semantics = [#tpu.dimension_semantics<parallel>, #tpu.dimension_semantics<arbitrary>], iteration_bounds = array<i64: 2, 1>, scalar_prefetch = 0 : i64, scratch_operands = 1 : i64, tpu.core_type = #tpu.core_type<tc>, window_params = [{transform_indices = @transform_0, window_bounds = array<i64: 1, 56, 192>}, {transform_indices = @transform_1, window_bounds = array<i64: 1, 56, 192>}, {pipeline_mode = #tpu.pipeline_mode<synchronous>, transform_indices = @transform_2, window_bounds = array<i64: 1, 1, 192>}, {transform_indices = @transform_3, window_bounds = array<i64: 1, 1, 1>}]} {
    %c0_i32 = arith.constant 0 : i32
    %0 = arith.cmpi eq, %arg1, %c0_i32 : i32
    %1 = arith.extui %0 : i1 to i32
    %c0_i32_0 = arith.constant 0 : i32
    %2 = arith.cmpi ne, %1, %c0_i32_0 : i32
    scf.if %2 {
      %cst_21 = arith.constant 0.000000e+00 : f32
      %45 = vector.broadcast %cst_21 : f32 to vector<1x1xf32>
      %c0_22 = arith.constant 0 : index
      %c0_23 = arith.constant 0 : index
      %46 = vector.load %arg6[%c0_22, %c0_23] : memref<1x1xf32, #tpu.memory_space<vmem>>, vector<1x1xf32>
      tpu.vector_store %arg6[%c0_22, %c0_23], %45 {strides = array<i32>} : memref<1x1xf32, #tpu.memory_space<vmem>>, vector<1x1xf32>,
    } else {
    }
    %c0 = arith.constant 0 : index
    %c0_1 = arith.constant 0 : index
    %c0_2 = arith.constant 0 : index
    %3 = vector.load %arg2[%c0, %c0_1, %c0_2] : memref<1x56x192xbf16, #tpu.memory_space<vmem>>, vector<1x56x192xbf16>
    %4 = arith.extf %3 : vector<1x56x192xbf16> to vector<1x56x192xf32>
    %c0_3 = arith.constant 0 : index
    %c0_4 = arith.constant 0 : index
    %c0_5 = arith.constant 0 : index
    %5 = vector.load %arg3[%c0_3, %c0_4, %c0_5] : memref<1x56x192xbf16, #tpu.memory_space<vmem>>, vector<1x56x192xbf16>
    %6 = arith.extf %5 : vector<1x56x192xbf16> to vector<1x56x192xf32>
    %7 = arith.mulf %4, %4 : vector<1x56x192xf32>
    %cst = arith.constant dense<0.000000e+00> : vector<1x56xf32>
    %8 = vector.multi_reduction <add>, %7, %cst [2] : vector<1x56x192xf32> to vector<1x56xf32>
    %9 = vector.shape_cast %8 : vector<1x56xf32> to vector<1x56x1xf32>
    %cst_6 = arith.constant 1.000000e-10 : f32
    %10 = vector.broadcast %cst_6 : f32 to vector<1x56x1xf32>
    %11 = arith.addf %9, %10 : vector<1x56x1xf32>
    %12 = math.rsqrt %11 : vector<1x56x1xf32>
    %13 = vector.broadcast %12 : vector<1x56x1xf32> to vector<1x56x192xf32>
    %14 = arith.mulf %4, %13 : vector<1x56x192xf32>
    %15 = arith.mulf %6, %6 : vector<1x56x192xf32>
    %cst_7 = arith.constant dense<0.000000e+00> : vector<1x56xf32>
    %16 = vector.multi_reduction <add>, %15, %cst_7 [2] : vector<1x56x192xf32> to vector<1x56xf32>
    %17 = vector.shape_cast %16 : vector<1x56xf32> to vector<1x56x1xf32>
    %cst_8 = arith.constant 1.000000e-10 : f32
    %18 = vector.broadcast %cst_8 : f32 to vector<1x56x1xf32>
    %19 = arith.addf %17, %18 : vector<1x56x1xf32>
    %20 = math.rsqrt %19 : vector<1x56x1xf32>
    %21 = vector.broadcast %20 : vector<1x56x1xf32> to vector<1x56x192xf32>
    %22 = arith.mulf %6, %21 : vector<1x56x192xf32>
    %23 = arith.subf %14, %22 : vector<1x56x192xf32>
    %24 = arith.mulf %23, %23 : vector<1x56x192xf32>
    %c0_9 = arith.constant 0 : index
    %c0_10 = arith.constant 0 : index
    %c0_11 = arith.constant 0 : index
    %25 = vector.load %arg4[%c0_9, %c0_10, %c0_11] : memref<1x1x192xf32, #tpu.memory_space<vmem>>, vector<1x1x192xf32>
    %26 = vector.broadcast %25 : vector<1x1x192xf32> to vector<1x56x192xf32>
    %27 = arith.mulf %24, %26 : vector<1x56x192xf32>
    %cst_12 = arith.constant dense<0.000000e+00> : vector<1x56xf32>
    %28 = vector.multi_reduction <add>, %27, %cst_12 [2] : vector<1x56x192xf32> to vector<1x56xf32>
    %c56_i32 = arith.constant 56 : i32
    %29 = arith.muli %arg1, %c56_i32 : i32
    %30 = tpu.iota {dimensions = array<i32: 1>} : vector<1x56xi32>
    %31 = vector.broadcast %29 : i32 to vector<1x56xi32>
    %32 = arith.addi %31, %30 : vector<1x56xi32>
    %c49_i32 = arith.constant 49 : i32
    %33 = vector.broadcast %c49_i32 : i32 to vector<1x56xi32>
    %34 = arith.cmpi slt, %32, %33 : vector<1x56xi32>
    %cst_13 = arith.constant 0.000000e+00 : f32
    %35 = vector.broadcast %cst_13 : f32 to vector<1x56xf32>
    %36 = arith.select %34, %28, %35 : vector<1x56xi1>, vector<1x56xf32>
    %c0_14 = arith.constant 0 : index
    %c0_15 = arith.constant 0 : index
    %37 = vector.load %arg6[%c0_14, %c0_15] : memref<1x1xf32, #tpu.memory_space<vmem>>, vector<1x1xf32>
    %cst_16 = arith.constant dense<0.000000e+00> : vector<1xf32>
    %38 = vector.multi_reduction <add>, %36, %cst_16 [1] : vector<1x56xf32> to vector<1xf32>
    %39 = vector.shape_cast %38 : vector<1xf32> to vector<1x1xf32>
    %40 = arith.addf %37, %39 : vector<1x1xf32>
    %c0_17 = arith.constant 0 : index
    %c0_18 = arith.constant 0 : index
    %41 = vector.load %arg6[%c0_17, %c0_18] : memref<1x1xf32, #tpu.memory_space<vmem>>, vector<1x1xf32>
    tpu.vector_store %arg6[%c0_17, %c0_18], %40 {strides = array<i32>} : memref<1x1xf32, #tpu.memory_space<vmem>>, vector<1x1xf32>,
    %c0_i32_19 = arith.constant 0 : i32
    %42 = arith.cmpi eq, %arg1, %c0_i32_19 : i32
    %43 = arith.extui %42 : i1 to i32
    %c0_i32_20 = arith.constant 0 : i32
    %44 = arith.cmpi ne, %43, %c0_i32_20 : i32
    scf.if %44 {
      %c0_21 = arith.constant 0 : index
      %c0_22 = arith.constant 0 : index
      %45 = vector.load %arg6[%c0_21, %c0_22] : memref<1x1xf32, #tpu.memory_space<vmem>>, vector<1x1xf32>
      %cst_23 = arith.constant 0.0204081628 : f32
      %46 = vector.broadcast %cst_23 : f32 to vector<1x1xf32>
      %47 = arith.mulf %45, %46 : vector<1x1xf32>
      %48 = vector.shape_cast %47 : vector<1x1xf32> to vector<1x1x1xf32>
      %c0_24 = arith.constant 0 : index
      %c0_25 = arith.constant 0 : index
      %c0_26 = arith.constant 0 : index
      %49 = vector.load %arg5[%c0_24, %c0_25, %c0_26] : memref<1x1x1xf32, #tpu.memory_space<vmem>>, vector<1x1x1xf32>
      tpu.vector_store %arg5[%c0_24, %c0_25, %c0_26], %48 {strides = array<i32>} : memref<1x1x1xf32, #tpu.memory_space<vmem>>, vector<1x1x1xf32>,
    } else {
    }
    return
  }
  func.func @transform_0(%arg0: i32, %arg1: i32) -> (i32, i32, i32) {
    %c0_i32 = arith.constant 0 : i32
    %c0_i32_0 = arith.constant 0 : i32
    return %arg0, %arg1, %c0_i32 : i32, i32, i32
  }
  func.func @transform_1(%arg0: i32, %arg1: i32) -> (i32, i32, i32) {
    %c0_i32 = arith.constant 0 : i32
    %c0_i32_0 = arith.constant 0 : i32
    return %arg0, %arg1, %c0_i32 : i32, i32, i32
  }
  func.func @transform_2(%arg0: i32, %arg1: i32) -> (i32, i32, i32) {
    %c0_i32 = arith.constant 0 : i32
    %c0_i32_0 = arith.constant 0 : i32
    %c0_i32_1 = arith.constant 0 : i32
    %c0_i32_2 = arith.constant 0 : i32
    return %c0_i32, %c0_i32_0, %c0_i32_1 : i32, i32, i32
  }
  func.func @transform_3(%arg0: i32, %arg1: i32) -> (i32, i32, i32) {
    %c0_i32 = arith.constant 0 : i32
    %c0_i32_0 = arith.constant 0 : i32
    %c0_i32_1 = arith.constant 0 : i32
    return %arg0, %c0_i32, %c0_i32_0 : i32, i32, i32
  }
}

module attributes {stable_mosaic.version = 11 : i64} {
  func.func @_lpips_dist_kernel(%arg0: i32, %arg1: i32, %arg2: memref<1x232x128xbf16, #tpu.memory_space<vmem>>, %arg3: memref<1x232x128xbf16, #tpu.memory_space<vmem>>, %arg4: memref<1x1x128xf32, #tpu.memory_space<vmem>>, %arg5: memref<1x1x1xf32, #tpu.memory_space<vmem>>, %arg6: memref<1x1xf32, #tpu.memory_space<vmem>>) attributes {dimension_semantics = [#tpu.dimension_semantics<parallel>, #tpu.dimension_semantics<arbitrary>], iteration_bounds = array<i64: 2, 1>, scalar_prefetch = 0 : i64, scratch_operands = 1 : i64, tpu.core_type = #tpu.core_type<tc>, window_params = [{transform_indices = @transform_0, window_bounds = array<i64: 1, 232, 128>}, {transform_indices = @transform_1, window_bounds = array<i64: 1, 232, 128>}, {pipeline_mode = #tpu.pipeline_mode<synchronous>, transform_indices = @transform_2, window_bounds = array<i64: 1, 1, 128>}, {transform_indices = @transform_3, window_bounds = array<i64: 1, 1, 1>}]} {
    %c0_i32 = arith.constant 0 : i32
    %0 = arith.cmpi eq, %arg1, %c0_i32 : i32
    %1 = arith.extui %0 : i1 to i32
    %c0_i32_0 = arith.constant 0 : i32
    %2 = arith.cmpi ne, %1, %c0_i32_0 : i32
    scf.if %2 {
      %cst_21 = arith.constant 0.000000e+00 : f32
      %45 = vector.broadcast %cst_21 : f32 to vector<1x1xf32>
      %c0_22 = arith.constant 0 : index
      %c0_23 = arith.constant 0 : index
      %46 = vector.load %arg6[%c0_22, %c0_23] : memref<1x1xf32, #tpu.memory_space<vmem>>, vector<1x1xf32>
      tpu.vector_store %arg6[%c0_22, %c0_23], %45 {strides = array<i32>} : memref<1x1xf32, #tpu.memory_space<vmem>>, vector<1x1xf32>,
    } else {
    }
    %c0 = arith.constant 0 : index
    %c0_1 = arith.constant 0 : index
    %c0_2 = arith.constant 0 : index
    %3 = vector.load %arg2[%c0, %c0_1, %c0_2] : memref<1x232x128xbf16, #tpu.memory_space<vmem>>, vector<1x232x128xbf16>
    %4 = arith.extf %3 : vector<1x232x128xbf16> to vector<1x232x128xf32>
    %c0_3 = arith.constant 0 : index
    %c0_4 = arith.constant 0 : index
    %c0_5 = arith.constant 0 : index
    %5 = vector.load %arg3[%c0_3, %c0_4, %c0_5] : memref<1x232x128xbf16, #tpu.memory_space<vmem>>, vector<1x232x128xbf16>
    %6 = arith.extf %5 : vector<1x232x128xbf16> to vector<1x232x128xf32>
    %7 = arith.mulf %4, %4 : vector<1x232x128xf32>
    %cst = arith.constant dense<0.000000e+00> : vector<1x232xf32>
    %8 = vector.multi_reduction <add>, %7, %cst [2] : vector<1x232x128xf32> to vector<1x232xf32>
    %9 = vector.shape_cast %8 : vector<1x232xf32> to vector<1x232x1xf32>
    %cst_6 = arith.constant 1.000000e-10 : f32
    %10 = vector.broadcast %cst_6 : f32 to vector<1x232x1xf32>
    %11 = arith.addf %9, %10 : vector<1x232x1xf32>
    %12 = math.rsqrt %11 : vector<1x232x1xf32>
    %13 = vector.broadcast %12 : vector<1x232x1xf32> to vector<1x232x128xf32>
    %14 = arith.mulf %4, %13 : vector<1x232x128xf32>
    %15 = arith.mulf %6, %6 : vector<1x232x128xf32>
    %cst_7 = arith.constant dense<0.000000e+00> : vector<1x232xf32>
    %16 = vector.multi_reduction <add>, %15, %cst_7 [2] : vector<1x232x128xf32> to vector<1x232xf32>
    %17 = vector.shape_cast %16 : vector<1x232xf32> to vector<1x232x1xf32>
    %cst_8 = arith.constant 1.000000e-10 : f32
    %18 = vector.broadcast %cst_8 : f32 to vector<1x232x1xf32>
    %19 = arith.addf %17, %18 : vector<1x232x1xf32>
    %20 = math.rsqrt %19 : vector<1x232x1xf32>
    %21 = vector.broadcast %20 : vector<1x232x1xf32> to vector<1x232x128xf32>
    %22 = arith.mulf %6, %21 : vector<1x232x128xf32>
    %23 = arith.subf %14, %22 : vector<1x232x128xf32>
    %24 = arith.mulf %23, %23 : vector<1x232x128xf32>
    %c0_9 = arith.constant 0 : index
    %c0_10 = arith.constant 0 : index
    %c0_11 = arith.constant 0 : index
    %25 = vector.load %arg4[%c0_9, %c0_10, %c0_11] : memref<1x1x128xf32, #tpu.memory_space<vmem>>, vector<1x1x128xf32>
    %26 = vector.broadcast %25 : vector<1x1x128xf32> to vector<1x232x128xf32>
    %27 = arith.mulf %24, %26 : vector<1x232x128xf32>
    %cst_12 = arith.constant dense<0.000000e+00> : vector<1x232xf32>
    %28 = vector.multi_reduction <add>, %27, %cst_12 [2] : vector<1x232x128xf32> to vector<1x232xf32>
    %c232_i32 = arith.constant 232 : i32
    %29 = arith.muli %arg1, %c232_i32 : i32
    %30 = tpu.iota {dimensions = array<i32: 1>} : vector<1x232xi32>
    %31 = vector.broadcast %29 : i32 to vector<1x232xi32>
    %32 = arith.addi %31, %30 : vector<1x232xi32>
    %c225_i32 = arith.constant 225 : i32
    %33 = vector.broadcast %c225_i32 : i32 to vector<1x232xi32>
    %34 = arith.cmpi slt, %32, %33 : vector<1x232xi32>
    %cst_13 = arith.constant 0.000000e+00 : f32
    %35 = vector.broadcast %cst_13 : f32 to vector<1x232xf32>
    %36 = arith.select %34, %28, %35 : vector<1x232xi1>, vector<1x232xf32>
    %c0_14 = arith.constant 0 : index
    %c0_15 = arith.constant 0 : index
    %37 = vector.load %arg6[%c0_14, %c0_15] : memref<1x1xf32, #tpu.memory_space<vmem>>, vector<1x1xf32>
    %cst_16 = arith.constant dense<0.000000e+00> : vector<1xf32>
    %38 = vector.multi_reduction <add>, %36, %cst_16 [1] : vector<1x232xf32> to vector<1xf32>
    %39 = vector.shape_cast %38 : vector<1xf32> to vector<1x1xf32>
    %40 = arith.addf %37, %39 : vector<1x1xf32>
    %c0_17 = arith.constant 0 : index
    %c0_18 = arith.constant 0 : index
    %41 = vector.load %arg6[%c0_17, %c0_18] : memref<1x1xf32, #tpu.memory_space<vmem>>, vector<1x1xf32>
    tpu.vector_store %arg6[%c0_17, %c0_18], %40 {strides = array<i32>} : memref<1x1xf32, #tpu.memory_space<vmem>>, vector<1x1xf32>,
    %c0_i32_19 = arith.constant 0 : i32
    %42 = arith.cmpi eq, %arg1, %c0_i32_19 : i32
    %43 = arith.extui %42 : i1 to i32
    %c0_i32_20 = arith.constant 0 : i32
    %44 = arith.cmpi ne, %43, %c0_i32_20 : i32
    scf.if %44 {
      %c0_21 = arith.constant 0 : index
      %c0_22 = arith.constant 0 : index
      %45 = vector.load %arg6[%c0_21, %c0_22] : memref<1x1xf32, #tpu.memory_space<vmem>>, vector<1x1xf32>
      %cst_23 = arith.constant 0.00444444455 : f32
      %46 = vector.broadcast %cst_23 : f32 to vector<1x1xf32>
      %47 = arith.mulf %45, %46 : vector<1x1xf32>
      %48 = vector.shape_cast %47 : vector<1x1xf32> to vector<1x1x1xf32>
      %c0_24 = arith.constant 0 : index
      %c0_25 = arith.constant 0 : index
      %c0_26 = arith.constant 0 : index
      %49 = vector.load %arg5[%c0_24, %c0_25, %c0_26] : memref<1x1x1xf32, #tpu.memory_space<vmem>>, vector<1x1x1xf32>
      tpu.vector_store %arg5[%c0_24, %c0_25, %c0_26], %48 {strides = array<i32>} : memref<1x1x1xf32, #tpu.memory_space<vmem>>, vector<1x1x1xf32>,
    } else {
    }
    return
  }
  func.func @transform_0(%arg0: i32, %arg1: i32) -> (i32, i32, i32) {
    %c0_i32 = arith.constant 0 : i32
    %c0_i32_0 = arith.constant 0 : i32
    return %arg0, %arg1, %c0_i32 : i32, i32, i32
  }
  func.func @transform_1(%arg0: i32, %arg1: i32) -> (i32, i32, i32) {
    %c0_i32 = arith.constant 0 : i32
    %c0_i32_0 = arith.constant 0 : i32
    return %arg0, %arg1, %c0_i32 : i32, i32, i32
  }
  func.func @transform_2(%arg0: i32, %arg1: i32) -> (i32, i32, i32) {
    %c0_i32 = arith.constant 0 : i32
    %c0_i32_0 = arith.constant 0 : i32
    %c0_i32_1 = arith.constant 0 : i32
    %c0_i32_2 = arith.constant 0 : i32
    return %c0_i32, %c0_i32_0, %c0_i32_1 : i32, i32, i32
  }
  func.func @transform_3(%arg0: i32, %arg1: i32) -> (i32, i32, i32) {
    %c0_i32 = arith.constant 0 : i32
    %c0_i32_0 = arith.constant 0 : i32
    %c0_i32_1 = arith.constant 0 : i32
    return %arg0, %c0_i32, %c0_i32_0 : i32, i32, i32
  }
}

</mosaic_0001>

<bundles_post_ra>
// kernel: lpips_forward.7
= control target key start
LH: loop header
LB: loop body
LE: loop exit
PB: predicated region body
PF: predicated region fallthrough
CT: control target
= control target key end

     0   :  { %s3116_s12 = smov 0   ;;  %s3118_s13 = smov 0   ;;  %s3814_s0 = inlined_call_operand.vmem [shape: bf16[900,384], index: 0, kind: input, shape index: {}]   ;;  %s3815_s1 = inlined_call_operand.vmem [shape: bf16[384,128], index: 1, kind: input, shape index: {}]   ;;  %s3816_s2 = inlined_call_operand.vmem [shape: f32[1,128], index: 2, kind: input, shape index: {}]   ;;  %s3817_s3 = inlined_call_operand.vmem [shape: bf16[900,128], index: 3, kind: output, shape index: {}]  }
   0x1   :  { %s3120_s14 = smov 0  }
   0x2 LB: > { %s3129_s15 = sadd.s32 4294967295, %s3062_s14   ;;  %s3131_s16 = sadd.s32 1, %s3062_s14   ;;  %s3062_s14 = sphi %s3120_s14, %s3826_s14   ;;  %s3058_s13 = sphi %s3118_s13, %s3825_s13   ;;  %s3054_s12 = sphi %s3116_s12, %s3824_s12  }
   0x3   : > { %s85_s17 = ssub.s32 %s3062_s14, %s3131_s16  ;;  %s88_s18 = sadd.s32 1, %s3058_s13 }
   0x4   : > { %p86_p0 = scmp.eq.s32.totalorder %s85_s17, 0  ;;  %p98_p1 = scmp.ne.s32.totalorder %s3058_s13, %s3054_s12 }
   0x5   : > { %p99_p2 = scmp.eq.s32.totalorder %s3129_s15, 1  ;;  %p2078_p3 = scmp.ge.s32.totalorder %s3062_s14, 1 }
   0x6   : > { %s3139_s19 = scalar_select %p86_p0, %s3058_s13, %s88_s18  }
   0x7   : > { %p3141_p4 = por %p99_p2, %p98_p1  ;;  %p149_p5 = scmp.lt.s32.totalorder %s3062_s14, 3 }
   0x9   : > { %p150_p6 = pnand %p2078_p3, %p149_p5 }
   0xa   : > { %s3189_s14 = sshll.u32 (!%p150_p6), %s3129_s15, 6  ;;  %s175_s9 = sand.u32 (!%p150_p6), 1, %s3054_s12  }
   0xb   : > { %153 = sbr.rel (%p150_p6) target bundleno = 629 (0x275), region = 32  ;;  %p184_p7 = scmp.lt.s32.totalorder (!%p150_p6), %s3189_s14, 112 }
   0xc   : > { %s2079_s10 = sshll.u32 (!%p150_p6), %s175_s9, 8 }
   0xd   : > { %s3367_s12 = scalar_lea.vmem (!%p150_p6), [#allocation2], %s2079_s10  }
  0x10   : > { %v2682_v0 = vld [vmem:[%s3815_s1 + $0x38] sm:$0xff]  ;;  %v2681_v3 = vld [vmem:[%s3815_s1 + $0x30] sm:$0xff]  ;;  %v2680_v6 = vld [vmem:[%s3815_s1 + $0x28] sm:$0xff]  ;;  %s185_s27 = scalar_select %p184_p7, %s3189_s14, 112 }
  0x11   : > { %v3151_v1 = vld [vmem:[%s3815_s1 + $0x78] sm:$0xff]  ;;  %1036 = vmatpush.bf16.msra.mxu0 %v2682_v0  ;;  %2893 = vmatpush.bf16.msra.mxu3 %v2682_v0  ;;  %v3166_v4 = vld [vmem:[%s3815_s1 + $0x70] sm:$0xff]  ;;  %v3181_v7 = vld [vmem:[%s3815_s1 + $0x68] sm:$0xff]  ;;  %s1743_s18 = ssub.s32 (%p3141_p4), 113, %s3189_s14  ;;  %s2699_s21 = sshll.u32 (%p3141_p4), %s3129_s15, 8 }
  0x12   : > { %v3156_v2 = vld [vmem:[%s3815_s1 + $0xb8] sm:$0xff]  ;;  %1205 = vmatpush.bf16.msra.mxu1 %v3151_v1  ;;  %v3171_v5 = vld [vmem:[%s3815_s1 + $0xb0] sm:$0xff]  ;;  %v3186_v8 = vld [vmem:[%s3815_s1 + $0xa8] sm:$0xff]  ;;  %s2917_s7 = smul.u32 12, %s185_s27  ;;  %p1744_p8 = scmp.lt.s32.totalorder (%p3141_p4), %s1743_s18, 64 }
  0x13   : > { %1374 = vmatpush.bf16.msra.mxu2 %v3156_v2  ;;  %v2679_v9 = vld [vmem:[%s3815_s1 + $0x20] sm:$0xff]  ;;  %v2678_v12 = vld [vmem:[%s3815_s1 + $0x18] sm:$0xff]  ;;  %v2677_v15 = vld [vmem:[%s3815_s1 + $0x10] sm:$0xff]  ;;  %s3679_s24 = scalar_lea.vmem (%p3141_p4), %s3817_s3, %s2699_s21  }
  0x14   : > { %v3200_v10 = vld [vmem:[%s3815_s1 + $0x60] sm:$0xff]  ;;  %v2686_v13 = vld [vmem:[%s3815_s1 + $0x58] sm:$0xff]  ;;  %v2685_v16 = vld [vmem:[%s3815_s1 + $0x50] sm:$0xff]  ;;  %s3239_s23 = scalar_lea.vmem %s3814_s0, %s2917_s7 }
  0x15   : > { %1037 = vmatpush.bf16.msra.mxu0 %v2681_v3  ;;  %2894 = vmatpush.bf16.msra.mxu3 %v2681_v3  ;;  %v3205_v11 = vld [vmem:[%s3815_s1 + $0xa0] sm:$0xff]  ;;  %v3219_v14 = vld [vmem:[%s3815_s1 + $0x98] sm:$0xff]  ;;  %v3231_v17 = vld [vmem:[%s3815_s1 + $0x90] sm:$0xff] }
  0x16   : > { %1206 = vmatpush.bf16.msra.mxu1 %v3166_v4  ;;  %v2676_v18 = vld [vmem:[%s3815_s1 + $0x8] sm:$0xff]  ;;  %v2675_v21 = vld [vmem:[%s3815_s1] sm:$0xff]  ;;  %v2086_v29 = vld [vmem:[%s3239_s23 + $0xc] sm:$0xf0] }
  0x17   : > { %1375 = vmatpush.bf16.msra.mxu2 %v3171_v5  ;;  %v2684_v19 = vld [vmem:[%s3815_s1 + $0x48] sm:$0xff]  ;;  %v2683_v22 = vld [vmem:[%s3815_s1 + $0x40] sm:$0xff]  ;;  %v2581_v31 = vld [vmem:[%s3239_s23 + $0x10] sm:$0xf0] }
  0x18   : > { %v3248_v20 = vld [vmem:[%s3815_s1 + $0x88] sm:$0xff]  ;;  %v3259_v23 = vld [vmem:[%s3815_s1 + $0x80] sm:$0xff]  ;;  %v2096_v36 = vld [vmem:[%s3239_s23 + $0x18] sm:$0xf] }
  0x19   : > { %1038 = vmatpush.bf16.msra.mxu0 %v2680_v6  ;;  %2895 = vmatpush.bf16.msra.mxu3 %v2680_v6  ;;  %v2084_v24 = vld [vmem:[%s3239_s23] sm:$0xf]  ;;  %v2580_v25 = vld [vmem:[%s3239_s23 + $0x8] sm:$0xf0]  ;;  %v2579_v28 = vld [vmem:[%s3239_s23 + $0x4] sm:$0xf] }
  0x1a   : > { %1207 = vmatpush.bf16.msra.mxu1 %v3181_v7  ;;  %v2372_v26 = vld [vmem:[%s3239_s23 + $0x240] sm:$0xf]  ;;  %v2652_v27 = vld [vmem:[%s3239_s23 + $0x248] sm:$0xf0]  ;;  %v2092_v30 = vld [vmem:[%s3239_s23 + $0x8] sm:$0xf]  ;;  %v2085_v32 = vor.u32 %v2580_v25, %v2084_v24  ;;  %v2089_v34 = vor.u32 %v2579_v28, %v2086_v29 }
  0x1b   : > { %1376 = vmatpush.bf16.msra.mxu2 %v3186_v8  ;;  %v2373_v33 = vor.u32 %v2652_v27, %v2372_v26  ;;  %v2093_v35 = vor.u32 %v2581_v31, %v2092_v30  ;;  %v2583_v37 = vld [vmem:[%s3239_s23 + $0x20] sm:$0xf0]  ;;  %v2384_v38 = vld [vmem:[%s3239_s23 + $0x258] sm:$0xf]  ;;  %v2582_v40 = vld [vmem:[%s3239_s23 + $0x1c] sm:$0xf] }
  0x1c   : > { %v2655_v39 = vld [vmem:[%s3239_s23 + $0x260] sm:$0xf0]  ;;  %v2098_v41 = vld [vmem:[%s3239_s23 + $0x24] sm:$0xf0]  ;;  %v2104_v42 = vld [vmem:[%s3239_s23 + $0x20] sm:$0xf]  ;;  %v2097_v44 = vor.u32 %v2583_v37, %v2096_v36 }
  0x1d   : > { %1039 = vmatpush.bf16.msra.mxu0 %v2679_v9  ;;  %2896 = vmatpush.bf16.msra.mxu3 %v2679_v9  ;;  %v2584_v43 = vld [vmem:[%s3239_s23 + $0x28] sm:$0xf0]  ;;  %v2385_v45 = vor.u32 %v2655_v39, %v2384_v38  ;;  %v2101_v46 = vor.u32 %v2582_v40, %v2098_v41  ;;  %v2108_v48 = vld [vmem:[%s3239_s23 + $0x30] sm:$0xf]  ;;  %v2586_v49 = vld [vmem:[%s3239_s23 + $0x38] sm:$0xf0] }
  0x1e   : > { %1208 = vmatpush.bf16.msra.mxu1 %v3200_v10  ;;  %v2105_v47 = vor.u32 %v2584_v43, %v2104_v42  ;;  %v2396_v50 = vld [vmem:[%s3239_s23 + $0x270] sm:$0xf]  ;;  %v2658_v51 = vld [vmem:[%s3239_s23 + $0x278] sm:$0xf0]  ;;  %v2585_v52 = vld [vmem:[%s3239_s23 + $0x34] sm:$0xf]  ;;  %v2109_v56 = vor.u32 %v2586_v49, %v2108_v48 }
  0x1f   : > { %1377 = vmatpush.bf16.msra.mxu2 %v3205_v11  ;;  %v2110_v53 = vld [vmem:[%s3239_s23 + $0x3c] sm:$0xf0]  ;;  %v2116_v54 = vld [vmem:[%s3239_s23 + $0x38] sm:$0xf]  ;;  %v2587_v55 = vld [vmem:[%s3239_s23 + $0x40] sm:$0xf0]  ;;  %v2397_v57 = vor.u32 %v2658_v51, %v2396_v50 }
  0x20   : > { %v2113_v58 = vor.u32 %v2585_v52, %v2110_v53  ;;  %v2117_v59 = vor.u32 %v2587_v55, %v2116_v54  ;;  %v2120_v60 = vld [vmem:[%s3239_s23 + $0x48] sm:$0xf]  ;;  %v2589_v61 = vld [vmem:[%s3239_s23 + $0x50] sm:$0xf0]  ;;  %v2588_v0 = vld [vmem:[%s3239_s23 + $0x4c] sm:$0xf] }
  0x21   : > { %1040 = vmatpush.bf16.msra.mxu0 %v2678_v12  ;;  %2897 = vmatpush.bf16.msra.mxu3 %v2678_v12  ;;  %v2408_v62 = vld [vmem:[%s3239_s23 + $0x288] sm:$0xf]  ;;  %v2661_v63 = vld [vmem:[%s3239_s23 + $0x290] sm:$0xf0]  ;;  %v2590_v3 = vld [vmem:[%s3239_s23 + $0x58] sm:$0xf0] }
  0x22   : > { %1209 = vmatpush.bf16.msra.mxu1 %v2686_v13  ;;  %v2592_v9 = vld [vmem:[%s3239_s23 + $0x68] sm:$0xf0]  ;;  %v2591_v12 = vld [vmem:[%s3239_s23 + $0x64] sm:$0xf]  ;;  %v2594_v25 = vld [vmem:[%s3239_s23 + $0x7c] sm:$0xf] }
  0x23   : > { %1378 = vmatpush.bf16.msra.mxu2 %v3219_v14  ;;  %v2667_v24 = vld [vmem:[%s3239_s23 + $0x2c0] sm:$0xf0]  ;;  %v2152_v26 = vld [vmem:[%s3239_s23 + $0x80] sm:$0xf]  ;;  %v2596_v27 = vld [vmem:[%s3239_s23 + $0x88] sm:$0xf0] }
  0x24   : > { %v2153_v31 = vor.u32 %v2596_v27, %v2152_v26  ;;  %v2597_v36 = vld [vmem:[%s3239_s23 + $0x94] sm:$0xf]  ;;  %v2158_v37 = vld [vmem:[%s3239_s23 + $0x9c] sm:$0xf0]  ;;  %v2164_v38 = vld [vmem:[%s3239_s23 + $0x98] sm:$0xf] }
  0x25   : > { %1041 = vmatpush.bf16.msra.mxu0 %v2677_v15  ;;  %2898 = vmatpush.bf16.msra.mxu3 %v2677_v15  ;;  %v2593_v15 = vld [vmem:[%s3239_s23 + $0x70] sm:$0xf0]  ;;  %v2599_v39 = vld [vmem:[%s3239_s23 + $0xa0] sm:$0xf0]  ;;  %v2161_v42 = vor.u32 %v2597_v36, %v2158_v37  ;;  %v2600_v48 = vld [vmem:[%s3239_s23 + $0xac] sm:$0xf] }
  0x26   : > { %1210 = vmatpush.bf16.msra.mxu1 %v2685_v16  ;;  %v2165_v43 = vor.u32 %v2599_v39, %v2164_v38  ;;  %v2170_v49 = vld [vmem:[%s3239_s23 + $0xb4] sm:$0xf0]  ;;  %v2176_v50 = vld [vmem:[%s3239_s23 + $0xb0] sm:$0xf]  ;;  %v2602_v51 = vld [vmem:[%s3239_s23 + $0xb8] sm:$0xf0] }
  0x27   : > { %1379 = vmatpush.bf16.msra.mxu2 %v3231_v17  ;;  %v2173_v54 = vor.u32 %v2600_v48, %v2170_v49  ;;  %v2177_v55 = vor.u32 %v2602_v51, %v2176_v50  ;;  %v2206_v48 = vld [vmem:[%s3239_s23 + $0xfc] sm:$0xf0]  ;;  %v2212_v49 = vld [vmem:[%s3239_s23 + $0xf8] sm:$0xf]  ;;  %v2611_v50 = vld [vmem:[%s3239_s23 + $0x100] sm:$0xf0] }
  0x29   : > { %1042 = vmatpush.bf16.msra.mxu0 %v2676_v18  ;;  %2899 = vmatpush.bf16.msra.mxu3 %v2676_v18 }
  0x2a   : > { %1211 = vmatpush.bf16.msra.mxu1 %v2684_v19 }
  0x2b   : > { %1380 = vmatpush.bf16.msra.mxu2 %v3248_v20 }
  0x2d   : > { %1043 = vmatpush.bf16.msra.mxu0 %v2675_v21  ;;  %2900 = vmatpush.bf16.msra.mxu3 %v2675_v21  ;;  %v2595_v21 = vld [vmem:[%s3239_s23 + $0x80] sm:$0xf0] }
  0x2e   : > { %1212 = vmatpush.bf16.msra.mxu1 %v2683_v22 }
  0x2f   : > { %1381 = vmatpush.bf16.msra.mxu2 %v3259_v23 }
  0x30   : > { %1044 = vmatmul.bf16.vlgmr.msra.gmra.mxu0 %v2085_v32  ;;  %1164 = vmatmul.bf16.vlgmr.msra.gmra.mxu3 %v2373_v33  ;;  %v2156_v32 = vld [vmem:[%s3239_s23 + $0x90] sm:$0xf]  ;;  %v2598_v33 = vld [vmem:[%s3239_s23 + $0x98] sm:$0xf0] }
  0x31   : > { %2901 = vmatpush.bf16.msrb.mxu3 %v3151_v1  ;;  %1213 = vmatmul.bf16.vlgmr.msra.gmra.mxu1 %v2089_v34  ;;  %v2122_v1 = vld [vmem:[%s3239_s23 + $0x54] sm:$0xf0]  ;;  %v2444_v34 = vld [vmem:[%s3239_s23 + $0x2d0] sm:$0xf]  ;;  %v2157_v40 = vor.u32 %v2598_v33, %v2156_v32 }
  0x32   : > { %1382 = vmatmul.bf16.vlgmr.msra.gmra.mxu2 %v2093_v35  ;;  %v2125_v6 = vor.u32 %v2588_v0, %v2122_v1  ;;  %v2670_v35 = vld [vmem:[%s3239_s23 + $0x2d8] sm:$0xf0] }
  0x33   : > { %v2445_v41 = vor.u32 %v2670_v35, %v2444_v34 }
  0x35   : > { %2902 = vmatpush.bf16.msrb.mxu3 %v3166_v4  ;;  %v2121_v4 = vor.u32 %v2589_v61, %v2120_v60  ;;  %v2374_v60 = vld [vmem:[%s3239_s23 + $0x24c] sm:$0xf0] }
  0x36   : > { %v2182_v61 = vld [vmem:[%s3239_s23 + $0xcc] sm:$0xf0] }
  0x39   : > { %2903 = vmatpush.bf16.msrb.mxu3 %v3181_v7 }
  0x3d   : > { %2904 = vmatpush.bf16.msrb.mxu3 %v3200_v10  ;;  %v2420_v10 = vld [vmem:[%s3239_s23 + $0x2a0] sm:$0xf] }
  0x40   : > { %1049 = vmatmul.bf16.gmra.mxu0 %v2097_v44  ;;  %1169 = vmatmul.bf16.gmra.mxu3 %v2385_v45  ;;  %v2168_v44 = vld [vmem:[%s3239_s23 + $0xa8] sm:$0xf]  ;;  %v2601_v45 = vld [vmem:[%s3239_s23 + $0xb0] sm:$0xf0] }
  0x41   : > { %2905 = vmatpush.bf16.msrb.mxu3 %v2686_v13  ;;  %1218 = vmatmul.bf16.gmra.mxu1 %v2101_v46  ;;  %v2134_v13 = vld [vmem:[%s3239_s23 + $0x6c] sm:$0xf0]  ;;  %v2456_v46 = vld [vmem:[%s3239_s23 + $0x2e8] sm:$0xf]  ;;  %v2169_v52 = vor.u32 %v2601_v45, %v2168_v44  ;;  %v2610_v44 = vld [vmem:[%s3239_s23 + $0xf8] sm:$0xf0] }
  0x42   : > { %1387 = vmatmul.bf16.gmra.mxu2 %v2105_v47  ;;  %v2137_v18 = vor.u32 %v2591_v12, %v2134_v13  ;;  %v2673_v47 = vld [vmem:[%s3239_s23 + $0x2f0] sm:$0xf0] }
  0x43   : > { %v2457_v53 = vor.u32 %v2673_v47, %v2456_v46  ;;  %v2609_v45 = vld [vmem:[%s3239_s23 + $0xf4] sm:$0xf]  ;;  %v2398_v47 = vld [vmem:[%s3239_s23 + $0x27c] sm:$0xf0] }
  0x44   : > { %v2657_v46 = vld [vmem:[%s3239_s23 + $0x274] sm:$0xf] }
  0x45   : > { %2906 = vmatpush.bf16.msrb.mxu3 %v2685_v16 }
  0x49   : > { %2907 = vmatpush.bf16.msrb.mxu3 %v2684_v19 }
  0x4d   : > { %2908 = vmatpush.bf16.msrb.mxu3 %v2683_v22  ;;  %v2432_v22 = vld [vmem:[%s3239_s23 + $0x2b8] sm:$0xf] }
  0x4e   : > { %v2433_v29 = vor.u32 %v2667_v24, %v2432_v22 }
  0x50   : > { %1054 = vmatmul.bf16.gmra.mxu0 %v2109_v56  ;;  %1174 = vmatmul.bf16.gmra.mxu3 %v2397_v57  ;;  %v2180_v56 = vld [vmem:[%s3239_s23 + $0xc0] sm:$0xf]  ;;  %v2604_v57 = vld [vmem:[%s3239_s23 + $0xc8] sm:$0xf0] }
  0x51   : > { %2909 = vmatpush.bf16.msra.mxu3 %v3156_v2  ;;  %1223 = vmatmul.bf16.gmra.mxu1 %v2113_v58  ;;  %v2128_v2 = vld [vmem:[%s3239_s23 + $0x50] sm:$0xf]  ;;  %v2603_v58 = vld [vmem:[%s3239_s23 + $0xc4] sm:$0xf]  ;;  %v2181_v0 = vor.u32 %v2604_v57, %v2180_v56  ;;  %v2401_v56 = vor.u32 %v2657_v46, %v2398_v47  ;;  %v2236_v47 = vld [vmem:[%s3239_s23 + $0x128] sm:$0xf] }
  0x52   : > { %1392 = vmatmul.bf16.gmra.mxu2 %v2117_v59  ;;  %v2129_v7 = vor.u32 %v2590_v3, %v2128_v2  ;;  %v2651_v59 = vld [vmem:[%s3239_s23 + $0x244] sm:$0xf]  ;;  %v2185_v3 = vor.u32 %v2603_v58, %v2182_v61  ;;  %v2230_v46 = vld [vmem:[%s3239_s23 + $0x12c] sm:$0xf0] }
  0x53   : > { %v2377_v1 = vor.u32 %v2651_v59, %v2374_v60  ;;  %v2209_v59 = vor.u32 %v2609_v45, %v2206_v48  ;;  %v2213_v60 = vor.u32 %v2611_v50, %v2212_v49  ;;  %v2422_v45 = vld [vmem:[%s3239_s23 + $0x2ac] sm:$0xf0]  ;;  %v2617_v48 = vld [vmem:[%s3239_s23 + $0x130] sm:$0xf0] }
  0x55   : > { %2910 = vmatpush.bf16.msra.mxu3 %v3171_v5  ;;  %v2409_v5 = vor.u32 %v2661_v63, %v2408_v62  ;;  %v2188_v62 = vld [vmem:[%s3239_s23 + $0xc8] sm:$0xf]  ;;  %v2605_v63 = vld [vmem:[%s3239_s23 + $0xd0] sm:$0xf0] }
  0x59   : > { %2911 = vmatpush.bf16.msra.mxu3 %v3186_v8  ;;  %v2132_v8 = vld [vmem:[%s3239_s23 + $0x60] sm:$0xf] }
  0x5a   : > { %v2133_v16 = vor.u32 %v2592_v9, %v2132_v8 }
  0x5d   : > { %2912 = vmatpush.bf16.msra.mxu3 %v3205_v11  ;;  %v2664_v11 = vld [vmem:[%s3239_s23 + $0x2a8] sm:$0xf0] }
  0x60   : > { %1059 = vmatmul.bf16.gmra.mxu0 %v2121_v4  ;;  %1179 = vmatmul.bf16.gmra.mxu3 %v2409_v5  ;;  %v2189_v4 = vor.u32 %v2605_v63, %v2188_v62 }
  0x61   : > { %2913 = vmatpush.bf16.msra.mxu3 %v3219_v14  ;;  %1228 = vmatmul.bf16.gmra.mxu1 %v2125_v6  ;;  %v2140_v14 = vld [vmem:[%s3239_s23 + $0x68] sm:$0xf]  ;;  %v3350_v6 = vld [vmem:[%s3816_s2] ss:$0 sm:$0xff] }
  0x62   : > { %1397 = vmatmul.bf16.gmra.mxu2 %v2129_v7  ;;  %v2141_v19 = vor.u32 %v2593_v15, %v2140_v14  ;;  %v2192_v14 = vld [vmem:[%s3239_s23 + $0xd8] sm:$0xf]  ;;  %v2607_v15 = vld [vmem:[%s3239_s23 + $0xe0] sm:$0xf0] }
  0x63   : > { %v2193_v26 = vor.u32 %v2607_v15, %v2192_v14  ;;  %v2410_v14 = vld [vmem:[%s3239_s23 + $0x294] sm:$0xf0] }
  0x64   : > { %v2218_v15 = vld [vmem:[%s3239_s23 + $0x114] sm:$0xf0] }
  0x65   : > { %2914 = vmatpush.bf16.msra.mxu3 %v3231_v17  ;;  %v2421_v17 = vor.u32 %v2664_v11, %v2420_v10 }
  0x69   : > { %2915 = vmatpush.bf16.msra.mxu3 %v3248_v20  ;;  %v2144_v20 = vld [vmem:[%s3239_s23 + $0x78] sm:$0xf] }
  0x6a   : > { %v2145_v28 = vor.u32 %v2595_v21, %v2144_v20  ;;  %v2200_v20 = vld [vmem:[%s3239_s23 + $0xe0] sm:$0xf]  ;;  %v2608_v21 = vld [vmem:[%s3239_s23 + $0xe8] sm:$0xf0] }
  0x6d   : > { %2916 = vmatpush.bf16.msra.mxu3 %v3259_v23  ;;  %v2146_v23 = vld [vmem:[%s3239_s23 + $0x84] sm:$0xf0] }
  0x6e   : > { %v2149_v30 = vor.u32 %v2594_v25, %v2146_v23 }
  0x70   : > { %1064 = vmatmul.bf16.gmra.mxu0 %v2133_v16  ;;  %1184 = vmatmul.bf16.gmra.mxu3 %v2421_v17  ;;  %v2606_v16 = vld [vmem:[%s3239_s23 + $0xdc] sm:$0xf] }
  0x71   : > { %1233 = vmatmul.bf16.gmra.mxu1 %v2137_v18  ;;  %v2654_v17 = vld [vmem:[%s3239_s23 + $0x25c] sm:$0xf]  ;;  %v2386_v18 = vld [vmem:[%s3239_s23 + $0x264] sm:$0xf0] }
  0x72   : > { %1402 = vmatmul.bf16.gmra.mxu2 %v2141_v19  ;;  %v2194_v19 = vld [vmem:[%s3239_s23 + $0xe4] sm:$0xf0]  ;;  %v2389_v27 = vor.u32 %v2654_v17, %v2386_v18  ;;  %v2614_v17 = vld [vmem:[%s3239_s23 + $0x118] sm:$0xf0] }
  0x80   : > { %1069 = vmatmul.bf16.gmra.mxu0 %v2145_v28  ;;  %1189 = vmatmul.bf16.gmra.mxu3 %v2433_v29 }
  0x81   : > { %1238 = vmatmul.bf16.gmra.mxu1 %v2149_v30  ;;  %v2197_v30 = vor.u32 %v2606_v16, %v2194_v19  ;;  %v2224_v16 = vld [vmem:[%s3239_s23 + $0x110] sm:$0xf] }
  0x82   : > { %1407 = vmatmul.bf16.gmra.mxu2 %v2153_v31  ;;  %v2201_v31 = vor.u32 %v2608_v21, %v2200_v20 }
  0x90   : > { %1074 = vmatmul.bf16.gmra.mxu0 %v2157_v40  ;;  %1194 = vmatmul.bf16.gmra.mxu3 %v2445_v41 }
  0x91   : > { %1243 = vmatmul.bf16.gmra.mxu1 %v2161_v42 }
  0x92   : > { %1412 = vmatmul.bf16.gmra.mxu2 %v2165_v43  ;;  %v2204_v43 = vld [vmem:[%s3239_s23 + $0xf0] sm:$0xf] }
  0xa0   : > { %1079 = vmatmul.bf16.gmra.mxu0 %v2169_v52  ;;  %1199 = vmatmul.bf16.gmra.mxu3 %v2457_v53 }
  0xa1   : > { %1248 = vmatmul.bf16.gmra.mxu1 %v2173_v54 }
  0xa2   : > { %1417 = vmatmul.bf16.gmra.mxu2 %v2177_v55  ;;  %v2205_v55 = vor.u32 %v2610_v44, %v2204_v43  ;;  %v2615_v43 = vld [vmem:[%s3239_s23 + $0x124] sm:$0xf] }
  0xa3   : > { %v2663_v44 = vld [vmem:[%s3239_s23 + $0x2a4] sm:$0xf] }
  0xad   : > { %v1045_v2 = vpop.f32.mrf.mxu0 }
  0xae   : > { %v1214_v5 = vpop.f32.mrf.mxu1  ;;  %v1046_v7 = vadd.f32 %v3350_v6, %v1045_v2 }
  0xb0   : > { %1084 = vmatmul.bf16.gmra.mxu0 %v2181_v0  ;;  %1333 = vmatmul.bf16.vlgmr.msrb.gmra.mxu3 %v2377_v1  ;;  %v1215_v12 = vadd.f32 %v1214_v5, %v1046_v7 }
  0xb1   : > { %1253 = vmatmul.bf16.gmra.mxu1 %v2185_v3 }
  0xb2   : > { %1422 = vmatmul.bf16.gmra.mxu2 %v2189_v4 }
  0xb3   : > { %v3353_v8 = vpop.f32.mrf.mxu3 }
  0xb5   : > { %v1383_v9 = vpop.f32.mrf.mxu2  ;;  %v1047_v10 = vpop.f32.mrf.mxu0 }
  0xb6   : > { %v1216_v11 = vpop.f32.mrf.mxu1  ;;  %v1048_v13 = vadd.f32 %v3350_v6, %v1047_v10  ;;  %v1384_v22 = vadd.f32 %v1383_v9, %v1215_v12  ;;  %v2216_v10 = vld [vmem:[%s3239_s23 + $0x108] sm:$0xf]  ;;  %v2612_v12 = vld [vmem:[%s3239_s23 + $0x10c] sm:$0xf] }
  0xb8   : > { %v1217_v24 = vadd.f32 %v1216_v11, %v1048_v13  ;;  %v1543_v33 = vmax.f32 %v1384_v22, 0.0  ;;  %v2613_v11 = vld [vmem:[%s3239_s23 + $0x110] sm:$0xf0]  ;;  %v2660_v13 = vld [vmem:[%s3239_s23 + $0x28c] sm:$0xf] }
  0xb9   : > { %v2217_v22 = vor.u32 %v2613_v11, %v2216_v10  ;;  %v2240_v10 = vld [vmem:[%s3239_s23 + $0x138] sm:$0xf]  ;;  %v2619_v11 = vld [vmem:[%s3239_s23 + $0x140] sm:$0xf0] }
  0xbb   : > { %v3365_v25 = vpop.f32.mrf.mxu3 }
  0xbd   : > { %v1385_v23 = vpop.f32.mrf.mxu2  ;;  %v1050_v29 = vpop.f32.mrf.mxu0 }
  0xbe   : > { %v1386_v28 = vadd.f32 %v1385_v23, %v1217_v24  ;;  %v1219_v32 = vpop.f32.mrf.mxu1  ;;  %v1051_v36 = vadd.f32 %v3350_v6, %v1050_v29  ;;  %v2413_v24 = vor.u32 %v2660_v13, %v2410_v14  ;;  %v2666_v13 = vld [vmem:[%s3239_s23 + $0x2bc] sm:$0xf]  ;;  %v2434_v14 = vld [vmem:[%s3239_s23 + $0x2c4] sm:$0xf0] }
  0xc0   : > { %v1544_v34 = vmax.f32 %v1386_v28, 0.0  ;;  %1089 = vmatmul.bf16.gmra.mxu0 %v2193_v26  ;;  %1338 = vmatmul.bf16.gmra.mxu3 %v2389_v27  ;;  %v1220_v41 = vadd.f32 %v1219_v32, %v1051_v36  ;;  %v2221_v27 = vor.u32 %v2612_v12, %v2218_v15  ;;  %v2225_v28 = vor.u32 %v2614_v17, %v2224_v16  ;;  %v2618_v12 = vld [vmem:[%s3239_s23 + $0x13c] sm:$0xf]  ;;  %v2242_v15 = vld [vmem:[%s3239_s23 + $0x144] sm:$0xf0] }
  0xc1   : > { %1258 = vmatmul.bf16.gmra.mxu1 %v2197_v30  ;;  %v2248_v16 = vld [vmem:[%s3239_s23 + $0x140] sm:$0xf]  ;;  %v2620_v17 = vld [vmem:[%s3239_s23 + $0x148] sm:$0xf0] }
  0xc2   : > { %v2705_v35 = vpack.c.bf16 %v1544_v34, %v1543_v33  ;;  %1427 = vmatmul.bf16.gmra.mxu2 %v2201_v31 }
  0xc3   : > { %v3371_v37 = vpop.f32.mrf.mxu3 }
  0xc4   : > { %2706 = vst [vmem:[%s3367_s12] sm:$0xff] %v2705_v35  }
  0xc5   : > { %v1388_v38 = vpop.f32.mrf.mxu2  ;;  %v1052_v39 = vpop.f32.mrf.mxu0 }
  0xc6   : > { %v1221_v40 = vpop.f32.mrf.mxu1  ;;  %v1053_v42 = vadd.f32 %v3350_v6, %v1052_v39  ;;  %v1389_v51 = vadd.f32 %v1388_v38, %v1220_v41  ;;  %v2228_v41 = vld [vmem:[%s3239_s23 + $0x120] sm:$0xf] }
  0xc8   : > { %v1222_v52 = vadd.f32 %v1221_v40, %v1053_v42  ;;  %v1545_v62 = vmax.f32 %v1389_v51, 0.0  ;;  %v2616_v42 = vld [vmem:[%s3239_s23 + $0x128] sm:$0xf0] }
  0xcb   : > { %v3382_v53 = vpop.f32.mrf.mxu3 }
  0xcd   : > { %v1390_v54 = vpop.f32.mrf.mxu2  ;;  %v1055_v58 = vpop.f32.mrf.mxu0 }
  0xce   : > { %v1391_v57 = vadd.f32 %v1390_v54, %v1222_v52  ;;  %v1224_v61 = vpop.f32.mrf.mxu1  ;;  %v1056_v1 = vadd.f32 %v3350_v6, %v1055_v58  ;;  %v2229_v54 = vor.u32 %v2616_v42, %v2228_v41  ;;  %v2233_v58 = vor.u32 %v2615_v43, %v2230_v46  ;;  %v2252_v43 = vld [vmem:[%s3239_s23 + $0x150] sm:$0xf]  ;;  %v2669_v46 = vld [vmem:[%s3239_s23 + $0x2d4] sm:$0xf] }
  0xd0   : > { %v1546_v63 = vmax.f32 %v1391_v57, 0.0  ;;  %1094 = vmatmul.bf16.gmra.mxu0 %v2205_v55  ;;  %1343 = vmatmul.bf16.gmra.mxu3 %v2401_v56  ;;  %v1225_v7 = vadd.f32 %v1224_v61, %v1056_v1  ;;  %v2425_v55 = vor.u32 %v2663_v44, %v2422_v45  ;;  %v2622_v44 = vld [vmem:[%s3239_s23 + $0x158] sm:$0xf0]  ;;  %v2621_v45 = vld [vmem:[%s3239_s23 + $0x154] sm:$0xf] }
  0xd1   : > { %1263 = vmatmul.bf16.gmra.mxu1 %v2209_v59  ;;  %v2237_v59 = vor.u32 %v2617_v48, %v2236_v47  ;;  %v2446_v47 = vld [vmem:[%s3239_s23 + $0x2dc] sm:$0xf0] }
  0xd2   : > { %v2710_v0 = vpack.c.bf16 %v1546_v63, %v1545_v62  ;;  %1432 = vmatmul.bf16.gmra.mxu2 %v2213_v60  ;;  %v2254_v48 = vld [vmem:[%s3239_s23 + $0x15c] sm:$0xf0] }
  0xd3   : > { %v3386_v2 = vpop.f32.mrf.mxu3 }
  0xd4   : > { %2862 = vst [vmem:[%s3367_s12 + $0x8] sm:$0xff] %v2710_v0  }
  0xd5   : > { %v1393_v3 = vpop.f32.mrf.mxu2  ;;  %v1057_v4 = vpop.f32.mrf.mxu0 }
  0xd6   : > { %v1226_v5 = vpop.f32.mrf.mxu1  ;;  %v1058_v9 = vadd.f32 %v3350_v6, %v1057_v4  ;;  %v1394_v18 = vadd.f32 %v1393_v3, %v1225_v7 }
  0xd8   : > { %v1227_v19 = vadd.f32 %v1226_v5, %v1058_v9  ;;  %v1547_v30 = vmax.f32 %v1394_v18, 0.0 }
  0xdb   : > { %v3397_v20 = vpop.f32.mrf.mxu3 }
  0xdd   : > { %v1395_v21 = vpop.f32.mrf.mxu2  ;;  %v1060_v26 = vpop.f32.mrf.mxu0 }
  0xde   : > { %v1396_v23 = vadd.f32 %v1395_v21, %v1227_v19  ;;  %v1229_v29 = vpop.f32.mrf.mxu1  ;;  %v1061_v33 = vadd.f32 %v3350_v6, %v1060_v26 }
  0xe0   : > { %v1548_v31 = vmax.f32 %v1396_v23, 0.0  ;;  %1099 = vmatmul.bf16.gmra.mxu0 %v2217_v22  ;;  %1348 = vmatmul.bf16.gmra.mxu3 %v2413_v24  ;;  %v1230_v39 = vadd.f32 %v1229_v29, %v1061_v33  ;;  %v2241_v24 = vor.u32 %v2619_v11, %v2240_v10  ;;  %v2437_v23 = vor.u32 %v2666_v13, %v2434_v14  ;;  %v2264_v14 = vld [vmem:[%s3239_s23 + $0x168] sm:$0xf] }
  0xe1   : > { %1268 = vmatmul.bf16.gmra.mxu1 %v2221_v27  ;;  %v2249_v29 = vor.u32 %v2620_v17, %v2248_v16  ;;  %v2624_v16 = vld [vmem:[%s3239_s23 + $0x16c] sm:$0xf] }
  0xe2   : > { %v2715_v32 = vpack.c.bf16 %v1548_v31, %v1547_v30  ;;  %1437 = vmatmul.bf16.gmra.mxu2 %v2225_v28  ;;  %v2245_v28 = vor.u32 %v2618_v12, %v2242_v15  ;;  %v2625_v15 = vld [vmem:[%s3239_s23 + $0x170] sm:$0xf0]  ;;  %v2672_v17 = vld [vmem:[%s3239_s23 + $0x2ec] sm:$0xf] }
  0xe3   : > { %v3401_v34 = vpop.f32.mrf.mxu3 }
  0xe4   : > { %2863 = vst [vmem:[%s3367_s12 + $0x10] sm:$0xff] %v2715_v32  }
  0xe5   : > { %v1398_v35 = vpop.f32.mrf.mxu2  ;;  %v1062_v36 = vpop.f32.mrf.mxu0 }
  0xe6   : > { %v1231_v38 = vpop.f32.mrf.mxu1  ;;  %v1063_v40 = vadd.f32 %v3350_v6, %v1062_v36  ;;  %v1399_v49 = vadd.f32 %v1398_v35, %v1230_v39 }
  0xe8   : > { %v1232_v50 = vadd.f32 %v1231_v38, %v1063_v40  ;;  %v1549_v61 = vmax.f32 %v1399_v49, 0.0  ;;  %v2260_v49 = vld [vmem:[%s3239_s23 + $0x158] sm:$0xf] }
  0xeb   : > { %v3412_v51 = vpop.f32.mrf.mxu3 }
  0xed   : > { %v1400_v52 = vpop.f32.mrf.mxu2  ;;  %v1065_v57 = vpop.f32.mrf.mxu0 }
  0xee   : > { %v1401_v56 = vadd.f32 %v1400_v52, %v1232_v50  ;;  %v1234_v60 = vpop.f32.mrf.mxu1  ;;  %v1066_v0 = vadd.f32 %v3350_v6, %v1065_v57  ;;  %v2623_v50 = vld [vmem:[%s3239_s23 + $0x160] sm:$0xf0]  ;;  %v2253_v57 = vor.u32 %v2622_v44, %v2252_v43 }
  0xf0   : > { %v1550_v62 = vmax.f32 %v1401_v56, 0.0  ;;  %1104 = vmatmul.bf16.gmra.mxu0 %v2229_v54  ;;  %1353 = vmatmul.bf16.gmra.mxu3 %v2425_v55  ;;  %v1235_v7 = vadd.f32 %v1234_v60, %v1066_v0 }
  0xf1   : > { %1273 = vmatmul.bf16.gmra.mxu1 %v2233_v58  ;;  %v2449_v58 = vor.u32 %v2669_v46, %v2446_v47 }
  0xf2   : > { %v2720_v63 = vpack.c.bf16 %v1550_v62, %v1549_v61  ;;  %1442 = vmatmul.bf16.gmra.mxu2 %v2237_v59  ;;  %v2257_v61 = vor.u32 %v2621_v45, %v2254_v48  ;;  %v2261_v62 = vor.u32 %v2623_v50, %v2260_v49  ;;  %v2276_v49 = vld [vmem:[%s3239_s23 + $0x180] sm:$0xf]  ;;  %v2628_v50 = vld [vmem:[%s3239_s23 + $0x188] sm:$0xf0] }
  0xf3   : > { %v3416_v1 = vpop.f32.mrf.mxu3 }
  0xf4   : > { %2864 = vst [vmem:[%s3367_s12 + $0x18] sm:$0xff] %v2720_v63  }
  0xf5   : > { %v1403_v3 = vpop.f32.mrf.mxu2  ;;  %v1067_v4 = vpop.f32.mrf.mxu0 }
  0xf6   : > { %v1236_v5 = vpop.f32.mrf.mxu1  ;;  %v1068_v9 = vadd.f32 %v3350_v6, %v1067_v4  ;;  %v1404_v18 = vadd.f32 %v1403_v3, %v1235_v7 }
  0xf8   : > { %v1237_v19 = vadd.f32 %v1236_v5, %v1068_v9  ;;  %v1551_v31 = vmax.f32 %v1404_v18, 0.0  ;;  %v2458_v18 = vld [vmem:[%s3239_s23 + $0x2f4] sm:$0xf0] }
  0xfb   : > { %v3427_v21 = vpop.f32.mrf.mxu3 }
  0xfd   : > { %v1405_v22 = vpop.f32.mrf.mxu2  ;;  %v1070_v27 = vpop.f32.mrf.mxu0 }
  0xfe   : > { %v1406_v26 = vadd.f32 %v1405_v22, %v1237_v19  ;;  %v1239_v30 = vpop.f32.mrf.mxu1  ;;  %v1071_v35 = vadd.f32 %v3350_v6, %v1070_v27  ;;  %v2266_v19 = vld [vmem:[%s3239_s23 + $0x174] sm:$0xf0]  ;;  %v2272_v22 = vld [vmem:[%s3239_s23 + $0x170] sm:$0xf] }
 0x100   : > { %v1552_v32 = vmax.f32 %v1406_v26, 0.0  ;;  %1109 = vmatmul.bf16.gmra.mxu0 %v2241_v24  ;;  %1358 = vmatmul.bf16.gmra.mxu3 %v2437_v23  ;;  %v1240_v41 = vadd.f32 %v1239_v30, %v1071_v35  ;;  %v2626_v24 = vld [vmem:[%s3239_s23 + $0x178] sm:$0xf0]  ;;  %v2461_v30 = vor.u32 %v2672_v17, %v2458_v18 }
 0x101   : > { %1278 = vmatmul.bf16.gmra.mxu1 %v2245_v28  ;;  %v2273_v35 = vor.u32 %v2626_v24, %v2272_v22 }
 0x102   : > { %v2725_v33 = vpack.c.bf16 %v1552_v32, %v1551_v31  ;;  %1447 = vmatmul.bf16.gmra.mxu2 %v2249_v29  ;;  %v2265_v29 = vor.u32 %v2625_v15, %v2264_v14  ;;  %v1166_v15 = vadd.f32 %v3350_v6, %v3353_v8  ;;  %v2656_v8 = vld [vmem:[%s3239_s23 + $0x268] sm:$0xf0] }
 0x103   : > { %v3431_v36 = vpop.f32.mrf.mxu3 }
 0x104   : > { %2865 = vst [vmem:[%s3367_s12 + $0x20] sm:$0xff] %v2725_v33   ;;  %v2269_v33 = vor.u32 %v2624_v16, %v2266_v19 }
 0x105   : > { %v1408_v38 = vpop.f32.mrf.mxu2  ;;  %v1072_v39 = vpop.f32.mrf.mxu0 }
 0x106   : > { %v1241_v40 = vpop.f32.mrf.mxu1  ;;  %v1073_v42 = vadd.f32 %v3350_v6, %v1072_v39  ;;  %v1409_v52 = vadd.f32 %v1408_v38, %v1240_v41 }
 0x108   : > { %v1242_v54 = vadd.f32 %v1241_v40, %v1073_v42  ;;  %v1553_v0 = vmax.f32 %v1409_v52, 0.0  ;;  %v2627_v52 = vld [vmem:[%s3239_s23 + $0x184] sm:$0xf] }
 0x10b   : > { %v3442_v55 = vpop.f32.mrf.mxu3 }
 0x10d   : > { %v1410_v56 = vpop.f32.mrf.mxu2  ;;  %v1075_v60 = vpop.f32.mrf.mxu0 }
 0x10e   : > { %v1411_v59 = vadd.f32 %v1410_v56, %v1242_v54  ;;  %v1244_v63 = vpop.f32.mrf.mxu1  ;;  %v1076_v5 = vadd.f32 %v3350_v6, %v1075_v60  ;;  %v2380_v54 = vld [vmem:[%s3239_s23 + $0x248] sm:$0xf]  ;;  %v2653_v56 = vld [vmem:[%s3239_s23 + $0x250] sm:$0xf0] }
 0x110   : > { %v1554_v3 = vmax.f32 %v1411_v59, 0.0  ;;  %1114 = vmatmul.bf16.gmra.mxu0 %v2253_v57  ;;  %1363 = vmatmul.bf16.gmra.mxu3 %v2449_v58  ;;  %v1245_v12 = vadd.f32 %v1244_v63, %v1076_v5  ;;  %v2278_v57 = vld [vmem:[%s3239_s23 + $0x18c] sm:$0xf0]  ;;  %v2284_v58 = vld [vmem:[%s3239_s23 + $0x188] sm:$0xf] }
 0x111   : > { %1283 = vmatmul.bf16.gmra.mxu1 %v2257_v61  ;;  %v2629_v59 = vld [vmem:[%s3239_s23 + $0x190] sm:$0xf0] }
 0x112   : > { %v2730_v4 = vpack.c.bf16 %v1554_v3, %v1553_v0  ;;  %1452 = vmatmul.bf16.gmra.mxu2 %v2261_v62  ;;  %v2277_v0 = vor.u32 %v2628_v50, %v2276_v49  ;;  %v2381_v3 = vor.u32 %v2653_v56, %v2380_v54 }
 0x113   : > { %v3446_v7 = vpop.f32.mrf.mxu3 }
 0x114   : > { %2866 = vst [vmem:[%s3367_s12 + $0x28] sm:$0xff] %v2730_v4  }
 0x115   : > { %v1413_v9 = vpop.f32.mrf.mxu2  ;;  %v1077_v10 = vpop.f32.mrf.mxu0 }
 0x116   : > { %v1246_v11 = vpop.f32.mrf.mxu1  ;;  %v1078_v13 = vadd.f32 %v3350_v6, %v1077_v10  ;;  %v1414_v23 = vadd.f32 %v1413_v9, %v1245_v12  ;;  %v2281_v9 = vor.u32 %v2627_v52, %v2278_v57  ;;  %v2285_v10 = vor.u32 %v2629_v59, %v2284_v58 }
 0x117   : > { %v1171_v57 = vadd.f32 %v3350_v6, %v3371_v37  ;;  %v2659_v37 = vld [vmem:[%s3239_s23 + $0x280] sm:$0xf0] }
 0x118   : > { %v1247_v26 = vadd.f32 %v1246_v11, %v1078_v13  ;;  %v1555_v39 = vmax.f32 %v1414_v23, 0.0 }
 0x11b   : > { %v3457_v27 = vpop.f32.mrf.mxu3 }
 0x11d   : > { %v1415_v28 = vpop.f32.mrf.mxu2  ;;  %v1080_v32 = vpop.f32.mrf.mxu0 }
 0x11e   : > { %v1416_v31 = vadd.f32 %v1415_v28, %v1247_v26  ;;  %v1249_v38 = vpop.f32.mrf.mxu1  ;;  %v1081_v42 = vadd.f32 %v3350_v6, %v1080_v32  ;;  %v2288_v28 = vld [vmem:[%s3239_s23 + $0x198] sm:$0xf]  ;;  %v1168_v32 = vadd.f32 %v3350_v6, %v3365_v25 }
 0x120   : > { %v1556_v40 = vmax.f32 %v1416_v31, 0.0  ;;  %1119 = vmatmul.bf16.gmra.mxu0 %v2265_v29  ;;  %1368 = vmatmul.bf16.gmra.mxu3 %v2461_v30  ;;  %v1250_v47 = vadd.f32 %v1249_v38, %v1081_v42  ;;  %v2631_v29 = vld [vmem:[%s3239_s23 + $0x1a0] sm:$0xf0]  ;;  %v2630_v30 = vld [vmem:[%s3239_s23 + $0x19c] sm:$0xf] }
 0x121   : > { %1288 = vmatmul.bf16.gmra.mxu1 %v2269_v33  ;;  %v2392_v31 = vld [vmem:[%s3239_s23 + $0x260] sm:$0xf]  ;;  %v2290_v33 = vld [vmem:[%s3239_s23 + $0x1a4] sm:$0xf0]  ;;  %v2632_v38 = vld [vmem:[%s3239_s23 + $0x1a8] sm:$0xf0] }
 0x122   : > { %v2735_v41 = vpack.c.bf16 %v1556_v40, %v1555_v39  ;;  %1457 = vmatmul.bf16.gmra.mxu2 %v2273_v35  ;;  %v2296_v35 = vld [vmem:[%s3239_s23 + $0x1a0] sm:$0xf]  ;;  %v2293_v49 = vor.u32 %v2630_v30, %v2290_v33 }
 0x123   : > { %v3461_v43 = vpop.f32.mrf.mxu3  ;;  %v2297_v50 = vor.u32 %v2632_v38, %v2296_v35  ;;  %v1176_v35 = vadd.f32 %v3350_v6, %v3386_v2  ;;  %v2662_v2 = vld [vmem:[%s3239_s23 + $0x298] sm:$0xf0] }
 0x124   : > { %2867 = vst [vmem:[%s3367_s12 + $0x30] sm:$0xff] %v2735_v41  }
 0x125   : > { %v1418_v44 = vpop.f32.mrf.mxu2  ;;  %v1082_v45 = vpop.f32.mrf.mxu0 }
 0x126   : > { %v1251_v46 = vpop.f32.mrf.mxu1  ;;  %v1083_v48 = vadd.f32 %v3350_v6, %v1082_v45  ;;  %v1419_v60 = vadd.f32 %v1418_v44, %v1250_v47  ;;  %v2289_v45 = vor.u32 %v2631_v29, %v2288_v28 }
 0x128   : > { %v1252_v61 = vadd.f32 %v1251_v46, %v1083_v48  ;;  %v1557_v12 = vmax.f32 %v1419_v60, 0.0  ;;  %v2393_v46 = vor.u32 %v2656_v8, %v2392_v31 }
 0x12b   : > { %v3472_v62 = vpop.f32.mrf.mxu3 }
 0x12d   : > { %v1420_v63 = vpop.f32.mrf.mxu2  ;;  %v1085_v5 = vpop.f32.mrf.mxu0 }
 0x12e   : > { %v1421_v4 = vadd.f32 %v1420_v63, %v1252_v61  ;;  %v1254_v11 = vpop.f32.mrf.mxu1  ;;  %v1086_v16 = vadd.f32 %v3350_v6, %v1085_v5  ;;  %v2300_v5 = vld [vmem:[%s3239_s23 + $0x1b0] sm:$0xf] }
 0x130   : > { %v1558_v13 = vmax.f32 %v1421_v4, 0.0  ;;  %1124 = vmatmul.bf16.gmra.mxu0 %v2277_v0  ;;  %1502 = vmatmul.bf16.vlgmr.msra.gmra.mxu3 %v2381_v3  ;;  %v1255_v23 = vadd.f32 %v1254_v11, %v1086_v16  ;;  %v2404_v11 = vld [vmem:[%s3239_s23 + $0x278] sm:$0xf] }
 0x131   : > { %1293 = vmatmul.bf16.gmra.mxu1 %v2281_v9  ;;  %v2634_v9 = vld [vmem:[%s3239_s23 + $0x1b8] sm:$0xf0] }
 0x132   : > { %v2740_v14 = vpack.c.bf16 %v1558_v13, %v1557_v12  ;;  %1462 = vmatmul.bf16.gmra.mxu2 %v2285_v10  ;;  %v2633_v10 = vld [vmem:[%s3239_s23 + $0x1b4] sm:$0xf]  ;;  %v1173_v12 = vadd.f32 %v3350_v6, %v3382_v53  ;;  %v2302_v13 = vld [vmem:[%s3239_s23 + $0x1bc] sm:$0xf0] }
 0x133   : > { %v1334_v17 = vpop.f32.mrf.mxu3  ;;  %v2305_v30 = vor.u32 %v2633_v10, %v2302_v13 }
 0x134   : > { %2868 = vst [vmem:[%s3367_s12 + $0x38] sm:$0xff] %v2740_v14   ;;  %v3478_v18 = vadd.f32 %v1334_v17, %v1166_v15  ;;  %v2308_v14 = vld [vmem:[%s3239_s23 + $0x1b8] sm:$0xf]  ;;  %v2635_v15 = vld [vmem:[%s3239_s23 + $0x1c0] sm:$0xf0] }
 0x135   : > { %v1423_v19 = vpop.f32.mrf.mxu2  ;;  %v1087_v22 = vpop.f32.mrf.mxu0  ;;  %v2309_v31 = vor.u32 %v2635_v15, %v2308_v14  ;;  %v1181_v14 = vadd.f32 %v3350_v6, %v3401_v34  ;;  %v2665_v34 = vld [vmem:[%s3239_s23 + $0x2b0] sm:$0xf0] }
 0x136   : > { %v1256_v24 = vpop.f32.mrf.mxu1  ;;  %v1088_v26 = vadd.f32 %v3350_v6, %v1087_v22  ;;  %v1424_v39 = vadd.f32 %v1423_v19, %v1255_v23  ;;  %v2301_v23 = vor.u32 %v2634_v9, %v2300_v5 }
 0x138   : > { %v1257_v40 = vadd.f32 %v1256_v24, %v1088_v26  ;;  %v1559_v54 = vmax.f32 %v1424_v39, 0.0  ;;  %v2405_v26 = vor.u32 %v2659_v37, %v2404_v11 }
 0x13b   : > { %v1336_v41 = vpop.f32.mrf.mxu3 }
 0x13c   : > { %v3491_v42 = vadd.f32 %v1336_v41, %v1168_v32 }
 0x13d   : > { %v1425_v44 = vpop.f32.mrf.mxu2  ;;  %v1090_v48 = vpop.f32.mrf.mxu0 }
 0x13e   : > { %v1426_v47 = vadd.f32 %v1425_v44, %v1257_v40  ;;  %v1259_v52 = vpop.f32.mrf.mxu1  ;;  %v1091_v58 = vadd.f32 %v3350_v6, %v1090_v48  ;;  %v2312_v48 = vld [vmem:[%s3239_s23 + $0x1c8] sm:$0xf] }
 0x140   : > { %v1560_v56 = vmax.f32 %v1426_v47, 0.0  ;;  %1129 = vmatmul.bf16.gmra.mxu0 %v2289_v45  ;;  %1507 = vmatmul.bf16.gmra.mxu3 %v2393_v46  ;;  %v1260_v3 = vadd.f32 %v1259_v52, %v1091_v58  ;;  %v2416_v52 = vld [vmem:[%s3239_s23 + $0x290] sm:$0xf] }
 0x141   : > { %1298 = vmatmul.bf16.gmra.mxu1 %v2293_v49  ;;  %v2637_v49 = vld [vmem:[%s3239_s23 + $0x1d0] sm:$0xf0] }
 0x142   : > { %v2745_v25 = vpack.c.bf16 %v1560_v56, %v1559_v54  ;;  %1467 = vmatmul.bf16.gmra.mxu2 %v2297_v50  ;;  %v2636_v50 = vld [vmem:[%s3239_s23 + $0x1cc] sm:$0xf]  ;;  %v1178_v54 = vadd.f32 %v3350_v6, %v3397_v20  ;;  %v2314_v56 = vld [vmem:[%s3239_s23 + $0x1d4] sm:$0xf0] }
 0x143   : > { %v1339_v59 = vpop.f32.mrf.mxu3  ;;  %v2317_v10 = vor.u32 %v2636_v50, %v2314_v56 }
 0x144   : > { %2869 = vst [vmem:[%s3367_s12 + $0x40] sm:$0xff] %v2745_v25   ;;  %v3497_v60 = vadd.f32 %v1339_v59, %v1171_v57  ;;  %v2320_v25 = vld [vmem:[%s3239_s23 + $0x1d0] sm:$0xf]  ;;  %v2638_v57 = vld [vmem:[%s3239_s23 + $0x1d8] sm:$0xf0] }
 0x145   : > { %v1428_v61 = vpop.f32.mrf.mxu2  ;;  %v1092_v63 = vpop.f32.mrf.mxu0  ;;  %v2321_v11 = vor.u32 %v2638_v57, %v2320_v25  ;;  %v1186_v25 = vadd.f32 %v3350_v6, %v3416_v1  ;;  %v2668_v1 = vld [vmem:[%s3239_s23 + $0x2c8] sm:$0xf0] }
 0x146   : > { %v1261_v0 = vpop.f32.mrf.mxu1  ;;  %v1093_v4 = vadd.f32 %v3350_v6, %v1092_v63  ;;  %v1429_v16 = vadd.f32 %v1428_v61, %v1260_v3  ;;  %v2313_v3 = vor.u32 %v2637_v49, %v2312_v48 }
 0x148   : > { %v1262_v17 = vadd.f32 %v1261_v0, %v1093_v4  ;;  %v1561_v32 = vmax.f32 %v1429_v16, 0.0  ;;  %v2417_v4 = vor.u32 %v2662_v2, %v2416_v52 }
 0x14b   : > { %v1341_v19 = vpop.f32.mrf.mxu3 }
 0x14c   : > { %v3510_v22 = vadd.f32 %v1341_v19, %v1173_v12 }
 0x14d   : > { %v1430_v24 = vpop.f32.mrf.mxu2  ;;  %v1095_v29 = vpop.f32.mrf.mxu0 }
 0x14e   : > { %v1431_v28 = vadd.f32 %v1430_v24, %v1262_v17  ;;  %v1264_v8 = vpop.f32.mrf.mxu1  ;;  %v1096_v38 = vadd.f32 %v3350_v6, %v1095_v29  ;;  %v2324_v29 = vld [vmem:[%s3239_s23 + $0x1e0] sm:$0xf] }
 0x150   : > { %v1562_v33 = vmax.f32 %v1431_v28, 0.0  ;;  %1134 = vmatmul.bf16.gmra.mxu0 %v2301_v23  ;;  %1512 = vmatmul.bf16.gmra.mxu3 %v2405_v26  ;;  %v1265_v46 = vadd.f32 %v1264_v8, %v1096_v38  ;;  %v2428_v8 = vld [vmem:[%s3239_s23 + $0x2a8] sm:$0xf] }
 0x151   : > { %1303 = vmatmul.bf16.gmra.mxu1 %v2305_v30  ;;  %v2640_v30 = vld [vmem:[%s3239_s23 + $0x1e8] sm:$0xf0] }
 0x152   : > { %v2750_v53 = vpack.c.bf16 %v1562_v33, %v1561_v32  ;;  %1472 = vmatmul.bf16.gmra.mxu2 %v2309_v31  ;;  %v2639_v31 = vld [vmem:[%s3239_s23 + $0x1e4] sm:$0xf]  ;;  %v1183_v32 = vadd.f32 %v3350_v6, %v3412_v51  ;;  %v2326_v33 = vld [vmem:[%s3239_s23 + $0x1ec] sm:$0xf0] }
 0x153   : > { %v1344_v39 = vpop.f32.mrf.mxu3  ;;  %v2329_v50 = vor.u32 %v2639_v31, %v2326_v33 }
 0x154   : > { %2870 = vst [vmem:[%s3367_s12 + $0x48] sm:$0xff] %v2750_v53   ;;  %v3516_v40 = vadd.f32 %v1344_v39, %v1176_v35  ;;  %v2332_v53 = vld [vmem:[%s3239_s23 + $0x1e8] sm:$0xf]  ;;  %v2641_v35 = vld [vmem:[%s3239_s23 + $0x1f0] sm:$0xf0] }
 0x155   : > { %v1433_v41 = vpop.f32.mrf.mxu2  ;;  %v1097_v44 = vpop.f32.mrf.mxu0  ;;  %v2333_v52 = vor.u32 %v2641_v35, %v2332_v53  ;;  %v1191_v53 = vadd.f32 %v3350_v6, %v3431_v36  ;;  %v2671_v36 = vld [vmem:[%s3239_s23 + $0x2e0] sm:$0xf0] }
 0x156   : > { %v1266_v45 = vpop.f32.mrf.mxu1  ;;  %v1098_v47 = vadd.f32 %v3350_v6, %v1097_v44  ;;  %v1434_v58 = vadd.f32 %v1433_v41, %v1265_v46  ;;  %v2325_v46 = vor.u32 %v2640_v30, %v2324_v29 }
 0x158   : > { %v1267_v59 = vadd.f32 %v1266_v45, %v1098_v47  ;;  %v1563_v12 = vmax.f32 %v1434_v58, 0.0  ;;  %v2429_v47 = vor.u32 %v2665_v34, %v2428_v8 }
 0x15b   : > { %v1346_v61 = vpop.f32.mrf.mxu3 }
 0x15c   : > { %v3529_v63 = vadd.f32 %v1346_v61, %v1178_v54 }
 0x15d   : > { %v1435_v0 = vpop.f32.mrf.mxu2  ;;  %v1100_v9 = vpop.f32.mrf.mxu0 }
 0x15e   : > { %v1436_v5 = vadd.f32 %v1435_v0, %v1267_v59  ;;  %v1269_v37 = vpop.f32.mrf.mxu1  ;;  %v1101_v15 = vadd.f32 %v3350_v6, %v1100_v9  ;;  %v2336_v9 = vld [vmem:[%s3239_s23 + $0x1f8] sm:$0xf] }
 0x160   : > { %v1564_v13 = vmax.f32 %v1436_v5, 0.0  ;;  %1139 = vmatmul.bf16.gmra.mxu0 %v2313_v3  ;;  %1517 = vmatmul.bf16.gmra.mxu3 %v2417_v4  ;;  %v1270_v26 = vadd.f32 %v1269_v37, %v1101_v15  ;;  %v2440_v37 = vld [vmem:[%s3239_s23 + $0x2c0] sm:$0xf] }
 0x161   : > { %1308 = vmatmul.bf16.gmra.mxu1 %v2317_v10  ;;  %v2643_v10 = vld [vmem:[%s3239_s23 + $0x200] sm:$0xf0] }
 0x162   : > { %v2755_v20 = vpack.c.bf16 %v1564_v13, %v1563_v12  ;;  %1477 = vmatmul.bf16.gmra.mxu2 %v2321_v11  ;;  %v2642_v11 = vld [vmem:[%s3239_s23 + $0x1fc] sm:$0xf]  ;;  %v1188_v12 = vadd.f32 %v3350_v6, %v3427_v21  ;;  %v2338_v13 = vld [vmem:[%s3239_s23 + $0x204] sm:$0xf0] }
 0x163   : > { %v1349_v16 = vpop.f32.mrf.mxu3  ;;  %v2341_v31 = vor.u32 %v2642_v11, %v2338_v13 }
 0x164   : > { %2871 = vst [vmem:[%s3367_s12 + $0x50] sm:$0xff] %v2755_v20   ;;  %v3535_v17 = vadd.f32 %v1349_v16, %v1181_v14  ;;  %v2344_v20 = vld [vmem:[%s3239_s23 + $0x200] sm:$0xf]  ;;  %v2644_v14 = vld [vmem:[%s3239_s23 + $0x208] sm:$0xf0] }
 0x165   : > { %v1438_v19 = vpop.f32.mrf.mxu2  ;;  %v1102_v24 = vpop.f32.mrf.mxu0  ;;  %v2345_v8 = vor.u32 %v2644_v14, %v2344_v20  ;;  %v1196_v20 = vadd.f32 %v3350_v6, %v3446_v7 }
 0x166   : > { %v1271_v23 = vpop.f32.mrf.mxu1  ;;  %v1103_v28 = vadd.f32 %v3350_v6, %v1102_v24  ;;  %v1439_v38 = vadd.f32 %v1438_v19, %v1270_v26  ;;  %v2337_v26 = vor.u32 %v2643_v10, %v2336_v9 }
 0x168   : > { %v1272_v39 = vadd.f32 %v1271_v23, %v1103_v28  ;;  %v1565_v54 = vmax.f32 %v1439_v38, 0.0  ;;  %v2441_v28 = vor.u32 %v2668_v1, %v2440_v37 }
 0x16b   : > { %v1351_v41 = vpop.f32.mrf.mxu3 }
 0x16c   : > { %v3548_v44 = vadd.f32 %v1351_v41, %v1183_v32 }
 0x16d   : > { %v1440_v45 = vpop.f32.mrf.mxu2  ;;  %v1105_v49 = vpop.f32.mrf.mxu0 }
 0x16e   : > { %v1441_v48 = vadd.f32 %v1440_v45, %v1272_v39  ;;  %v1274_v2 = vpop.f32.mrf.mxu1  ;;  %v1106_v57 = vadd.f32 %v3350_v6, %v1105_v49  ;;  %v2348_v49 = vld [vmem:[%s3239_s23 + $0x210] sm:$0xf] }
 0x170   : > { %v1566_v56 = vmax.f32 %v1441_v48, 0.0  ;;  %1144 = vmatmul.bf16.gmra.mxu0 %v2325_v46  ;;  %1522 = vmatmul.bf16.gmra.mxu3 %v2429_v47  ;;  %v1275_v4 = vadd.f32 %v1274_v2, %v1106_v57  ;;  %v2452_v2 = vld [vmem:[%s3239_s23 + $0x2d8] sm:$0xf] }
 0x171   : > { %1313 = vmatmul.bf16.gmra.mxu1 %v2329_v50  ;;  %v2646_v50 = vld [vmem:[%s3239_s23 + $0x218] sm:$0xf0] }
 0x172   : > { %v2760_v51 = vpack.c.bf16 %v1566_v56, %v1565_v54  ;;  %1482 = vmatmul.bf16.gmra.mxu2 %v2333_v52  ;;  %v2645_v52 = vld [vmem:[%s3239_s23 + $0x214] sm:$0xf]  ;;  %v1193_v54 = vadd.f32 %v3350_v6, %v3442_v55  ;;  %v2350_v56 = vld [vmem:[%s3239_s23 + $0x21c] sm:$0xf0] }
 0x173   : > { %v1354_v58 = vpop.f32.mrf.mxu3  ;;  %v2353_v11 = vor.u32 %v2645_v52, %v2350_v56 }
 0x174   : > { %2872 = vst [vmem:[%s3367_s12 + $0x58] sm:$0xff] %v2760_v51   ;;  %v3554_v59 = vadd.f32 %v1354_v58, %v1186_v25  ;;  %v2356_v51 = vld [vmem:[%s3239_s23 + $0x218] sm:$0xf]  ;;  %v2647_v25 = vld [vmem:[%s3239_s23 + $0x220] sm:$0xf0] }
 0x175   : > { %v1443_v61 = vpop.f32.mrf.mxu2  ;;  %v1107_v0 = vpop.f32.mrf.mxu0  ;;  %v2357_v37 = vor.u32 %v2647_v25, %v2356_v51 }
 0x176   : > { %v1276_v3 = vpop.f32.mrf.mxu1  ;;  %v1108_v5 = vadd.f32 %v3350_v6, %v1107_v0  ;;  %v1444_v15 = vadd.f32 %v1443_v61, %v1275_v4  ;;  %v2349_v4 = vor.u32 %v2646_v50, %v2348_v49 }
 0x178   : > { %v1277_v16 = vadd.f32 %v1276_v3, %v1108_v5  ;;  %v1567_v32 = vmax.f32 %v1444_v15, 0.0  ;;  %v2453_v5 = vor.u32 %v2671_v36, %v2452_v2 }
 0x17b   : > { %v1356_v19 = vpop.f32.mrf.mxu3 }
 0x17c   : > { %v3567_v24 = vadd.f32 %v1356_v19, %v1188_v12 }
 0x17d   : > { %v1445_v23 = vpop.f32.mrf.mxu2  ;;  %v1110_v30 = vpop.f32.mrf.mxu0 }
 0x17e   : > { %v1446_v29 = vadd.f32 %v1445_v23, %v1277_v16  ;;  %v1279_v34 = vpop.f32.mrf.mxu1  ;;  %v1111_v35 = vadd.f32 %v3350_v6, %v1110_v30  ;;  %v2360_v30 = vld [vmem:[%s3239_s23 + $0x228] sm:$0xf] }
 0x180   : > { %v1568_v33 = vmax.f32 %v1446_v29, 0.0  ;;  %1149 = vmatmul.bf16.gmra.mxu0 %v2337_v26  ;;  %1527 = vmatmul.bf16.gmra.mxu3 %v2441_v28  ;;  %v1280_v47 = vadd.f32 %v1279_v34, %v1111_v35  ;;  %v3597_v29 = vld [vmem:[%s3816_s2] ss:$0 sm:$0xff]  ;;  %v2674_v34 = vld [vmem:[%s3239_s23 + $0x2f8] sm:$0xf0] }
 0x181   : > { %1318 = vmatmul.bf16.gmra.mxu1 %v2341_v31  ;;  %v2649_v31 = vld [vmem:[%s3239_s23 + $0x230] sm:$0xf0]  ;;  %v1201_v51 = vadd.f32 %v3597_v29, %v3461_v43 }
 0x182   : > { %v2765_v21 = vpack.c.bf16 %v1568_v33, %v1567_v32  ;;  %1487 = vmatmul.bf16.gmra.mxu2 %v2345_v8  ;;  %v2648_v8 = vld [vmem:[%s3239_s23 + $0x22c] sm:$0xf]  ;;  %v1198_v32 = vadd.f32 %v3597_v29, %v3457_v27  ;;  %v2362_v33 = vld [vmem:[%s3239_s23 + $0x234] sm:$0xf0] }
 0x183   : > { %v1359_v38 = vpop.f32.mrf.mxu3  ;;  %v2365_v52 = vor.u32 %v2648_v8, %v2362_v33 }
 0x184   : > { %2873 = vst [vmem:[%s3367_s12 + $0x60] sm:$0xff] %v2765_v21   ;;  %v3573_v39 = vadd.f32 %v1359_v38, %v1191_v53  ;;  %v2368_v21 = vld [vmem:[%s3239_s23 + $0x230] sm:$0xf]  ;;  %v2650_v53 = vld [vmem:[%s3239_s23 + $0x238] sm:$0xf0] }
 0x185   : > { %v1448_v41 = vpop.f32.mrf.mxu2  ;;  %v1112_v45 = vpop.f32.mrf.mxu0  ;;  %v2369_v2 = vor.u32 %v2650_v53, %v2368_v21 }
 0x186   : > { %v1281_v46 = vpop.f32.mrf.mxu1  ;;  %v1113_v48 = vadd.f32 %v3350_v6, %v1112_v45  ;;  %v1449_v57 = vadd.f32 %v1448_v41, %v1280_v47  ;;  %v2361_v47 = vor.u32 %v2649_v31, %v2360_v30 }
 0x188   : > { %v1282_v58 = vadd.f32 %v1281_v46, %v1113_v48  ;;  %v1569_v12 = vmax.f32 %v1449_v57, 0.0 }
 0x18b   : > { %v1361_v61 = vpop.f32.mrf.mxu3 }
 0x18c   : > { %v3586_v0 = vadd.f32 %v1361_v61, %v1193_v54 }
 0x18d   : > { %v1450_v3 = vpop.f32.mrf.mxu2  ;;  %v1115_v10 = vpop.f32.mrf.mxu0 }
 0x18e   : > { %v1451_v9 = vadd.f32 %v1450_v3, %v1282_v58  ;;  %v1284_v1 = vpop.f32.mrf.mxu1  ;;  %v1116_v14 = vadd.f32 %v3350_v6, %v1115_v10  ;;  %v2464_v6 = vld [vmem:[%s3239_s23 + $0x2f0] sm:$0xf]  ;;  %v1203_v10 = vadd.f32 %v3597_v29, %v3472_v62 }
 0x18f   : > { %v2465_v48 = vor.u32 %v2674_v34, %v2464_v6 }
 0x190   : > { %v1570_v13 = vmax.f32 %v1451_v9, 0.0  ;;  %1154 = vmatmul.bf16.gmra.mxu0 %v2349_v4  ;;  %1532 = vmatmul.bf16.gmra.mxu3 %v2453_v5  ;;  %v1285_v28 = vadd.f32 %v1284_v1, %v1116_v14 }
 0x191   : > { %1323 = vmatmul.bf16.gmra.mxu1 %v2353_v11 }
 0x192   : > { %v2770_v55 = vpack.c.bf16 %v1570_v13, %v1569_v12  ;;  %1492 = vmatmul.bf16.gmra.mxu2 %v2357_v37 }
 0x193   : > { %v1364_v15 = vpop.f32.mrf.mxu3 }
 0x194   : > { %2874 = vst [vmem:[%s3367_s12 + $0x68] sm:$0xff] %v2770_v55   ;;  %v3592_v16 = vadd.f32 %v1364_v15, %v1196_v20 }
 0x195   : > { %v1453_v19 = vpop.f32.mrf.mxu2  ;;  %v1117_v23 = vpop.f32.mrf.mxu0 }
 0x196   : > { %v1286_v26 = vpop.f32.mrf.mxu1  ;;  %v1118_v7 = vadd.f32 %v3597_v29, %v1117_v23  ;;  %v1454_v35 = vadd.f32 %v1453_v19, %v1285_v28 }
 0x198   : > { %v1287_v38 = vadd.f32 %v1286_v26, %v1118_v7  ;;  %v1571_v54 = vmax.f32 %v1454_v35, 0.0 }
 0x19b   : > { %v1366_v41 = vpop.f32.mrf.mxu3 }
 0x19c   : > { %v3610_v45 = vadd.f32 %v1366_v41, %v1198_v32 }
 0x19d   : > { %v1455_v46 = vpop.f32.mrf.mxu2  ;;  %v1120_v50 = vpop.f32.mrf.mxu0 }
 0x19e   : > { %v1456_v49 = vadd.f32 %v1455_v46, %v1287_v38  ;;  %v1289_v36 = vpop.f32.mrf.mxu1  ;;  %v1121_v25 = vadd.f32 %v3597_v29, %v1120_v50 }
 0x1a0   : > { %v1572_v56 = vmax.f32 %v1456_v49, 0.0  ;;  %1159 = vmatmul.bf16.gmra.mxu0 %v2361_v47  ;;  %1537 = vmatmul.bf16.gmra.mxu3 %v2465_v48  ;;  %v1290_v5 = vadd.f32 %v1289_v36, %v1121_v25 }
 0x1a1   : > { %1328 = vmatmul.bf16.gmra.mxu1 %v2365_v52 }
 0x1a2   : > { %v2775_v27 = vpack.c.bf16 %v1572_v56, %v1571_v54  ;;  %1497 = vmatmul.bf16.gmra.mxu2 %v2369_v2 }
 0x1a3   : > { %v1369_v57 = vpop.f32.mrf.mxu3 }
 0x1a4   : > { %2875 = vst [vmem:[%s3367_s12 + $0x70] sm:$0xff] %v2775_v27   ;;  %v3616_v58 = vadd.f32 %v1369_v57, %v1201_v51 }
 0x1a5   : > { %v1458_v61 = vpop.f32.mrf.mxu2  ;;  %v1122_v3 = vpop.f32.mrf.mxu0 }
 0x1a6   : > { %v1291_v4 = vpop.f32.mrf.mxu1  ;;  %v1123_v9 = vadd.f32 %v3597_v29, %v1122_v3  ;;  %v1459_v11 = vadd.f32 %v1458_v61, %v1290_v5 }
 0x1a8   : > { %v1292_v37 = vadd.f32 %v1291_v4, %v1123_v9  ;;  %v1573_v14 = vmax.f32 %v1459_v11, 0.0 }
 0x1ab   : > { %v1371_v1 = vpop.f32.mrf.mxu3 }
 0x1ac   : > { %v3621_v43 = vadd.f32 %v1371_v1, %v1203_v10 }
 0x1ad   : > { %v1460_v12 = vpop.f32.mrf.mxu2  ;;  %v1125_v55 = vpop.f32.mrf.mxu0 }
 0x1ae   : > { %v1461_v13 = vadd.f32 %v1460_v12, %v1292_v37  ;;  %v1294_v20 = vpop.f32.mrf.mxu1  ;;  %v1126_v23 = vadd.f32 %v3597_v29, %v1125_v55 }
 0x1b0   : > { %v1574_v15 = vmax.f32 %v1461_v13, 0.0  ;;  %v1295_v62 = vadd.f32 %v1294_v20, %v1126_v23 }
 0x1b2   : > { %v2780_v19 = vpack.c.bf16 %v1574_v15, %v1573_v14 }
 0x1b3   : > { %v1503_v26 = vpop.f32.mrf.mxu3 }
 0x1b4   : > { %2876 = vst [vmem:[%s3367_s12 + $0x78] sm:$0xff] %v2780_v19   ;;  %v1504_v8 = vadd.f32 %v1503_v26, %v3478_v18 }
 0x1b5   : > { %v1463_v28 = vpop.f32.mrf.mxu2  ;;  %v1127_v7 = vpop.f32.mrf.mxu0 }
 0x1b6   : > { %v1296_v30 = vpop.f32.mrf.mxu1  ;;  %v1128_v31 = vadd.f32 %v3597_v29, %v1127_v7  ;;  %v1464_v6 = vadd.f32 %v1463_v28, %v1295_v62  ;;  %v1591_v38 = vmax.f32 %v1504_v8, 0.0 }
 0x1b8   : > { %v1297_v34 = vadd.f32 %v1296_v30, %v1128_v31  ;;  %v1575_v47 = vmax.f32 %v1464_v6, 0.0 }
 0x1bb   : > { %v1505_v32 = vpop.f32.mrf.mxu3 }
 0x1bc   : > { %v1506_v21 = vadd.f32 %v1505_v32, %v3491_v42 }
 0x1bd   : > { %v1465_v33 = vpop.f32.mrf.mxu2  ;;  %v1130_v35 = vpop.f32.mrf.mxu0 }
 0x1be   : > { %v1466_v53 = vadd.f32 %v1465_v33, %v1297_v34  ;;  %v1592_v41 = vmax.f32 %v1506_v21, 0.0  ;;  %v1299_v46 = vpop.f32.mrf.mxu1  ;;  %v1131_v18 = vadd.f32 %v3597_v29, %v1130_v35 }
 0x1c0   : > { %v1576_v48 = vmax.f32 %v1466_v53, 0.0  ;;  %v2825_v49 = vpack.c.bf16 %v1592_v41, %v1591_v38  ;;  %v1300_v56 = vadd.f32 %v1299_v46, %v1131_v18 }
 0x1c2   : > { %v2785_v50 = vpack.c.bf16 %v1576_v48, %v1575_v47  ;;  %2885 = vst [vmem:[%s3367_s12 + $0xc0] sm:$0xff] %v2825_v49  }
 0x1c3   : > { %v1508_v52 = vpop.f32.mrf.mxu3 }
 0x1c4   : > { %2877 = vst [vmem:[%s3367_s12 + $0x80] sm:$0xff] %v2785_v50   ;;  %v1509_v27 = vadd.f32 %v1508_v52, %v3497_v60 }
 0x1c5   : > { %v1468_v2 = vpop.f32.mrf.mxu2  ;;  %v1132_v36 = vpop.f32.mrf.mxu0 }
 0x1c6   : > { %v1301_v54 = vpop.f32.mrf.mxu1  ;;  %v1133_v42 = vadd.f32 %v3597_v29, %v1132_v36  ;;  %v1469_v51 = vadd.f32 %v1468_v2, %v1300_v56  ;;  %v1593_v9 = vmax.f32 %v1509_v27, 0.0 }
 0x1c8   : > { %v1302_v25 = vadd.f32 %v1301_v54, %v1133_v42  ;;  %v1577_v37 = vmax.f32 %v1469_v51, 0.0 }
 0x1cb   : > { %v1510_v57 = vpop.f32.mrf.mxu3 }
 0x1cc   : > { %v1511_v3 = vadd.f32 %v1510_v57, %v3510_v22 }
 0x1cd   : > { %v1470_v61 = vpop.f32.mrf.mxu2  ;;  %v1135_v5 = vpop.f32.mrf.mxu0 }
 0x1ce   : > { %v1471_v4 = vadd.f32 %v1470_v61, %v1302_v25  ;;  %v1594_v10 = vmax.f32 %v1511_v3, 0.0  ;;  %v1304_v11 = vpop.f32.mrf.mxu1  ;;  %v1136_v60 = vadd.f32 %v3597_v29, %v1135_v5 }
 0x1d0   : > { %v1578_v1 = vmax.f32 %v1471_v4, 0.0  ;;  %v2830_v12 = vpack.c.bf16 %v1594_v10, %v1593_v9  ;;  %v1305_v19 = vadd.f32 %v1304_v11, %v1136_v60 }
 0x1d2   : > { %v2790_v13 = vpack.c.bf16 %v1578_v1, %v1577_v37  ;;  %2886 = vst [vmem:[%s3367_s12 + $0xc8] sm:$0xff] %v2830_v12  }
 0x1d3   : > { %v1513_v55 = vpop.f32.mrf.mxu3 }
 0x1d4   : > { %2878 = vst [vmem:[%s3367_s12 + $0x88] sm:$0xff] %v2790_v13   ;;  %v1514_v23 = vadd.f32 %v1513_v55, %v3516_v40 }
 0x1d5   : > { %v1473_v20 = vpop.f32.mrf.mxu2  ;;  %v1137_v14 = vpop.f32.mrf.mxu0 }
 0x1d6   : > { %v1306_v15 = vpop.f32.mrf.mxu1  ;;  %v1138_v22 = vadd.f32 %v3597_v29, %v1137_v14  ;;  %v1474_v26 = vadd.f32 %v1473_v20, %v1305_v19  ;;  %v1595_v6 = vmax.f32 %v1514_v23, 0.0 }
 0x1d8   : > { %v1307_v28 = vadd.f32 %v1306_v15, %v1138_v22  ;;  %v1579_v33 = vmax.f32 %v1474_v26, 0.0 }
 0x1db   : > { %v1515_v7 = vpop.f32.mrf.mxu3 }
 0x1dc   : > { %v1516_v62 = vadd.f32 %v1515_v7, %v3529_v63 }
 0x1dd   : > { %v1475_v30 = vpop.f32.mrf.mxu2  ;;  %v1140_v8 = vpop.f32.mrf.mxu0 }
 0x1de   : > { %v1476_v31 = vadd.f32 %v1475_v30, %v1307_v28  ;;  %v1596_v34 = vmax.f32 %v1516_v62, 0.0  ;;  %v1309_v32 = vpop.f32.mrf.mxu1  ;;  %v1141_v40 = vadd.f32 %v3597_v29, %v1140_v8 }
 0x1e0   : > { %v1580_v21 = vmax.f32 %v1476_v31, 0.0  ;;  %v2835_v53 = vpack.c.bf16 %v1596_v34, %v1595_v6  ;;  %v1310_v48 = vadd.f32 %v1309_v32, %v1141_v40 }
 0x1e2   : > { %v2795_v35 = vpack.c.bf16 %v1580_v21, %v1579_v33  ;;  %2887 = vst [vmem:[%s3367_s12 + $0xd0] sm:$0xff] %v2835_v53  }
 0x1e3   : > { %v1518_v38 = vpop.f32.mrf.mxu3 }
 0x1e4   : > { %2879 = vst [vmem:[%s3367_s12 + $0x90] sm:$0xff] %v2795_v35   ;;  %v1519_v49 = vadd.f32 %v1518_v38, %v3535_v17 }
 0x1e5   : > { %v1478_v41 = vpop.f32.mrf.mxu2  ;;  %v1142_v46 = vpop.f32.mrf.mxu0 }
 0x1e6   : > { %v1311_v47 = vpop.f32.mrf.mxu1  ;;  %v1143_v63 = vadd.f32 %v3597_v29, %v1142_v46  ;;  %v1479_v50 = vadd.f32 %v1478_v41, %v1310_v48  ;;  %v1597_v42 = vmax.f32 %v1519_v49, 0.0 }
 0x1e8   : > { %v1312_v18 = vadd.f32 %v1311_v47, %v1143_v63  ;;  %v1581_v25 = vmax.f32 %v1479_v50, 0.0 }
 0x1eb   : > { %v1520_v52 = vpop.f32.mrf.mxu3 }
 0x1ec   : > { %v1521_v36 = vadd.f32 %v1520_v52, %v3548_v44 }
 0x1ed   : > { %v1480_v2 = vpop.f32.mrf.mxu2  ;;  %v1145_v56 = vpop.f32.mrf.mxu0 }
 0x1ee   : > { %v1481_v54 = vadd.f32 %v1480_v2, %v1312_v18  ;;  %v1598_v27 = vmax.f32 %v1521_v36, 0.0  ;;  %v1314_v51 = vpop.f32.mrf.mxu1  ;;  %v1146_v17 = vadd.f32 %v3597_v29, %v1145_v56 }
 0x1f0   : > { %v1582_v57 = vmax.f32 %v1481_v54, 0.0  ;;  %v2840_v61 = vpack.c.bf16 %v1598_v27, %v1597_v42  ;;  %v1315_v11 = vadd.f32 %v1314_v51, %v1146_v17 }
 0x1f2   : > { %v2800_v3 = vpack.c.bf16 %v1582_v57, %v1581_v25  ;;  %2888 = vst [vmem:[%s3367_s12 + $0xd8] sm:$0xff] %v2840_v61  }
 0x1f3   : > { %v1523_v4 = vpop.f32.mrf.mxu3 }
 0x1f4   : > { %2880 = vst [vmem:[%s3367_s12 + $0x98] sm:$0xff] %v2800_v3   ;;  %v1524_v37 = vadd.f32 %v1523_v4, %v3554_v59 }
 0x1f5   : > { %v1483_v5 = vpop.f32.mrf.mxu2  ;;  %v1147_v9 = vpop.f32.mrf.mxu0 }
 0x1f6   : > { %v1316_v10 = vpop.f32.mrf.mxu1  ;;  %v1148_v44 = vadd.f32 %v3597_v29, %v1147_v9  ;;  %v1484_v1 = vadd.f32 %v1483_v5, %v1315_v11  ;;  %v1599_v15 = vmax.f32 %v1524_v37, 0.0 }
 0x1f8   : > { %v1317_v12 = vadd.f32 %v1316_v10, %v1148_v44  ;;  %v1583_v23 = vmax.f32 %v1484_v1, 0.0 }
 0x1fb   : > { %v1525_v13 = vpop.f32.mrf.mxu3 }
 0x1fc   : > { %v1526_v55 = vadd.f32 %v1525_v13, %v3567_v24 }
 0x1fd   : > { %v1485_v60 = vpop.f32.mrf.mxu2  ;;  %v1150_v14 = vpop.f32.mrf.mxu0 }
 0x1fe   : > { %v1486_v20 = vadd.f32 %v1485_v60, %v1317_v12  ;;  %v1600_v19 = vmax.f32 %v1526_v55, 0.0  ;;  %v1319_v22 = vpop.f32.mrf.mxu1  ;;  %v1151_v59 = vadd.f32 %v3597_v29, %v1150_v14 }
 0x200   : > { %v1584_v26 = vmax.f32 %v1486_v20, 0.0  ;;  %v2845_v28 = vpack.c.bf16 %v1600_v19, %v1599_v15  ;;  %v1320_v6 = vadd.f32 %v1319_v22, %v1151_v59 }
 0x202   : > { %v2805_v7 = vpack.c.bf16 %v1584_v26, %v1583_v23  ;;  %2889 = vst [vmem:[%s3367_s12 + $0xe0] sm:$0xff] %v2845_v28  }
 0x203   : > { %v1528_v30 = vpop.f32.mrf.mxu3 }
 0x204   : > { %2881 = vst [vmem:[%s3367_s12 + $0xa0] sm:$0xff] %v2805_v7   ;;  %v1529_v34 = vadd.f32 %v1528_v30, %v3573_v39 }
 0x205   : > { %v1488_v62 = vpop.f32.mrf.mxu2  ;;  %v1152_v31 = vpop.f32.mrf.mxu0 }
 0x206   : > { %v1321_v8 = vpop.f32.mrf.mxu1  ;;  %v1153_v24 = vadd.f32 %v3597_v29, %v1152_v31  ;;  %v1489_v32 = vadd.f32 %v1488_v62, %v1320_v6  ;;  %v1601_v41 = vmax.f32 %v1529_v34, 0.0 }
 0x208   : > { %v1322_v33 = vadd.f32 %v1321_v8, %v1153_v24  ;;  %v1585_v48 = vmax.f32 %v1489_v32, 0.0 }
 0x20b   : > { %v1530_v21 = vpop.f32.mrf.mxu3 }
 0x20c   : > { %v1531_v35 = vadd.f32 %v1530_v21, %v3586_v0 }
 0x20d   : > { %v1490_v53 = vpop.f32.mrf.mxu2  ;;  %v1155_v38 = vpop.f32.mrf.mxu0 }
 0x20e   : > { %v1491_v40 = vadd.f32 %v1490_v53, %v1322_v33  ;;  %v1602_v46 = vmax.f32 %v1531_v35, 0.0  ;;  %v1324_v47 = vpop.f32.mrf.mxu1  ;;  %v1156_v39 = vadd.f32 %v3597_v29, %v1155_v38 }
 0x210   : > { %v1586_v63 = vmax.f32 %v1491_v40, 0.0  ;;  %v2850_v49 = vpack.c.bf16 %v1602_v46, %v1601_v41  ;;  %v1325_v54 = vadd.f32 %v1324_v47, %v1156_v39 }
 0x212   : > { %v2810_v50 = vpack.c.bf16 %v1586_v63, %v1585_v48  ;;  %2890 = vst [vmem:[%s3367_s12 + $0xe8] sm:$0xff] %v2850_v49  }
 0x213   : > { %v1533_v18 = vpop.f32.mrf.mxu3 }
 0x214   : > { %2882 = vst [vmem:[%s3367_s12 + $0xa8] sm:$0xff] %v2810_v50   ;;  %v1534_v56 = vadd.f32 %v1533_v18, %v3592_v16 }
 0x215   : > { %v1493_v52 = vpop.f32.mrf.mxu2  ;;  %v1157_v2 = vpop.f32.mrf.mxu0 }
 0x216   : > { %v1326_v36 = vpop.f32.mrf.mxu1  ;;  %v1158_v0 = vadd.f32 %v3597_v29, %v1157_v2  ;;  %v1494_v42 = vadd.f32 %v1493_v52, %v1325_v54  ;;  %v1603_v17 = vmax.f32 %v1534_v56, 0.0 }
 0x218   : > { %v1327_v27 = vadd.f32 %v1326_v36, %v1158_v0  ;;  %v1587_v5 = vmax.f32 %v1494_v42, 0.0 }
 0x21b   : > { %v1535_v51 = vpop.f32.mrf.mxu3 }
 0x21c   : > { %v1536_v57 = vadd.f32 %v1535_v51, %v3610_v45 }
 0x21d   : > { %v1495_v25 = vpop.f32.mrf.mxu2  ;;  %v1160_v3 = vpop.f32.mrf.mxu0 }
 0x21e   : > { %v1496_v61 = vadd.f32 %v1495_v25, %v1327_v27  ;;  %v1604_v4 = vmax.f32 %v1536_v57, 0.0  ;;  %v1329_v11 = vpop.f32.mrf.mxu1  ;;  %v1161_v16 = vadd.f32 %v3597_v29, %v1160_v3 }
 0x220   : > { %v1588_v9 = vmax.f32 %v1496_v61, 0.0  ;;  %v2855_v10 = vpack.c.bf16 %v1604_v4, %v1603_v17  ;;  %v1330_v13 = vadd.f32 %v1329_v11, %v1161_v16 }
 0x222   : > { %v2815_v44 = vpack.c.bf16 %v1588_v9, %v1587_v5  ;;  %2891 = vst [vmem:[%s3367_s12 + $0xf0] sm:$0xff] %v2855_v10  }
 0x223   : > { %v1538_v37 = vpop.f32.mrf.mxu3 }
 0x224   : > { %2883 = vst [vmem:[%s3367_s12 + $0xb0] sm:$0xff] %v2815_v44   ;;  %v1539_v60 = vadd.f32 %v1538_v37, %v3616_v58 }
 0x225   : > { %v1498_v1 = vpop.f32.mrf.mxu2  ;;  %v1162_v12 = vpop.f32.mrf.mxu0 }
 0x226   : > { %v1163_v45 = vadd.f32 %v3597_v29, %v1162_v12  ;;  %v1331_v55 = vpop.f32.mrf.mxu1  ;;  %v1499_v20 = vadd.f32 %v1498_v1, %v1330_v13  ;;  %v1605_v26 = vmax.f32 %v1539_v60, 0.0 }
 0x228   : > { %v1332_v14 = vadd.f32 %v1331_v55, %v1163_v45  ;;  %v1589_v7 = vmax.f32 %v1499_v20, 0.0 }
 0x22b   : > { %v1540_v15 = vpop.f32.mrf.mxu3 }
 0x22c   : > { %v1541_v22 = vadd.f32 %v1540_v15, %v3621_v43 }
 0x22d   : > { %v1500_v19 = vpop.f32.mrf.mxu2 }
 0x22e   : > { %v1501_v23 = vadd.f32 %v1500_v19, %v1332_v14  ;;  %v1606_v28 = vmax.f32 %v1541_v22, 0.0 }
 0x230   : > { %v1590_v59 = vmax.f32 %v1501_v23, 0.0  ;;  %v2860_v30 = vpack.c.bf16 %v1606_v28, %v1605_v26  ;;  %1741 = sbr.rel (!%p3141_p4) target bundleno = 629 (0x275), region = 36 }
 0x232   : > { %v2820_v62 = vpack.c.bf16 %v1590_v59, %v1589_v7  ;;  %2892 = vst [vmem:[%s3367_s12 + $0xf8] sm:$0xff] %v2860_v30  }
 0x234   : > { %2884 = vst [vmem:[%s3367_s12 + $0xb8] sm:$0xff] %v2820_v62  }
 0x235   : > { %s3828_s18 = smov (!%p1744_p8, %s1743_s18), 64 }
 0x236   : > { %s2564_s25 = sshll.u32 %s3828_s18, 2 }
 0x237   : > { %p2567_p9 = scmp.eq.s32.totalorder %s2564_s25, 0 }
 0x238   : > { %s3685_s26 = sshrl.u32 (!%p2567_p9), %s3828_s18, 5 }
 0x239   : > { %1752 = sbr.rel (%p2567_p9) target bundleno = 629 (0x275), region = 40  ;;  %p2568_p10 = scmp.le.s32.totalorder (!%p2567_p9), %s3685_s26, 0 }
 0x23e   : > { %2031 = sbr.rel (%p2568_p10) target bundleno = 612 (0x264), region = 112  ;;  %s3819_s15 = smov (!%p2568_p10), %s3679_s24 }
 0x23f   : > { %s3820_s20 = smov (!%p2568_p10), %s3367_s12  ;;  %s3694_s14 = smov (!%p2568_p10), 0  }
 0x240   : > { %s3696_s27 = smov (!%p2568_p10), 0  }
 0x243 LB: >> { %v1769_v29 = vld [vmem:[%s3070_s20] sm:$0xf]  ;;  %v1771_v58 = vld [vmem:[%s3070_s20 + $0x4] sm:$0xf]  ;;  %v1773_v43 = vld [vmem:[%s3070_s20 + $0x8] sm:$0xf]  ;;  %s3078_s27 = sphi %s3696_s27, %s1763_s27   ;;  %s3074_s14 = sphi %s3694_s14, %s3823_s14   ;;  %s3070_s20 = sphi %s3820_s20, %s3822_s20   ;;  %s3066_s15 = sphi %s3819_s15, %s3821_s15  }
 0x244   : >> { %1770 = vst [vmem:[%s3066_s15] sm:$0xf] %v1769_v29  ;;  %v1775_v31 = vld [vmem:[%s3070_s20 + $0xc] sm:$0xf]  ;;  %v1777_v8 = vld [vmem:[%s3070_s20 + $0x10] sm:$0xf]  ;;  %s1833_s28 = sadd.s32 1, %s3074_s14 }
 0x245   : >> { %1772 = vst [vmem:[%s3066_s15 + $0x4] sm:$0xf] %v1771_v58  ;;  %v1779_v6 = vld [vmem:[%s3070_s20 + $0x14] sm:$0xf]  ;;  %v1781_v24 = vld [vmem:[%s3070_s20 + $0x18] sm:$0xf]  ;;  %p1834_p11 = scmp.ge.s32.totalorder %s1833_s28, %s3685_s26 }
 0x246   : >> { %1774 = vst [vmem:[%s3066_s15 + $0x8] sm:$0xf] %v1773_v43  ;;  %v1783_v34 = vld [vmem:[%s3070_s20 + $0x1c] sm:$0xf]  ;;  %v1785_v32 = vld [vmem:[%s3070_s20 + $0x20] sm:$0xf] }
 0x247   : >> { %1776 = vst [vmem:[%s3066_s15 + $0xc] sm:$0xf] %v1775_v31  ;;  %v1787_v33 = vld [vmem:[%s3070_s20 + $0x24] sm:$0xf]  ;;  %v1789_v21 = vld [vmem:[%s3070_s20 + $0x28] sm:$0xf] }
 0x248   : >> { %1778 = vst [vmem:[%s3066_s15 + $0x10] sm:$0xf] %v1777_v8  ;;  %v1791_v53 = vld [vmem:[%s3070_s20 + $0x2c] sm:$0xf]  ;;  %v1793_v35 = vld [vmem:[%s3070_s20 + $0x30] sm:$0xf] }
 0x249   : >> { %1780 = vst [vmem:[%s3066_s15 + $0x14] sm:$0xf] %v1779_v6  ;;  %v1795_v40 = vld [vmem:[%s3070_s20 + $0x34] sm:$0xf]  ;;  %v1797_v38 = vld [vmem:[%s3070_s20 + $0x38] sm:$0xf] }
 0x24a   : >> { %1782 = vst [vmem:[%s3066_s15 + $0x18] sm:$0xf] %v1781_v24  ;;  %v1799_v41 = vld [vmem:[%s3070_s20 + $0x3c] sm:$0xf]  ;;  %v1801_v46 = vld [vmem:[%s3070_s20 + $0x40] sm:$0xf] }
 0x24b   : >> { %1784 = vst [vmem:[%s3066_s15 + $0x1c] sm:$0xf] %v1783_v34  ;;  %v1803_v47 = vld [vmem:[%s3070_s20 + $0x44] sm:$0xf]  ;;  %s3830_s28 = smov (%p1834_p11, %s1833_s28), 0  ;;  %s1763_s27 = sadd.s32 1, %s3078_s27  }
 0x24c   : >> { %1786 = vst [vmem:[%s3066_s15 + $0x20] sm:$0xf] %v1785_v32  ;;  %v1805_v48 = vld [vmem:[%s3070_s20 + $0x48] sm:$0xf]  ;;  %v1807_v63 = vld [vmem:[%s3070_s20 + $0x4c] sm:$0xf]  ;;  %p1762_p12 = scmp.ge.s32.totalorder %s1763_s27, %s3685_s26  ;;  %s3823_s14 = smov %s3830_s28 }
 0x24d   : >> { %1788 = vst [vmem:[%s3066_s15 + $0x24] sm:$0xf] %v1787_v33  ;;  %s2569_s29 = sshll.u32 %s3830_s28, 7  ;;  %v1809_v49 = vld [vmem:[%s3070_s20 + $0x50] sm:$0xf] }
 0x24e   : >> { %1790 = vst [vmem:[%s3066_s15 + $0x28] sm:$0xf] %v1789_v21  ;;  %s3755_s30 = scalar_lea.vmem %s3367_s12, %s2569_s29 [#allocation2]   ;;  %s1839_s4 = scalar_lea.vmem %s3679_s24, %s2569_s29   ;;  %v1811_v50 = vld [vmem:[%s3070_s20 + $0x54] sm:$0xf]  ;;  %v1813_v39 = vld [vmem:[%s3070_s20 + $0x58] sm:$0xf] }
 0x24f   : >> { %1792 = vst [vmem:[%s3066_s15 + $0x2c] sm:$0xf] %v1791_v53  ;;  %v1815_v18 = vld [vmem:[%s3070_s20 + $0x5c] sm:$0xf]  ;;  %v1817_v52 = vld [vmem:[%s3070_s20 + $0x60] sm:$0xf] }
 0x250   : >> { %1794 = vst [vmem:[%s3066_s15 + $0x30] sm:$0xf] %v1793_v35  ;;  %v1819_v2 = vld [vmem:[%s3070_s20 + $0x64] sm:$0xf]  ;;  %v1821_v36 = vld [vmem:[%s3070_s20 + $0x68] sm:$0xf] }
 0x251   : >> { %1796 = vst [vmem:[%s3066_s15 + $0x34] sm:$0xf] %v1795_v40  ;;  %v1823_v54 = vld [vmem:[%s3070_s20 + $0x6c] sm:$0xf]  ;;  %v1825_v0 = vld [vmem:[%s3070_s20 + $0x70] sm:$0xf] }
 0x252   : >> { %1798 = vst [vmem:[%s3066_s15 + $0x38] sm:$0xf] %v1797_v38  ;;  %v1827_v56 = vld [vmem:[%s3070_s20 + $0x74] sm:$0xf]  ;;  %v1829_v42 = vld [vmem:[%s3070_s20 + $0x78] sm:$0xf] }
 0x253   : >> { %1800 = vst [vmem:[%s3066_s15 + $0x3c] sm:$0xf] %v1799_v41  ;;  %v1831_v27 = vld [vmem:[%s3070_s20 + $0x7c] sm:$0xf]  ;;  %s3822_s20 = smov %s3755_s30 }
 0x254   : >> { %1802 = vst [vmem:[%s3066_s15 + $0x40] sm:$0xf] %v1801_v46 }
 0x255   : >> { %1804 = vst [vmem:[%s3066_s15 + $0x44] sm:$0xf] %v1803_v47 }
 0x256   : >> { %1806 = vst [vmem:[%s3066_s15 + $0x48] sm:$0xf] %v1805_v48 }
 0x257   : >> { %1808 = vst [vmem:[%s3066_s15 + $0x4c] sm:$0xf] %v1807_v63 }
 0x258   : >> { %1810 = vst [vmem:[%s3066_s15 + $0x50] sm:$0xf] %v1809_v49 }
 0x259   : >> { %1812 = vst [vmem:[%s3066_s15 + $0x54] sm:$0xf] %v1811_v50 }
 0x25a   : >> { %1814 = vst [vmem:[%s3066_s15 + $0x58] sm:$0xf] %v1813_v39 }
 0x25b   : >> { %1816 = vst [vmem:[%s3066_s15 + $0x5c] sm:$0xf] %v1815_v18 }
 0x25c   : >> { %1818 = vst [vmem:[%s3066_s15 + $0x60] sm:$0xf] %v1817_v52 }
 0x25d   : >> { %1820 = vst [vmem:[%s3066_s15 + $0x64] sm:$0xf] %v1819_v2 }
 0x25e   : >> { %1822 = vst [vmem:[%s3066_s15 + $0x68] sm:$0xf] %v1821_v36 }
 0x25f   : >> { %1824 = vst [vmem:[%s3066_s15 + $0x6c] sm:$0xf] %v1823_v54  ;;  %1765 = sbr.rel (!%p1762_p12) target bundleno = 579 (0x243), region = 118 }
 0x260   : >> { %1826 = vst [vmem:[%s3066_s15 + $0x70] sm:$0xf] %v1825_v0 }
 0x261   : >> { %1828 = vst [vmem:[%s3066_s15 + $0x74] sm:$0xf] %v1827_v56 }
 0x262   : >> { %1830 = vst [vmem:[%s3066_s15 + $0x78] sm:$0xf] %v1829_v42 }
 0x263   : >> { %1832 = vst [vmem:[%s3066_s15 + $0x7c] sm:$0xf] %v1831_v27  ;;  %s3821_s15 = smov %s1839_s4 }
 0x264 PF: > { %s3796_s5 = sand.u32 31, %s3828_s18   ;;  %s2700_s6 = sshll.u32 %s3685_s26, 7 }
 0x265   : > { %s1844_s7 = scalar_lea.vmem %s3367_s12, %s2700_s6 [#allocation2]   ;;  %s1846_s8 = scalar_lea.vmem %s3679_s24, %s2700_s6  }
 0x266   : > { %p2574_p13 = scmp.le.s32.totalorder %s3796_s5, 0 }
 0x267   : > { %s3080_s9 = smov (!%p2574_p13), %s1846_s8   ;;  %s3084_s10 = smov (!%p2574_p13), %s1844_s7  }
 0x268   : > { %2045 = sbr.rel (%p2574_p13) target bundleno = 629 (0x275), region = 123  ;;  %s3088_s11 = smov (!%p2574_p13), 0  }
 0x269   : > { %s3092_s17 = smov (!%p2574_p13), 0  }
 0x26d LB: >> { %v1856_v51 = vld [vmem:[%s3086_s10] sm:$0xf]  ;;  %s1858_s18 = sadd.s32 1, %s3090_s11  ;;  %s1850_s17 = sadd.s32 1, %s3094_s17   ;;  %s3094_s17 = sphi %s3092_s17, %s1850_s17   ;;  %s3090_s11 = sphi %s3088_s11, %s3089_s11   ;;  %s3086_s10 = sphi %s3084_s10, %s1863_s10   ;;  %s3082_s9 = sphi %s3080_s9, %s1864_s9  }
 0x26e   : >> { %1857 = vst [vmem:[%s3082_s9] sm:$0xf] %v1856_v51  ;;  %p1859_p0 = scmp.ge.s32.totalorder %s1858_s18, %s3796_s5  ;;  %p1849_p1 = scmp.ge.s32.totalorder %s1850_s17, %s3796_s5 }
 0x270   : >> { %s3832_s18 = smov (%p1859_p0, %s1858_s18), 0  ;;  %1852 = sbr.rel (!%p1849_p1) target bundleno = 621 (0x26d), region = 129 }
 0x271   : >> { %s2575_s12 = sshll.u32 %s3832_s18, 2  ;;  %s3089_s11 = smov %s3832_s18  }
 0x272   : >> { %s1863_s10 = scalar_lea.vmem %s1844_s7, %s2575_s12 [#allocation2]   ;;  %s1864_s9 = scalar_lea.vmem %s1846_s8, %s2575_s12  }
 0x275 PF: > { %p10_p2 = scmp.ge.s32.totalorder %s3131_s16, 4   ;;  %s3824_s12 = smov %s3058_s13 }
 0x276   : > { %s3825_s13 = smov %s3139_s19  ;;  %s3826_s14 = smov %s3131_s16 }
 0x277   :  { %12 = sbr.rel (!%p10_p2) target bundleno = 2 (0x2), region = 140 }

// kernel: lpips_forward.8
= control target key start
LH: loop header
LB: loop body
LE: loop exit
PB: predicated region body
PF: predicated region fallthrough
CT: control target
= control target key end

     0   :  { %s1374_s12 = smov 0   ;;  %s1376_s13 = smov 0   ;;  %s1766_s0 = inlined_call_operand.vmem [shape: bf16[196,1664], index: 0, kind: input, shape index: {}]   ;;  %s1767_s1 = inlined_call_operand.vmem [shape: bf16[1664,192], index: 1, kind: input, shape index: {}]   ;;  %s1768_s2 = inlined_call_operand.vmem [shape: f32[1,192], index: 2, kind: input, shape index: {}]   ;;  %s1769_s3 = inlined_call_operand.vmem [shape: bf16[196,192], index: 3, kind: output, shape index: {}]  }
   0x1   :  { %s1378_s14 = smov 0  }
   0x2 LB: > { %s1390_s15 = sadd.s32 4294967295, %s1351_s14   ;;  %s1393_s16 = sadd.s32 1, %s1351_s14   ;;  %s1351_s14 = sphi %s1378_s14, %s1774_s14   ;;  %s1347_s13 = sphi %s1376_s13, %s1773_s13   ;;  %s1343_s12 = sphi %s1374_s12, %s1772_s12  }
   0x3   : > { %s17_s17 = ssub.s32 %s1351_s14, %s1393_s16  ;;  %s20_s18 = sadd.s32 1, %s1347_s13 }
   0x4   : > { %p18_p0 = scmp.eq.s32.totalorder %s17_s17, 0  ;;  %p27_p1 = scmp.ne.s32.totalorder %s1347_s13, %s1343_s12 }
   0x5   : > { %p28_p2 = scmp.eq.s32.totalorder %s1351_s14, 0  ;;  %p1135_p4 = scmp.ge.s32.totalorder %s1351_s14, 13 }
   0x6   : > { %s1402_s19 = scalar_select %p18_p0, %s1347_s13, %s20_s18  }
   0x7   : > { %p29_p3 = por %p28_p2, %p27_p1  ;;  %124 = sbr.rel (%p1135_p4) target bundleno = 42 (0x2a), region = 20 }
   0xc   : > { %127 = sbr.rel (!%p29_p3) target bundleno = 42 (0x2a), region = 24  ;;  %s129_s20 = sand.u32 (%p29_p3), 1, %s1347_s13  }
   0xd   : > { %s1136_s21 = sshll.u32 (%p29_p3), %s1351_s14, 2  ;;  %s1302_s22 = smul.u32 (%p29_p3), 100, %s129_s20 }
   0xe   : > { %s1410_s25 = scalar_lea.vmem (%p29_p3), %s1766_s0, %s1136_s21 }
   0xf   : > { %v150_v0 = vld [vmem:[%s1410_s25] sm:$0xf] (%p29_p3)  ;;  %v152_v1 = vld [vmem:[%s1410_s25 + $0x34] sm:$0xf] (%p29_p3)  ;;  %v154_v2 = vld [vmem:[%s1410_s25 + $0x68] sm:$0xf] (%p29_p3) }
  0x10   : > { %s1415_s26 = scalar_lea.vmem (%p29_p3), [#allocation3], %s1302_s22  ;;  %v156_v3 = vld [vmem:[%s1410_s25 + $0x9c] sm:$0xf] (%p29_p3)  ;;  %v158_v4 = vld [vmem:[%s1410_s25 + $0xd0] sm:$0xf] (%p29_p3) }
  0x11   : > { %151 = vst [vmem:[%s1415_s26] sm:$0xf] %v150_v0  ;;  %v160_v5 = vld [vmem:[%s1410_s25 + $0x104] sm:$0xf]  ;;  %v162_v6 = vld [vmem:[%s1410_s25 + $0x138] sm:$0xf] }
  0x12   : > { %153 = vst [vmem:[%s1415_s26 + $0x4] sm:$0xf] %v152_v1  ;;  %v164_v7 = vld [vmem:[%s1410_s25 + $0x16c] sm:$0xf]  ;;  %v166_v8 = vld [vmem:[%s1410_s25 + $0x1a0] sm:$0xf] }
  0x13   : > { %155 = vst [vmem:[%s1415_s26 + $0x8] sm:$0xf] %v154_v2  ;;  %v168_v9 = vld [vmem:[%s1410_s25 + $0x1d4] sm:$0xf]  ;;  %v170_v10 = vld [vmem:[%s1410_s25 + $0x208] sm:$0xf] }
  0x14   : > { %157 = vst [vmem:[%s1415_s26 + $0xc] sm:$0xf] %v156_v3  ;;  %v172_v11 = vld [vmem:[%s1410_s25 + $0x23c] sm:$0xf]  ;;  %v174_v12 = vld [vmem:[%s1410_s25 + $0x270] sm:$0xf] }
  0x15   : > { %159 = vst [vmem:[%s1415_s26 + $0x10] sm:$0xf] %v158_v4  ;;  %v176_v13 = vld [vmem:[%s1410_s25 + $0x2a4] sm:$0xf]  ;;  %v178_v14 = vld [vmem:[%s1410_s25 + $0x2d8] sm:$0xf] }
  0x16   : > { %161 = vst [vmem:[%s1415_s26 + $0x14] sm:$0xf] %v160_v5  ;;  %v180_v15 = vld [vmem:[%s1410_s25 + $0x30c] sm:$0xf]  ;;  %v182_v16 = vld [vmem:[%s1410_s25 + $0x340] sm:$0xf] }
  0x17   : > { %163 = vst [vmem:[%s1415_s26 + $0x18] sm:$0xf] %v162_v6  ;;  %v184_v17 = vld [vmem:[%s1410_s25 + $0x374] sm:$0xf]  ;;  %v186_v18 = vld [vmem:[%s1410_s25 + $0x3a8] sm:$0xf] }
  0x18   : > { %165 = vst [vmem:[%s1415_s26 + $0x1c] sm:$0xf] %v164_v7  ;;  %v188_v19 = vld [vmem:[%s1410_s25 + $0x3dc] sm:$0xf]  ;;  %v190_v20 = vld [vmem:[%s1410_s25 + $0x410] sm:$0xf] }
  0x19   : > { %167 = vst [vmem:[%s1415_s26 + $0x20] sm:$0xf] %v166_v8  ;;  %v192_v21 = vld [vmem:[%s1410_s25 + $0x444] sm:$0xf]  ;;  %v194_v22 = vld [vmem:[%s1410_s25 + $0x478] sm:$0xf] }
  0x1a   : > { %169 = vst [vmem:[%s1415_s26 + $0x24] sm:$0xf] %v168_v9  ;;  %v196_v23 = vld [vmem:[%s1410_s25 + $0x4ac] sm:$0xf]  ;;  %v198_v24 = vld [vmem:[%s1410_s25 + $0x4e0] sm:$0xf] }
  0x1b   : > { %171 = vst [vmem:[%s1415_s26 + $0x28] sm:$0xf] %v170_v10 }
  0x1c   : > { %173 = vst [vmem:[%s1415_s26 + $0x2c] sm:$0xf] %v172_v11 }
  0x1d   : > { %175 = vst [vmem:[%s1415_s26 + $0x30] sm:$0xf] %v174_v12 }
  0x1e   : > { %177 = vst [vmem:[%s1415_s26 + $0x34] sm:$0xf] %v176_v13 }
  0x1f   : > { %179 = vst [vmem:[%s1415_s26 + $0x38] sm:$0xf] %v178_v14 }
  0x20   : > { %181 = vst [vmem:[%s1415_s26 + $0x3c] sm:$0xf] %v180_v15 }
  0x21   : > { %183 = vst [vmem:[%s1415_s26 + $0x40] sm:$0xf] %v182_v16 }
  0x22   : > { %185 = vst [vmem:[%s1415_s26 + $0x44] sm:$0xf] %v184_v17 }
  0x23   : > { %187 = vst [vmem:[%s1415_s26 + $0x48] sm:$0xf] %v186_v18 }
  0x24   : > { %189 = vst [vmem:[%s1415_s26 + $0x4c] sm:$0xf] %v188_v19 }
  0x25   : > { %191 = vst [vmem:[%s1415_s26 + $0x50] sm:$0xf] %v190_v20 }
  0x26   : > { %193 = vst [vmem:[%s1415_s26 + $0x54] sm:$0xf] %v192_v21 }
  0x27   : > { %195 = vst [vmem:[%s1415_s26 + $0x58] sm:$0xf] %v194_v22 }
  0x28   : > { %197 = vst [vmem:[%s1415_s26 + $0x5c] sm:$0xf] %v196_v23 }
  0x29   : > { %199 = vst [vmem:[%s1415_s26 + $0x60] sm:$0xf] %v198_v24 }
  0x2a PF: > { %p1137_p5 = scmp.ge.s32.totalorder %s1351_s14, 1  ;;  %p282_p6 = scmp.lt.s32.totalorder %s1351_s14, 14 }
  0x2c   : > { %p283_p7 = pnand %p1137_p5, %p282_p6 }
  0x2d   : > { %s289_s27 = sand.u32 (!%p283_p7), 1, %s1343_s12   ;;  %s1138_s28 = sshll.u32 (!%p283_p7), %s1390_s15, 4 }
  0x2e   : > { %286 = sbr.rel (%p283_p7) target bundleno = 417 (0x1a1), region = 69  ;;  %p314_p8 = scmp.lt.s32.totalorder (!%p283_p7), %s1138_s28, 207 }
  0x2f   : > { %s1303_s29 = smul.u32 (!%p283_p7), 100, %s289_s27  ;;  %p1141_p9 = scmp.ne.s32.totalorder (!%p283_p7), %s1390_s15, 0 }
  0x31   : > { %s1473_s7 = scalar_lea.vmem (!%p283_p7), [#allocation3], %s1303_s29 }
  0x33   : > { %s1776_s28 = smov (!%p314_p8, %s1138_s28), 207  ;;  %323 = sbr.rel (%p1141_p9) target bundleno = 107 (0x6b), region = 77 }
  0x34   : > { %s1257_s30 = sshll.u32 %s1776_s28, 3 }
  0x35   : > { %s1471_s6 = scalar_lea.vmem %s1767_s1, %s1257_s30 }
  0x38   : > { %v1353_v25 = vmov 0.0   ;;  %vm325_vm0 = vcmask 523264   ;;  %vm374_vm1 = vcmask 519168  }
  0x39   : > { %324 = vst [vmem:[#allocation2] sm:$0xff] %v1353_v25 }
  0x3a   : > { %327 = vst [vmem:[#allocation2 + $0x10] sm:$0xff] %v1353_v25 }
  0x3b   : > { %329 = vst [vmem:[#allocation2 + $0x20] sm:$0xff] %v1353_v25 }
  0x3c   : > { %331 = vst [vmem:[#allocation2 + $0x30] sm:$0xff] %v1353_v25 }
  0x3d   : > { %333 = vst [vmem:[#allocation2 + $0x40] sm:$0xff] %v1353_v25 }
  0x3e   : > { %335 = vst [vmem:[#allocation2 + $0x50] sm:$0xff] %v1353_v25 }
  0x3f   : > { %337 = vst [vmem:[#allocation2 + $0x60] sm:$0xff] %v1353_v25 }
  0x40   : > { %339 = vst [vmem:[#allocation2 + $0x70] sm:$0xff] %v1353_v25 }
  0x41   : > { %341 = vst [vmem:[#allocation2 + $0x80] sm:$0xff] %v1353_v25 }
  0x42   : > { %343 = vst [vmem:[#allocation2 + $0x90] sm:$0xff] %v1353_v25 }
  0x43   : > { %345 = vst [vmem:[#allocation2 + $0xa0] sm:$0xff] %v1353_v25 }
  0x44   : > { %347 = vst [vmem:[#allocation2 + $0xb0] sm:$0xff] %v1353_v25 }
  0x45   : > { %349 = vst [vmem:[#allocation2 + $0xc0] sm:$0xff] %v1353_v25 }
  0x46   : > { %351 = vst [vmem:[#allocation2 + $0xd0] sm:$0xff] %v1353_v25 }
  0x47   : > { %353 = vst [vmem:[#allocation2 + $0xe0] sm:$0xff] %v1353_v25 }
  0x48   : > { %355 = vst [vmem:[#allocation2 + $0xf0] sm:$0xff] %v1353_v25 }
  0x49   : > { %357 = vst [vmem:[#allocation2 + $0x100] sm:$0xff] %v1353_v25 }
  0x4a   : > { %359 = vst [vmem:[#allocation2 + $0x110] sm:$0xff] %v1353_v25 }
  0x4b   : > { %361 = vst [vmem:[#allocation2 + $0x120] sm:$0xff] %v1353_v25 }
  0x4c   : > { %363 = vst [vmem:[#allocation2 + $0x130] sm:$0xff] %v1353_v25 }
  0x4d   : > { %365 = vst [vmem:[#allocation2 + $0x140] sm:$0xff] %v1353_v25 }
  0x4e   : > { %367 = vst [vmem:[#allocation2 + $0x150] sm:$0xff] %v1353_v25 }
  0x4f   : > { %369 = vst [vmem:[#allocation2 + $0x160] sm:$0xff] %v1353_v25 }
  0x50   : > { %371 = vst [vmem:[#allocation2 + $0x170] sm:$0xff] %v1353_v25 }
  0x51   : > { %373 = vst [vmem:[#allocation2 + $0x180] sm:$0xf] %v1353_v25 }
  0x52   : > { %326 = vst.msk [vmem:[#allocation2 + $0x8] sm:$0xff] %vm325_vm0, %v1353_v25 }
  0x53   : > { %328 = vst.msk [vmem:[#allocation2 + $0x18] sm:$0xff] %vm325_vm0, %v1353_v25 }
  0x54   : > { %330 = vst.msk [vmem:[#allocation2 + $0x28] sm:$0xff] %vm325_vm0, %v1353_v25 }
  0x55   : > { %332 = vst.msk [vmem:[#allocation2 + $0x38] sm:$0xff] %vm325_vm0, %v1353_v25 }
  0x56   : > { %334 = vst.msk [vmem:[#allocation2 + $0x48] sm:$0xff] %vm325_vm0, %v1353_v25 }
  0x57   : > { %336 = vst.msk [vmem:[#allocation2 + $0x58] sm:$0xff] %vm325_vm0, %v1353_v25 }
  0x58   : > { %338 = vst.msk [vmem:[#allocation2 + $0x68] sm:$0xff] %vm325_vm0, %v1353_v25 }
  0x59   : > { %340 = vst.msk [vmem:[#allocation2 + $0x78] sm:$0xff] %vm325_vm0, %v1353_v25 }
  0x5a   : > { %342 = vst.msk [vmem:[#allocation2 + $0x88] sm:$0xff] %vm325_vm0, %v1353_v25 }
  0x5b   : > { %344 = vst.msk [vmem:[#allocation2 + $0x98] sm:$0xff] %vm325_vm0, %v1353_v25 }
  0x5c   : > { %346 = vst.msk [vmem:[#allocation2 + $0xa8] sm:$0xff] %vm325_vm0, %v1353_v25 }
  0x5d   : > { %348 = vst.msk [vmem:[#allocation2 + $0xb8] sm:$0xff] %vm325_vm0, %v1353_v25 }
  0x5e   : > { %350 = vst.msk [vmem:[#allocation2 + $0xc8] sm:$0xff] %vm325_vm0, %v1353_v25 }
  0x5f   : > { %352 = vst.msk [vmem:[#allocation2 + $0xd8] sm:$0xff] %vm325_vm0, %v1353_v25 }
  0x60   : > { %354 = vst.msk [vmem:[#allocation2 + $0xe8] sm:$0xff] %vm325_vm0, %v1353_v25 }
  0x61   : > { %356 = vst.msk [vmem:[#allocation2 + $0xf8] sm:$0xff] %vm325_vm0, %v1353_v25 }
  0x62   : > { %358 = vst.msk [vmem:[#allocation2 + $0x108] sm:$0xff] %vm325_vm0, %v1353_v25 }
  0x63   : > { %360 = vst.msk [vmem:[#allocation2 + $0x118] sm:$0xff] %vm325_vm0, %v1353_v25 }
  0x64   : > { %362 = vst.msk [vmem:[#allocation2 + $0x128] sm:$0xff] %vm325_vm0, %v1353_v25 }
  0x65   : > { %364 = vst.msk [vmem:[#allocation2 + $0x138] sm:$0xff] %vm325_vm0, %v1353_v25 }
  0x66   : > { %366 = vst.msk [vmem:[#allocation2 + $0x148] sm:$0xff] %vm325_vm0, %v1353_v25 }
  0x67   : > { %368 = vst.msk [vmem:[#allocation2 + $0x158] sm:$0xff] %vm325_vm0, %v1353_v25 }
  0x68   : > { %370 = vst.msk [vmem:[#allocation2 + $0x168] sm:$0xff] %vm325_vm0, %v1353_v25 }
  0x69   : > { %372 = vst.msk [vmem:[#allocation2 + $0x178] sm:$0xff] %vm325_vm0, %v1353_v25 }
  0x6a   : > { %375 = vst.msk [vmem:[#allocation2 + $0x188] sm:$0xf] %vm374_vm1, %v1353_v25 }
  0x6b PF: > { %v1248_v26 = vld [vmem:[%s1471_s6 + $0x70] sm:$0xf]  ;;  %v1285_v27 = vld [vmem:[%s1471_s6 + $0x74] sm:$0xf0]  ;;  %v1284_v28 = vld [vmem:[%s1471_s6 + $0x74] sm:$0xf] }
  0x6c   : > { %v1249_v29 = vor.u32 %v1285_v27, %v1248_v26  ;;  %v1250_v30 = vld [vmem:[%s1471_s6 + $0x78] sm:$0xf0]  ;;  %v1240_v31 = vld [vmem:[%s1471_s6 + $0x60] sm:$0xf]  ;;  %v1283_v32 = vld [vmem:[%s1471_s6 + $0x64] sm:$0xf0] }
  0x6d   : > { %v1253_v33 = vor.u32 %v1284_v28, %v1250_v30  ;;  %v1282_v34 = vld [vmem:[%s1471_s6 + $0x64] sm:$0xf]  ;;  %v1242_v35 = vld [vmem:[%s1471_s6 + $0x68] sm:$0xf0]  ;;  %v1241_v36 = vor.u32 %v1283_v32, %v1240_v31  ;;  %v1232_v38 = vld [vmem:[%s1471_s6 + $0x50] sm:$0xf] }
  0x6e   : > { %1286 = vmatpush.bf16.msra.mxu2 %v1249_v29  ;;  %623 = vmatpush.bf16.msra.mxu0 %v1249_v29  ;;  %v1245_v37 = vor.u32 %v1282_v34, %v1242_v35  ;;  %v1281_v39 = vld [vmem:[%s1471_s6 + $0x54] sm:$0xf0]  ;;  %v1280_v40 = vld [vmem:[%s1471_s6 + $0x54] sm:$0xf]  ;;  %v1234_v41 = vld [vmem:[%s1471_s6 + $0x58] sm:$0xf0] }
  0x6f   : > { %696 = vmatpush.bf16.msra.mxu1 %v1253_v33  ;;  %1294 = vmatpush.bf16.msra.mxu3 %v1253_v33  ;;  %v1233_v42 = vor.u32 %v1281_v39, %v1232_v38  ;;  %v1237_v43 = vor.u32 %v1280_v40, %v1234_v41  ;;  %v1224_v44 = vld [vmem:[%s1471_s6 + $0x40] sm:$0xf]  ;;  %v1279_v45 = vld [vmem:[%s1471_s6 + $0x44] sm:$0xf0]  ;;  %v1278_v46 = vld [vmem:[%s1471_s6 + $0x44] sm:$0xf] }
  0x70   : > { %v1226_v47 = vld [vmem:[%s1471_s6 + $0x48] sm:$0xf0]  ;;  %v1225_v48 = vor.u32 %v1279_v45, %v1224_v44  ;;  %v1216_v50 = vld [vmem:[%s1471_s6 + $0x30] sm:$0xf]  ;;  %v1277_v51 = vld [vmem:[%s1471_s6 + $0x34] sm:$0xf0] }
  0x71   : > { %v1229_v49 = vor.u32 %v1278_v46, %v1226_v47  ;;  %v1276_v52 = vld [vmem:[%s1471_s6 + $0x34] sm:$0xf]  ;;  %v1218_v53 = vld [vmem:[%s1471_s6 + $0x38] sm:$0xf0]  ;;  %v1217_v54 = vor.u32 %v1277_v51, %v1216_v50  ;;  %v1208_v56 = vld [vmem:[%s1471_s6 + $0x20] sm:$0xf] }
  0x72   : > { %1287 = vmatpush.bf16.msra.mxu2 %v1241_v36  ;;  %624 = vmatpush.bf16.msra.mxu0 %v1241_v36  ;;  %v1221_v55 = vor.u32 %v1276_v52, %v1218_v53  ;;  %v1275_v57 = vld [vmem:[%s1471_s6 + $0x24] sm:$0xf0]  ;;  %v1274_v58 = vld [vmem:[%s1471_s6 + $0x24] sm:$0xf]  ;;  %v1210_v59 = vld [vmem:[%s1471_s6 + $0x28] sm:$0xf0] }
  0x73   : > { %697 = vmatpush.bf16.msra.mxu1 %v1245_v37  ;;  %1295 = vmatpush.bf16.msra.mxu3 %v1245_v37  ;;  %v1209_v60 = vor.u32 %v1275_v57, %v1208_v56  ;;  %v1213_v61 = vor.u32 %v1274_v58, %v1210_v59  ;;  %v1200_v62 = vld [vmem:[%s1471_s6 + $0x10] sm:$0xf]  ;;  %v1273_v63 = vld [vmem:[%s1471_s6 + $0x14] sm:$0xf0]  ;;  %v1272_v0 = vld [vmem:[%s1471_s6 + $0x14] sm:$0xf] }
  0x74   : > { %v1202_v1 = vld [vmem:[%s1471_s6 + $0x18] sm:$0xf0]  ;;  %v1201_v2 = vor.u32 %v1273_v63, %v1200_v62  ;;  %v1192_v4 = vld [vmem:[%s1471_s6] sm:$0xf]  ;;  %v1271_v5 = vld [vmem:[%s1471_s6 + $0x4] sm:$0xf0] }
  0x75   : > { %v1205_v3 = vor.u32 %v1272_v0, %v1202_v1  ;;  %v1270_v6 = vld [vmem:[%s1471_s6 + $0x4] sm:$0xf]  ;;  %v1194_v7 = vld [vmem:[%s1471_s6 + $0x8] sm:$0xf0]  ;;  %v1193_v8 = vor.u32 %v1271_v5, %v1192_v4  ;;  %v1258_v11 = vld [vmem:[%s1473_s7] sm:$0xff]  ;;  %vm820_vm2 = vcmask 523264  }
  0x76   : > { %1288 = vmatpush.bf16.msra.mxu2 %v1233_v42  ;;  %625 = vmatpush.bf16.msra.mxu0 %v1233_v42  ;;  %v1197_v9 = vor.u32 %v1270_v6, %v1194_v7  ;;  %v1264_v10 = vld [vmem:[%s1473_s7 + $0x30] sm:$0xff]  ;;  %v1265_v12 = vld [vmem:[%s1473_s7 + $0x38] sm:$0xff]  ;;  %v1259_v13 = vld [vmem:[%s1473_s7 + $0x8] sm:$0xff]  ;;  %vm869_vm3 = vcmask 519168   ;;  %p1254_p10 = scmp.ne.s32.totalorder %s1390_s15, 12 }
  0x77   : > { %698 = vmatpush.bf16.msra.mxu1 %v1237_v43  ;;  %1296 = vmatpush.bf16.msra.mxu3 %v1237_v43  ;;  %v1266_v14 = vld [vmem:[%s1473_s7 + $0x40] sm:$0xff]  ;;  %v1260_v15 = vld [vmem:[%s1473_s7 + $0x10] sm:$0xff]  ;;  %v1267_v16 = vld [vmem:[%s1473_s7 + $0x48] sm:$0xff] }
  0x78   : > { %v1261_v17 = vld [vmem:[%s1473_s7 + $0x18] sm:$0xff]  ;;  %v1268_v18 = vld [vmem:[%s1473_s7 + $0x50] sm:$0xff]  ;;  %v1262_v19 = vld [vmem:[%s1473_s7 + $0x20] sm:$0xff] }
  0x79   : > { %v1269_v20 = vld [vmem:[%s1473_s7 + $0x58] sm:$0xff]  ;;  %v450_v21 = vld [vmem:[%s1473_s7 + $0x60] sm:$0x3]  ;;  %v1263_v23 = vld [vmem:[%s1473_s7 + $0x28] sm:$0xff] }
  0x7a   : > { %1289 = vmatpush.bf16.msra.mxu2 %v1225_v48  ;;  %626 = vmatpush.bf16.msra.mxu0 %v1225_v48  ;;  %v516_v22 = vunpack.c.l.b16 %v450_v21  ;;  %v376_v25 = vld [vmem:[#allocation2] sm:$0xff]  ;;  %v377_v26 = vld [vmem:[#allocation2 + $0x8] sm:$0xff]  ;;  %v378_v34 = vld [vmem:[#allocation2 + $0x10] sm:$0xff] }
  0x7b   : > { %699 = vmatpush.bf16.msra.mxu1 %v1229_v49  ;;  %1297 = vmatpush.bf16.msra.mxu3 %v1229_v49  ;;  %v400_v31 = vld [vmem:[#allocation2 + $0xc0] sm:$0xff]  ;;  %v405_v32 = vld [vmem:[#allocation2 + $0xe8] sm:$0xff]  ;;  %v379_v36 = vld [vmem:[#allocation2 + $0x18] sm:$0xff] }
  0x7c   : > { %v529_v24 = vpack.c.b16 %v516_v22, %v516_v22  ;;  %v402_v43 = vld [vmem:[#allocation2 + $0xd0] sm:$0xff]  ;;  %v407_v44 = vld [vmem:[#allocation2 + $0xf8] sm:$0xff]  ;;  %v380_v46 = vld [vmem:[#allocation2 + $0x20] sm:$0xff] }
  0x7d   : > { %v381_v48 = vld [vmem:[#allocation2 + $0x28] sm:$0xff]  ;;  %v382_v58 = vld [vmem:[#allocation2 + $0x30] sm:$0xff]  ;;  %v411_v4 = vld [vmem:[#allocation2 + $0x118] sm:$0xff] }
  0x7e   : > { %1290 = vmatpush.bf16.msra.mxu2 %v1217_v54  ;;  %627 = vmatpush.bf16.msra.mxu0 %v1217_v54  ;;  %v409_v56 = vld [vmem:[#allocation2 + $0x108] sm:$0xff]  ;;  %v384_v6 = vld [vmem:[#allocation2 + $0x40] sm:$0xff] }
  0x7f   : > { %700 = vmatpush.bf16.msra.mxu1 %v1221_v55  ;;  %1298 = vmatpush.bf16.msra.mxu3 %v1221_v55  ;;  %v404_v55 = vld [vmem:[#allocation2 + $0xe0] sm:$0xff] }
  0x82   : > { %1291 = vmatpush.bf16.msra.mxu2 %v1209_v60  ;;  %628 = vmatpush.bf16.msra.mxu0 %v1209_v60  ;;  %v383_v60 = vld [vmem:[#allocation2 + $0x38] sm:$0xff] }
  0x83   : > { %701 = vmatpush.bf16.msra.mxu1 %v1213_v61  ;;  %1299 = vmatpush.bf16.msra.mxu3 %v1213_v61 }
  0x86   : > { %1292 = vmatpush.bf16.msra.mxu2 %v1201_v2  ;;  %629 = vmatpush.bf16.msra.mxu0 %v1201_v2 }
  0x87   : > { %702 = vmatpush.bf16.msra.mxu1 %v1205_v3  ;;  %1300 = vmatpush.bf16.msra.mxu3 %v1205_v3  ;;  %v406_v3 = vld [vmem:[#allocation2 + $0xf0] sm:$0xff] }
  0x8a   : > { %1293 = vmatpush.bf16.msra.mxu2 %v1193_v8  ;;  %630 = vmatpush.bf16.msra.mxu0 %v1193_v8  ;;  %v385_v8 = vld [vmem:[#allocation2 + $0x48] sm:$0xff] }
  0x8b   : > { %703 = vmatpush.bf16.msra.mxu1 %v1197_v9  ;;  %1301 = vmatpush.bf16.msra.mxu3 %v1197_v9 }
  0x8d   : > { %661 = vmatmul.bf16.vlgmr.msra.gmra.mxu2 %v1264_v10  ;;  %631 = vmatmul.bf16.vlgmr.msra.gmra.mxu0 %v1258_v11 }
  0x8e   : > { %704 = vmatmul.bf16.vlgmr.msra.gmra.mxu1 %v1258_v11  ;;  %739 = vmatmul.bf16.vlgmr.msra.gmra.mxu3 %v1265_v12 }
  0x9d   : > { %666 = vmatmul.bf16.gmra.mxu2 %v1265_v12  ;;  %636 = vmatmul.bf16.gmra.mxu0 %v1259_v13 }
  0x9e   : > { %709 = vmatmul.bf16.gmra.mxu1 %v1259_v13  ;;  %744 = vmatmul.bf16.gmra.mxu3 %v1266_v14 }
  0xad   : > { %671 = vmatmul.bf16.gmra.mxu2 %v1266_v14  ;;  %641 = vmatmul.bf16.gmra.mxu0 %v1260_v15 }
  0xae   : > { %714 = vmatmul.bf16.gmra.mxu1 %v1260_v15  ;;  %749 = vmatmul.bf16.gmra.mxu3 %v1267_v16  ;;  %v408_v15 = vld [vmem:[#allocation2 + $0x100] sm:$0xff] }
  0xbd   : > { %676 = vmatmul.bf16.gmra.mxu2 %v1267_v16  ;;  %646 = vmatmul.bf16.gmra.mxu0 %v1261_v17  ;;  %v413_v16 = vld [vmem:[#allocation2 + $0x128] sm:$0xff] }
  0xbe   : > { %719 = vmatmul.bf16.gmra.mxu1 %v1261_v17  ;;  %754 = vmatmul.bf16.gmra.mxu3 %v1268_v18 }
  0xcd   : > { %681 = vmatmul.bf16.gmra.mxu2 %v1268_v18  ;;  %651 = vmatmul.bf16.gmra.mxu0 %v1262_v19  ;;  %v386_v18 = vld [vmem:[#allocation2 + $0x50] sm:$0xff] }
  0xce   : > { %724 = vmatmul.bf16.gmra.mxu1 %v1262_v19  ;;  %759 = vmatmul.bf16.gmra.mxu3 %v1269_v20 }
  0xdd   : > { %686 = vmatmul.bf16.gmra.mxu2 %v1269_v20  ;;  %656 = vmatmul.bf16.gmra.mxu0 %v1263_v23  ;;  %v387_v20 = vld [vmem:[#allocation2 + $0x58] sm:$0xff] }
  0xde   : > { %729 = vmatmul.bf16.gmra.mxu1 %v1263_v23  ;;  %764 = vmatmul.bf16.gmra.mxu3 %v529_v24 }
  0xed   : > { %691 = vmatmul.bf16.gmra.mxu2 %v529_v24 }
  0xee   : > { %734 = vmatmul.bf16.gmra.mxu1 %v1264_v10 }
 0x10a   : > { %v632_v27 = vpop.f32.mrf.mxu0 }
 0x10b   : > { %v705_v28 = vpop.f32.mrf.mxu1  ;;  %v769_v29 = vadd.f32 %v632_v27, %v376_v25  ;;  %v410_v27 = vld [vmem:[#allocation2 + $0x110] sm:$0xff] }
 0x10c   : > { %v770_v30 = vadd.f32 %v705_v28, %v377_v26  ;;  %v415_v28 = vld [vmem:[#allocation2 + $0x138] sm:$0xff] }
 0x10d   : > { %819 = vst [vmem:[#allocation2] sm:$0xff] %v769_v29 }
 0x10e   : > { %821 = vst.msk [vmem:[#allocation2 + $0x8] sm:$0xff] %vm820_vm2, %v770_v30  ;;  %v388_v30 = vld [vmem:[#allocation2 + $0x60] sm:$0xff] }
 0x110   : > { %v662_v33 = vpop.f32.mrf.mxu2 }
 0x111   : > { %v793_v35 = vadd.f32 %v662_v33, %v400_v31  ;;  %v740_v37 = vpop.f32.mrf.mxu3 }
 0x112   : > { %v798_v38 = vadd.f32 %v740_v37, %v405_v32  ;;  %v634_v39 = vpop.f32.mrf.mxu0  ;;  %v389_v32 = vld [vmem:[#allocation2 + $0x68] sm:$0xff] }
 0x113   : > { %844 = vst [vmem:[#allocation2 + $0xc0] sm:$0xff] %v793_v35  ;;  %v707_v40 = vpop.f32.mrf.mxu1  ;;  %v771_v41 = vadd.f32 %v634_v39, %v378_v34  ;;  %v412_v39 = vld [vmem:[#allocation2 + $0x120] sm:$0xff] }
 0x114   : > { %v772_v42 = vadd.f32 %v707_v40, %v379_v36  ;;  %849 = vst.msk [vmem:[#allocation2 + $0xe8] sm:$0xff] %vm820_vm2, %v798_v38  ;;  %v417_v40 = vld [vmem:[#allocation2 + $0x148] sm:$0xff] }
 0x115   : > { %822 = vst [vmem:[#allocation2 + $0x10] sm:$0xff] %v771_v41 }
 0x116   : > { %823 = vst.msk [vmem:[#allocation2 + $0x18] sm:$0xff] %vm820_vm2, %v772_v42  ;;  %v390_v42 = vld [vmem:[#allocation2 + $0x70] sm:$0xff] }
 0x118   : > { %v664_v45 = vpop.f32.mrf.mxu2 }
 0x119   : > { %v795_v47 = vadd.f32 %v664_v45, %v402_v43  ;;  %v742_v49 = vpop.f32.mrf.mxu3 }
 0x11a   : > { %v800_v50 = vadd.f32 %v742_v49, %v407_v44  ;;  %v637_v51 = vpop.f32.mrf.mxu0  ;;  %v391_v44 = vld [vmem:[#allocation2 + $0x78] sm:$0xff] }
 0x11b   : > { %846 = vst [vmem:[#allocation2 + $0xd0] sm:$0xff] %v795_v47  ;;  %v710_v52 = vpop.f32.mrf.mxu1  ;;  %v773_v53 = vadd.f32 %v637_v51, %v380_v46  ;;  %v414_v51 = vld [vmem:[#allocation2 + $0x130] sm:$0xff] }
 0x11c   : > { %v774_v54 = vadd.f32 %v710_v52, %v381_v48  ;;  %851 = vst.msk [vmem:[#allocation2 + $0xf8] sm:$0xff] %vm820_vm2, %v800_v50  ;;  %v419_v52 = vld [vmem:[#allocation2 + $0x158] sm:$0xff] }
 0x11d   : > { %824 = vst [vmem:[#allocation2 + $0x20] sm:$0xff] %v773_v53 }
 0x11e   : > { %825 = vst.msk [vmem:[#allocation2 + $0x28] sm:$0xff] %vm820_vm2, %v774_v54  ;;  %v392_v54 = vld [vmem:[#allocation2 + $0x80] sm:$0xff] }
 0x120   : > { %v667_v57 = vpop.f32.mrf.mxu2 }
 0x121   : > { %v797_v59 = vadd.f32 %v667_v57, %v404_v55  ;;  %v745_v61 = vpop.f32.mrf.mxu3 }
 0x122   : > { %v802_v62 = vadd.f32 %v745_v61, %v409_v56  ;;  %v639_v63 = vpop.f32.mrf.mxu0  ;;  %v393_v56 = vld [vmem:[#allocation2 + $0x88] sm:$0xff] }
 0x123   : > { %848 = vst [vmem:[#allocation2 + $0xe0] sm:$0xff] %v797_v59  ;;  %v712_v0 = vpop.f32.mrf.mxu1  ;;  %v775_v1 = vadd.f32 %v639_v63, %v382_v58  ;;  %v416_v63 = vld [vmem:[#allocation2 + $0x140] sm:$0xff] }
 0x124   : > { %v776_v2 = vadd.f32 %v712_v0, %v383_v60  ;;  %853 = vst.msk [vmem:[#allocation2 + $0x108] sm:$0xff] %vm820_vm2, %v802_v62  ;;  %v421_v0 = vld [vmem:[#allocation2 + $0x168] sm:$0xff] }
 0x125   : > { %826 = vst [vmem:[#allocation2 + $0x30] sm:$0xff] %v775_v1 }
 0x126   : > { %827 = vst.msk [vmem:[#allocation2 + $0x38] sm:$0xff] %vm820_vm2, %v776_v2  ;;  %v394_v2 = vld [vmem:[#allocation2 + $0x90] sm:$0xff] }
 0x128   : > { %v669_v5 = vpop.f32.mrf.mxu2 }
 0x129   : > { %v799_v7 = vadd.f32 %v669_v5, %v406_v3  ;;  %v747_v9 = vpop.f32.mrf.mxu3 }
 0x12a   : > { %v804_v10 = vadd.f32 %v747_v9, %v411_v4  ;;  %v642_v11 = vpop.f32.mrf.mxu0  ;;  %v395_v4 = vld [vmem:[#allocation2 + $0x98] sm:$0xff] }
 0x12b   : > { %850 = vst [vmem:[#allocation2 + $0xf0] sm:$0xff] %v799_v7  ;;  %v715_v12 = vpop.f32.mrf.mxu1  ;;  %v777_v13 = vadd.f32 %v642_v11, %v384_v6  ;;  %v418_v11 = vld [vmem:[#allocation2 + $0x150] sm:$0xff] }
 0x12c   : > { %v778_v14 = vadd.f32 %v715_v12, %v385_v8  ;;  %855 = vst.msk [vmem:[#allocation2 + $0x118] sm:$0xff] %vm820_vm2, %v804_v10  ;;  %v423_v12 = vld [vmem:[#allocation2 + $0x178] sm:$0xff] }
 0x12d   : > { %828 = vst [vmem:[#allocation2 + $0x40] sm:$0xff] %v777_v13 }
 0x12e   : > { %829 = vst.msk [vmem:[#allocation2 + $0x48] sm:$0xff] %vm820_vm2, %v778_v14  ;;  %v396_v14 = vld [vmem:[#allocation2 + $0xa0] sm:$0xff] }
 0x130   : > { %v672_v17 = vpop.f32.mrf.mxu2 }
 0x131   : > { %v801_v19 = vadd.f32 %v672_v17, %v408_v15  ;;  %v750_v21 = vpop.f32.mrf.mxu3 }
 0x132   : > { %v806_v22 = vadd.f32 %v750_v21, %v413_v16  ;;  %v644_v23 = vpop.f32.mrf.mxu0  ;;  %v397_v16 = vld [vmem:[#allocation2 + $0xa8] sm:$0xff] }
 0x133   : > { %852 = vst [vmem:[#allocation2 + $0x100] sm:$0xff] %v801_v19  ;;  %v717_v24 = vpop.f32.mrf.mxu1  ;;  %v779_v25 = vadd.f32 %v644_v23, %v386_v18  ;;  %v420_v23 = vld [vmem:[#allocation2 + $0x160] sm:$0xff] }
 0x134   : > { %v780_v26 = vadd.f32 %v717_v24, %v387_v20  ;;  %857 = vst.msk [vmem:[#allocation2 + $0x128] sm:$0xff] %vm820_vm2, %v806_v22  ;;  %v425_v24 = vld [vmem:[#allocation2 + $0x188] sm:$0xf] }
 0x135   : > { %830 = vst [vmem:[#allocation2 + $0x50] sm:$0xff] %v779_v25 }
 0x136   : > { %831 = vst.msk [vmem:[#allocation2 + $0x58] sm:$0xff] %vm820_vm2, %v780_v26  ;;  %v398_v26 = vld [vmem:[#allocation2 + $0xb0] sm:$0xff] }
 0x138   : > { %v674_v29 = vpop.f32.mrf.mxu2 }
 0x139   : > { %v803_v31 = vadd.f32 %v674_v29, %v410_v27  ;;  %v752_v33 = vpop.f32.mrf.mxu3 }
 0x13a   : > { %v808_v34 = vadd.f32 %v752_v33, %v415_v28  ;;  %v647_v35 = vpop.f32.mrf.mxu0  ;;  %v399_v28 = vld [vmem:[#allocation2 + $0xb8] sm:$0xff] }
 0x13b   : > { %854 = vst [vmem:[#allocation2 + $0x110] sm:$0xff] %v803_v31  ;;  %v720_v36 = vpop.f32.mrf.mxu1  ;;  %v781_v37 = vadd.f32 %v647_v35, %v388_v30  ;;  %v422_v35 = vld [vmem:[#allocation2 + $0x170] sm:$0xff] }
 0x13c   : > { %v782_v38 = vadd.f32 %v720_v36, %v389_v32  ;;  %859 = vst.msk [vmem:[#allocation2 + $0x138] sm:$0xff] %vm820_vm2, %v808_v34 }
 0x13d   : > { %832 = vst [vmem:[#allocation2 + $0x60] sm:$0xff] %v781_v37 }
 0x13e   : > { %833 = vst.msk [vmem:[#allocation2 + $0x68] sm:$0xff] %vm820_vm2, %v782_v38  ;;  %v401_v38 = vld [vmem:[#allocation2 + $0xc8] sm:$0xff] }
 0x140   : > { %v677_v41 = vpop.f32.mrf.mxu2 }
 0x141   : > { %v805_v43 = vadd.f32 %v677_v41, %v412_v39  ;;  %v755_v45 = vpop.f32.mrf.mxu3 }
 0x142   : > { %v810_v46 = vadd.f32 %v755_v45, %v417_v40  ;;  %v649_v47 = vpop.f32.mrf.mxu0  ;;  %v403_v45 = vld [vmem:[#allocation2 + $0xd8] sm:$0xff] }
 0x143   : > { %856 = vst [vmem:[#allocation2 + $0x120] sm:$0xff] %v805_v43  ;;  %v722_v48 = vpop.f32.mrf.mxu1  ;;  %v783_v49 = vadd.f32 %v649_v47, %v390_v42  ;;  %v424_v42 = vld [vmem:[#allocation2 + $0x180] sm:$0xf] }
 0x144   : > { %v784_v50 = vadd.f32 %v722_v48, %v391_v44  ;;  %861 = vst.msk [vmem:[#allocation2 + $0x148] sm:$0xff] %vm820_vm2, %v810_v46 }
 0x145   : > { %834 = vst [vmem:[#allocation2 + $0x70] sm:$0xff] %v783_v49 }
 0x146   : > { %835 = vst.msk [vmem:[#allocation2 + $0x78] sm:$0xff] %vm820_vm2, %v784_v50 }
 0x148   : > { %v679_v53 = vpop.f32.mrf.mxu2 }
 0x149   : > { %v807_v55 = vadd.f32 %v679_v53, %v414_v51  ;;  %v757_v57 = vpop.f32.mrf.mxu3 }
 0x14a   : > { %v812_v58 = vadd.f32 %v757_v57, %v419_v52  ;;  %v652_v59 = vpop.f32.mrf.mxu0 }
 0x14b   : > { %858 = vst [vmem:[#allocation2 + $0x130] sm:$0xff] %v807_v55  ;;  %v725_v60 = vpop.f32.mrf.mxu1  ;;  %v785_v61 = vadd.f32 %v652_v59, %v392_v54 }
 0x14c   : > { %v786_v62 = vadd.f32 %v725_v60, %v393_v56  ;;  %863 = vst.msk [vmem:[#allocation2 + $0x158] sm:$0xff] %vm820_vm2, %v812_v58 }
 0x14d   : > { %836 = vst [vmem:[#allocation2 + $0x80] sm:$0xff] %v785_v61 }
 0x14e   : > { %837 = vst.msk [vmem:[#allocation2 + $0x88] sm:$0xff] %vm820_vm2, %v786_v62 }
 0x150   : > { %v682_v1 = vpop.f32.mrf.mxu2 }
 0x151   : > { %v809_v3 = vadd.f32 %v682_v1, %v416_v63  ;;  %v760_v5 = vpop.f32.mrf.mxu3 }
 0x152   : > { %v814_v6 = vadd.f32 %v760_v5, %v421_v0  ;;  %v654_v7 = vpop.f32.mrf.mxu0 }
 0x153   : > { %860 = vst [vmem:[#allocation2 + $0x140] sm:$0xff] %v809_v3  ;;  %v727_v8 = vpop.f32.mrf.mxu1  ;;  %v787_v9 = vadd.f32 %v654_v7, %v394_v2 }
 0x154   : > { %v788_v10 = vadd.f32 %v727_v8, %v395_v4  ;;  %865 = vst.msk [vmem:[#allocation2 + $0x168] sm:$0xff] %vm820_vm2, %v814_v6 }
 0x155   : > { %838 = vst [vmem:[#allocation2 + $0x90] sm:$0xff] %v787_v9 }
 0x156   : > { %839 = vst.msk [vmem:[#allocation2 + $0x98] sm:$0xff] %vm820_vm2, %v788_v10 }
 0x158   : > { %v684_v13 = vpop.f32.mrf.mxu2 }
 0x159   : > { %v811_v15 = vadd.f32 %v684_v13, %v418_v11  ;;  %v762_v17 = vpop.f32.mrf.mxu3 }
 0x15a   : > { %v816_v18 = vadd.f32 %v762_v17, %v423_v12  ;;  %v657_v19 = vpop.f32.mrf.mxu0 }
 0x15b   : > { %862 = vst [vmem:[#allocation2 + $0x150] sm:$0xff] %v811_v15  ;;  %v730_v20 = vpop.f32.mrf.mxu1  ;;  %v789_v21 = vadd.f32 %v657_v19, %v396_v14 }
 0x15c   : > { %v790_v22 = vadd.f32 %v730_v20, %v397_v16  ;;  %867 = vst.msk [vmem:[#allocation2 + $0x178] sm:$0xff] %vm820_vm2, %v816_v18 }
 0x15d   : > { %840 = vst [vmem:[#allocation2 + $0xa0] sm:$0xff] %v789_v21 }
 0x15e   : > { %841 = vst.msk [vmem:[#allocation2 + $0xa8] sm:$0xff] %vm820_vm2, %v790_v22 }
 0x160   : > { %v687_v25 = vpop.f32.mrf.mxu2 }
 0x161   : > { %v813_v27 = vadd.f32 %v687_v25, %v420_v23  ;;  %v765_v29 = vpop.f32.mrf.mxu3 }
 0x162   : > { %v818_v30 = vadd.f32 %v765_v29, %v425_v24  ;;  %v659_v31 = vpop.f32.mrf.mxu0 }
 0x163   : > { %864 = vst [vmem:[#allocation2 + $0x160] sm:$0xff] %v813_v27  ;;  %v732_v32 = vpop.f32.mrf.mxu1  ;;  %v791_v33 = vadd.f32 %v659_v31, %v398_v26 }
 0x164   : > { %v792_v34 = vadd.f32 %v732_v32, %v399_v28  ;;  %870 = vst.msk [vmem:[#allocation2 + $0x188] sm:$0xf] %vm869_vm3, %v818_v30 }
 0x165   : > { %842 = vst [vmem:[#allocation2 + $0xb0] sm:$0xff] %v791_v33 }
 0x166   : > { %843 = vst.msk [vmem:[#allocation2 + $0xb8] sm:$0xff] %vm820_vm2, %v792_v34 }
 0x168   : > { %v689_v36 = vpop.f32.mrf.mxu2 }
 0x169   : > { %v815_v37 = vadd.f32 %v689_v36, %v422_v35  ;;  %v767_v39 = vpop.f32.mrf.mxu3 }
 0x16b   : > { %866 = vst [vmem:[#allocation2 + $0x170] sm:$0xff] %v815_v37  ;;  %v735_v40 = vpop.f32.mrf.mxu1 }
 0x16c   : > { %v794_v41 = vadd.f32 %v735_v40, %v401_v38 }
 0x16e   : > { %845 = vst.msk [vmem:[#allocation2 + $0xc8] sm:$0xff] %vm820_vm2, %v794_v41 }
 0x170   : > { %v692_v43 = vpop.f32.mrf.mxu2 }
 0x171   : > { %v817_v44 = vadd.f32 %v692_v43, %v424_v42 }
 0x173   : > { %868 = vst [vmem:[#allocation2 + $0x180] sm:$0xf] %v817_v44  ;;  %v737_v46 = vpop.f32.mrf.mxu1 }
 0x174   : > { %v796_v47 = vadd.f32 %v737_v46, %v403_v45  ;;  %874 = sbr.rel (%p1254_p10) target bundleno = 417 (0x1a1), region = 81 }
 0x176   : > { %847 = vst.msk [vmem:[#allocation2 + $0xd8] sm:$0xff] %vm820_vm2, %v796_v47 }
 0x178   : > { %v694_v48 = vpop.f32.mrf.mxu2 }
 0x179   : > { %v875_v49 = vld [vmem:[#allocation2] sm:$0xff]  ;;  %v876_v50 = vld [vmem:[#allocation2 + $0x8] sm:$0xff]  ;;  %v877_v54 = vld [vmem:[#allocation2 + $0x10] sm:$0xff]  ;;  %vm1056_vm4 = vcmask 1043456   ;;  %vm1057_vm5 = vcmask 523268   ;;  %vm1083_vm7 = vcmask 1041408  }
 0x17a   : > { %v925_v51 = vld [vmem:[%s1768_s2] sm:$0x3]  ;;  %v878_v55 = vld [vmem:[#allocation2 + $0x18] sm:$0xff]  ;;  %v880_v57 = vld [vmem:[#allocation2 + $0x28] sm:$0xff]  ;;  %vm1084_vm8 = vcmask 521220  }
 0x17b   : > { %v1573_v52 = vperm.slane %v925_v51, 0  ;;  %v1575_v53 = vperm.slane %v925_v51, 1  ;;  %v879_v56 = vld [vmem:[#allocation2 + $0x20] sm:$0xff]  ;;  %v881_v58 = vld [vmem:[#allocation2 + $0x30] sm:$0xff]  ;;  %v882_v63 = vld [vmem:[#allocation2 + $0x38] sm:$0xff] }
 0x17c   : > { %v883_v4 = vld [vmem:[#allocation2 + $0x40] sm:$0xff]  ;;  %v884_v5 = vld [vmem:[#allocation2 + $0x48] sm:$0xff]  ;;  %v885_v10 = vld [vmem:[#allocation2 + $0x50] sm:$0xff] }
 0x17d   : > { %v931_v59 = vadd.f32 %v1573_v52, %v875_v49  ;;  %v932_v60 = vadd.f32 %v1575_v53, %v876_v50  ;;  %v933_v61 = vadd.f32 %v1573_v52, %v877_v54  ;;  %v934_v62 = vadd.f32 %v1575_v53, %v878_v55  ;;  %v886_v11 = vld [vmem:[#allocation2 + $0x58] sm:$0xff]  ;;  %vm1587_vm6 = vmor %vm1057_vm5, %vm1056_vm4  ;;  %v887_v17 = vld [vmem:[#allocation2 + $0x60] sm:$0xff] }
 0x17e   : > { %v935_v0 = vadd.f32 %v1573_v52, %v879_v56  ;;  %v936_v1 = vadd.f32 %v1575_v53, %v880_v57  ;;  %v937_v2 = vadd.f32 %v1573_v52, %v881_v58  ;;  %v938_v3 = vadd.f32 %v1575_v53, %v882_v63  ;;  %v888_v18 = vld [vmem:[#allocation2 + $0x68] sm:$0xff]  ;;  %v889_v23 = vld [vmem:[#allocation2 + $0x70] sm:$0xff]  ;;  %v890_v24 = vld [vmem:[#allocation2 + $0x78] sm:$0xff] }
 0x17f   : > { %v981_v6 = vmax.f32 %v931_v59, 0.0  ;;  %v982_v7 = vmax.f32 %v932_v60, 0.0  ;;  %v983_v8 = vmax.f32 %v933_v61, 0.0  ;;  %v984_v9 = vmax.f32 %v934_v62, 0.0  ;;  %v891_v29 = vld [vmem:[#allocation2 + $0x80] sm:$0xff]  ;;  %v892_v34 = vld [vmem:[#allocation2 + $0x88] sm:$0xff]  ;;  %vm1085_vm9 = vmor %vm1084_vm8, %vm1083_vm7 }
 0x180   : > { %v985_v13 = vmax.f32 %v935_v0, 0.0  ;;  %v986_v14 = vmax.f32 %v936_v1, 0.0  ;;  %v987_v15 = vmax.f32 %v937_v2, 0.0  ;;  %v988_v16 = vmax.f32 %v938_v3, 0.0  ;;  %v893_v39 = vld [vmem:[#allocation2 + $0x90] sm:$0xff]  ;;  %v894_v40 = vld [vmem:[#allocation2 + $0x98] sm:$0xff] }
 0x181   : > { %v1031_v19 = vpack.c.bf16 %v982_v7, %v981_v6  ;;  %v1032_v20 = vpack.c.bf16 %v984_v9, %v983_v8  ;;  %v939_v21 = vadd.f32 %v1573_v52, %v883_v4  ;;  %v940_v22 = vadd.f32 %v1575_v53, %v884_v5  ;;  %v895_v45 = vld [vmem:[#allocation2 + $0xa0] sm:$0xff]  ;;  %v896_v46 = vld [vmem:[#allocation2 + $0xa8] sm:$0xff]  ;;  %v897_v51 = vld [vmem:[#allocation2 + $0xb0] sm:$0xff] }
 0x182   : > { %v1033_v25 = vpack.c.bf16 %v986_v14, %v985_v13  ;;  %v1034_v26 = vpack.c.bf16 %v988_v16, %v987_v15  ;;  %v941_v27 = vadd.f32 %v1573_v52, %v885_v10  ;;  %v942_v28 = vadd.f32 %v1575_v53, %v886_v11  ;;  %v898_v54 = vld [vmem:[#allocation2 + $0xb8] sm:$0xff]  ;;  %v899_v59 = vld [vmem:[#allocation2 + $0xc0] sm:$0xff]  ;;  %v900_v0 = vld [vmem:[#allocation2 + $0xc8] sm:$0xff] }
 0x183   : > { %1059 = vst.msk [vmem:[%s1769_s3] sm:$0xff] %vm1587_vm6, %v1031_v19  ;;  %v989_v30 = vmax.f32 %v939_v21, 0.0  ;;  %v990_v31 = vmax.f32 %v940_v22, 0.0  ;;  %v943_v32 = vadd.f32 %v1573_v52, %v887_v17  ;;  %v944_v33 = vadd.f32 %v1575_v53, %v888_v18  ;;  %v901_v5 = vld [vmem:[#allocation2 + $0xd0] sm:$0xff]  ;;  %v902_v6 = vld [vmem:[#allocation2 + $0xd8] sm:$0xff]  ;;  %v903_v11 = vld [vmem:[#allocation2 + $0xe0] sm:$0xff] }
 0x184   : > { %1060 = vst.msk [vmem:[%s1769_s3 + $0x8] sm:$0xff] %vm1587_vm6, %v1032_v20  ;;  %v991_v35 = vmax.f32 %v941_v27, 0.0  ;;  %v992_v36 = vmax.f32 %v942_v28, 0.0  ;;  %v945_v37 = vadd.f32 %v1573_v52, %v889_v23  ;;  %v946_v38 = vadd.f32 %v1575_v53, %v890_v24  ;;  %v904_v13 = vld [vmem:[#allocation2 + $0xe8] sm:$0xff]  ;;  %v905_v18 = vld [vmem:[#allocation2 + $0xf0] sm:$0xff]  ;;  %v906_v19 = vld [vmem:[#allocation2 + $0xf8] sm:$0xff] }
 0x185   : > { %1061 = vst.msk [vmem:[%s1769_s3 + $0x10] sm:$0xff] %vm1587_vm6, %v1033_v25  ;;  %v1035_v41 = vpack.c.bf16 %v990_v31, %v989_v30  ;;  %v993_v42 = vmax.f32 %v943_v32, 0.0  ;;  %v994_v43 = vmax.f32 %v944_v33, 0.0  ;;  %v947_v44 = vadd.f32 %v1573_v52, %v891_v29  ;;  %v907_v24 = vld [vmem:[#allocation2 + $0x100] sm:$0xff]  ;;  %v908_v29 = vld [vmem:[#allocation2 + $0x108] sm:$0xff] }
 0x186   : > { %1062 = vst.msk [vmem:[%s1769_s3 + $0x18] sm:$0xff] %vm1587_vm6, %v1034_v26  ;;  %v1036_v47 = vpack.c.bf16 %v992_v36, %v991_v35  ;;  %v995_v48 = vmax.f32 %v945_v37, 0.0  ;;  %v996_v49 = vmax.f32 %v946_v38, 0.0  ;;  %v948_v50 = vadd.f32 %v1575_v53, %v892_v34  ;;  %v909_v34 = vld [vmem:[#allocation2 + $0x110] sm:$0xff]  ;;  %v910_v35 = vld [vmem:[#allocation2 + $0x118] sm:$0xff] }
 0x187   : > { %1063 = vst.msk [vmem:[%s1769_s3 + $0x20] sm:$0xff] %vm1587_vm6, %v1035_v41  ;;  %v1037_v55 = vpack.c.bf16 %v994_v43, %v993_v42  ;;  %v997_v56 = vmax.f32 %v947_v44, 0.0  ;;  %v949_v57 = vadd.f32 %v1573_v52, %v893_v39  ;;  %v950_v58 = vadd.f32 %v1575_v53, %v894_v40  ;;  %v911_v40 = vld [vmem:[#allocation2 + $0x120] sm:$0xff]  ;;  %v912_v41 = vld [vmem:[#allocation2 + $0x128] sm:$0xff] }
 0x188   : > { %1064 = vst.msk [vmem:[%s1769_s3 + $0x28] sm:$0xff] %vm1587_vm6, %v1036_v47  ;;  %v1038_v60 = vpack.c.bf16 %v996_v49, %v995_v48  ;;  %v998_v61 = vmax.f32 %v948_v50, 0.0  ;;  %v951_v62 = vadd.f32 %v1573_v52, %v895_v45  ;;  %v952_v63 = vadd.f32 %v1575_v53, %v896_v46  ;;  %v913_v46 = vld [vmem:[#allocation2 + $0x130] sm:$0xff]  ;;  %v914_v47 = vld [vmem:[#allocation2 + $0x138] sm:$0xff] }
 0x189   : > { %1065 = vst.msk [vmem:[%s1769_s3 + $0x30] sm:$0xff] %vm1587_vm6, %v1037_v55  ;;  %v999_v1 = vmax.f32 %v949_v57, 0.0  ;;  %v1000_v2 = vmax.f32 %v950_v58, 0.0  ;;  %v953_v3 = vadd.f32 %v1573_v52, %v897_v51  ;;  %v954_v4 = vadd.f32 %v1575_v53, %v898_v54  ;;  %v915_v54 = vld [vmem:[#allocation2 + $0x140] sm:$0xff] }
 0x18a   : > { %1066 = vst.msk [vmem:[%s1769_s3 + $0x38] sm:$0xff] %vm1587_vm6, %v1038_v60  ;;  %v1039_v7 = vpack.c.bf16 %v998_v61, %v997_v56  ;;  %v1001_v8 = vmax.f32 %v951_v62, 0.0  ;;  %v1002_v9 = vmax.f32 %v952_v63, 0.0  ;;  %v955_v10 = vadd.f32 %v1573_v52, %v899_v59  ;;  %v916_v59 = vld [vmem:[#allocation2 + $0x148] sm:$0xff] }
 0x18b   : > { %v1040_v14 = vpack.c.bf16 %v1000_v2, %v999_v1  ;;  %v1003_v15 = vmax.f32 %v953_v3, 0.0  ;;  %v1004_v16 = vmax.f32 %v954_v4, 0.0  ;;  %v956_v17 = vadd.f32 %v1575_v53, %v900_v0  ;;  %v917_v0 = vld [vmem:[#allocation2 + $0x150] sm:$0xff]  ;;  %v918_v1 = vld [vmem:[#allocation2 + $0x158] sm:$0xff] }
 0x18c   : > { %1067 = vst.msk [vmem:[%s1769_s3 + $0x40] sm:$0xff] %vm1587_vm6, %v1039_v7  ;;  %v1041_v20 = vpack.c.bf16 %v1002_v9, %v1001_v8  ;;  %v1005_v21 = vmax.f32 %v955_v10, 0.0  ;;  %v957_v22 = vadd.f32 %v1573_v52, %v901_v5  ;;  %v958_v23 = vadd.f32 %v1575_v53, %v902_v6  ;;  %v919_v6 = vld [vmem:[#allocation2 + $0x160] sm:$0xff]  ;;  %v920_v7 = vld [vmem:[#allocation2 + $0x168] sm:$0xff] }
 0x18d   : > { %1068 = vst.msk [vmem:[%s1769_s3 + $0x48] sm:$0xff] %vm1587_vm6, %v1040_v14  ;;  %v1042_v25 = vpack.c.bf16 %v1004_v16, %v1003_v15  ;;  %v1006_v26 = vmax.f32 %v956_v17, 0.0  ;;  %v959_v27 = vadd.f32 %v1573_v52, %v903_v11  ;;  %v960_v28 = vadd.f32 %v1575_v53, %v904_v13  ;;  %v921_v13 = vld [vmem:[#allocation2 + $0x170] sm:$0xff]  ;;  %v922_v14 = vld [vmem:[#allocation2 + $0x178] sm:$0xff] }
 0x18e   : > { %1069 = vst.msk [vmem:[%s1769_s3 + $0x50] sm:$0xff] %vm1587_vm6, %v1041_v20  ;;  %v1007_v30 = vmax.f32 %v957_v22, 0.0  ;;  %v1008_v31 = vmax.f32 %v958_v23, 0.0  ;;  %v961_v32 = vadd.f32 %v1573_v52, %v905_v18  ;;  %v962_v33 = vadd.f32 %v1575_v53, %v906_v19  ;;  %v923_v19 = vld [vmem:[#allocation2 + $0x180] sm:$0xf] }
 0x18f   : > { %1070 = vst.msk [vmem:[%s1769_s3 + $0x58] sm:$0xff] %vm1587_vm6, %v1042_v25  ;;  %v1043_v36 = vpack.c.bf16 %v1006_v26, %v1005_v21  ;;  %v1009_v37 = vmax.f32 %v959_v27, 0.0  ;;  %v1010_v38 = vmax.f32 %v960_v28, 0.0  ;;  %v963_v39 = vadd.f32 %v1573_v52, %v907_v24  ;;  %v924_v24 = vld [vmem:[#allocation2 + $0x188] sm:$0xf] }
 0x190   : > { %v1044_v42 = vpack.c.bf16 %v1008_v31, %v1007_v30  ;;  %v1011_v43 = vmax.f32 %v961_v32, 0.0  ;;  %v1012_v44 = vmax.f32 %v962_v33, 0.0  ;;  %v964_v45 = vadd.f32 %v1575_v53, %v908_v29 }
 0x191   : > { %1071 = vst.msk [vmem:[%s1769_s3 + $0x60] sm:$0xff] %vm1587_vm6, %v1043_v36  ;;  %v1045_v48 = vpack.c.bf16 %v1010_v38, %v1009_v37  ;;  %v1013_v49 = vmax.f32 %v963_v39, 0.0  ;;  %v965_v50 = vadd.f32 %v1573_v52, %v909_v34  ;;  %v966_v51 = vadd.f32 %v1575_v53, %v910_v35 }
 0x192   : > { %1072 = vst.msk [vmem:[%s1769_s3 + $0x68] sm:$0xff] %vm1587_vm6, %v1044_v42  ;;  %v1046_v55 = vpack.c.bf16 %v1012_v44, %v1011_v43  ;;  %v1014_v56 = vmax.f32 %v964_v45, 0.0  ;;  %v967_v57 = vadd.f32 %v1573_v52, %v911_v40  ;;  %v968_v58 = vadd.f32 %v1575_v53, %v912_v41 }
 0x193   : > { %1073 = vst.msk [vmem:[%s1769_s3 + $0x70] sm:$0xff] %vm1587_vm6, %v1045_v48  ;;  %v1015_v60 = vmax.f32 %v965_v50, 0.0  ;;  %v1016_v61 = vmax.f32 %v966_v51, 0.0  ;;  %v969_v62 = vadd.f32 %v1573_v52, %v913_v46  ;;  %v970_v63 = vadd.f32 %v1575_v53, %v914_v47 }
 0x194   : > { %1074 = vst.msk [vmem:[%s1769_s3 + $0x78] sm:$0xff] %vm1587_vm6, %v1046_v55  ;;  %v1047_v2 = vpack.c.bf16 %v1014_v56, %v1013_v49  ;;  %v1017_v3 = vmax.f32 %v967_v57, 0.0  ;;  %v1018_v4 = vmax.f32 %v968_v58, 0.0  ;;  %v971_v5 = vadd.f32 %v1573_v52, %v915_v54 }
 0x195   : > { %v1048_v8 = vpack.c.bf16 %v1016_v61, %v1015_v60  ;;  %v1019_v9 = vmax.f32 %v969_v62, 0.0  ;;  %v1020_v10 = vmax.f32 %v970_v63, 0.0  ;;  %v972_v11 = vadd.f32 %v1575_v53, %v916_v59 }
 0x196   : > { %1075 = vst.msk [vmem:[%s1769_s3 + $0x80] sm:$0xff] %vm1587_vm6, %v1047_v2  ;;  %v1049_v15 = vpack.c.bf16 %v1018_v4, %v1017_v3  ;;  %v1021_v16 = vmax.f32 %v971_v5, 0.0  ;;  %v973_v17 = vadd.f32 %v1573_v52, %v917_v0  ;;  %v974_v18 = vadd.f32 %v1575_v53, %v918_v1 }
 0x197   : > { %1076 = vst.msk [vmem:[%s1769_s3 + $0x88] sm:$0xff] %vm1587_vm6, %v1048_v8  ;;  %v1050_v20 = vpack.c.bf16 %v1020_v10, %v1019_v9  ;;  %v1022_v21 = vmax.f32 %v972_v11, 0.0  ;;  %v975_v22 = vadd.f32 %v1573_v52, %v919_v6  ;;  %v976_v23 = vadd.f32 %v1575_v53, %v920_v7 }
 0x198   : > { %1077 = vst.msk [vmem:[%s1769_s3 + $0x90] sm:$0xff] %vm1587_vm6, %v1049_v15  ;;  %v1023_v25 = vmax.f32 %v973_v17, 0.0  ;;  %v1024_v26 = vmax.f32 %v974_v18, 0.0  ;;  %v977_v27 = vadd.f32 %v1573_v52, %v921_v13  ;;  %v978_v28 = vadd.f32 %v1575_v53, %v922_v14 }
 0x199   : > { %1078 = vst.msk [vmem:[%s1769_s3 + $0x98] sm:$0xff] %vm1587_vm6, %v1050_v20  ;;  %v1051_v29 = vpack.c.bf16 %v1022_v21, %v1021_v16  ;;  %v1025_v30 = vmax.f32 %v975_v22, 0.0  ;;  %v1026_v31 = vmax.f32 %v976_v23, 0.0  ;;  %v979_v32 = vadd.f32 %v1573_v52, %v923_v19 }
 0x19a   : > { %v1052_v33 = vpack.c.bf16 %v1024_v26, %v1023_v25  ;;  %v1027_v34 = vmax.f32 %v977_v27, 0.0  ;;  %v1028_v35 = vmax.f32 %v978_v28, 0.0  ;;  %v980_v36 = vadd.f32 %v1575_v53, %v924_v24 }
 0x19b   : > { %1079 = vst.msk [vmem:[%s1769_s3 + $0xa0] sm:$0xff] %vm1587_vm6, %v1051_v29  ;;  %v1053_v37 = vpack.c.bf16 %v1026_v31, %v1025_v30  ;;  %v1029_v38 = vmax.f32 %v979_v32, 0.0 }
 0x19c   : > { %1080 = vst.msk [vmem:[%s1769_s3 + $0xa8] sm:$0xff] %vm1587_vm6, %v1052_v33  ;;  %v1054_v52 = vpack.c.bf16 %v1028_v35, %v1027_v34  ;;  %v1030_v39 = vmax.f32 %v980_v36, 0.0 }
 0x19d   : > { %1081 = vst.msk [vmem:[%s1769_s3 + $0xb0] sm:$0xff] %vm1587_vm6, %v1053_v37 }
 0x19e   : > { %1082 = vst.msk [vmem:[%s1769_s3 + $0xb8] sm:$0xff] %vm1587_vm6, %v1054_v52  ;;  %v1055_v53 = vpack.c.bf16 %v1030_v39, %v1029_v38 }
 0x1a0   : > { %1086 = vst.msk [vmem:[%s1769_s3 + $0xc0] sm:$0x33] %vm1085_vm9, %v1055_v53 }
 0x1a1 PF: > { %p10_p11 = scmp.ge.s32.totalorder %s1393_s16, 15   ;;  %s1772_s12 = smov %s1347_s13 }
 0x1a2   : > { %s1773_s13 = smov %s1402_s19  ;;  %s1774_s14 = smov %s1393_s16 }
 0x1a3   :  { %12 = sbr.rel (!%p10_p11) target bundleno = 2 (0x2), region = 115 }

// kernel: lpips_forward.9
= control target key start
LH: loop header
LB: loop body
LE: loop exit
PB: predicated region body
PF: predicated region fallthrough
CT: control target
= control target key end

     0   :  { %s3181_s12 = smov 0   ;;  %s3183_s13 = smov 0   ;;  %s3885_s0 = inlined_call_operand.vmem [shape: bf16[36,1792], index: 0, kind: input, shape index: {}]   ;;  %s3886_s1 = inlined_call_operand.vmem [shape: bf16[1792,384], index: 1, kind: input, shape index: {}]   ;;  %s3887_s2 = inlined_call_operand.vmem [shape: f32[1,384], index: 2, kind: input, shape index: {}]   ;;  %s3888_s3 = inlined_call_operand.vmem [shape: bf16[36,384], index: 3, kind: output, shape index: {}]  }
   0x1   :  { %s3185_s14 = smov 0  }
   0x2 LB: > { %s3197_s15 = sadd.s32 4294967295, %s3158_s14   ;;  %s3200_s16 = sadd.s32 1, %s3158_s14   ;;  %s3158_s14 = sphi %s3185_s14, %s3891_s14   ;;  %s3154_s13 = sphi %s3183_s13, %s3890_s13   ;;  %s3150_s12 = sphi %s3181_s12, %s3889_s12  }
   0x3   : > { %s17_s17 = ssub.s32 %s3158_s14, %s3200_s16  ;;  %s20_s18 = sadd.s32 1, %s3154_s13 }
   0x4   : > { %p18_p0 = scmp.eq.s32.totalorder %s17_s17, 0  ;;  %p27_p1 = scmp.ne.s32.totalorder %s3154_s13, %s3150_s12 }
   0x5   : > { %p28_p2 = scmp.eq.s32.totalorder %s3158_s14, 0  ;;  %p2163_p4 = scmp.ge.s32.totalorder %s3158_s14, 2 }
   0x6   : > { %s3209_s19 = scalar_select %p18_p0, %s3154_s13, %s20_s18  }
   0x7   : > { %p29_p3 = por %p28_p2, %p27_p1  ;;  %124 = sbr.rel (%p2163_p4) target bundleno = 37 (0x25), region = 20 }
   0xc   : > { %127 = sbr.rel (!%p29_p3) target bundleno = 37 (0x25), region = 24  ;;  %s129_s20 = sand.u32 (%p29_p3), 1, %s3154_s13  }
   0xd   : > { %s2909_s21 = smul.u32 (%p29_p3), 28, %s3158_s14 }
   0xe   : > { %s3108_s22 = smul.u32 (%p29_p3), 140, %s129_s20 }
   0xf   : > { %s3217_s25 = scalar_lea.vmem (%p29_p3), %s3885_s0, %s2909_s21 }
  0x10   : > { %v149_v0 = vld [vmem:[%s3217_s25] sm:$0xff] (%p29_p3)  ;;  %v151_v1 = vld [vmem:[%s3217_s25 + $0x8] sm:$0xff] (%p29_p3)  ;;  %v153_v2 = vld [vmem:[%s3217_s25 + $0x10] sm:$0xff] (%p29_p3)  ;;  %s3222_s26 = scalar_lea.vmem (%p29_p3), [#allocation3], %s3108_s22 }
  0x11   : > { %150 = vst [vmem:[%s3222_s26] sm:$0xff] %v149_v0  ;;  %v155_v3 = vld [vmem:[%s3217_s25 + $0x38] sm:$0xff]  ;;  %v157_v4 = vld [vmem:[%s3217_s25 + $0x40] sm:$0xff]  ;;  %v159_v5 = vld [vmem:[%s3217_s25 + $0x48] sm:$0xff] }
  0x12   : > { %152 = vst [vmem:[%s3222_s26 + $0x8] sm:$0xff] %v151_v1  ;;  %v161_v6 = vld [vmem:[%s3217_s25 + $0x70] sm:$0xff]  ;;  %v163_v7 = vld [vmem:[%s3217_s25 + $0x78] sm:$0xff]  ;;  %v165_v8 = vld [vmem:[%s3217_s25 + $0x80] sm:$0xff] }
  0x13   : > { %154 = vst [vmem:[%s3222_s26 + $0x10] sm:$0xff] %v153_v2  ;;  %v167_v9 = vld [vmem:[%s3217_s25 + $0xa8] sm:$0xff]  ;;  %v169_v10 = vld [vmem:[%s3217_s25 + $0xb0] sm:$0xff]  ;;  %v171_v11 = vld [vmem:[%s3217_s25 + $0xb8] sm:$0xff] }
  0x14   : > { %156 = vst [vmem:[%s3222_s26 + $0x1c] sm:$0xff] %v155_v3  ;;  %v173_v12 = vld [vmem:[%s3217_s25 + $0xe0] sm:$0xff]  ;;  %v175_v13 = vld [vmem:[%s3217_s25 + $0xe8] sm:$0xff]  ;;  %v177_v14 = vld [vmem:[%s3217_s25 + $0xf0] sm:$0xff] }
  0x15   : > { %158 = vst [vmem:[%s3222_s26 + $0x24] sm:$0xff] %v157_v4  ;;  %v2165_v15 = vld [vmem:[%s3217_s25 + $0x18] sm:$0xf]  ;;  %v2167_v16 = vld [vmem:[%s3217_s25 + $0x50] sm:$0xf] }
  0x16   : > { %160 = vst [vmem:[%s3222_s26 + $0x2c] sm:$0xff] %v159_v5  ;;  %v2169_v17 = vld [vmem:[%s3217_s25 + $0x88] sm:$0xf]  ;;  %v2171_v18 = vld [vmem:[%s3217_s25 + $0xc0] sm:$0xf] }
  0x17   : > { %162 = vst [vmem:[%s3222_s26 + $0x38] sm:$0xff] %v161_v6  ;;  %v2173_v19 = vld [vmem:[%s3217_s25 + $0xf8] sm:$0xf] }
  0x18   : > { %164 = vst [vmem:[%s3222_s26 + $0x40] sm:$0xff] %v163_v7 }
  0x19   : > { %166 = vst [vmem:[%s3222_s26 + $0x48] sm:$0xff] %v165_v8 }
  0x1a   : > { %168 = vst [vmem:[%s3222_s26 + $0x54] sm:$0xff] %v167_v9 }
  0x1b   : > { %170 = vst [vmem:[%s3222_s26 + $0x5c] sm:$0xff] %v169_v10 }
  0x1c   : > { %172 = vst [vmem:[%s3222_s26 + $0x64] sm:$0xff] %v171_v11 }
  0x1d   : > { %174 = vst [vmem:[%s3222_s26 + $0x70] sm:$0xff] %v173_v12 }
  0x1e   : > { %176 = vst [vmem:[%s3222_s26 + $0x78] sm:$0xff] %v175_v13 }
  0x1f   : > { %178 = vst [vmem:[%s3222_s26 + $0x80] sm:$0xff] %v177_v14 }
  0x20   : > { %2166 = vst [vmem:[%s3222_s26 + $0x18] sm:$0xf] %v2165_v15 }
  0x21   : > { %2168 = vst [vmem:[%s3222_s26 + $0x34] sm:$0xf] %v2167_v16 }
  0x22   : > { %2170 = vst [vmem:[%s3222_s26 + $0x50] sm:$0xf] %v2169_v17 }
  0x23   : > { %2172 = vst [vmem:[%s3222_s26 + $0x6c] sm:$0xf] %v2171_v18 }
  0x24   : > { %2174 = vst [vmem:[%s3222_s26 + $0x88] sm:$0xf] %v2173_v19 }
  0x25 PF: > { %p2175_p5 = scmp.ge.s32.totalorder %s3158_s14, 1  ;;  %p211_p6 = scmp.lt.s32.totalorder %s3158_s14, 3 }
  0x27   : > { %p212_p7 = pnand %p2175_p5, %p211_p6 }
  0x28   : > { %s218_s27 = sand.u32 (!%p212_p7), 1, %s3150_s12   ;;  %s243_s28 = smul.u32 (!%p212_p7), 112, %s3197_s15 }
  0x29   : > { %215 = sbr.rel (%p212_p7) target bundleno = 514 (0x202), region = 54  ;;  %p2177_p9 = scmp.ne.s32.totalorder (!%p212_p7), %s3197_s15, 0 }
  0x2a   : > { %s3109_s29 = smul.u32 (!%p212_p7), 140, %s218_s27  ;;  %p244_p8 = scmp.lt.s32.totalorder (!%p212_p7), %s243_s28, 223 }
  0x2c   : > { %s3270_s7 = scalar_lea.vmem (!%p212_p7), [#allocation3], %s3109_s29 }
  0x2e   : > { %s3893_s28 = smov (!%p244_p8, %s243_s28), 223  ;;  %253 = sbr.rel (%p2177_p9) target bundleno = 67 (0x43), region = 62 }
  0x2f   : > { %s3110_s30 = smul.u32 12, %s3893_s28 }
  0x31   : > { %s3268_s6 = scalar_lea.vmem %s3886_s1, %s3110_s30 }
  0x33   : > { %v3160_v20 = vmov 0.0  }
  0x34   : > { %254 = vst [vmem:[#allocation2 + $0x30] sm:$0xff] %v3160_v20 }
  0x35   : > { %255 = vst [vmem:[#allocation2] sm:$0xff] %v3160_v20 }
  0x36   : > { %256 = vst [vmem:[#allocation2 + $0x58] sm:$0xff] %v3160_v20 }
  0x37   : > { %257 = vst [vmem:[#allocation2 + $0x18] sm:$0xff] %v3160_v20 }
  0x38   : > { %258 = vst [vmem:[#allocation2 + $0x50] sm:$0xff] %v3160_v20 }
  0x39   : > { %259 = vst [vmem:[#allocation2 + $0x68] sm:$0xff] %v3160_v20 }
  0x3a   : > { %260 = vst [vmem:[#allocation2 + $0x8] sm:$0xff] %v3160_v20 }
  0x3b   : > { %261 = vst [vmem:[#allocation2 + $0x48] sm:$0xff] %v3160_v20 }
  0x3c   : > { %262 = vst [vmem:[#allocation2 + $0x40] sm:$0xff] %v3160_v20 }
  0x3d   : > { %263 = vst [vmem:[#allocation2 + $0x20] sm:$0xff] %v3160_v20 }
  0x3e   : > { %264 = vst [vmem:[#allocation2 + $0x10] sm:$0xff] %v3160_v20 }
  0x3f   : > { %265 = vst [vmem:[#allocation2 + $0x38] sm:$0xff] %v3160_v20 }
  0x40   : > { %266 = vst [vmem:[#allocation2 + $0x60] sm:$0xf] %v3160_v20 }
  0x41   : > { %267 = vst [vmem:[#allocation2 + $0x70] sm:$0xf] %v3160_v20 }
  0x42   : > { %268 = vst [vmem:[#allocation2 + $0x28] sm:$0xf] %v3160_v20 }
  0x43 PF: > { %v2320_v21 = vld [vmem:[%s3268_s6 + $0xa8] sm:$0xf]  ;;  %v2946_v22 = vld [vmem:[%s3268_s6 + $0xb0] sm:$0xf0]  ;;  %v2308_v30 = vld [vmem:[%s3268_s6 + $0x90] sm:$0xf] }
  0x44   : > { %v2512_v23 = vld [vmem:[%s3268_s6 + $0x228] sm:$0xf]  ;;  %v2321_v24 = vor.u32 %v2946_v22, %v2320_v21  ;;  %v2994_v25 = vld [vmem:[%s3268_s6 + $0x230] sm:$0xf0]  ;;  %v2943_v31 = vld [vmem:[%s3268_s6 + $0x98] sm:$0xf0] }
  0x45   : > { %v2608_v26 = vld [vmem:[%s3268_s6 + $0x2e8] sm:$0xf]  ;;  %v3018_v27 = vld [vmem:[%s3268_s6 + $0x2f0] sm:$0xf0]  ;;  %v2513_v28 = vor.u32 %v2994_v25, %v2512_v23  ;;  %v2500_v32 = vld [vmem:[%s3268_s6 + $0x210] sm:$0xf]  ;;  %v2309_v33 = vor.u32 %v2943_v31, %v2308_v30 }
  0x46   : > { %v2609_v29 = vor.u32 %v3018_v27, %v2608_v26  ;;  %1521 = vmatpush.bf16.msra.mxu0 %v2321_v24  ;;  %3092 = vmatpush.bf16.msra.mxu1 %v2321_v24  ;;  %v2991_v34 = vld [vmem:[%s3268_s6 + $0x218] sm:$0xf0]  ;;  %v2596_v35 = vld [vmem:[%s3268_s6 + $0x2d0] sm:$0xf]  ;;  %v2296_v39 = vld [vmem:[%s3268_s6 + $0x78] sm:$0xf] }
  0x47   : > { %v3015_v36 = vld [vmem:[%s3268_s6 + $0x2d8] sm:$0xf0]  ;;  %1567 = vmatpush.bf16.msra.mxu2 %v2513_v28  ;;  %v2501_v37 = vor.u32 %v2991_v34, %v2500_v32  ;;  %v2940_v40 = vld [vmem:[%s3268_s6 + $0x80] sm:$0xf0]  ;;  %v2488_v41 = vld [vmem:[%s3268_s6 + $0x1f8] sm:$0xf] }
  0x48   : > { %1590 = vmatpush.bf16.msra.mxu3 %v2609_v29  ;;  %v2597_v38 = vor.u32 %v3015_v36, %v2596_v35  ;;  %v2988_v42 = vld [vmem:[%s3268_s6 + $0x200] sm:$0xf0]  ;;  %v2584_v43 = vld [vmem:[%s3268_s6 + $0x2b8] sm:$0xf]  ;;  %v2297_v45 = vor.u32 %v2940_v40, %v2296_v39  ;;  %v2284_v48 = vld [vmem:[%s3268_s6 + $0x60] sm:$0xf] }
  0x49   : > { %v3012_v44 = vld [vmem:[%s3268_s6 + $0x2c0] sm:$0xf0]  ;;  %v2489_v46 = vor.u32 %v2988_v42, %v2488_v41  ;;  %v2937_v49 = vld [vmem:[%s3268_s6 + $0x68] sm:$0xf0]  ;;  %v2476_v50 = vld [vmem:[%s3268_s6 + $0x1e0] sm:$0xf] }
  0x4a   : > { %1522 = vmatpush.bf16.msra.mxu0 %v2309_v33  ;;  %3093 = vmatpush.bf16.msra.mxu1 %v2309_v33  ;;  %v2585_v47 = vor.u32 %v3012_v44, %v2584_v43  ;;  %v2985_v51 = vld [vmem:[%s3268_s6 + $0x1e8] sm:$0xf0]  ;;  %v2572_v52 = vld [vmem:[%s3268_s6 + $0x2a0] sm:$0xf]  ;;  %v2285_v54 = vor.u32 %v2937_v49, %v2284_v48  ;;  %v2272_v57 = vld [vmem:[%s3268_s6 + $0x48] sm:$0xf] }
  0x4b   : > { %1568 = vmatpush.bf16.msra.mxu2 %v2501_v37  ;;  %v3009_v53 = vld [vmem:[%s3268_s6 + $0x2a8] sm:$0xf0]  ;;  %v2477_v55 = vor.u32 %v2985_v51, %v2476_v50  ;;  %v2934_v58 = vld [vmem:[%s3268_s6 + $0x50] sm:$0xf0]  ;;  %v2464_v59 = vld [vmem:[%s3268_s6 + $0x1c8] sm:$0xf] }
  0x4c   : > { %1591 = vmatpush.bf16.msra.mxu3 %v2597_v38  ;;  %v2573_v56 = vor.u32 %v3009_v53, %v2572_v52  ;;  %v2982_v60 = vld [vmem:[%s3268_s6 + $0x1d0] sm:$0xf0]  ;;  %v2560_v61 = vld [vmem:[%s3268_s6 + $0x288] sm:$0xf]  ;;  %v2273_v63 = vor.u32 %v2934_v58, %v2272_v57  ;;  %v2260_v2 = vld [vmem:[%s3268_s6 + $0x30] sm:$0xf] }
  0x4d   : > { %v3006_v62 = vld [vmem:[%s3268_s6 + $0x290] sm:$0xf0]  ;;  %v2465_v0 = vor.u32 %v2982_v60, %v2464_v59  ;;  %v2931_v3 = vld [vmem:[%s3268_s6 + $0x38] sm:$0xf0]  ;;  %v2452_v4 = vld [vmem:[%s3268_s6 + $0x1b0] sm:$0xf] }
  0x4e   : > { %1523 = vmatpush.bf16.msra.mxu0 %v2297_v45  ;;  %3094 = vmatpush.bf16.msra.mxu1 %v2297_v45  ;;  %v2561_v1 = vor.u32 %v3006_v62, %v2560_v61  ;;  %v2979_v5 = vld [vmem:[%s3268_s6 + $0x1b8] sm:$0xf0]  ;;  %v2548_v6 = vld [vmem:[%s3268_s6 + $0x270] sm:$0xf]  ;;  %v2261_v8 = vor.u32 %v2931_v3, %v2260_v2  ;;  %v2248_v11 = vld [vmem:[%s3268_s6 + $0x18] sm:$0xf] }
  0x4f   : > { %1569 = vmatpush.bf16.msra.mxu2 %v2489_v46  ;;  %v3003_v7 = vld [vmem:[%s3268_s6 + $0x278] sm:$0xf0]  ;;  %v2453_v9 = vor.u32 %v2979_v5, %v2452_v4  ;;  %v2928_v12 = vld [vmem:[%s3268_s6 + $0x20] sm:$0xf0]  ;;  %v2440_v13 = vld [vmem:[%s3268_s6 + $0x198] sm:$0xf] }
  0x50   : > { %1592 = vmatpush.bf16.msra.mxu3 %v2585_v47  ;;  %v2549_v10 = vor.u32 %v3003_v7, %v2548_v6  ;;  %v2976_v14 = vld [vmem:[%s3268_s6 + $0x1a0] sm:$0xf0]  ;;  %v2536_v15 = vld [vmem:[%s3268_s6 + $0x258] sm:$0xf]  ;;  %v2236_v17 = vld [vmem:[%s3268_s6] sm:$0xf]  ;;  %v2249_v18 = vor.u32 %v2928_v12, %v2248_v11 }
  0x51   : > { %v3000_v16 = vld [vmem:[%s3268_s6 + $0x260] sm:$0xf0]  ;;  %v2925_v19 = vld [vmem:[%s3268_s6 + $0x8] sm:$0xf0]  ;;  %v2416_v20 = vld [vmem:[%s3268_s6 + $0x168] sm:$0xf]  ;;  %v2441_v22 = vor.u32 %v2976_v14, %v2440_v13 }
  0x52   : > { %1524 = vmatpush.bf16.msra.mxu0 %v2285_v54  ;;  %3095 = vmatpush.bf16.msra.mxu1 %v2285_v54  ;;  %v3319_v21 = vld [vmem:[%s3270_s7 + $0x70] sm:$0x33]  ;;  %v2537_v23 = vor.u32 %v3000_v16, %v2536_v15  ;;  %v2428_v25 = vld [vmem:[%s3268_s6 + $0x180] sm:$0xf]  ;;  %v2180_v29 = vld [vmem:[%s3270_s7] sm:$0xf]  ;;  %v2237_v34 = vor.u32 %v2925_v19, %v2236_v17 }
  0x53   : > { %1570 = vmatpush.bf16.msra.mxu2 %v2477_v55  ;;  %v2970_v24 = vld [vmem:[%s3268_s6 + $0x170] sm:$0xf0]  ;;  %v2973_v26 = vld [vmem:[%s3268_s6 + $0x188] sm:$0xf0]  ;;  %v2524_v27 = vld [vmem:[%s3268_s6 + $0x240] sm:$0xf]  ;;  %v576_v33 = vunpack.c.l.b16 %v3319_v21 }
  0x54   : > { %1593 = vmatpush.bf16.msra.mxu3 %v2573_v56  ;;  %v2997_v28 = vld [vmem:[%s3268_s6 + $0x248] sm:$0xf0]  ;;  %v2913_v30 = vld [vmem:[%s3270_s7 + $0x18] sm:$0xf0]  ;;  %v2704_v31 = vld [vmem:[%s3268_s6 + $0x3a8] sm:$0xf]  ;;  %v2417_v38 = vor.u32 %v2970_v24, %v2416_v20  ;;  %v2429_v39 = vor.u32 %v2973_v26, %v2428_v25 }
  0x55   : > { %v3042_v32 = vld [vmem:[%s3268_s6 + $0x3b0] sm:$0xf0]  ;;  %v2404_v35 = vld [vmem:[%s3268_s6 + $0x150] sm:$0xf]  ;;  %v2967_v36 = vld [vmem:[%s3268_s6 + $0x158] sm:$0xf0]  ;;  %v2525_v43 = vor.u32 %v2997_v28, %v2524_v27  ;;  %v3340_v48 = vor.u32 %v2913_v30, %v2180_v29  ;;  %v3342_v49 = vpack.c.b16 %v576_v33, %v576_v33 }
  0x56   : > { %1525 = vmatpush.bf16.msra.mxu0 %v2273_v63  ;;  %3096 = vmatpush.bf16.msra.mxu1 %v2273_v63  ;;  %v2188_v37 = vld [vmem:[%s3270_s7 + $0x8] sm:$0xf]  ;;  %v2914_v40 = vld [vmem:[%s3270_s7 + $0x20] sm:$0xf0]  ;;  %v2911_v41 = vld [vmem:[%s3270_s7 + $0xc] sm:$0xf]  ;;  %v2705_v44 = vor.u32 %v3042_v32, %v2704_v31  ;;  %v2405_v55 = vor.u32 %v2967_v36, %v2404_v35 }
  0x57   : > { %1571 = vmatpush.bf16.msra.mxu2 %v2465_v0  ;;  %v2190_v42 = vld [vmem:[%s3270_s7 + $0x24] sm:$0xf0]  ;;  %v2692_v45 = vld [vmem:[%s3268_s6 + $0x390] sm:$0xf]  ;;  %v2322_v47 = vld [vmem:[%s3268_s6 + $0xb4] sm:$0xf0]  ;;  %v3347_v53 = vor.u32 %v2914_v40, %v2188_v37 }
  0x58   : > { %1594 = vmatpush.bf16.msra.mxu3 %v2561_v1  ;;  %v2945_v46 = vld [vmem:[%s3268_s6 + $0xac] sm:$0xf]  ;;  %v3039_v50 = vld [vmem:[%s3268_s6 + $0x398] sm:$0xf0]  ;;  %v2896_v51 = vld [vmem:[%s3268_s6 + $0x528] sm:$0xf]  ;;  %v3349_v56 = vor.u32 %v2911_v41, %v2190_v42 }
  0x59   : > { %v3090_v52 = vld [vmem:[%s3268_s6 + $0x530] sm:$0xf0]  ;;  %v2325_v54 = vor.u32 %v2945_v46, %v2322_v47  ;;  %v2310_v58 = vld [vmem:[%s3268_s6 + $0x9c] sm:$0xf0]  ;;  %v2693_v59 = vor.u32 %v3039_v50, %v2692_v45  ;;  %v2392_v60 = vld [vmem:[%s3268_s6 + $0x138] sm:$0xf] }
  0x5a   : > { %1526 = vmatpush.bf16.msra.mxu0 %v2261_v8  ;;  %3097 = vmatpush.bf16.msra.mxu1 %v2261_v8  ;;  %v2942_v57 = vld [vmem:[%s3268_s6 + $0x94] sm:$0xf]  ;;  %v2964_v61 = vld [vmem:[%s3268_s6 + $0x140] sm:$0xf0]  ;;  %v2680_v62 = vld [vmem:[%s3268_s6 + $0x378] sm:$0xf]  ;;  %v2897_v63 = vor.u32 %v3090_v52, %v2896_v51 }
  0x5b   : > { %1572 = vmatpush.bf16.msra.mxu2 %v2453_v9  ;;  %v3036_v0 = vld [vmem:[%s3268_s6 + $0x380] sm:$0xf0]  ;;  %v2884_v1 = vld [vmem:[%s3268_s6 + $0x510] sm:$0xf]  ;;  %v3087_v2 = vld [vmem:[%s3268_s6 + $0x518] sm:$0xf0]  ;;  %v2313_v3 = vor.u32 %v2942_v57, %v2310_v58  ;;  %v2393_v4 = vor.u32 %v2964_v61, %v2392_v60 }
  0x5c   : > { %1595 = vmatpush.bf16.msra.mxu3 %v2549_v10  ;;  %v2939_v5 = vld [vmem:[%s3268_s6 + $0x7c] sm:$0xf]  ;;  %v2298_v6 = vld [vmem:[%s3268_s6 + $0x84] sm:$0xf0]  ;;  %v2681_v7 = vor.u32 %v3036_v0, %v2680_v62  ;;  %v2380_v8 = vld [vmem:[%s3268_s6 + $0x120] sm:$0xf]  ;;  %v2885_v11 = vor.u32 %v3087_v2, %v2884_v1 }
  0x5d   : > { %v2961_v9 = vld [vmem:[%s3268_s6 + $0x128] sm:$0xf0]  ;;  %v2668_v10 = vld [vmem:[%s3268_s6 + $0x360] sm:$0xf]  ;;  %v2872_v13 = vld [vmem:[%s3268_s6 + $0x4f8] sm:$0xf]  ;;  %v2301_v16 = vor.u32 %v2939_v5, %v2298_v6 }
  0x5e   : > { %1527 = vmatpush.bf16.msra.mxu0 %v2249_v18  ;;  %3098 = vmatpush.bf16.msra.mxu1 %v2249_v18  ;;  %v3033_v12 = vld [vmem:[%s3268_s6 + $0x368] sm:$0xf0]  ;;  %v3084_v14 = vld [vmem:[%s3268_s6 + $0x500] sm:$0xf0]  ;;  %v2368_v15 = vld [vmem:[%s3268_s6 + $0x108] sm:$0xf]  ;;  %v2381_v17 = vor.u32 %v2961_v9, %v2380_v8 }
  0x5f   : > { %1573 = vmatpush.bf16.msra.mxu2 %v2441_v22  ;;  %v2958_v18 = vld [vmem:[%s3268_s6 + $0x110] sm:$0xf0]  ;;  %v2936_v19 = vld [vmem:[%s3268_s6 + $0x64] sm:$0xf]  ;;  %v2286_v20 = vld [vmem:[%s3268_s6 + $0x6c] sm:$0xf0]  ;;  %v2669_v22 = vor.u32 %v3033_v12, %v2668_v10  ;;  %v2873_v26 = vor.u32 %v3084_v14, %v2872_v13 }
  0x60   : > { %1596 = vmatpush.bf16.msra.mxu3 %v2537_v23  ;;  %v2208_v23 = vld [vmem:[%s3270_s7 + $0x38] sm:$0xf]  ;;  %v2920_v24 = vld [vmem:[%s3270_s7 + $0x50] sm:$0xf0]  ;;  %v2656_v25 = vld [vmem:[%s3268_s6 + $0x348] sm:$0xf]  ;;  %v2289_v33 = vor.u32 %v2936_v19, %v2286_v20 }
  0x61   : > { %v3030_v27 = vld [vmem:[%s3268_s6 + $0x350] sm:$0xf0]  ;;  %v2860_v28 = vld [vmem:[%s3268_s6 + $0x4e0] sm:$0xf]  ;;  %v3081_v29 = vld [vmem:[%s3268_s6 + $0x4e8] sm:$0xf0] }
  0x62   : > { %1528 = vmatpush.bf16.msra.mxu0 %v2237_v34  ;;  %3099 = vmatpush.bf16.msra.mxu1 %v2237_v34  ;;  %v2356_v30 = vld [vmem:[%s3268_s6 + $0xf0] sm:$0xf]  ;;  %v2955_v31 = vld [vmem:[%s3268_s6 + $0xf8] sm:$0xf0]  ;;  %v2216_v32 = vld [vmem:[%s3270_s7 + $0x40] sm:$0xf]  ;;  %v2369_v34 = vor.u32 %v2958_v18, %v2368_v15  ;;  %v2861_v42 = vor.u32 %v3081_v29, %v2860_v28 }
  0x63   : > { %1574 = vmatpush.bf16.msra.mxu2 %v2429_v39  ;;  %v2921_v35 = vld [vmem:[%s3270_s7 + $0x58] sm:$0xf0]  ;;  %v2933_v36 = vld [vmem:[%s3268_s6 + $0x4c] sm:$0xf]  ;;  %v2274_v37 = vld [vmem:[%s3268_s6 + $0x54] sm:$0xf0]  ;;  %v2357_v51 = vor.u32 %v2955_v31, %v2356_v30 }
  0x64   : > { %1597 = vmatpush.bf16.msra.mxu3 %v2525_v43  ;;  %v2918_v39 = vld [vmem:[%s3270_s7 + $0x44] sm:$0xf]  ;;  %v2218_v40 = vld [vmem:[%s3270_s7 + $0x5c] sm:$0xf0]  ;;  %v2644_v41 = vld [vmem:[%s3268_s6 + $0x330] sm:$0xf]  ;;  %v3390_v43 = vor.u32 %v2920_v24, %v2208_v23  ;;  %v3395_v47 = vor.u32 %v2921_v35, %v2216_v32  ;;  %v2277_v50 = vor.u32 %v2933_v36, %v2274_v37 }
  0x65   : > { %1529 = vmatmul.bf16.vlgmr.msra.gmra.mxu0 %v3340_v48  ;;  %1539 = vmatmul.bf16.vlgmr.msra.gmra.mxu1 %v3342_v49  ;;  %v2848_v45 = vld [vmem:[%s3268_s6 + $0x4c8] sm:$0xf]  ;;  %v3078_v46 = vld [vmem:[%s3268_s6 + $0x4d0] sm:$0xf0]  ;;  %v3397_v52 = vor.u32 %v2918_v39, %v2218_v40  ;;  %v2344_v58 = vld [vmem:[%s3268_s6 + $0xd8] sm:$0xf] }
  0x66   : > { %1544 = vmatpush.bf16.msrb.mxu1 %v2417_v38  ;;  %1613 = vmatpush.bf16.msrb.mxu0 %v2705_v44  ;;  %v2657_v38 = vor.u32 %v3030_v27, %v2656_v25  ;;  %v3027_v44 = vld [vmem:[%s3268_s6 + $0x338] sm:$0xf0]  ;;  %v2632_v60 = vld [vmem:[%s3268_s6 + $0x318] sm:$0xf]  ;;  %v2849_v61 = vor.u32 %v3078_v46, %v2848_v45  ;;  %v3024_v62 = vld [vmem:[%s3268_s6 + $0x320] sm:$0xf0] }
  0x67   : > { %1575 = vmatmul.bf16.vlgmr.msra.gmra.mxu2 %v3347_v53  ;;  %1598 = vmatmul.bf16.vlgmr.msra.gmra.mxu3 %v3349_v56  ;;  %v2645_v57 = vor.u32 %v3027_v44, %v2644_v41  ;;  %v3075_v0 = vld [vmem:[%s3268_s6 + $0x4b8] sm:$0xf0]  ;;  %v2250_v5 = vld [vmem:[%s3268_s6 + $0x24] sm:$0xf0]  ;;  %v2633_v6 = vor.u32 %v3024_v62, %v2632_v60  ;;  %v2620_v8 = vld [vmem:[%s3268_s6 + $0x300] sm:$0xf] }
  0x68   : > { %1682 = vmatpush.bf16.msrb.mxu3 %v2325_v54  ;;  %1659 = vmatpush.bf16.msrb.mxu2 %v2897_v63  ;;  %v2930_v54 = vld [vmem:[%s3268_s6 + $0x34] sm:$0xf]  ;;  %v2836_v63 = vld [vmem:[%s3268_s6 + $0x4b0] sm:$0xf]  ;;  %v3021_v9 = vld [vmem:[%s3268_s6 + $0x308] sm:$0xf0] }
  0x69   : > { %v2837_v10 = vor.u32 %v3075_v0, %v2836_v63  ;;  %v2182_v12 = vld [vmem:[%s3270_s7 + $0x1c] sm:$0xf0]  ;;  %v2800_v13 = vld [vmem:[%s3268_s6 + $0x468] sm:$0xf]  ;;  %v3066_v14 = vld [vmem:[%s3268_s6 + $0x470] sm:$0xf0]  ;;  %v2621_v25 = vor.u32 %v3021_v9, %v2620_v8 }
  0x6a   : > { %1545 = vmatpush.bf16.msrb.mxu1 %v2405_v55  ;;  %1614 = vmatpush.bf16.msrb.mxu0 %v2693_v59  ;;  %v2262_v55 = vld [vmem:[%s3268_s6 + $0x3c] sm:$0xf0]  ;;  %v2952_v59 = vld [vmem:[%s3268_s6 + $0xe0] sm:$0xf0]  ;;  %v2824_v15 = vld [vmem:[%s3268_s6 + $0x498] sm:$0xf] }
  0x6b   : > { %v2265_v1 = vor.u32 %v2930_v54, %v2262_v55  ;;  %v2345_v2 = vor.u32 %v2952_v59, %v2344_v58  ;;  %v2969_v18 = vld [vmem:[%s3268_s6 + $0x16c] sm:$0xf]  ;;  %v2418_v19 = vld [vmem:[%s3268_s6 + $0x174] sm:$0xf0]  ;;  %v2924_v23 = vld [vmem:[%s3268_s6 + $0x4] sm:$0xf] }
  0x6c   : > { %1683 = vmatpush.bf16.msrb.mxu3 %v2313_v3  ;;  %1660 = vmatpush.bf16.msrb.mxu2 %v2885_v11  ;;  %v2332_v3 = vld [vmem:[%s3268_s6 + $0xc0] sm:$0xf]  ;;  %v2910_v11 = vld [vmem:[%s3270_s7 + $0x4] sm:$0xf]  ;;  %v2238_v24 = vld [vmem:[%s3268_s6 + $0xc] sm:$0xf0]  ;;  %v2421_v31 = vor.u32 %v2969_v18, %v2418_v19 }
  0x6d   : > { %v2196_v27 = vld [vmem:[%s3270_s7 + $0x10] sm:$0xf]  ;;  %v2788_v28 = vld [vmem:[%s3268_s6 + $0x450] sm:$0xf]  ;;  %v3063_v29 = vld [vmem:[%s3268_s6 + $0x458] sm:$0xf0]  ;;  %v3430_v32 = vor.u32 %v2910_v11, %v2182_v12  ;;  %v2241_v37 = vor.u32 %v2924_v23, %v2238_v24 }
  0x6e   : > { %1546 = vmatpush.bf16.msrb.mxu1 %v2393_v4  ;;  %1615 = vmatpush.bf16.msrb.mxu0 %v2681_v7  ;;  %v2927_v4 = vld [vmem:[%s3268_s6 + $0x1c] sm:$0xf]  ;;  %v2949_v7 = vld [vmem:[%s3268_s6 + $0xc8] sm:$0xf0]  ;;  %v2812_v35 = vld [vmem:[%s3268_s6 + $0x480] sm:$0xf]  ;;  %v2789_v41 = vor.u32 %v3063_v29, %v2788_v28 }
  0x6f   : > { %v2333_v20 = vor.u32 %v2949_v7, %v2332_v3  ;;  %v3069_v36 = vld [vmem:[%s3268_s6 + $0x488] sm:$0xf0]  ;;  %v2966_v39 = vld [vmem:[%s3268_s6 + $0x154] sm:$0xf]  ;;  %v2406_v40 = vld [vmem:[%s3268_s6 + $0x15c] sm:$0xf0] }
  0x70   : > { %1684 = vmatpush.bf16.msrb.mxu3 %v2301_v16  ;;  %1661 = vmatpush.bf16.msrb.mxu2 %v2873_v26  ;;  %v3072_v16 = vld [vmem:[%s3268_s6 + $0x4a0] sm:$0xf0]  ;;  %v2801_v26 = vor.u32 %v3066_v14, %v2800_v13  ;;  %v2610_v44 = vld [vmem:[%s3268_s6 + $0x2f4] sm:$0xf0]  ;;  %v2409_v55 = vor.u32 %v2966_v39, %v2406_v40  ;;  %v2963_v58 = vld [vmem:[%s3268_s6 + $0x13c] sm:$0xf] }
  0x71   : > { %v2825_v30 = vor.u32 %v3072_v16, %v2824_v15  ;;  %v2776_v46 = vld [vmem:[%s3268_s6 + $0x438] sm:$0xf]  ;;  %v2394_v59 = vld [vmem:[%s3268_s6 + $0x144] sm:$0xf0]  ;;  %v2764_v62 = vld [vmem:[%s3268_s6 + $0x420] sm:$0xf] }
  0x72   : > { %1547 = vmatpush.bf16.msrb.mxu1 %v2381_v17  ;;  %1616 = vmatpush.bf16.msrb.mxu0 %v2669_v22  ;;  %v2253_v17 = vor.u32 %v2927_v4, %v2250_v5  ;;  %v301_v22 = vld [vmem:[%s3270_s7 + $0x78] sm:$0x33]  ;;  %v3057_v63 = vld [vmem:[%s3268_s6 + $0x428] sm:$0xf0]  ;;  %v2706_v4 = vld [vmem:[%s3268_s6 + $0x3b4] sm:$0xf0] }
  0x73   : > { %v3014_v0 = vld [vmem:[%s3268_s6 + $0x2d4] sm:$0xf]  ;;  %v3041_v3 = vld [vmem:[%s3268_s6 + $0x3ac] sm:$0xf]  ;;  %v2960_v5 = vld [vmem:[%s3268_s6 + $0x124] sm:$0xf]  ;;  %v2765_v9 = vor.u32 %v3057_v63, %v2764_v62 }
  0x74   : > { %1685 = vmatpush.bf16.msrb.mxu3 %v2289_v33  ;;  %1662 = vmatpush.bf16.msrb.mxu2 %v2861_v42  ;;  %v2915_v33 = vld [vmem:[%s3270_s7 + $0x28] sm:$0xf0]  ;;  %v3017_v42 = vld [vmem:[%s3268_s6 + $0x2ec] sm:$0xf]  ;;  %v2709_v8 = vor.u32 %v3041_v3, %v2706_v4  ;;  %v3011_v11 = vld [vmem:[%s3268_s6 + $0x2bc] sm:$0xf] }
  0x75   : > { %1534 = vmatmul.bf16.gmra.mxu0 %v3390_v43  ;;  %v3439_v45 = vor.u32 %v2915_v33, %v2196_v27  ;;  %v2613_v60 = vor.u32 %v3017_v42, %v2610_v44  ;;  %v2586_v12 = vld [vmem:[%s3268_s6 + $0x2c4] sm:$0xf0]  ;;  %v3054_v13 = vld [vmem:[%s3268_s6 + $0x410] sm:$0xf0]  ;;  %v2694_v15 = vld [vmem:[%s3268_s6 + $0x39c] sm:$0xf0] }
  0x76   : > { %1548 = vmatpush.bf16.msrb.mxu1 %v2369_v34  ;;  %1617 = vmatpush.bf16.msrb.mxu0 %v2657_v38  ;;  %v578_v34 = vunpack.c.l.b16 %v301_v22  ;;  %v579_v38 = vunpack.c.h.b16 %v301_v22  ;;  %v3038_v14 = vld [vmem:[%s3268_s6 + $0x394] sm:$0xf]  ;;  %v3035_v19 = vld [vmem:[%s3268_s6 + $0x37c] sm:$0xf]  ;;  %v2957_v23 = vld [vmem:[%s3268_s6 + $0x10c] sm:$0xf] }
  0x77   : > { %1580 = vmatmul.bf16.gmra.mxu2 %v3395_v47  ;;  %1603 = vmatmul.bf16.gmra.mxu3 %v3397_v52  ;;  %v2917_v16 = vld [vmem:[%s3270_s7 + $0x3c] sm:$0xf]  ;;  %v2697_v18 = vor.u32 %v3038_v14, %v2694_v15  ;;  %v2210_v22 = vld [vmem:[%s3270_s7 + $0x54] sm:$0xf0]  ;;  %v2370_v24 = vld [vmem:[%s3268_s6 + $0x114] sm:$0xf0] }
  0x78   : > { %1686 = vmatpush.bf16.msrb.mxu3 %v2277_v50  ;;  %1663 = vmatpush.bf16.msrb.mxu2 %v2849_v61  ;;  %v3060_v50 = vld [vmem:[%s3268_s6 + $0x440] sm:$0xf0]  ;;  %v3444_v54 = vpack.c.b16 %v578_v34, %v578_v34  ;;  %v2574_v28 = vld [vmem:[%s3268_s6 + $0x2ac] sm:$0xf0]  ;;  %v3477_v33 = vor.u32 %v2917_v16, %v2210_v22  ;;  %v2224_v34 = vld [vmem:[%s3270_s7 + $0x48] sm:$0xf] }
  0x79   : > { %v2777_v61 = vor.u32 %v3060_v50, %v2776_v46  ;;  %v3008_v27 = vld [vmem:[%s3268_s6 + $0x2a4] sm:$0xf]  ;;  %v2740_v29 = vld [vmem:[%s3268_s6 + $0x3f0] sm:$0xf]  ;;  %v2954_v39 = vld [vmem:[%s3268_s6 + $0xf4] sm:$0xf] }
  0x7a   : > { %1549 = vmatpush.bf16.msrb.mxu1 %v2357_v51  ;;  %1618 = vmatpush.bf16.msrb.mxu0 %v2645_v57  ;;  %v2813_v51 = vor.u32 %v3069_v36, %v2812_v35  ;;  %v3446_v57 = vpack.c.b16 %v579_v38, %v579_v38  ;;  %v2922_v35 = vld [vmem:[%s3270_s7 + $0x60] sm:$0xf0]  ;;  %v2204_v36 = vld [vmem:[%s3270_s7 + $0x18] sm:$0xf]  ;;  %v2916_v38 = vld [vmem:[%s3270_s7 + $0x30] sm:$0xf0] }
  0x7b   : > { %v2358_v40 = vld [vmem:[%s3268_s6 + $0xfc] sm:$0xf0]  ;;  %v2728_v44 = vld [vmem:[%s3268_s6 + $0x3d8] sm:$0xf]  ;;  %v3486_v46 = vor.u32 %v2922_v35, %v2224_v34  ;;  %v3048_v50 = vld [vmem:[%s3268_s6 + $0x3e0] sm:$0xf0] }
  0x7c   : > { %1687 = vmatpush.bf16.msrb.mxu3 %v2265_v1  ;;  %1664 = vmatpush.bf16.msrb.mxu2 %v2837_v10  ;;  %v2598_v1 = vld [vmem:[%s3268_s6 + $0x2dc] sm:$0xf0]  ;;  %v2752_v10 = vld [vmem:[%s3268_s6 + $0x408] sm:$0xf]  ;;  %v2729_v63 = vor.u32 %v3048_v50, %v2728_v44  ;;  %v2562_v3 = vld [vmem:[%s3268_s6 + $0x294] sm:$0xf0] }
  0x7d   : > { %v2601_v7 = vor.u32 %v3014_v0, %v2598_v1  ;;  %v2346_v62 = vld [vmem:[%s3268_s6 + $0xe4] sm:$0xf0]  ;;  %v2716_v0 = vld [vmem:[%s3268_s6 + $0x3c0] sm:$0xf]  ;;  %v3045_v1 = vld [vmem:[%s3268_s6 + $0x3c8] sm:$0xf0] }
  0x7e   : > { %1550 = vmatpush.bf16.msrb.mxu1 %v2345_v2  ;;  %1619 = vmatpush.bf16.msrb.mxu0 %v2633_v6  ;;  %v2397_v2 = vor.u32 %v2963_v58, %v2394_v59  ;;  %v2382_v6 = vld [vmem:[%s3268_s6 + $0x12c] sm:$0xf0]  ;;  %v3492_v58 = vor.u32 %v2916_v38, %v2204_v36  ;;  %v2361_v59 = vor.u32 %v2954_v39, %v2358_v40  ;;  %v3029_v4 = vld [vmem:[%s3268_s6 + $0x34c] sm:$0xf]  ;;  %v3511_v14 = vld [vmem:[%s3270_s7 + $0x80] sm:$0x33] }
  0x7f   : > { %v2717_v15 = vor.u32 %v3045_v1, %v2716_v0  ;;  %v2550_v16 = vld [vmem:[%s3268_s6 + $0x27c] sm:$0xf0]  ;;  %v2802_v34 = vld [vmem:[%s3268_s6 + $0x474] sm:$0xf0]  ;;  %v2987_v40 = vld [vmem:[%s3268_s6 + $0x1fc] sm:$0xf] }
  0x80   : > { %1688 = vmatpush.bf16.msrb.mxu3 %v2253_v17  ;;  %1665 = vmatpush.bf16.msrb.mxu2 %v2825_v30  ;;  %v2385_v17 = vor.u32 %v2960_v5, %v2382_v6  ;;  %v3051_v30 = vld [vmem:[%s3268_s6 + $0x3f8] sm:$0xf0]  ;;  %v2993_v6 = vld [vmem:[%s3268_s6 + $0x22c] sm:$0xf]  ;;  %v2502_v22 = vld [vmem:[%s3268_s6 + $0x21c] sm:$0xf0] }
  0x81   : > { %v2741_v42 = vor.u32 %v3051_v30, %v2740_v29  ;;  %v3023_v29 = vld [vmem:[%s3268_s6 + $0x31c] sm:$0xf]  ;;  %v2634_v30 = vld [vmem:[%s3268_s6 + $0x324] sm:$0xf0]  ;;  %v2923_v44 = vld [vmem:[%s3270_s7 + $0x68] sm:$0xf0] }
  0x82   : > { %1551 = vmatpush.bf16.msrb.mxu1 %v2333_v20  ;;  %1620 = vmatpush.bf16.msrb.mxu0 %v2621_v25  ;;  %v2682_v20 = vld [vmem:[%s3268_s6 + $0x384] sm:$0xf0]  ;;  %v2589_v25 = vor.u32 %v3011_v11, %v2586_v12  ;;  %v2334_v11 = vld [vmem:[%s3268_s6 + $0xcc] sm:$0xf0]  ;;  %v2637_v38 = vor.u32 %v3023_v29, %v2634_v30  ;;  %v3053_v30 = vld [vmem:[%s3268_s6 + $0x40c] sm:$0xf] }
  0x83   : > { %v2622_v1 = vld [vmem:[%s3268_s6 + $0x30c] sm:$0xf0]  ;;  %p2906_p10 = scmp.ne.s32.totalorder %s3197_s15, 1 }
  0x84   : > { %1689 = vmatpush.bf16.msrb.mxu3 %v2241_v37  ;;  %1666 = vmatpush.bf16.msrb.mxu2 %v2813_v51  ;;  %v2373_v37 = vor.u32 %v2957_v23, %v2370_v24  ;;  %v3032_v51 = vld [vmem:[%s3268_s6 + $0x364] sm:$0xf] }
  0x85   : > { %1552 = vmatmul.bf16.vlgmr.msrb.gmra.mxu1 %v3430_v32  ;;  %1621 = vmatmul.bf16.vlgmr.msrb.gmra.mxu0 %v3439_v45 }
  0x86   : > { %1636 = vmatpush.bf16.msra.mxu1 %v2801_v26  ;;  %1705 = vmatpush.bf16.msra.mxu0 %v2421_v31  ;;  %v2753_v26 = vor.u32 %v3054_v13, %v2752_v10  ;;  %v2685_v31 = vor.u32 %v3035_v19, %v2682_v20  ;;  %v2948_v10 = vld [vmem:[%s3268_s6 + $0xc4] sm:$0xf]  ;;  %v3002_v13 = vld [vmem:[%s3268_s6 + $0x274] sm:$0xf] }
  0x87   : > { %1585 = vmatmul.bf16.gmra.mxu2 %v3444_v54  ;;  %1608 = vmatmul.bf16.gmra.mxu3 %v3446_v57  ;;  %v2990_v20 = vld [vmem:[%s3268_s6 + $0x214] sm:$0xf]  ;;  %v2553_v23 = vor.u32 %v3002_v13, %v2550_v16 }
  0x88   : > { %1751 = vmatpush.bf16.msra.mxu2 %v2613_v60  ;;  %1774 = vmatpush.bf16.msra.mxu3 %v2709_v8 }
  0x8a   : > { %1637 = vmatpush.bf16.msra.mxu1 %v2789_v41  ;;  %1706 = vmatpush.bf16.msra.mxu0 %v2409_v55  ;;  %v2577_v41 = vor.u32 %v3008_v27, %v2574_v28  ;;  %v2670_v55 = vld [vmem:[%s3268_s6 + $0x36c] sm:$0xf0]  ;;  %v2337_v27 = vor.u32 %v2948_v10, %v2334_v11  ;;  %v2538_v28 = vld [vmem:[%s3268_s6 + $0x264] sm:$0xf0] }
  0x8b   : > { %v2673_v60 = vor.u32 %v3032_v51, %v2670_v55  ;;  %v2996_v55 = vld [vmem:[%s3268_s6 + $0x244] sm:$0xf]  ;;  %v2778_v10 = vld [vmem:[%s3268_s6 + $0x444] sm:$0xf0]  ;;  %v2328_v11 = vld [vmem:[%s3268_s6 + $0xb0] sm:$0xf] }
  0x8c   : > { %1752 = vmatpush.bf16.msra.mxu2 %v2601_v7  ;;  %1775 = vmatpush.bf16.msra.mxu3 %v2697_v18  ;;  %v2514_v7 = vld [vmem:[%s3268_s6 + $0x234] sm:$0xf0]  ;;  %v2646_v18 = vld [vmem:[%s3268_s6 + $0x33c] sm:$0xf0] }
  0x8d   : > { %v2517_v19 = vor.u32 %v2993_v6, %v2514_v7  ;;  %v2981_v7 = vld [vmem:[%s3268_s6 + $0x1cc] sm:$0xf] }
  0x8e   : > { %1638 = vmatpush.bf16.msra.mxu1 %v2777_v61  ;;  %1707 = vmatpush.bf16.msra.mxu0 %v2397_v2  ;;  %v2951_v61 = vld [vmem:[%s3268_s6 + $0xdc] sm:$0xf]  ;;  %v3005_v2 = vld [vmem:[%s3268_s6 + $0x28c] sm:$0xf] }
  0x8f   : > { %v2349_v5 = vor.u32 %v2951_v61, %v2346_v62  ;;  %v2565_v8 = vor.u32 %v3005_v2, %v2562_v3  ;;  %v2984_v62 = vld [vmem:[%s3268_s6 + $0x1e4] sm:$0xf] }
  0x90   : > { %1753 = vmatpush.bf16.msra.mxu2 %v2589_v25  ;;  %1776 = vmatpush.bf16.msra.mxu3 %v2685_v31  ;;  %v2999_v25 = vld [vmem:[%s3268_s6 + $0x25c] sm:$0xf]  ;;  %v3065_v31 = vld [vmem:[%s3268_s6 + $0x46c] sm:$0xf] }
  0x91   : > { %v2541_v35 = vor.u32 %v2999_v25, %v2538_v28  ;;  %v2805_v36 = vor.u32 %v3065_v31, %v2802_v34  ;;  %v2754_v31 = vld [vmem:[%s3268_s6 + $0x414] sm:$0xf0] }
  0x92   : > { %1639 = vmatpush.bf16.msra.mxu1 %v2765_v9  ;;  %1708 = vmatpush.bf16.msra.mxu0 %v2385_v17  ;;  %v2658_v9 = vld [vmem:[%s3268_s6 + $0x354] sm:$0xf0]  ;;  %v3026_v17 = vld [vmem:[%s3268_s6 + $0x334] sm:$0xf]  ;;  %v2757_v34 = vor.u32 %v3053_v30, %v2754_v31  ;;  %v2280_v31 = vld [vmem:[%s3268_s6 + $0x50] sm:$0xf] }
  0x93   : > { %v2661_v12 = vor.u32 %v3029_v4, %v2658_v9  ;;  %v2649_v24 = vor.u32 %v3026_v17, %v2646_v18  ;;  %v3062_v4 = vld [vmem:[%s3268_s6 + $0x454] sm:$0xf]  ;;  %v3059_v9 = vld [vmem:[%s3268_s6 + $0x43c] sm:$0xf]  ;;  %v2454_v18 = vld [vmem:[%s3268_s6 + $0x1bc] sm:$0xf0] }
  0x94   : > { %1754 = vmatpush.bf16.msra.mxu2 %v2577_v41  ;;  %1777 = vmatpush.bf16.msra.mxu3 %v2673_v60  ;;  %v2490_v41 = vld [vmem:[%s3268_s6 + $0x204] sm:$0xf0]  ;;  %v3020_v60 = vld [vmem:[%s3268_s6 + $0x304] sm:$0xf]  ;;  %v2978_v17 = vld [vmem:[%s3268_s6 + $0x1b4] sm:$0xf] }
  0x95   : > { %1557 = vmatmul.bf16.gmra.mxu1 %v3477_v33  ;;  %1626 = vmatmul.bf16.gmra.mxu0 %v3486_v46  ;;  %v2493_v51 = vor.u32 %v2987_v40, %v2490_v41  ;;  %v2625_v2 = vor.u32 %v3020_v60, %v2622_v1  ;;  %v2424_v40 = vld [vmem:[%s3268_s6 + $0x170] sm:$0xf]  ;;  %v2971_v41 = vld [vmem:[%s3268_s6 + $0x178] sm:$0xf0] }
  0x96   : > { %1640 = vmatpush.bf16.msra.mxu1 %v2753_v26  ;;  %1709 = vmatpush.bf16.msra.mxu0 %v2373_v37  ;;  %v577_v26 = vunpack.c.h.b16 %v3319_v21  ;;  %v580_v37 = vunpack.c.l.b16 %v3511_v14  ;;  %v2505_v21 = vor.u32 %v2990_v20, %v2502_v22  ;;  %v2198_v20 = vld [vmem:[%s3270_s7 + $0x2c] sm:$0xf0]  ;;  %v303_v22 = vld [vmem:[%s3270_s7 + $0x88] sm:$0x3]  ;;  %v2919_v1 = vld [vmem:[%s3270_s7 + $0x4c] sm:$0xf] }
  0x97   : > { %1667 = vmatmul.bf16.vlgmr.msrb.gmra.mxu2 %v3492_v58  ;;  %1690 = vmatmul.bf16.vlgmr.msrb.gmra.mxu3 %v3340_v48  ;;  %v582_v25 = vunpack.c.l.b16 %v303_v22 }
  0x98   : > { %1755 = vmatpush.bf16.msra.mxu2 %v2565_v8  ;;  %1778 = vmatpush.bf16.msra.mxu3 %v2661_v12  ;;  %v3526_v39 = vpack.c.b16 %v577_v26, %v577_v26  ;;  %v3532_v50 = vpack.c.b16 %v580_v37, %v580_v37  ;;  %v2466_v8 = vld [vmem:[%s3268_s6 + $0x1d4] sm:$0xf0]  ;;  %v2947_v12 = vld [vmem:[%s3268_s6 + $0xb8] sm:$0xf0]  ;;  %v3056_v26 = vld [vmem:[%s3268_s6 + $0x424] sm:$0xf] }
  0x99   : > { %v2469_v13 = vor.u32 %v2981_v7, %v2466_v8  ;;  %v2329_v16 = vor.u32 %v2947_v12, %v2328_v11  ;;  %v3564_v29 = vpack.c.b16 %v582_v25, %v582_v25  ;;  %v2975_v37 = vld [vmem:[%s3268_s6 + $0x19c] sm:$0xf]  ;;  %v2730_v8 = vld [vmem:[%s3268_s6 + $0x3e4] sm:$0xf0]  ;;  %v2226_v11 = vld [vmem:[%s3270_s7 + $0x64] sm:$0xf0] }
  0x9a   : > { %1641 = vmatpush.bf16.msra.mxu1 %v2741_v42  ;;  %1710 = vmatpush.bf16.msra.mxu0 %v2361_v59  ;;  %v2232_v42 = vld [vmem:[%s3270_s7 + $0x50] sm:$0xf]  ;;  %v2526_v59 = vld [vmem:[%s3268_s6 + $0x24c] sm:$0xf0] }
  0x9b   : > { %v3538_v61 = vor.u32 %v2923_v44, %v2232_v42  ;;  %v2529_v0 = vor.u32 %v2996_v55, %v2526_v59  ;;  %v2425_v44 = vor.u32 %v2971_v41, %v2424_v40  ;;  %v2742_v55 = vld [vmem:[%s3268_s6 + $0x3fc] sm:$0xf0]  ;;  %v2962_v25 = vld [vmem:[%s3268_s6 + $0x130] sm:$0xf0] }
  0x9c   : > { %1756 = vmatpush.bf16.msra.mxu2 %v2553_v23  ;;  %1779 = vmatpush.bf16.msra.mxu3 %v2649_v24  ;;  %v2457_v23 = vor.u32 %v2978_v17, %v2454_v18  ;;  %v2304_v59 = vld [vmem:[%s3268_s6 + $0x80] sm:$0xf]  ;;  %v3593_v18 = vor.u32 %v2919_v1, %v2226_v11  ;;  %v2244_v11 = vld [vmem:[%s3268_s6 + $0x8] sm:$0xf] }
  0x9e   : > { %1642 = vmatpush.bf16.msra.mxu1 %v2729_v63  ;;  %1711 = vmatpush.bf16.msra.mxu0 %v2349_v5  ;;  %v2478_v63 = vld [vmem:[%s3268_s6 + $0x1ec] sm:$0xf0]  ;;  %v2790_v5 = vld [vmem:[%s3268_s6 + $0x45c] sm:$0xf0] }
  0x9f   : > { %v2481_v3 = vor.u32 %v2984_v62, %v2478_v63  ;;  %v2793_v6 = vor.u32 %v3062_v4, %v2790_v5  ;;  %v2941_v62 = vld [vmem:[%s3268_s6 + $0x88] sm:$0xf0]  ;;  %v2972_v63 = vld [vmem:[%s3268_s6 + $0x184] sm:$0xf]  ;;  %v2412_v4 = vld [vmem:[%s3268_s6 + $0x158] sm:$0xf] }
  0xa0   : > { %1757 = vmatpush.bf16.msra.mxu2 %v2541_v35  ;;  %1780 = vmatpush.bf16.msra.mxu3 %v2637_v38  ;;  %v2316_v35 = vld [vmem:[%s3268_s6 + $0x98] sm:$0xf]  ;;  %v2442_v38 = vld [vmem:[%s3268_s6 + $0x1a4] sm:$0xf0]  ;;  %v2968_v5 = vld [vmem:[%s3268_s6 + $0x160] sm:$0xf0] }
  0xa1   : > { %v2445_v42 = vor.u32 %v2975_v37, %v2442_v38  ;;  %v2413_v7 = vor.u32 %v2968_v5, %v2412_v4  ;;  %v2959_v37 = vld [vmem:[%s3268_s6 + $0x118] sm:$0xf0]  ;;  %v2886_v38 = vld [vmem:[%s3268_s6 + $0x51c] sm:$0xf0] }
  0xa2   : > { %1643 = vmatpush.bf16.msra.mxu1 %v2717_v15  ;;  %1712 = vmatpush.bf16.msra.mxu0 %v2337_v27  ;;  %v2781_v15 = vor.u32 %v3059_v9, %v2778_v10  ;;  %v2766_v27 = vld [vmem:[%s3268_s6 + $0x42c] sm:$0xf0]  ;;  %v2400_v9 = vld [vmem:[%s3268_s6 + $0x140] sm:$0xf]  ;;  %v2965_v10 = vld [vmem:[%s3268_s6 + $0x148] sm:$0xf0] }
  0xa3   : > { %v2769_v28 = vor.u32 %v3056_v26, %v2766_v27  ;;  %v2401_v17 = vor.u32 %v2965_v10, %v2400_v9  ;;  %v3089_v26 = vld [vmem:[%s3268_s6 + $0x52c] sm:$0xf]  ;;  %v2898_v27 = vld [vmem:[%s3268_s6 + $0x534] sm:$0xf0]  ;;  %v2352_v4 = vld [vmem:[%s3268_s6 + $0xe0] sm:$0xf] }
  0xa4   : > { %1758 = vmatpush.bf16.msra.mxu2 %v2529_v0  ;;  %1781 = vmatpush.bf16.msra.mxu3 %v2625_v2  ;;  %v2430_v0 = vld [vmem:[%s3268_s6 + $0x18c] sm:$0xf0]  ;;  %v2305_v2 = vor.u32 %v2941_v62, %v2304_v59  ;;  %v2901_v30 = vor.u32 %v3089_v26, %v2898_v27  ;;  %v3083_v62 = vld [vmem:[%s3268_s6 + $0x4fc] sm:$0xf]  ;;  %v3077_v27 = vld [vmem:[%s3268_s6 + $0x4cc] sm:$0xf] }
  0xa5   : > { %1562 = vmatmul.bf16.gmra.mxu1 %v3526_v39  ;;  %1631 = vmatmul.bf16.gmra.mxu0 %v3532_v50 }
  0xa6   : > { %1728 = vmatpush.bf16.msrb.mxu1 %v2517_v19  ;;  %1797 = vmatpush.bf16.msrb.mxu0 %v2805_v36  ;;  %v2912_v19 = vld [vmem:[%s3270_s7 + $0x14] sm:$0xf]  ;;  %v2944_v36 = vld [vmem:[%s3268_s6 + $0xa0] sm:$0xf0] }
  0xa7   : > { %1672 = vmatmul.bf16.gmra.mxu2 %v3538_v61  ;;  %1695 = vmatmul.bf16.gmra.mxu3 %v3390_v43  ;;  %v3559_v24 = vor.u32 %v2912_v19, %v2198_v20  ;;  %v3044_v19 = vld [vmem:[%s3268_s6 + $0x3c4] sm:$0xf]  ;;  %v2718_v20 = vld [vmem:[%s3268_s6 + $0x3cc] sm:$0xf0] }
  0xa8   : > { %1843 = vmatpush.bf16.msrb.mxu2 %v2329_v16  ;;  %1866 = vmatpush.bf16.msrb.mxu3 %v2425_v44  ;;  %v2721_v22 = vor.u32 %v3044_v19, %v2718_v20  ;;  %v2932_v44 = vld [vmem:[%s3268_s6 + $0x40] sm:$0xf0]  ;;  %v2950_v19 = vld [vmem:[%s3268_s6 + $0xd0] sm:$0xf0] }
  0xaa   : > { %1729 = vmatpush.bf16.msrb.mxu1 %v2505_v21  ;;  %1798 = vmatpush.bf16.msrb.mxu0 %v2793_v6  ;;  %v2317_v21 = vor.u32 %v2944_v36, %v2316_v35  ;;  %v3047_v6 = vld [vmem:[%s3268_s6 + $0x3dc] sm:$0xf]  ;;  %v2376_v35 = vld [vmem:[%s3268_s6 + $0x110] sm:$0xf] }
  0xab   : > { %v2733_v12 = vor.u32 %v3047_v6, %v2730_v8  ;;  %v2377_v40 = vor.u32 %v2959_v37, %v2376_v35  ;;  %v2953_v6 = vld [vmem:[%s3268_s6 + $0xe8] sm:$0xf0]  ;;  %v2986_v37 = vld [vmem:[%s3268_s6 + $0x1f0] sm:$0xf0] }
  0xac   : > { %1844 = vmatpush.bf16.msrb.mxu2 %v2317_v21  ;;  %1867 = vmatpush.bf16.msrb.mxu3 %v2413_v7  ;;  %v3086_v21 = vld [vmem:[%s3268_s6 + $0x514] sm:$0xf]  ;;  %v2995_v7 = vld [vmem:[%s3268_s6 + $0x238] sm:$0xf0]  ;;  %v2353_v10 = vor.u32 %v2953_v6, %v2352_v4  ;;  %v2826_v4 = vld [vmem:[%s3268_s6 + $0x4a4] sm:$0xf0] }
  0xad   : > { %v2889_v41 = vor.u32 %v3086_v21, %v2886_v38  ;;  %v2980_v6 = vld [vmem:[%s3268_s6 + $0x1c0] sm:$0xf0] }
  0xae   : > { %1730 = vmatpush.bf16.msrb.mxu1 %v2493_v51  ;;  %1799 = vmatpush.bf16.msrb.mxu0 %v2781_v15  ;;  %v3050_v51 = vld [vmem:[%s3268_s6 + $0x3f4] sm:$0xf] }
  0xaf   : > { %v2745_v60 = vor.u32 %v3050_v51, %v2742_v55  ;;  %v2938_v15 = vld [vmem:[%s3268_s6 + $0x70] sm:$0xf0]  ;;  %v2364_v51 = vld [vmem:[%s3268_s6 + $0xf8] sm:$0xf]  ;;  %v581_v55 = vunpack.c.h.b16 %v3511_v14  ;;  %v2520_v14 = vld [vmem:[%s3268_s6 + $0x230] sm:$0xf] }
  0xb0   : > { %1845 = vmatpush.bf16.msrb.mxu2 %v2305_v2  ;;  %1868 = vmatpush.bf16.msrb.mxu3 %v2401_v17  ;;  %v2256_v2 = vld [vmem:[%s3268_s6 + $0x20] sm:$0xf]  ;;  %v2521_v8 = vor.u32 %v2995_v7, %v2520_v14 }
  0xb1   : > { %v3624_v9 = vpack.c.b16 %v581_v55, %v581_v55  ;;  %v2838_v55 = vld [vmem:[%s3268_s6 + $0x4bc] sm:$0xf0] }
  0xb2   : > { %1731 = vmatpush.bf16.msrb.mxu1 %v2481_v3  ;;  %1800 = vmatpush.bf16.msrb.mxu0 %v2769_v28  ;;  %v2433_v3 = vor.u32 %v2972_v63, %v2430_v0  ;;  %v2874_v63 = vld [vmem:[%s3268_s6 + $0x504] sm:$0xf0] }
  0xb3   : > { %v2877_v1 = vor.u32 %v3083_v62, %v2874_v63 }
  0xb5   : > { %1644 = vmatmul.bf16.vlgmr.msra.gmra.mxu1 %v3559_v24  ;;  %1713 = vmatmul.bf16.vlgmr.msra.gmra.mxu0 %v3430_v32 }
  0xb6   : > { %1732 = vmatpush.bf16.msrb.mxu1 %v2469_v13  ;;  %1801 = vmatpush.bf16.msrb.mxu0 %v2757_v34  ;;  %v2292_v13 = vld [vmem:[%s3268_s6 + $0x68] sm:$0xf]  ;;  %v2935_v34 = vld [vmem:[%s3268_s6 + $0x58] sm:$0xf0] }
  0xb7   : > { %1677 = vmatmul.bf16.gmra.mxu2 %v3564_v29  ;;  %1700 = vmatmul.bf16.gmra.mxu3 %v3342_v49  ;;  %v2293_v16 = vor.u32 %v2938_v15, %v2292_v13  ;;  %v2281_v36 = vor.u32 %v2935_v34, %v2280_v31  ;;  %v2340_v13 = vld [vmem:[%s3268_s6 + $0xc8] sm:$0xf]  ;;  %v3080_v15 = vld [vmem:[%s3268_s6 + $0x4e4] sm:$0xf]  ;;  %v2989_v34 = vld [vmem:[%s3268_s6 + $0x208] sm:$0xf0] }
  0xb9   : > { %1846 = vmatpush.bf16.msrb.mxu2 %v2293_v16  ;;  %v2862_v16 = vld [vmem:[%s3268_s6 + $0x4ec] sm:$0xf0] }
  0xba   : > { %1733 = vmatpush.bf16.msrb.mxu1 %v2457_v23  ;;  %1802 = vmatpush.bf16.msrb.mxu0 %v2745_v60  ;;  %v2388_v23 = vld [vmem:[%s3268_s6 + $0x128] sm:$0xf]  ;;  %v2956_v60 = vld [vmem:[%s3268_s6 + $0x100] sm:$0xf0]  ;;  %v2865_v20 = vor.u32 %v3080_v15, %v2862_v16  ;;  %v2977_v15 = vld [vmem:[%s3268_s6 + $0x1a8] sm:$0xf0] }
  0xbb   : > { %v2389_v28 = vor.u32 %v2962_v25, %v2388_v23  ;;  %v2365_v0 = vor.u32 %v2956_v60, %v2364_v51  ;;  %v2508_v23 = vld [vmem:[%s3268_s6 + $0x218] sm:$0xf]  ;;  %v2992_v25 = vld [vmem:[%s3268_s6 + $0x220] sm:$0xf0]  ;;  %v2983_v60 = vld [vmem:[%s3268_s6 + $0x1d8] sm:$0xf0] }
  0xbc   : > { %v2509_v26 = vor.u32 %v2992_v25, %v2508_v23  ;;  %v3068_v16 = vld [vmem:[%s3268_s6 + $0x484] sm:$0xf] }
  0xbd   : > { %1869 = vmatpush.bf16.msrb.mxu3 %v2389_v28  ;;  %1847 = vmatpush.bf16.msrb.mxu2 %v2281_v36  ;;  %v2850_v28 = vld [vmem:[%s3268_s6 + $0x4d4] sm:$0xf0]  ;;  %v2484_v36 = vld [vmem:[%s3268_s6 + $0x1e8] sm:$0xf] }
  0xbe   : > { %1734 = vmatpush.bf16.msrb.mxu1 %v2445_v42  ;;  %1803 = vmatpush.bf16.msrb.mxu0 %v2733_v12  ;;  %v2268_v42 = vld [vmem:[%s3268_s6 + $0x38] sm:$0xf]  ;;  %v2926_v12 = vld [vmem:[%s3268_s6 + $0x10] sm:$0xf0]  ;;  %v2853_v31 = vor.u32 %v3077_v27, %v2850_v28  ;;  %v2485_v21 = vor.u32 %v2986_v37, %v2484_v36  ;;  %v2808_v37 = vld [vmem:[%s3268_s6 + $0x470] sm:$0xf] }
  0xbf   : > { %v2269_v59 = vor.u32 %v2932_v44, %v2268_v42  ;;  %v2245_v17 = vor.u32 %v2926_v12, %v2244_v11  ;;  %v3043_v42 = vld [vmem:[%s3268_s6 + $0x3b8] sm:$0xf0]  ;;  %v3074_v44 = vld [vmem:[%s3268_s6 + $0x4b4] sm:$0xf] }
  0xc0   : > { %v2841_v62 = vor.u32 %v3074_v44, %v2838_v55  ;;  %v2974_v27 = vld [vmem:[%s3268_s6 + $0x190] sm:$0xf0]  ;;  %v2664_v44 = vld [vmem:[%s3268_s6 + $0x350] sm:$0xf] }
  0xc1   : > { %1870 = vmatpush.bf16.msrb.mxu3 %v2377_v40  ;;  %1848 = vmatpush.bf16.msrb.mxu2 %v2269_v59  ;;  %v2472_v59 = vld [vmem:[%s3268_s6 + $0x1d0] sm:$0xf] }
  0xc2   : > { %1735 = vmatpush.bf16.msrb.mxu1 %v2433_v3  ;;  %1804 = vmatpush.bf16.msrb.mxu0 %v2721_v22  ;;  %v2929_v3 = vld [vmem:[%s3268_s6 + $0x28] sm:$0xf0]  ;;  %v2341_v22 = vor.u32 %v2950_v19, %v2340_v13  ;;  %v2473_v63 = vor.u32 %v2983_v60, %v2472_v59  ;;  %v2448_v13 = vld [vmem:[%s3268_s6 + $0x1a0] sm:$0xf]  ;;  %v2616_v55 = vld [vmem:[%s3268_s6 + $0x2f0] sm:$0xf] }
  0xc3   : > { %v2257_v5 = vor.u32 %v2929_v3, %v2256_v2  ;;  %v3071_v2 = vld [vmem:[%s3268_s6 + $0x49c] sm:$0xf]  ;;  %v2449_v19 = vor.u32 %v2977_v15, %v2448_v13  ;;  %v2796_v60 = vld [vmem:[%s3268_s6 + $0x458] sm:$0xf]  ;;  %v3061_v13 = vld [vmem:[%s3268_s6 + $0x448] sm:$0xf0] }
  0xc4   : > { %v2829_v14 = vor.u32 %v3071_v2, %v2826_v4  ;;  %v3019_v59 = vld [vmem:[%s3268_s6 + $0x2f8] sm:$0xf0]  ;;  %v2640_v15 = vld [vmem:[%s3268_s6 + $0x320] sm:$0xf] }
  0xc5   : > { %1649 = vmatmul.bf16.gmra.mxu1 %v3593_v18  ;;  %1718 = vmatmul.bf16.gmra.mxu0 %v3477_v33 }
  0xc6   : > { %1820 = vmatpush.bf16.msra.mxu1 %v2901_v30  ;;  %1871 = vmatpush.bf16.msrb.mxu3 %v2365_v0  ;;  %v2496_v30 = vld [vmem:[%s3268_s6 + $0x200] sm:$0xf]  ;;  %v2700_v0 = vld [vmem:[%s3268_s6 + $0x398] sm:$0xf] }
  0xc7   : > { %1759 = vmatmul.bf16.vlgmr.msra.gmra.mxu2 %v3349_v56  ;;  %1782 = vmatmul.bf16.vlgmr.msra.gmra.mxu3 %v3439_v45  ;;  %v2497_v35 = vor.u32 %v2989_v34, %v2496_v30  ;;  %v3034_v34 = vld [vmem:[%s3268_s6 + $0x370] sm:$0xf0] }
  0xc8   : > { %1889 = vmatpush.bf16.msra.mxu0 %v2521_v8  ;;  %1849 = vmatpush.bf16.msrb.mxu2 %v2257_v5  ;;  %v2460_v5 = vld [vmem:[%s3268_s6 + $0x1b8] sm:$0xf] }
  0xc9   : > { %v2461_v7 = vor.u32 %v2980_v6, %v2460_v5  ;;  %v3016_v6 = vld [vmem:[%s3268_s6 + $0x2e0] sm:$0xf0] }
  0xca   : > { %1821 = vmatpush.bf16.msra.mxu1 %v2889_v41  ;;  %1872 = vmatpush.bf16.msrb.mxu3 %v2353_v10  ;;  %v2712_v41 = vld [vmem:[%s3268_s6 + $0x3b0] sm:$0xf] }
  0xcb   : > { %v2713_v51 = vor.u32 %v3043_v42, %v2712_v41 }
  0xcc   : > { %1850 = vmatpush.bf16.msrb.mxu2 %v2245_v17  ;;  %1890 = vmatpush.bf16.msra.mxu0 %v2509_v26  ;;  %v2814_v17 = vld [vmem:[%s3268_s6 + $0x48c] sm:$0xf0]  ;;  %v2436_v26 = vld [vmem:[%s3268_s6 + $0x188] sm:$0xf] }
  0xcd   : > { %v2817_v23 = vor.u32 %v3068_v16, %v2814_v17  ;;  %v2437_v28 = vor.u32 %v2974_v27, %v2436_v26  ;;  %v2592_v17 = vld [vmem:[%s3268_s6 + $0x2c0] sm:$0xf] }
  0xce   : > { %1822 = vmatpush.bf16.msra.mxu1 %v2877_v1  ;;  %1873 = vmatpush.bf16.msrb.mxu3 %v2341_v22  ;;  %v3040_v1 = vld [vmem:[%s3268_s6 + $0x3a0] sm:$0xf0]  ;;  %v3037_v22 = vld [vmem:[%s3268_s6 + $0x388] sm:$0xf0] }
  0xcf   : > { %v2701_v3 = vor.u32 %v3040_v1, %v2700_v0  ;;  %v3064_v0 = vld [vmem:[%s3268_s6 + $0x460] sm:$0xf0] }
  0xd0   : > { %1891 = vmatpush.bf16.msra.mxu0 %v2497_v35  ;;  %1935 = vmatpush.bf16.msra.mxu2 %v2713_v51  ;;  %v3031_v51 = vld [vmem:[%s3268_s6 + $0x358] sm:$0xf0]  ;;  %v2797_v1 = vor.u32 %v3064_v0, %v2796_v60  ;;  %v3010_v0 = vld [vmem:[%s3268_s6 + $0x2b0] sm:$0xf0] }
  0xd2   : > { %1823 = vmatpush.bf16.msra.mxu1 %v2865_v20  ;;  %v2688_v20 = vld [vmem:[%s3268_s6 + $0x380] sm:$0xf] }
  0xd3   : > { %v2689_v25 = vor.u32 %v3037_v22, %v2688_v20  ;;  %v3025_v20 = vld [vmem:[%s3268_s6 + $0x328] sm:$0xf0] }
  0xd4   : > { %1892 = vmatpush.bf16.msra.mxu0 %v2485_v21  ;;  %1936 = vmatpush.bf16.msra.mxu2 %v2701_v3  ;;  %v3067_v21 = vld [vmem:[%s3268_s6 + $0x478] sm:$0xf0]  ;;  %v3028_v3 = vld [vmem:[%s3268_s6 + $0x340] sm:$0xf0] }
  0xd5   : > { %1654 = vmatmul.bf16.gmra.mxu1 %v3624_v9  ;;  %1723 = vmatmul.bf16.gmra.mxu0 %v3526_v39  ;;  %v2809_v42 = vor.u32 %v3067_v21, %v2808_v37 }
  0xd6   : > { %1824 = vmatpush.bf16.msra.mxu1 %v2853_v31  ;;  %v2676_v31 = vld [vmem:[%s3268_s6 + $0x368] sm:$0xf] }
  0xd7   : > { %1764 = vmatmul.bf16.gmra.mxu2 %v3397_v52  ;;  %1787 = vmatmul.bf16.gmra.mxu3 %v3486_v46  ;;  %v2677_v41 = vor.u32 %v3034_v34, %v2676_v31  ;;  %v3058_v31 = vld [vmem:[%s3268_s6 + $0x430] sm:$0xf0]  ;;  %v2628_v34 = vld [vmem:[%s3268_s6 + $0x308] sm:$0xf] }
  0xd8   : > { %1893 = vmatpush.bf16.msra.mxu0 %v2473_v63  ;;  %1937 = vmatpush.bf16.msra.mxu2 %v2689_v25  ;;  %v2617_v63 = vor.u32 %v3019_v59, %v2616_v55  ;;  %v2641_v25 = vor.u32 %v3025_v20, %v2640_v15 }
  0xd9   : > { %1958 = vmatpush.bf16.msra.mxu3 %v2809_v42  ;;  %v3091_v42 = vld [vmem:[%s3268_s6 + $0x538] sm:$0xf0] }
  0xda   : > { %1825 = vmatpush.bf16.msra.mxu1 %v2841_v62  ;;  %v2665_v62 = vor.u32 %v3031_v51, %v2664_v44  ;;  %v3022_v51 = vld [vmem:[%s3268_s6 + $0x310] sm:$0xf0] }
  0xdb   : > { %v2629_v59 = vor.u32 %v3022_v51, %v2628_v34 }
  0xdc   : > { %1894 = vmatpush.bf16.msra.mxu0 %v2461_v7  ;;  %1938 = vmatpush.bf16.msra.mxu2 %v2677_v41 }
  0xdd   : > { %1959 = vmatpush.bf16.msra.mxu3 %v2797_v1  ;;  %v2892_v1 = vld [vmem:[%s3268_s6 + $0x518] sm:$0xf] }
  0xde   : > { %1826 = vmatpush.bf16.msra.mxu1 %v2829_v14 }
  0xe0   : > { %1895 = vmatpush.bf16.msra.mxu0 %v2449_v19  ;;  %1939 = vmatpush.bf16.msra.mxu2 %v2665_v62  ;;  %v3013_v19 = vld [vmem:[%s3268_s6 + $0x2c8] sm:$0xf0]  ;;  %v3055_v62 = vld [vmem:[%s3268_s6 + $0x418] sm:$0xf0] }
  0xe2   : > { %v3644_v38 = vpop.f32.mrf.mxu0  ;;  %v3647_v40 = vpop.f32.mrf.mxu1  ;;  %1827 = vmatpush.bf16.msra.mxu1 %v2817_v23  ;;  %v2593_v23 = vor.u32 %v3013_v19, %v2592_v17  ;;  %v3007_v17 = vld [vmem:[%s3268_s6 + $0x298] sm:$0xf0]  ;;  %v2880_v19 = vld [vmem:[%s3268_s6 + $0x500] sm:$0xf] }
  0xe4   : > { %1896 = vmatpush.bf16.msra.mxu0 %v2437_v28  ;;  %v2772_v28 = vld [vmem:[%s3268_s6 + $0x428] sm:$0xf] }
  0xe5   : > { %1736 = vmatmul.bf16.vlgmr.msrb.gmra.mxu1 %v3347_v53  ;;  %1805 = vmatmul.bf16.vlgmr.msrb.gmra.mxu0 %v3559_v24  ;;  %v2773_v44 = vor.u32 %v3058_v31, %v2772_v28 }
  0xe6   : > { %1912 = vmatpush.bf16.msrb.mxu1 %v2617_v63  ;;  %v2580_v63 = vld [vmem:[%s3268_s6 + $0x2a8] sm:$0xf] }
  0xe7   : > { %1769 = vmatmul.bf16.gmra.mxu2 %v3446_v57  ;;  %1792 = vmatmul.bf16.gmra.mxu3 %v3532_v50 }
  0xea   : > { %v3664_v8 = vpop.f32.mrf.mxu2  ;;  %v3666_v10 = vpop.f32.mrf.mxu0 }
  0xeb   : > { %v3668_v11 = vpop.f32.mrf.mxu3  ;;  %v1542_v12 = vpop.f32.mrf.mxu1 }
  0xec   : > { %v2784_v12 = vld [vmem:[%s3268_s6 + $0x440] sm:$0xf] }
  0xed   : > { %v2785_v16 = vor.u32 %v3061_v13, %v2784_v12  ;;  %v3052_v12 = vld [vmem:[%s3268_s6 + $0x400] sm:$0xf0] }
  0xef   : > { %1960 = vmatpush.bf16.msra.mxu3 %v2785_v16  ;;  %v2568_v16 = vld [vmem:[%s3268_s6 + $0x290] sm:$0xf] }
  0xf0   : > { %v2569_v20 = vor.u32 %v3007_v17, %v2568_v16 }
  0xf2   : > { %v3678_v30 = vpop.f32.mrf.mxu2  ;;  %v3682_v35 = vpop.f32.mrf.mxu0 }
  0xf3   : > { %v3684_v36 = vpop.f32.mrf.mxu3  ;;  %1961 = vmatpush.bf16.msra.mxu3 %v2773_v44 }
  0xf5   : > { %1741 = vmatmul.bf16.gmra.mxu1 %v3395_v47  ;;  %1810 = vmatmul.bf16.gmra.mxu0 %v3593_v18 }
  0xf7   : > { %1851 = vmatmul.bf16.vlgmr.msrb.gmra.mxu2 %v3340_v48  ;;  %1874 = vmatmul.bf16.vlgmr.msrb.gmra.mxu3 %v3430_v32  ;;  %v2652_v48 = vld [vmem:[%s3268_s6 + $0x338] sm:$0xf] }
  0xf8   : > { %v2604_v32 = vld [vmem:[%s3268_s6 + $0x2d8] sm:$0xf]  ;;  %v2653_v14 = vor.u32 %v3028_v3, %v2652_v48 }
  0xf9   : > { %v2605_v7 = vor.u32 %v3016_v6, %v2604_v32  ;;  %v3088_v32 = vld [vmem:[%s3268_s6 + $0x520] sm:$0xf0] }
  0xfa   : > { %v3698_v2 = vpop.f32.mrf.mxu2  ;;  %v3702_v4 = vpop.f32.mrf.mxu0  ;;  %1940 = vmatpush.bf16.msra.mxu2 %v2653_v14 }
  0xfb   : > { %v3704_v5 = vpop.f32.mrf.mxu3  ;;  %1913 = vmatpush.bf16.msrb.mxu1 %v2605_v7  ;;  %v2748_v7 = vld [vmem:[%s3268_s6 + $0x3f8] sm:$0xf] }
  0xfe   : > { %1941 = vmatpush.bf16.msra.mxu2 %v2641_v25  ;;  %v2736_v25 = vld [vmem:[%s3268_s6 + $0x3e0] sm:$0xf] }
  0xff   : > { %1914 = vmatpush.bf16.msrb.mxu1 %v2593_v23 }
 0x102   : > { %v1553_v22 = vpop.f32.mrf.mxu1  ;;  %v3715_v27 = vpop.f32.mrf.mxu2  ;;  %1942 = vmatpush.bf16.msra.mxu2 %v2629_v59  ;;  %v3082_v59 = vld [vmem:[%s3268_s6 + $0x4f0] sm:$0xf0] }
 0x103   : > { %v1554_v26 = vadd.f32 %v1553_v22, %v3644_v38  ;;  %v3721_v21 = vpop.f32.mrf.mxu3  ;;  %v3723_v41 = vpop.f32.mrf.mxu0  ;;  %v2904_v38 = vld [vmem:[%s3268_s6 + $0x530] sm:$0xf]  ;;  %v3085_v22 = vld [vmem:[%s3268_s6 + $0x508] sm:$0xf0] }
 0x104   : > { %v2905_v55 = vor.u32 %v3091_v42, %v2904_v38  ;;  %v2724_v38 = vld [vmem:[%s3268_s6 + $0x3c8] sm:$0xf] }
 0x105   : > { %v1577_v37 = vadd.f32 %v3664_v8, %v1554_v26  ;;  %1746 = vmatmul.bf16.gmra.mxu1 %v3444_v54  ;;  %1815 = vmatmul.bf16.gmra.mxu0 %v3624_v9  ;;  %v2760_v8 = vld [vmem:[%s3268_s6 + $0x410] sm:$0xf]  ;;  %v3049_v26 = vld [vmem:[%s3268_s6 + $0x3e8] sm:$0xf0] }
 0x106   : > { %1981 = vmatpush.bf16.msrb.mxu0 %v2905_v55  ;;  %v2761_v48 = vor.u32 %v3055_v62, %v2760_v8  ;;  %3100 = vmatpush.bf16.msrb.mxu2 %v2905_v55  ;;  %v2737_v28 = vor.u32 %v3049_v26, %v2736_v25  ;;  %v2868_v55 = vld [vmem:[%s3268_s6 + $0x4e8] sm:$0xf] }
 0x107   : > { %v3730_v60 = vadd.f32 %v3668_v11, %v1577_v37  ;;  %1856 = vmatmul.bf16.gmra.mxu2 %v3390_v43  ;;  %1879 = vmatmul.bf16.gmra.mxu3 %v3477_v33  ;;  %v2581_v11 = vor.u32 %v3010_v0, %v2580_v63  ;;  %v2893_v43 = vor.u32 %v3088_v32, %v2892_v1  ;;  %v2556_v63 = vld [vmem:[%s3268_s6 + $0x278] sm:$0xf]  ;;  %v3004_v0 = vld [vmem:[%s3268_s6 + $0x280] sm:$0xf0]  ;;  %v2544_v1 = vld [vmem:[%s3268_s6 + $0x260] sm:$0xf] }
 0x108   : > { %1962 = vmatpush.bf16.msra.mxu3 %v2761_v48  ;;  %v2869_v62 = vor.u32 %v3082_v59, %v2868_v55  ;;  %v3001_v48 = vld [vmem:[%s3268_s6 + $0x268] sm:$0xf0]  ;;  %v3079_v32 = vld [vmem:[%s3268_s6 + $0x4d8] sm:$0xf0] }
 0x109   : > { %1915 = vmatpush.bf16.msrb.mxu1 %v2581_v11  ;;  %v2856_v11 = vld [vmem:[%s3268_s6 + $0x4d0] sm:$0xf]  ;;  %v1623_v55 = vadd.f32 %v3723_v41, %v3730_v60 }
 0x10a   : > { %v1555_v3 = vpop.f32.mrf.mxu1  ;;  %v3742_v14 = vpop.f32.mrf.mxu2  ;;  %1982 = vmatpush.bf16.msrb.mxu0 %v2893_v43  ;;  %3101 = vmatpush.bf16.msrb.mxu2 %v2893_v43 }
 0x10b   : > { %v1556_v6 = vadd.f32 %v1555_v3, %v3666_v10  ;;  %v3747_v33 = vpop.f32.mrf.mxu3  ;;  %v3749_v15 = vpop.f32.mrf.mxu0  ;;  %v2749_v10 = vor.u32 %v3052_v12, %v2748_v7 }
 0x10d   : > { %v1579_v13 = vadd.f32 %v3678_v30, %v1556_v6  ;;  %1963 = vmatpush.bf16.msra.mxu3 %v2749_v10  ;;  %v2881_v30 = vor.u32 %v3085_v22, %v2880_v19  ;;  %1916 = vmatpush.bf16.msrb.mxu1 %v2569_v20  ;;  %v2857_v6 = vor.u32 %v3079_v32, %v2856_v11  ;;  %v2532_v10 = vld [vmem:[%s3268_s6 + $0x248] sm:$0xf]  ;;  %v2832_v20 = vld [vmem:[%s3268_s6 + $0x4a0] sm:$0xf] }
 0x10f   : > { %v3756_v23 = vadd.f32 %v3684_v36, %v1579_v13  ;;  %1983 = vmatpush.bf16.msrb.mxu0 %v2881_v30  ;;  %3102 = vmatpush.bf16.msrb.mxu2 %v2881_v30  ;;  %v3046_v36 = vld [vmem:[%s3268_s6 + $0x3d0] sm:$0xf0]  ;;  %v2844_v13 = vld [vmem:[%s3268_s6 + $0x4b8] sm:$0xf] }
 0x110   : > { %v2725_v8 = vor.u32 %v3046_v36, %v2724_v38 }
 0x111   : > { %1964 = vmatpush.bf16.msra.mxu3 %v2737_v28 }
 0x112   : > { %v1558_v31 = vpop.f32.mrf.mxu1  ;;  %v1588_v37 = vpop.f32.mrf.mxu2 }
 0x113   : > { %v1559_v34 = vadd.f32 %v1558_v31, %v3682_v35  ;;  %v1611_v44 = vpop.f32.mrf.mxu3  ;;  %v3764_v51 = vpop.f32.mrf.mxu0  ;;  %3103 = vmatpush.bf16.msrb.mxu2 %v2869_v62  ;;  %1984 = vmatpush.bf16.msrb.mxu0 %v2869_v62  ;;  %v3070_v37 = vld [vmem:[%s3268_s6 + $0x490] sm:$0xf0] }
 0x114   : > { %v269_v62 = vld [vmem:[#allocation2 + $0x30] sm:$0xff] }
 0x115   : > { %v1582_v42 = vadd.f32 %v3698_v2, %v1559_v34  ;;  %1828 = vmatmul.bf16.vlgmr.msra.gmra.mxu1 %v3492_v58  ;;  %1965 = vmatpush.bf16.msra.mxu3 %v2725_v8  ;;  %v2557_v2 = vor.u32 %v3004_v0, %v2556_v63  ;;  %v2820_v34 = vld [vmem:[%s3268_s6 + $0x488] sm:$0xf] }
 0x116   : > { %1897 = vmatmul.bf16.vlgmr.msra.gmra.mxu0 %v3347_v53  ;;  %v2821_v38 = vor.u32 %v3070_v37, %v2820_v34 }
 0x117   : > { %v3770_v35 = vadd.f32 %v3704_v5, %v1582_v42  ;;  %1861 = vmatmul.bf16.gmra.mxu2 %v3342_v49  ;;  %1884 = vmatmul.bf16.gmra.mxu3 %v3526_v39  ;;  %v2545_v5 = vor.u32 %v3001_v48, %v2544_v1  ;;  %v3076_v39 = vld [vmem:[%s3268_s6 + $0x4c0] sm:$0xf0]  ;;  %v272_v1 = vld [vmem:[#allocation2 + $0x18] sm:$0xff] }
 0x118   : > { %1917 = vmatpush.bf16.msrb.mxu1 %v2557_v2  ;;  %1985 = vmatpush.bf16.msrb.mxu0 %v2857_v6  ;;  %v2845_v16 = vor.u32 %v3076_v39, %v2844_v13 }
 0x119   : > { %3104 = vmatpush.bf16.msrb.mxu2 %v2857_v6 }
 0x11a   : > { %v1560_v3 = vpop.f32.mrf.mxu1  ;;  %v1668_v43 = vpop.f32.mrf.mxu2 }
 0x11b   : > { %v1561_v53 = vadd.f32 %v1560_v3, %v3702_v4  ;;  %v3783_v7 = vpop.f32.mrf.mxu0  ;;  %v1691_v12 = vpop.f32.mrf.mxu3  ;;  %v2998_v4 = vld [vmem:[%s3268_s6 + $0x250] sm:$0xf0] }
 0x11c   : > { %1918 = vmatpush.bf16.msrb.mxu1 %v2545_v5  ;;  %v2533_v19 = vor.u32 %v2998_v4, %v2532_v10  ;;  %1986 = vmatpush.bf16.msrb.mxu0 %v2845_v16 }
 0x11d   : > { %v1584_v49 = vadd.f32 %v3715_v27, %v1561_v53  ;;  %v3073_v27 = vld [vmem:[%s3268_s6 + $0x4a8] sm:$0xf0]  ;;  %3105 = vmatpush.bf16.msrb.mxu2 %v2845_v16  ;;  %v278_v16 = vld [vmem:[#allocation2 + $0x20] sm:$0xff] }
 0x11e   : > { %v2833_v30 = vor.u32 %v3073_v27, %v2832_v20 }
 0x11f   : > { %v3788_v17 = vadd.f32 %v3721_v21, %v1584_v49 }
 0x120   : > { %1919 = vmatpush.bf16.msrb.mxu1 %v2533_v19  ;;  %1987 = vmatpush.bf16.msrb.mxu0 %v2833_v30 }
 0x121   : > { %3106 = vmatpush.bf16.msrb.mxu2 %v2833_v30  ;;  %v1630_v39 = vadd.f32 %v3783_v7, %v3788_v17  ;;  %v281_v7 = vld [vmem:[#allocation2 + $0x60] sm:$0xf] }
 0x122   : > { %v1563_v22 = vpop.f32.mrf.mxu1  ;;  %v1670_v26 = vpop.f32.mrf.mxu2 }
 0x123   : > { %v1564_v25 = vadd.f32 %v1563_v22, %v3647_v40  ;;  %v3796_v31 = vpop.f32.mrf.mxu0  ;;  %v1693_v21 = vpop.f32.mrf.mxu3 }
 0x124   : > { %1988 = vmatpush.bf16.msrb.mxu0 %v2821_v38 }
 0x125   : > { %v1587_v28 = vadd.f32 %v3742_v14, %v1564_v25  ;;  %1833 = vmatmul.bf16.gmra.mxu1 %v3538_v61  ;;  %3107 = vmatpush.bf16.msrb.mxu2 %v2821_v38 }
 0x126   : > { %1902 = vmatmul.bf16.gmra.mxu0 %v3395_v47 }
 0x127   : > { %v1610_v36 = vadd.f32 %v3747_v33, %v1587_v28  ;;  %1943 = vmatmul.bf16.vlgmr.msra.gmra.mxu2 %v3439_v45  ;;  %1966 = vmatmul.bf16.vlgmr.msra.gmra.mxu3 %v3559_v24  ;;  %v1625_v24 = vadd.f32 %v3749_v15, %v3756_v23  ;;  %v275_v23 = vld [vmem:[#allocation2 + $0x8] sm:$0xff] }
 0x129   : > { %v1633_v22 = vadd.f32 %v3796_v31, %v1610_v36 }
 0x12a   : > { %v1565_v40 = vpop.f32.mrf.mxu1  ;;  %v1673_v14 = vpop.f32.mrf.mxu2 }
 0x12b   : > { %v1634_v42 = vpop.f32.mrf.mxu0  ;;  %v1696_v44 = vpop.f32.mrf.mxu3 }
 0x132   : > { %v1645_v59 = vpop.f32.mrf.mxu1  ;;  %v1675_v63 = vpop.f32.mrf.mxu2 }
 0x133   : > { %v1646_v8 = vadd.f32 %v1645_v59, %v1623_v55  ;;  %v1698_v0 = vpop.f32.mrf.mxu3  ;;  %v1714_v47 = vpop.f32.mrf.mxu0 }
 0x134   : > { %v1715_v45 = vadd.f32 %v1714_v47, %v1691_v12 }
 0x135   : > { %v1669_v33 = vadd.f32 %v1668_v43, %v1646_v8  ;;  %1838 = vmatmul.bf16.gmra.mxu1 %v3564_v29 }
 0x136   : > { %1907 = vmatmul.bf16.gmra.mxu0 %v3444_v54  ;;  %v1628_v54 = vadd.f32 %v3764_v51, %v3770_v35 }
 0x137   : > { %v2004_v2 = vadd.f32 %v1669_v33, %v269_v62  ;;  %1948 = vmatmul.bf16.gmra.mxu2 %v3486_v46  ;;  %1971 = vmatmul.bf16.gmra.mxu3 %v3593_v18 }
 0x139   : > { %2019 = vst [vmem:[#allocation2 + $0x30] sm:$0xff] %v2004_v2 }
 0x13a   : > { %v1647_v41 = vpop.f32.mrf.mxu1  ;;  %v1678_v48 = vpop.f32.mrf.mxu2 }
 0x13b   : > { %v1648_v60 = vadd.f32 %v1647_v41, %v1625_v24  ;;  %v1701_v5 = vpop.f32.mrf.mxu3  ;;  %v1716_v11 = vpop.f32.mrf.mxu0 }
 0x13c   : > { %v1717_v32 = vadd.f32 %v1716_v11, %v1693_v21 }
 0x13d   : > { %v1671_v3 = vadd.f32 %v1670_v26, %v1648_v60 }
 0x13f   : > { %v2007_v53 = vadd.f32 %v1671_v3, %v272_v1 }
 0x141   : > { %2022 = vst [vmem:[#allocation2 + $0x18] sm:$0xff] %v2007_v53 }
 0x142   : > { %v1650_v6 = vpop.f32.mrf.mxu1  ;;  %v1680_v43 = vpop.f32.mrf.mxu2 }
 0x143   : > { %v1651_v15 = vadd.f32 %v1650_v6, %v1628_v54  ;;  %v1703_v49 = vpop.f32.mrf.mxu3  ;;  %v1719_v12 = vpop.f32.mrf.mxu0 }
 0x144   : > { %v1720_v18 = vadd.f32 %v1719_v12, %v1696_v44 }
 0x145   : > { %v1674_v46 = vadd.f32 %v1673_v14, %v1651_v15  ;;  %1920 = vmatmul.bf16.vlgmr.msrb.gmra.mxu1 %v3349_v56 }
 0x146   : > { %1989 = vmatmul.bf16.vlgmr.msrb.gmra.mxu0 %v3492_v58 }
 0x147   : > { %v2010_v13 = vadd.f32 %v1674_v46, %v275_v23  ;;  %1953 = vmatmul.bf16.gmra.mxu2 %v3532_v50  ;;  %1976 = vmatmul.bf16.gmra.mxu3 %v3624_v9 }
 0x149   : > { %2025 = vst [vmem:[#allocation2 + $0x8] sm:$0xff] %v2010_v13 }
 0x14a   : > { %v1652_v51 = vpop.f32.mrf.mxu1  ;;  %v1760_v10 = vpop.f32.mrf.mxu2 }
 0x14b   : > { %v1653_v35 = vadd.f32 %v1652_v51, %v1630_v39  ;;  %v1721_v19 = vpop.f32.mrf.mxu0  ;;  %v1783_v20 = vpop.f32.mrf.mxu3 }
 0x14c   : > { %v1722_v56 = vadd.f32 %v1721_v19, %v1698_v0 }
 0x14d   : > { %v1676_v4 = vadd.f32 %v1675_v63, %v1653_v35 }
 0x14f   : > { %v2013_v27 = vadd.f32 %v1676_v4, %v278_v16  ;;  %v270_v16 = vld [vmem:[#allocation2] sm:$0xff] }
 0x151   : > { %2028 = vst [vmem:[#allocation2 + $0x20] sm:$0xff] %v2013_v27 }
 0x152   : > { %v1655_v58 = vpop.f32.mrf.mxu1  ;;  %v1762_v17 = vpop.f32.mrf.mxu2 }
 0x153   : > { %v1656_v30 = vadd.f32 %v1655_v58, %v1633_v22  ;;  %v1724_v50 = vpop.f32.mrf.mxu0  ;;  %v1785_v26 = vpop.f32.mrf.mxu3 }
 0x154   : > { %v1725_v9 = vadd.f32 %v1724_v50, %v1701_v5 }
 0x155   : > { %v1679_v25 = vadd.f32 %v1678_v48, %v1656_v30  ;;  %1925 = vmatmul.bf16.gmra.mxu1 %v3397_v52  ;;  %v273_v30 = vld [vmem:[#allocation2 + $0x50] sm:$0xff] }
 0x156   : > { %1994 = vmatmul.bf16.gmra.mxu0 %v3538_v61 }
 0x157   : > { %v2016_v28 = vadd.f32 %v1679_v25, %v281_v7  ;;  %1999 = vmatmul.bf16.vlgmr.msrb.gmra.mxu2 %v3564_v29 }
 0x159   : > { %2031 = vst [vmem:[#allocation2 + $0x60] sm:$0xf] %v2016_v28 }
 0x15a   : > { %v1657_v21 = vpop.f32.mrf.mxu1  ;;  %v1765_v34 = vpop.f32.mrf.mxu2 }
 0x15b   : > { %v1726_v31 = vpop.f32.mrf.mxu0  ;;  %v1788_v37 = vpop.f32.mrf.mxu3 }
 0x162   : > { %v1737_v38 = vpop.f32.mrf.mxu1  ;;  %v1767_v40 = vpop.f32.mrf.mxu2 }
 0x163   : > { %v1738_v36 = vadd.f32 %v1737_v38, %v1715_v45  ;;  %v1790_v42 = vpop.f32.mrf.mxu3  ;;  %v1806_v44 = vpop.f32.mrf.mxu0 }
 0x165   : > { %v1761_v14 = vadd.f32 %v1760_v10, %v1738_v36  ;;  %1930 = vmatmul.bf16.gmra.mxu1 %v3446_v57 }
 0x167   : > { %v1784_v52 = vadd.f32 %v1783_v20, %v1761_v14 }
 0x169   : > { %v1807_v35 = vadd.f32 %v1806_v44, %v1784_v52  ;;  %v279_v44 = vld [vmem:[#allocation2 + $0x10] sm:$0xff] }
 0x16a   : > { %v1739_v55 = vpop.f32.mrf.mxu1  ;;  %v1770_v8 = vpop.f32.mrf.mxu2 }
 0x16b   : > { %v1740_v59 = vadd.f32 %v1739_v55, %v1717_v32  ;;  %v1793_v62 = vpop.f32.mrf.mxu3  ;;  %v1808_v63 = vpop.f32.mrf.mxu0 }
 0x16d   : > { %v1763_v61 = vadd.f32 %v1762_v17, %v1740_v59 }
 0x16f   : > { %v1786_v29 = vadd.f32 %v1785_v26, %v1763_v61 }
 0x171   : > { %v1809_v58 = vadd.f32 %v1808_v63, %v1786_v29  ;;  %v282_v29 = vld [vmem:[#allocation2 + $0x70] sm:$0xf] }
 0x172   : > { %v1742_v33 = vpop.f32.mrf.mxu1  ;;  %v1772_v47 = vpop.f32.mrf.mxu2 }
 0x173   : > { %v1743_v0 = vadd.f32 %v1742_v33, %v1720_v18  ;;  %v1795_v24 = vpop.f32.mrf.mxu3  ;;  %v1811_v45 = vpop.f32.mrf.mxu0 }
 0x175   : > { %v1766_v2 = vadd.f32 %v1765_v34, %v1743_v0  ;;  %v276_v34 = vld [vmem:[#allocation2 + $0x48] sm:$0xff] }
 0x177   : > { %v1789_v41 = vadd.f32 %v1788_v37, %v1766_v2 }
 0x179   : > { %v1812_v21 = vadd.f32 %v1811_v45, %v1789_v41 }
 0x17a   : > { %v1744_v60 = vpop.f32.mrf.mxu1  ;;  %v1852_v48 = vpop.f32.mrf.mxu2 }
 0x17b   : > { %v1745_v1 = vadd.f32 %v1744_v60, %v1722_v56  ;;  %v1813_v57 = vpop.f32.mrf.mxu0  ;;  %v1875_v5 = vpop.f32.mrf.mxu3 }
 0x17c   : > { %v3826_v11 = vadd.f32 %v1875_v5, %v1852_v48 }
 0x17d   : > { %v1768_v3 = vadd.f32 %v1767_v40, %v1745_v1 }
 0x17f   : > { %v1791_v32 = vadd.f32 %v1790_v42, %v1768_v3 }
 0x181   : > { %v1814_v42 = vadd.f32 %v1813_v57, %v1791_v32 }
 0x182   : > { %v1747_v53 = vpop.f32.mrf.mxu1  ;;  %v1854_v6 = vpop.f32.mrf.mxu2 }
 0x183   : > { %v1748_v54 = vadd.f32 %v1747_v53, %v1725_v9  ;;  %v1816_v23 = vpop.f32.mrf.mxu0  ;;  %v1877_v43 = vpop.f32.mrf.mxu3 }
 0x184   : > { %v3828_v46 = vadd.f32 %v1877_v43, %v1854_v6 }
 0x185   : > { %v1771_v15 = vadd.f32 %v1770_v8, %v1748_v54 }
 0x187   : > { %v1794_v49 = vadd.f32 %v1793_v62, %v1771_v15 }
 0x189   : > { %v1817_v63 = vadd.f32 %v1816_v23, %v1794_v49  ;;  %v271_v23 = vld [vmem:[#allocation2 + $0x58] sm:$0xff] }
 0x18a   : > { %v1749_v12 = vpop.f32.mrf.mxu1  ;;  %v1857_v18 = vpop.f32.mrf.mxu2 }
 0x18b   : > { %v1818_v13 = vpop.f32.mrf.mxu0  ;;  %v1880_v39 = vpop.f32.mrf.mxu3 }
 0x18c   : > { %v3830_v51 = vadd.f32 %v1880_v39, %v1857_v18 }
 0x192   : > { %v1829_v10 = vpop.f32.mrf.mxu1  ;;  %v1859_v19 = vpop.f32.mrf.mxu2 }
 0x193   : > { %v1830_v4 = vadd.f32 %v1829_v10, %v1807_v35  ;;  %v1882_v56 = vpop.f32.mrf.mxu3  ;;  %v1898_v27 = vpop.f32.mrf.mxu0 }
 0x194   : > { %v3832_v22 = vadd.f32 %v1882_v56, %v1859_v19  ;;  %v1899_v3 = vadd.f32 %v1898_v27, %v3826_v11 }
 0x195   : > { %v2005_v20 = vadd.f32 %v1830_v4, %v270_v16  ;;  %v274_v4 = vld [vmem:[#allocation2 + $0x68] sm:$0xff] }
 0x197   : > { %2020 = vst [vmem:[#allocation2] sm:$0xff] %v2005_v20 }
 0x19a   : > { %v1831_v7 = vpop.f32.mrf.mxu1  ;;  %v1862_v25 = vpop.f32.mrf.mxu2 }
 0x19b   : > { %v1832_v17 = vadd.f32 %v1831_v7, %v1809_v58  ;;  %v1900_v26 = vpop.f32.mrf.mxu0  ;;  %v1885_v9 = vpop.f32.mrf.mxu3 }
 0x19c   : > { %v3834_v28 = vadd.f32 %v1885_v9, %v1862_v25  ;;  %v1901_v43 = vadd.f32 %v1900_v26, %v3828_v46 }
 0x19d   : > { %v2008_v50 = vadd.f32 %v1832_v17, %v273_v30 }
 0x19f   : > { %2023 = vst [vmem:[#allocation2 + $0x50] sm:$0xff] %v2008_v50  ;;  %v277_v50 = vld [vmem:[#allocation2 + $0x40] sm:$0xff] }
 0x1a2   : > { %v1834_v31 = vpop.f32.mrf.mxu1  ;;  %v1864_v38 = vpop.f32.mrf.mxu2 }
 0x1a3   : > { %v1835_v37 = vadd.f32 %v1834_v31, %v1812_v21  ;;  %v1903_v40 = vpop.f32.mrf.mxu0  ;;  %v1887_v14 = vpop.f32.mrf.mxu3 }
 0x1a4   : > { %v1904_v19 = vadd.f32 %v1903_v40, %v3830_v51  ;;  %v280_v40 = vld [vmem:[#allocation2 + $0x38] sm:$0xff] }
 0x1a5   : > { %v2011_v36 = vadd.f32 %v1835_v37, %v276_v34 }
 0x1a7   : > { %2026 = vst [vmem:[#allocation2 + $0x48] sm:$0xff] %v2011_v36 }
 0x1aa   : > { %v1836_v52 = vpop.f32.mrf.mxu1  ;;  %v1944_v59 = vpop.f32.mrf.mxu2 }
 0x1ab   : > { %v1837_v55 = vadd.f32 %v1836_v52, %v1814_v42  ;;  %v1905_v61 = vpop.f32.mrf.mxu0  ;;  %v1967_v62 = vpop.f32.mrf.mxu3 }
 0x1ac   : > { %v1906_v26 = vadd.f32 %v1905_v61, %v3832_v22  ;;  %v283_v61 = vld [vmem:[#allocation2 + $0x28] sm:$0xf] }
 0x1ad   : > { %v2014_v8 = vadd.f32 %v1837_v55, %v279_v44 }
 0x1af   : > { %2029 = vst [vmem:[#allocation2 + $0x10] sm:$0xff] %v2014_v8 }
 0x1b2   : > { %v1839_v33 = vpop.f32.mrf.mxu1  ;;  %v1946_v47 = vpop.f32.mrf.mxu2 }
 0x1b3   : > { %v1840_v0 = vadd.f32 %v1839_v33, %v1817_v63  ;;  %v1908_v24 = vpop.f32.mrf.mxu0  ;;  %v1969_v45 = vpop.f32.mrf.mxu3 }
 0x1b4   : > { %v1909_v14 = vadd.f32 %v1908_v24, %v3834_v28 }
 0x1b5   : > { %v2017_v2 = vadd.f32 %v1840_v0, %v282_v29 }
 0x1b7   : > { %2032 = vst [vmem:[#allocation2 + $0x70] sm:$0xf] %v2017_v2 }
 0x1ba   : > { %v1841_v41 = vpop.f32.mrf.mxu1  ;;  %v1949_v60 = vpop.f32.mrf.mxu2 }
 0x1bb   : > { %v1910_v1 = vpop.f32.mrf.mxu0  ;;  %v1972_v48 = vpop.f32.mrf.mxu3 }
 0x1c2   : > { %v1921_v57 = vpop.f32.mrf.mxu1  ;;  %v1951_v32 = vpop.f32.mrf.mxu2 }
 0x1c3   : > { %v1922_v5 = vadd.f32 %v1921_v57, %v1899_v3  ;;  %v1990_v54 = vpop.f32.mrf.mxu0  ;;  %v1974_v6 = vpop.f32.mrf.mxu3 }
 0x1c5   : > { %v1945_v53 = vadd.f32 %v1944_v59, %v1922_v5 }
 0x1c7   : > { %v1968_v15 = vadd.f32 %v1967_v62, %v1945_v53 }
 0x1c9   : > { %v1991_v49 = vadd.f32 %v1990_v54, %v1968_v15 }
 0x1ca   : > { %v1923_v12 = vpop.f32.mrf.mxu1  ;;  %v1954_v39 = vpop.f32.mrf.mxu2 }
 0x1cb   : > { %v2006_v18 = vadd.f32 %v1991_v49, %v271_v23  ;;  %v1924_v13 = vadd.f32 %v1923_v12, %v1901_v43  ;;  %v1992_v16 = vpop.f32.mrf.mxu0  ;;  %v1977_v10 = vpop.f32.mrf.mxu3 }
 0x1cd   : > { %2021 = vst [vmem:[#allocation2 + $0x58] sm:$0xff] %v2006_v18  ;;  %v1947_v35 = vadd.f32 %v1946_v47, %v1924_v13 }
 0x1cf   : > { %v1970_v11 = vadd.f32 %v1969_v45, %v1947_v35 }
 0x1d1   : > { %v1993_v20 = vadd.f32 %v1992_v16, %v1970_v11 }
 0x1d2   : > { %v1926_v56 = vpop.f32.mrf.mxu1  ;;  %v1956_v30 = vpop.f32.mrf.mxu2 }
 0x1d3   : > { %v2009_v27 = vadd.f32 %v1993_v20, %v274_v4  ;;  %v1927_v58 = vadd.f32 %v1926_v56, %v1904_v19  ;;  %v1995_v7 = vpop.f32.mrf.mxu0  ;;  %v1979_v17 = vpop.f32.mrf.mxu3 }
 0x1d5   : > { %2024 = vst [vmem:[#allocation2 + $0x68] sm:$0xff] %v2009_v27  ;;  %v1950_v46 = vadd.f32 %v1949_v60, %v1927_v58 }
 0x1d7   : > { %v1973_v25 = vadd.f32 %v1972_v48, %v1950_v46 }
 0x1d9   : > { %v1996_v9 = vadd.f32 %v1995_v7, %v1973_v25 }
 0x1da   : > { %v1928_v21 = vpop.f32.mrf.mxu1  ;;  %v2000_v37 = vpop.f32.mrf.mxu2 }
 0x1db   : > { %v2012_v34 = vadd.f32 %v1996_v9, %v277_v50  ;;  %v1929_v31 = vadd.f32 %v1928_v21, %v1906_v26  ;;  %v1997_v38 = vpop.f32.mrf.mxu0 }
 0x1dd   : > { %2027 = vst [vmem:[#allocation2 + $0x40] sm:$0xff] %v2012_v34  ;;  %v1952_v51 = vadd.f32 %v1951_v32, %v1929_v31 }
 0x1df   : > { %v1975_v36 = vadd.f32 %v1974_v6, %v1952_v51 }
 0x1e1   : > { %v1998_v42 = vadd.f32 %v1997_v38, %v1975_v36 }
 0x1e2   : > { %v1931_v44 = vpop.f32.mrf.mxu1  ;;  %v2002_v59 = vpop.f32.mrf.mxu2 }
 0x1e3   : > { %v2015_v52 = vadd.f32 %v1998_v42, %v280_v40  ;;  %v1932_v55 = vadd.f32 %v1931_v44, %v1909_v14 }
 0x1e5   : > { %2030 = vst [vmem:[#allocation2 + $0x38] sm:$0xff] %v2015_v52  ;;  %v1955_v8 = vadd.f32 %v1954_v39, %v1932_v55 }
 0x1e7   : > { %v1978_v22 = vadd.f32 %v1977_v10, %v1955_v8 }
 0x1e9   : > { %v2001_v62 = vadd.f32 %v2000_v37, %v1978_v22  ;;  %2037 = sbr.rel (%p2906_p10) target bundleno = 514 (0x202), region = 66 }
 0x1ea   : > { %v1933_v63 = vpop.f32.mrf.mxu1 }
 0x1eb   : > { %v2018_v29 = vadd.f32 %v2001_v62, %v283_v61 }
 0x1ed   : > { %2033 = vst [vmem:[#allocation2 + $0x28] sm:$0xf] %v2018_v29 }
 0x1ee   : > { %v2038_v33 = vld [vmem:[#allocation2 + $0x30] sm:$0xff]  ;;  %v2039_v0 = vld [vmem:[#allocation2] sm:$0xff]  ;;  %v2040_v24 = vld [vmem:[#allocation2 + $0x58] sm:$0xff] }
 0x1ef   : > { %v2053_v28 = vld [vmem:[%s3887_s2] sm:$0x7]  ;;  %v2041_v41 = vld [vmem:[#allocation2 + $0x18] sm:$0xff]  ;;  %v2042_v60 = vld [vmem:[#allocation2 + $0x50] sm:$0xff] }
 0x1f0   : > { %v2055_v47 = vperm.slane %v2053_v28, 0  ;;  %v2056_v2 = vperm.slane %v2053_v28, 1  ;;  %v2057_v45 = vperm.slane %v2053_v28, 2  ;;  %v2043_v1 = vld [vmem:[#allocation2 + $0x68] sm:$0xff]  ;;  %v2046_v43 = vld [vmem:[#allocation2 + $0x40] sm:$0xff]  ;;  %v2048_v35 = vld [vmem:[#allocation2 + $0x10] sm:$0xff] }
 0x1f1   : > { %v2044_v48 = vld [vmem:[#allocation2 + $0x8] sm:$0xff]  ;;  %v2047_v49 = vld [vmem:[#allocation2 + $0x20] sm:$0xff]  ;;  %v2049_v16 = vld [vmem:[#allocation2 + $0x38] sm:$0xff] }
 0x1f2   : > { %v2045_v3 = vld [vmem:[#allocation2 + $0x48] sm:$0xff]  ;;  %v2061_v57 = vadd.f32 %v2055_v47, %v2038_v33  ;;  %v2062_v5 = vadd.f32 %v2056_v2, %v2039_v0  ;;  %v2063_v32 = vadd.f32 %v2057_v45, %v2040_v24  ;;  %v2064_v53 = vadd.f32 %v2055_v47, %v2041_v41  ;;  %v2050_v20 = vld [vmem:[#allocation2 + $0x60] sm:$0xf]  ;;  %v2051_v46 = vld [vmem:[#allocation2 + $0x70] sm:$0xf] }
 0x1f3   : > { %v2065_v54 = vadd.f32 %v2056_v2, %v2042_v60  ;;  %v2066_v6 = vadd.f32 %v2057_v45, %v2043_v1  ;;  %v2067_v15 = vadd.f32 %v2055_v47, %v2044_v48  ;;  %v2068_v23 = vadd.f32 %v2056_v2, %v2045_v3 }
 0x1f4   : > { %v2076_v12 = vmax.f32 %v2061_v57, 0.0  ;;  %v2077_v18 = vmax.f32 %v2062_v5, 0.0  ;;  %v2078_v13 = vmax.f32 %v2063_v32, 0.0  ;;  %v2079_v39 = vmax.f32 %v2064_v53, 0.0  ;;  %v2052_v7 = vld [vmem:[#allocation2 + $0x28] sm:$0xf] }
 0x1f5   : > { %v2080_v10 = vmax.f32 %v2065_v54, 0.0  ;;  %v2081_v11 = vmax.f32 %v2066_v6, 0.0  ;;  %v2082_v4 = vmax.f32 %v2067_v15, 0.0  ;;  %v2083_v19 = vmax.f32 %v2068_v23, 0.0 }
 0x1f6   : > { %v2091_v56 = vpack.c.bf16 %v2077_v18, %v2076_v12  ;;  %v2092_v27 = vpack.c.bf16 %v2078_v13, %v2078_v13  ;;  %v2069_v58 = vadd.f32 %v2057_v45, %v2046_v43  ;;  %v2070_v30 = vadd.f32 %v2055_v47, %v2047_v49 }
 0x1f7   : > { %v2093_v17 = vpack.c.bf16 %v2080_v10, %v2079_v39  ;;  %v2094_v25 = vpack.c.bf16 %v2081_v11, %v2081_v11  ;;  %v2095_v50 = vpack.c.bf16 %v2083_v19, %v2082_v4  ;;  %v2071_v26 = vadd.f32 %v2056_v2, %v2048_v35 }
 0x1f8   : > { %2101 = vst [vmem:[%s3888_s3] sm:$0xff] %v2091_v56  ;;  %v2084_v9 = vmax.f32 %v2069_v58, 0.0  ;;  %v2085_v21 = vmax.f32 %v2070_v30, 0.0  ;;  %v2072_v34 = vadd.f32 %v2057_v45, %v2049_v16  ;;  %v2073_v31 = vadd.f32 %v2055_v47, %v2050_v20 }
 0x1f9   : > { %2102 = vst [vmem:[%s3888_s3 + $0x8] sm:$0xf] %v2092_v27  ;;  %v2086_v37 = vmax.f32 %v2071_v26, 0.0  ;;  %v2074_v51 = vadd.f32 %v2056_v2, %v2051_v46  ;;  %v2075_v38 = vadd.f32 %v2057_v45, %v2052_v7 }
 0x1fa   : > { %2103 = vst [vmem:[%s3888_s3 + $0xc] sm:$0xff] %v2093_v17  ;;  %v2096_v36 = vpack.c.bf16 %v2084_v9, %v2084_v9  ;;  %v2087_v40 = vmax.f32 %v2072_v34, 0.0  ;;  %v2088_v14 = vmax.f32 %v2073_v31, 0.0 }
 0x1fb   : > { %2104 = vst [vmem:[%s3888_s3 + $0x14] sm:$0xf] %v2094_v25  ;;  %v2097_v42 = vpack.c.bf16 %v2086_v37, %v2085_v21  ;;  %v2089_v44 = vmax.f32 %v2074_v51, 0.0  ;;  %v2090_v52 = vmax.f32 %v2075_v38, 0.0 }
 0x1fc   : > { %2105 = vst [vmem:[%s3888_s3 + $0x18] sm:$0xff] %v2095_v50  ;;  %v2098_v55 = vpack.c.bf16 %v2087_v40, %v2087_v40 }
 0x1fd   : > { %2106 = vst [vmem:[%s3888_s3 + $0x20] sm:$0xf] %v2096_v36  ;;  %v2099_v59 = vpack.c.bf16 %v2089_v44, %v2088_v14  ;;  %v2100_v8 = vpack.c.bf16 %v2090_v52, %v2090_v52 }
 0x1fe   : > { %2107 = vst [vmem:[%s3888_s3 + $0x24] sm:$0xff] %v2097_v42 }
 0x1ff   : > { %2108 = vst [vmem:[%s3888_s3 + $0x2c] sm:$0xf] %v2098_v55 }
 0x200   : > { %2109 = vst [vmem:[%s3888_s3 + $0x30] sm:$0x33] %v2099_v59 }
 0x201   : > { %2110 = vst [vmem:[%s3888_s3 + $0x38] sm:$0x3] %v2100_v8 }
 0x202 PF: > { %p10_p11 = scmp.ge.s32.totalorder %s3200_s16, 4   ;;  %s3889_s12 = smov %s3154_s13 }
 0x203   : > { %s3890_s13 = smov %s3209_s19  ;;  %s3891_s14 = smov %s3200_s16 }
 0x204   :  { %12 = sbr.rel (!%p10_p11) target bundleno = 2 (0x2), region = 106 }

// kernel: lpips_forward.10
= control target key start
LH: loop header
LB: loop body
LE: loop exit
PB: predicated region body
PF: predicated region fallthrough
CT: control target
= control target key end

     0   :  { %s1234_s12 = smov 0   ;;  %s1236_s13 = smov 0   ;;  %s1451_s0 = inlined_call_operand.vmem [shape: bf16[36,3456], index: 0, kind: input, shape index: {}]   ;;  %s1452_s1 = inlined_call_operand.vmem [shape: bf16[3456,256], index: 1, kind: input, shape index: {}]   ;;  %s1453_s2 = inlined_call_operand.vmem [shape: f32[1,256], index: 2, kind: input, shape index: {}]   ;;  %s1454_s3 = inlined_call_operand.vmem [shape: bf16[36,256], index: 3, kind: output, shape index: {}]  }
   0x1   :  { %s1238_s14 = smov 0  }
   0x2 LB: > { %s1250_s15 = sadd.s32 4294967295, %s1211_s14   ;;  %s1253_s16 = sadd.s32 1, %s1211_s14   ;;  %s1211_s14 = sphi %s1238_s14, %s1457_s14   ;;  %s1207_s13 = sphi %s1236_s13, %s1456_s13   ;;  %s1203_s12 = sphi %s1234_s12, %s1455_s12  }
   0x3   : > { %s17_s17 = ssub.s32 %s1211_s14, %s1253_s16  ;;  %s20_s18 = sadd.s32 1, %s1207_s13 }
   0x4   : > { %p18_p0 = scmp.eq.s32.totalorder %s17_s17, 0  ;;  %p27_p1 = scmp.ne.s32.totalorder %s1207_s13, %s1203_s12 }
   0x5   : > { %p28_p2 = scmp.eq.s32.totalorder %s1211_s14, 0  ;;  %p855_p4 = scmp.ge.s32.totalorder %s1211_s14, 9 }
   0x6   : > { %s1262_s19 = scalar_select %p18_p0, %s1207_s13, %s20_s18  }
   0x7   : > { %p29_p3 = por %p28_p2, %p27_p1  ;;  %124 = sbr.rel (%p855_p4) target bundleno = 27 (0x1b), region = 20 }
   0xc   : > { %127 = sbr.rel (!%p29_p3) target bundleno = 27 (0x1b), region = 24  ;;  %s129_s20 = sand.u32 (%p29_p3), 1, %s1207_s13  }
   0xd   : > { %s1090_s21 = smul.u32 (%p29_p3), 12, %s1211_s14 }
   0xe   : > { %s1162_s22 = smul.u32 (%p29_p3), 60, %s129_s20 }
   0xf   : > { %s134_s25 = scalar_lea.vmem (%p29_p3), %s1451_s0, %s1090_s21 }
  0x10   : > { %v149_v0 = vld [vmem:[%s134_s25] sm:$0xff] (%p29_p3)  ;;  %v151_v1 = vld [vmem:[%s134_s25 + $0x6c] sm:$0xff] (%p29_p3)  ;;  %v153_v2 = vld [vmem:[%s134_s25 + $0xd8] sm:$0xff] (%p29_p3)  ;;  %s131_s26 = scalar_lea.vmem (%p29_p3), [#allocation3], %s1162_s22 }
  0x11   : > { %150 = vst [vmem:[%s131_s26] sm:$0xff] %v149_v0  ;;  %v155_v3 = vld [vmem:[%s134_s25 + $0x144] sm:$0xff]  ;;  %v157_v4 = vld [vmem:[%s134_s25 + $0x1b0] sm:$0xff]  ;;  %v861_v7 = vld [vmem:[%s134_s25 + $0xe0] sm:$0xf] }
  0x12   : > { %152 = vst [vmem:[%s131_s26 + $0xc] sm:$0xff] %v151_v1  ;;  %v857_v5 = vld [vmem:[%s134_s25 + $0x8] sm:$0xf]  ;;  %v859_v6 = vld [vmem:[%s134_s25 + $0x74] sm:$0xf] }
  0x13   : > { %154 = vst [vmem:[%s131_s26 + $0x18] sm:$0xff] %v153_v2  ;;  %v863_v8 = vld [vmem:[%s134_s25 + $0x14c] sm:$0xf]  ;;  %v865_v9 = vld [vmem:[%s134_s25 + $0x1b8] sm:$0xf] }
  0x14   : > { %156 = vst [vmem:[%s131_s26 + $0x24] sm:$0xff] %v155_v3 }
  0x15   : > { %158 = vst [vmem:[%s131_s26 + $0x30] sm:$0xff] %v157_v4 }
  0x16   : > { %858 = vst [vmem:[%s131_s26 + $0x8] sm:$0xf] %v857_v5 }
  0x17   : > { %860 = vst [vmem:[%s131_s26 + $0x14] sm:$0xf] %v859_v6 }
  0x18   : > { %862 = vst [vmem:[%s131_s26 + $0x20] sm:$0xf] %v861_v7 }
  0x19   : > { %864 = vst [vmem:[%s131_s26 + $0x2c] sm:$0xf] %v863_v8 }
  0x1a   : > { %866 = vst [vmem:[%s131_s26 + $0x38] sm:$0xf] %v865_v9 }
  0x1b PF: > { %p867_p5 = scmp.ge.s32.totalorder %s1211_s14, 1  ;;  %p191_p6 = scmp.lt.s32.totalorder %s1211_s14, 10 }
  0x1d   : > { %p192_p7 = pnand %p867_p5, %p191_p6 }
  0x1e   : > { %s198_s27 = sand.u32 (!%p192_p7), 1, %s1203_s12   ;;  %s223_s28 = smul.u32 (!%p192_p7), 48, %s1250_s15 }
  0x1f   : > { %195 = sbr.rel (%p192_p7) target bundleno = 306 (0x132), region = 54  ;;  %p870_p9 = scmp.ne.s32.totalorder (!%p192_p7), %s1250_s15, 0 }
  0x20   : > { %s1163_s29 = smul.u32 (!%p192_p7), 60, %s198_s27  ;;  %p224_p8 = scmp.lt.s32.totalorder (!%p192_p7), %s223_s28, 431 }
  0x22   : > { %s1279_s7 = scalar_lea.vmem (!%p192_p7), [#allocation3], %s1163_s29 }
  0x24   : > { %s1459_s28 = smov (!%p224_p8, %s223_s28), 431  ;;  %233 = sbr.rel (%p870_p9) target bundleno = 52 (0x34), region = 62 }
  0x25   : > { %s1091_s30 = sshll.u32 %s1459_s28, 3 }
  0x26   : > { %s1277_s6 = scalar_lea.vmem %s1452_s1, %s1091_s30 }
  0x29   : > { %v1213_v10 = vmov 0.0  }
  0x2a   : > { %234 = vst [vmem:[#allocation2 + $0x30] sm:$0xff] %v1213_v10 }
  0x2b   : > { %235 = vst [vmem:[#allocation2] sm:$0xff] %v1213_v10 }
  0x2c   : > { %236 = vst [vmem:[#allocation2 + $0x18] sm:$0xff] %v1213_v10 }
  0x2d   : > { %237 = vst [vmem:[#allocation2 + $0x10] sm:$0xff] %v1213_v10 }
  0x2e   : > { %238 = vst [vmem:[#allocation2 + $0x48] sm:$0xff] %v1213_v10 }
  0x2f   : > { %239 = vst [vmem:[#allocation2 + $0x28] sm:$0xff] %v1213_v10 }
  0x30   : > { %240 = vst [vmem:[#allocation2 + $0x8] sm:$0xff] %v1213_v10 }
  0x31   : > { %241 = vst [vmem:[#allocation2 + $0x20] sm:$0xff] %v1213_v10 }
  0x32   : > { %242 = vst [vmem:[#allocation2 + $0x40] sm:$0xf] %v1213_v10 }
  0x33   : > { %243 = vst [vmem:[#allocation2 + $0x38] sm:$0xf] %v1213_v10 }
  0x34 PF: > { %v953_v11 = vld [vmem:[%s1277_s6 + $0x70] sm:$0xf]  ;;  %v1113_v12 = vld [vmem:[%s1277_s6 + $0x74] sm:$0xf0]  ;;  %v945_v16 = vld [vmem:[%s1277_s6 + $0x60] sm:$0xf] }
  0x35   : > { %v1017_v13 = vld [vmem:[%s1277_s6 + $0xf0] sm:$0xf]  ;;  %v954_v14 = vor.u32 %v1113_v12, %v953_v11  ;;  %v1129_v15 = vld [vmem:[%s1277_s6 + $0xf4] sm:$0xf0]  ;;  %v1111_v17 = vld [vmem:[%s1277_s6 + $0x64] sm:$0xf0] }
  0x36   : > { %v1018_v18 = vor.u32 %v1129_v15, %v1017_v13  ;;  %v1009_v19 = vld [vmem:[%s1277_s6 + $0xe0] sm:$0xf]  ;;  %v1127_v20 = vld [vmem:[%s1277_s6 + $0xe4] sm:$0xf0]  ;;  %v946_v21 = vor.u32 %v1111_v17, %v945_v16  ;;  %v937_v23 = vld [vmem:[%s1277_s6 + $0x50] sm:$0xf] }
  0x37   : > { %595 = vmatpush.bf16.msra.mxu0 %v954_v14  ;;  %1146 = vmatpush.bf16.msra.mxu2 %v954_v14  ;;  %v1010_v22 = vor.u32 %v1127_v20, %v1009_v19  ;;  %v1109_v24 = vld [vmem:[%s1277_s6 + $0x54] sm:$0xf0]  ;;  %v1001_v25 = vld [vmem:[%s1277_s6 + $0xd0] sm:$0xf]  ;;  %v929_v29 = vld [vmem:[%s1277_s6 + $0x40] sm:$0xf] }
  0x38   : > { %618 = vmatpush.bf16.msra.mxu1 %v1018_v18  ;;  %1154 = vmatpush.bf16.msra.mxu3 %v1018_v18  ;;  %v1125_v26 = vld [vmem:[%s1277_s6 + $0xd4] sm:$0xf0]  ;;  %v938_v27 = vor.u32 %v1109_v24, %v937_v23  ;;  %v1107_v30 = vld [vmem:[%s1277_s6 + $0x44] sm:$0xf0]  ;;  %v993_v31 = vld [vmem:[%s1277_s6 + $0xc0] sm:$0xf] }
  0x39   : > { %v1002_v28 = vor.u32 %v1125_v26, %v1001_v25  ;;  %v1123_v32 = vld [vmem:[%s1277_s6 + $0xc4] sm:$0xf0]  ;;  %v930_v33 = vor.u32 %v1107_v30, %v929_v29  ;;  %v921_v35 = vld [vmem:[%s1277_s6 + $0x30] sm:$0xf]  ;;  %v1105_v36 = vld [vmem:[%s1277_s6 + $0x34] sm:$0xf0] }
  0x3a   : > { %v994_v34 = vor.u32 %v1123_v32, %v993_v31  ;;  %v985_v37 = vld [vmem:[%s1277_s6 + $0xb0] sm:$0xf]  ;;  %v1121_v38 = vld [vmem:[%s1277_s6 + $0xb4] sm:$0xf0]  ;;  %v922_v39 = vor.u32 %v1105_v36, %v921_v35  ;;  %v913_v41 = vld [vmem:[%s1277_s6 + $0x20] sm:$0xf] }
  0x3b   : > { %596 = vmatpush.bf16.msra.mxu0 %v946_v21  ;;  %1147 = vmatpush.bf16.msra.mxu2 %v946_v21  ;;  %v986_v40 = vor.u32 %v1121_v38, %v985_v37  ;;  %v1103_v42 = vld [vmem:[%s1277_s6 + $0x24] sm:$0xf0]  ;;  %v977_v43 = vld [vmem:[%s1277_s6 + $0xa0] sm:$0xf]  ;;  %v905_v47 = vld [vmem:[%s1277_s6 + $0x10] sm:$0xf] }
  0x3c   : > { %619 = vmatpush.bf16.msra.mxu1 %v1010_v22  ;;  %1155 = vmatpush.bf16.msra.mxu3 %v1010_v22  ;;  %v1119_v44 = vld [vmem:[%s1277_s6 + $0xa4] sm:$0xf0]  ;;  %v914_v45 = vor.u32 %v1103_v42, %v913_v41  ;;  %v1101_v48 = vld [vmem:[%s1277_s6 + $0x14] sm:$0xf0]  ;;  %v969_v49 = vld [vmem:[%s1277_s6 + $0x90] sm:$0xf] }
  0x3d   : > { %v978_v46 = vor.u32 %v1119_v44, %v977_v43  ;;  %v1117_v50 = vld [vmem:[%s1277_s6 + $0x94] sm:$0xf0]  ;;  %v906_v51 = vor.u32 %v1101_v48, %v905_v47  ;;  %v897_v52 = vld [vmem:[%s1277_s6] sm:$0xf]  ;;  %v1099_v53 = vld [vmem:[%s1277_s6 + $0x4] sm:$0xf0] }
  0x3e   : > { %v970_v54 = vor.u32 %v1117_v50, %v969_v49  ;;  %v961_v55 = vld [vmem:[%s1277_s6 + $0x80] sm:$0xf]  ;;  %v1115_v56 = vld [vmem:[%s1277_s6 + $0x84] sm:$0xf0]  ;;  %v1081_v57 = vld [vmem:[%s1277_s6 + $0x170] sm:$0xf]  ;;  %v898_v0 = vor.u32 %v1099_v53, %v897_v52 }
  0x3f   : > { %597 = vmatpush.bf16.msra.mxu0 %v938_v27  ;;  %1148 = vmatpush.bf16.msra.mxu2 %v938_v27  ;;  %v1145_v58 = vld [vmem:[%s1277_s6 + $0x174] sm:$0xf0]  ;;  %v1112_v59 = vld [vmem:[%s1277_s6 + $0x74] sm:$0xf]  ;;  %v262_v60 = vld [vmem:[%s1279_s7 + $0x30] sm:$0x33]  ;;  %v962_v4 = vor.u32 %v1115_v56, %v961_v55 }
  0x40   : > { %620 = vmatpush.bf16.msra.mxu1 %v1002_v28  ;;  %1156 = vmatpush.bf16.msra.mxu3 %v1002_v28  ;;  %v955_v61 = vld [vmem:[%s1277_s6 + $0x78] sm:$0xf0]  ;;  %v873_v62 = vld [vmem:[%s1279_s7] sm:$0xf]  ;;  %v1092_v1 = vld [vmem:[%s1279_s7 + $0x4] sm:$0xf]  ;;  %v334_v8 = vunpack.c.l.b16 %v262_v60  ;;  %v335_v9 = vunpack.c.h.b16 %v262_v60  ;;  %v1082_v10 = vor.u32 %v1145_v58, %v1081_v57 }
  0x41   : > { %v1093_v63 = vld [vmem:[%s1279_s7 + $0x8] sm:$0xf0]  ;;  %v1144_v2 = vld [vmem:[%s1277_s6 + $0x174] sm:$0xf]  ;;  %v875_v5 = vld [vmem:[%s1279_s7 + $0xc] sm:$0xf0]  ;;  %v958_v11 = vor.u32 %v1112_v59, %v955_v61 }
  0x42   : > { %v1083_v3 = vld [vmem:[%s1277_s6 + $0x178] sm:$0xf0]  ;;  %v1128_v6 = vld [vmem:[%s1277_s6 + $0xf4] sm:$0xf]  ;;  %v1073_v12 = vld [vmem:[%s1277_s6 + $0x160] sm:$0xf]  ;;  %v1328_v13 = vor.u32 %v1093_v63, %v873_v62  ;;  %v1333_v18 = vor.u32 %v1092_v1, %v875_v5  ;;  %v1337_v22 = vpack.c.b16 %v334_v8, %v334_v8  ;;  %v1339_v23 = vpack.c.b16 %v335_v9, %v335_v9 }
  0x43   : > { %598 = vmatpush.bf16.msra.mxu0 %v930_v33  ;;  %1149 = vmatpush.bf16.msra.mxu2 %v930_v33  ;;  %v1019_v7 = vld [vmem:[%s1277_s6 + $0xf8] sm:$0xf0]  ;;  %v1086_v14 = vor.u32 %v1144_v2, %v1083_v3  ;;  %v1143_v15 = vld [vmem:[%s1277_s6 + $0x164] sm:$0xf0]  ;;  %v1110_v16 = vld [vmem:[%s1277_s6 + $0x64] sm:$0xf] }
  0x44   : > { %621 = vmatpush.bf16.msra.mxu1 %v994_v34  ;;  %1157 = vmatpush.bf16.msra.mxu3 %v994_v34  ;;  %v947_v17 = vld [vmem:[%s1277_s6 + $0x68] sm:$0xf0]  ;;  %v1022_v19 = vor.u32 %v1128_v6, %v1019_v7  ;;  %v1142_v20 = vld [vmem:[%s1277_s6 + $0x164] sm:$0xf]  ;;  %v1074_v26 = vor.u32 %v1143_v15, %v1073_v12  ;;  %v1065_v28 = vld [vmem:[%s1277_s6 + $0x150] sm:$0xf] }
  0x45   : > { %v1075_v21 = vld [vmem:[%s1277_s6 + $0x168] sm:$0xf0]  ;;  %v1126_v24 = vld [vmem:[%s1277_s6 + $0xe4] sm:$0xf]  ;;  %v950_v27 = vor.u32 %v1110_v16, %v947_v17  ;;  %v1141_v30 = vld [vmem:[%s1277_s6 + $0x154] sm:$0xf0] }
  0x46   : > { %v1011_v25 = vld [vmem:[%s1277_s6 + $0xe8] sm:$0xf0]  ;;  %v1078_v29 = vor.u32 %v1142_v20, %v1075_v21  ;;  %v1108_v31 = vld [vmem:[%s1277_s6 + $0x54] sm:$0xf]  ;;  %v939_v32 = vld [vmem:[%s1277_s6 + $0x58] sm:$0xf0]  ;;  %v1066_v38 = vor.u32 %v1141_v30, %v1065_v28 }
  0x47   : > { %599 = vmatpush.bf16.msra.mxu0 %v922_v39  ;;  %1150 = vmatpush.bf16.msra.mxu2 %v922_v39  ;;  %v1014_v33 = vor.u32 %v1126_v24, %v1011_v25  ;;  %v1140_v34 = vld [vmem:[%s1277_s6 + $0x154] sm:$0xf]  ;;  %v1067_v35 = vld [vmem:[%s1277_s6 + $0x158] sm:$0xf0]  ;;  %v942_v39 = vor.u32 %v1108_v31, %v939_v32  ;;  %v1139_v42 = vld [vmem:[%s1277_s6 + $0x144] sm:$0xf0] }
  0x48   : > { %622 = vmatpush.bf16.msra.mxu1 %v986_v40  ;;  %1158 = vmatpush.bf16.msra.mxu3 %v986_v40  ;;  %v1124_v36 = vld [vmem:[%s1277_s6 + $0xd4] sm:$0xf]  ;;  %v1003_v37 = vld [vmem:[%s1277_s6 + $0xd8] sm:$0xf0]  ;;  %v1057_v40 = vld [vmem:[%s1277_s6 + $0x140] sm:$0xf]  ;;  %v1070_v41 = vor.u32 %v1140_v34, %v1067_v35 }
  0x49   : > { %v1106_v43 = vld [vmem:[%s1277_s6 + $0x44] sm:$0xf]  ;;  %v931_v44 = vld [vmem:[%s1277_s6 + $0x48] sm:$0xf0]  ;;  %v1058_v50 = vor.u32 %v1139_v42, %v1057_v40  ;;  %v1049_v52 = vld [vmem:[%s1277_s6 + $0x130] sm:$0xf] }
  0x4a   : > { %v1059_v47 = vld [vmem:[%s1277_s6 + $0x148] sm:$0xf0]  ;;  %v1122_v48 = vld [vmem:[%s1277_s6 + $0xc4] sm:$0xf]  ;;  %v1137_v53 = vld [vmem:[%s1277_s6 + $0x134] sm:$0xf0] }
  0x4b   : > { %600 = vmatpush.bf16.msra.mxu0 %v914_v45  ;;  %1151 = vmatpush.bf16.msra.mxu2 %v914_v45  ;;  %v1006_v45 = vor.u32 %v1124_v36, %v1003_v37  ;;  %v995_v49 = vld [vmem:[%s1277_s6 + $0xc8] sm:$0xf0]  ;;  %v923_v56 = vld [vmem:[%s1277_s6 + $0x38] sm:$0xf0]  ;;  %v885_v57 = vld [vmem:[%s1279_s7 + $0x18] sm:$0xf]  ;;  %v1050_v2 = vor.u32 %v1137_v53, %v1049_v52 }
  0x4c   : > { %623 = vmatpush.bf16.msra.mxu1 %v978_v46  ;;  %1159 = vmatpush.bf16.msra.mxu3 %v978_v46  ;;  %v1138_v46 = vld [vmem:[%s1277_s6 + $0x144] sm:$0xf]  ;;  %v1096_v58 = vld [vmem:[%s1279_s7 + $0x20] sm:$0xf0]  ;;  %v998_v59 = vor.u32 %v1122_v48, %v995_v49  ;;  %v1095_v60 = vld [vmem:[%s1279_s7 + $0x1c] sm:$0xf] }
  0x4d   : > { %v1062_v55 = vor.u32 %v1138_v46, %v1059_v47  ;;  %v1136_v61 = vld [vmem:[%s1277_s6 + $0x134] sm:$0xf]  ;;  %v1051_v62 = vld [vmem:[%s1277_s6 + $0x138] sm:$0xf0]  ;;  %v1376_v5 = vor.u32 %v1096_v58, %v885_v57  ;;  %v1135_v7 = vld [vmem:[%s1277_s6 + $0x124] sm:$0xf0] }
  0x4e   : > { %v887_v63 = vld [vmem:[%s1279_s7 + $0x24] sm:$0xf0]  ;;  %v987_v1 = vld [vmem:[%s1277_s6 + $0xb8] sm:$0xf0]  ;;  %v1054_v6 = vor.u32 %v1136_v61, %v1051_v62  ;;  %v1102_v8 = vld [vmem:[%s1277_s6 + $0x24] sm:$0xf] }
  0x4f   : > { %601 = vmatpush.bf16.msra.mxu0 %v906_v51  ;;  %1152 = vmatpush.bf16.msra.mxu2 %v906_v51  ;;  %v934_v51 = vor.u32 %v1106_v43, %v931_v44  ;;  %v915_v9 = vld [vmem:[%s1277_s6 + $0x28] sm:$0xf0]  ;;  %v1134_v12 = vld [vmem:[%s1277_s6 + $0x124] sm:$0xf]  ;;  %v1033_v20 = vld [vmem:[%s1277_s6 + $0x110] sm:$0xf] }
  0x50   : > { %624 = vmatpush.bf16.msra.mxu1 %v970_v54  ;;  %1160 = vmatpush.bf16.msra.mxu3 %v970_v54  ;;  %v1104_v54 = vld [vmem:[%s1277_s6 + $0x34] sm:$0xf]  ;;  %v1118_v15 = vld [vmem:[%s1277_s6 + $0xa4] sm:$0xf]  ;;  %v979_v16 = vld [vmem:[%s1277_s6 + $0xa8] sm:$0xf0] }
  0x51   : > { %v926_v3 = vor.u32 %v1104_v54, %v923_v56  ;;  %v1133_v24 = vld [vmem:[%s1277_s6 + $0x114] sm:$0xf0]  ;;  %v1100_v25 = vld [vmem:[%s1277_s6 + $0x14] sm:$0xf]  ;;  %v971_v31 = vld [vmem:[%s1277_s6 + $0x98] sm:$0xf0] }
  0x52   : > { %v1132_v28 = vld [vmem:[%s1277_s6 + $0x114] sm:$0xf]  ;;  %v1034_v32 = vor.u32 %v1133_v24, %v1033_v20  ;;  %v1025_v34 = vld [vmem:[%s1277_s6 + $0x100] sm:$0xf]  ;;  %v1131_v36 = vld [vmem:[%s1277_s6 + $0x104] sm:$0xf0] }
  0x53   : > { %602 = vmatpush.bf16.msra.mxu0 %v898_v0  ;;  %1153 = vmatpush.bf16.msra.mxu2 %v898_v0  ;;  %v1120_v0 = vld [vmem:[%s1277_s6 + $0xb4] sm:$0xf]  ;;  %v1098_v37 = vld [vmem:[%s1277_s6 + $0x4] sm:$0xf]  ;;  %v963_v43 = vld [vmem:[%s1277_s6 + $0x88] sm:$0xf0]  ;;  %v1026_v44 = vor.u32 %v1131_v36, %v1025_v34 }
  0x54   : > { %625 = vmatpush.bf16.msra.mxu1 %v962_v4  ;;  %1161 = vmatpush.bf16.msra.mxu3 %v962_v4  ;;  %v1041_v4 = vld [vmem:[%s1277_s6 + $0x120] sm:$0xf]  ;;  %v1116_v30 = vld [vmem:[%s1277_s6 + $0x94] sm:$0xf]  ;;  %v1130_v40 = vld [vmem:[%s1277_s6 + $0x104] sm:$0xf] }
  0x55   : > { %v1042_v17 = vor.u32 %v1135_v7, %v1041_v4  ;;  %v1114_v42 = vld [vmem:[%s1277_s6 + $0x84] sm:$0xf]  ;;  %v881_v46 = vld [vmem:[%s1279_s7 + $0x8] sm:$0xf]  ;;  %v1097_v52 = vld [vmem:[%s1279_s7 + $0x28] sm:$0xf0] }
  0x56   : > { %603 = vmatmul.bf16.vlgmr.msra.gmra.mxu0 %v1328_v13  ;;  %613 = vmatmul.bf16.vlgmr.msra.gmra.mxu2 %v1337_v22  ;;  %v1094_v47 = vld [vmem:[%s1279_s7 + $0x10] sm:$0xf0]  ;;  %v966_v49 = vor.u32 %v1114_v42, %v963_v43  ;;  %v263_v54 = vld [vmem:[%s1279_s7 + $0x38] sm:$0x3]  ;;  %p1087_p10 = scmp.ne.s32.totalorder %s1250_s15, 8 }
  0x57   : > { %641 = vmatpush.bf16.msrb.mxu2 %v1082_v10  ;;  %626 = vmatmul.bf16.vlgmr.msra.gmra.mxu1 %v1333_v18  ;;  %v1381_v10 = vor.u32 %v1095_v60, %v887_v63 }
  0x58   : > { %664 = vmatpush.bf16.msrb.mxu3 %v958_v11  ;;  %710 = vmatpush.bf16.msrb.mxu1 %v1086_v14  ;;  %v990_v11 = vor.u32 %v1120_v0, %v987_v1  ;;  %v1043_v14 = vld [vmem:[%s1277_s6 + $0x128] sm:$0xf0] }
  0x59   : > { %687 = vmatpush.bf16.msrb.mxu0 %v1022_v19  ;;  %636 = vmatmul.bf16.vlgmr.msra.gmra.mxu3 %v1339_v23  ;;  %v918_v19 = vor.u32 %v1102_v8, %v915_v9  ;;  %v1046_v21 = vor.u32 %v1134_v12, %v1043_v14  ;;  %v245_v9 = vld [vmem:[#allocation2] sm:$0xff] }
  0x5b   : > { %642 = vmatpush.bf16.msrb.mxu2 %v1074_v26  ;;  %v907_v26 = vld [vmem:[%s1277_s6 + $0x18] sm:$0xf0] }
  0x5c   : > { %665 = vmatpush.bf16.msrb.mxu3 %v950_v27  ;;  %711 = vmatpush.bf16.msrb.mxu1 %v1078_v29  ;;  %v982_v27 = vor.u32 %v1118_v15, %v979_v16  ;;  %v1035_v29 = vld [vmem:[%s1277_s6 + $0x118] sm:$0xf0] }
  0x5d   : > { %688 = vmatpush.bf16.msrb.mxu0 %v1014_v33  ;;  %v910_v33 = vor.u32 %v1100_v25, %v907_v26  ;;  %v1038_v35 = vor.u32 %v1132_v28, %v1035_v29  ;;  %v247_v25 = vld [vmem:[#allocation2 + $0x10] sm:$0xff] }
  0x5f   : > { %643 = vmatpush.bf16.msrb.mxu2 %v1066_v38  ;;  %v899_v38 = vld [vmem:[%s1277_s6 + $0x8] sm:$0xf0] }
  0x60   : > { %666 = vmatpush.bf16.msrb.mxu3 %v942_v39  ;;  %712 = vmatpush.bf16.msrb.mxu1 %v1070_v41  ;;  %v974_v39 = vor.u32 %v1116_v30, %v971_v31  ;;  %v1027_v41 = vld [vmem:[%s1277_s6 + $0x108] sm:$0xf0] }
  0x61   : > { %689 = vmatpush.bf16.msrb.mxu0 %v1006_v45  ;;  %v902_v45 = vor.u32 %v1098_v37, %v899_v38  ;;  %v1030_v48 = vor.u32 %v1130_v40, %v1027_v41  ;;  %v249_v37 = vld [vmem:[#allocation2 + $0x28] sm:$0xff] }
  0x63   : > { %644 = vmatpush.bf16.msrb.mxu2 %v1058_v50  ;;  %v882_v50 = vor.u32 %v1094_v47, %v881_v46 }
  0x64   : > { %667 = vmatpush.bf16.msrb.mxu3 %v934_v51  ;;  %713 = vmatpush.bf16.msrb.mxu1 %v1062_v55  ;;  %v893_v51 = vld [vmem:[%s1279_s7 + $0x20] sm:$0xf]  ;;  %v336_v55 = vunpack.c.l.b16 %v263_v54 }
  0x65   : > { %690 = vmatpush.bf16.msrb.mxu0 %v998_v59  ;;  %v894_v53 = vor.u32 %v1097_v52, %v893_v51 }
  0x66   : > { %608 = vmatmul.bf16.gmra.mxu0 %v1376_v5  ;;  %v345_v56 = vpack.c.b16 %v336_v55, %v336_v55 }
  0x67   : > { %645 = vmatpush.bf16.msrb.mxu2 %v1050_v2  ;;  %631 = vmatmul.bf16.gmra.mxu1 %v1381_v10 }
  0x68   : > { %668 = vmatpush.bf16.msrb.mxu3 %v926_v3  ;;  %714 = vmatpush.bf16.msrb.mxu1 %v1054_v6 }
  0x69   : > { %691 = vmatpush.bf16.msrb.mxu0 %v990_v11 }
  0x6b   : > { %646 = vmatpush.bf16.msrb.mxu2 %v1042_v17  ;;  %v246_v17 = vld [vmem:[#allocation2 + $0x18] sm:$0xff] }
  0x6c   : > { %669 = vmatpush.bf16.msrb.mxu3 %v918_v19  ;;  %715 = vmatpush.bf16.msrb.mxu1 %v1046_v21 }
  0x6d   : > { %692 = vmatpush.bf16.msrb.mxu0 %v982_v27 }
  0x6f   : > { %647 = vmatpush.bf16.msrb.mxu2 %v1034_v32  ;;  %v248_v32 = vld [vmem:[#allocation2 + $0x48] sm:$0xff] }
  0x70   : > { %670 = vmatpush.bf16.msrb.mxu3 %v910_v33  ;;  %716 = vmatpush.bf16.msrb.mxu1 %v1038_v35 }
  0x71   : > { %693 = vmatpush.bf16.msrb.mxu0 %v974_v39 }
  0x73   : > { %648 = vmatpush.bf16.msrb.mxu2 %v1026_v44  ;;  %v250_v44 = vld [vmem:[#allocation2 + $0x8] sm:$0xff] }
  0x74   : > { %671 = vmatpush.bf16.msrb.mxu3 %v902_v45  ;;  %717 = vmatpush.bf16.msrb.mxu1 %v1030_v48 }
  0x75   : > { %694 = vmatpush.bf16.msrb.mxu0 %v966_v49  ;;  %v251_v49 = vld [vmem:[#allocation2 + $0x20] sm:$0xff] }
  0x76   : > { %649 = vmatmul.bf16.vlgmr.msrb.gmra.mxu2 %v882_v50 }
  0x77   : > { %672 = vmatmul.bf16.vlgmr.msrb.gmra.mxu3 %v1328_v13  ;;  %718 = vmatmul.bf16.vlgmr.msrb.gmra.mxu1 %v882_v50 }
  0x78   : > { %695 = vmatmul.bf16.vlgmr.msrb.gmra.mxu0 %v1333_v18 }
  0x86   : > { %654 = vmatmul.bf16.gmra.mxu2 %v894_v53 }
  0x87   : > { %677 = vmatmul.bf16.gmra.mxu3 %v1376_v5  ;;  %723 = vmatmul.bf16.gmra.mxu1 %v894_v53  ;;  %v244_v5 = vld [vmem:[#allocation2 + $0x30] sm:$0xff] }
  0x88   : > { %700 = vmatmul.bf16.gmra.mxu0 %v1381_v10 }
  0x96   : > { %659 = vmatmul.bf16.gmra.mxu2 %v345_v56 }
  0x97   : > { %682 = vmatmul.bf16.gmra.mxu3 %v1337_v22  ;;  %728 = vmatmul.bf16.gmra.mxu1 %v345_v56  ;;  %v252_v56 = vld [vmem:[#allocation2 + $0x40] sm:$0xf] }
  0x98   : > { %705 = vmatmul.bf16.gmra.mxu0 %v1339_v23 }
  0xd3   : > { %v604_v13 = vpop.f32.mrf.mxu0 }
  0xd4   : > { %v627_v18 = vpop.f32.mrf.mxu1 }
  0xd5   : > { %v628_v22 = vadd.f32 %v627_v18, %v604_v13 }
  0xd9   : > { %v1416_v58 = vpop.f32.mrf.mxu2 }
  0xdb   : > { %v606_v57 = vpop.f32.mrf.mxu0 }
  0xdc   : > { %v629_v59 = vpop.f32.mrf.mxu1  ;;  %v1418_v60 = vpop.f32.mrf.mxu3 }
  0xdd   : > { %v630_v16 = vadd.f32 %v629_v59, %v606_v57  ;;  %v638_v55 = vadd.f32 %v1418_v60, %v1416_v58 }
  0xe1   : > { %v616_v62 = vpop.f32.mrf.mxu2 }
  0xe3   : > { %v609_v61 = vpop.f32.mrf.mxu0 }
  0xe4   : > { %v632_v63 = vpop.f32.mrf.mxu1  ;;  %v639_v0 = vpop.f32.mrf.mxu3 }
  0xe5   : > { %v633_v31 = vadd.f32 %v632_v63, %v609_v61  ;;  %v253_v61 = vld [vmem:[#allocation2 + $0x38] sm:$0xf] }
  0xeb   : > { %v611_v1 = vpop.f32.mrf.mxu0 }
  0xec   : > { %v634_v2 = vpop.f32.mrf.mxu1 }
  0xed   : > { %v635_v43 = vadd.f32 %v634_v2, %v611_v1 }
  0xf4   : > { %v719_v4 = vpop.f32.mrf.mxu1 }
  0xf5   : > { %v696_v3 = vpop.f32.mrf.mxu0 }
  0xf9   : > { %v650_v23 = vpop.f32.mrf.mxu2 }
  0xfa   : > { %v673_v6 = vpop.f32.mrf.mxu3  ;;  %v651_v7 = vadd.f32 %v650_v23, %v628_v22 }
  0xfb   : > { %v697_v8 = vadd.f32 %v696_v3, %v673_v6 }
  0xfc   : > { %v733_v10 = vadd.f32 %v651_v7, %v244_v5  ;;  %v721_v15 = vpop.f32.mrf.mxu1 }
  0xfd   : > { %v720_v11 = vadd.f32 %v719_v4, %v697_v8  ;;  %v698_v12 = vpop.f32.mrf.mxu0 }
  0xfe   : > { %743 = vst [vmem:[#allocation2 + $0x30] sm:$0xff] %v733_v10 }
  0xff   : > { %v734_v14 = vadd.f32 %v720_v11, %v245_v9 }
 0x101   : > { %744 = vst [vmem:[#allocation2] sm:$0xff] %v734_v14  ;;  %v652_v19 = vpop.f32.mrf.mxu2 }
 0x102   : > { %v675_v20 = vpop.f32.mrf.mxu3  ;;  %v653_v21 = vadd.f32 %v652_v19, %v630_v16 }
 0x103   : > { %v699_v24 = vadd.f32 %v698_v12, %v675_v20 }
 0x104   : > { %v735_v26 = vadd.f32 %v653_v21, %v246_v17  ;;  %v724_v30 = vpop.f32.mrf.mxu1 }
 0x105   : > { %v722_v27 = vadd.f32 %v721_v15, %v699_v24  ;;  %v701_v28 = vpop.f32.mrf.mxu0 }
 0x106   : > { %745 = vst [vmem:[#allocation2 + $0x18] sm:$0xff] %v735_v26 }
 0x107   : > { %v736_v29 = vadd.f32 %v722_v27, %v247_v25 }
 0x109   : > { %746 = vst [vmem:[#allocation2 + $0x10] sm:$0xff] %v736_v29  ;;  %v655_v33 = vpop.f32.mrf.mxu2 }
 0x10a   : > { %v678_v34 = vpop.f32.mrf.mxu3  ;;  %v656_v35 = vadd.f32 %v655_v33, %v633_v31 }
 0x10b   : > { %v702_v36 = vadd.f32 %v701_v28, %v678_v34 }
 0x10c   : > { %v737_v38 = vadd.f32 %v656_v35, %v248_v32  ;;  %v726_v42 = vpop.f32.mrf.mxu1 }
 0x10d   : > { %v725_v39 = vadd.f32 %v724_v30, %v702_v36  ;;  %v703_v40 = vpop.f32.mrf.mxu0 }
 0x10e   : > { %747 = vst [vmem:[#allocation2 + $0x48] sm:$0xff] %v737_v38 }
 0x10f   : > { %v738_v41 = vadd.f32 %v725_v39, %v249_v37 }
 0x111   : > { %748 = vst [vmem:[#allocation2 + $0x28] sm:$0xff] %v738_v41  ;;  %v657_v45 = vpop.f32.mrf.mxu2 }
 0x112   : > { %v680_v46 = vpop.f32.mrf.mxu3  ;;  %v658_v47 = vadd.f32 %v657_v45, %v635_v43 }
 0x113   : > { %v704_v48 = vadd.f32 %v703_v40, %v680_v46 }
 0x114   : > { %v739_v50 = vadd.f32 %v658_v47, %v250_v44  ;;  %v729_v54 = vpop.f32.mrf.mxu1 }
 0x115   : > { %v727_v51 = vadd.f32 %v726_v42, %v704_v48  ;;  %v706_v52 = vpop.f32.mrf.mxu0 }
 0x116   : > { %749 = vst [vmem:[#allocation2 + $0x8] sm:$0xff] %v739_v50 }
 0x117   : > { %v740_v53 = vadd.f32 %v727_v51, %v251_v49 }
 0x119   : > { %750 = vst [vmem:[#allocation2 + $0x20] sm:$0xff] %v740_v53  ;;  %v660_v13 = vpop.f32.mrf.mxu2 }
 0x11a   : > { %v683_v18 = vpop.f32.mrf.mxu3  ;;  %v661_v57 = vadd.f32 %v660_v13, %v638_v55 }
 0x11b   : > { %v707_v59 = vadd.f32 %v706_v52, %v683_v18 }
 0x11c   : > { %v741_v62 = vadd.f32 %v661_v57, %v252_v56  ;;  %v731_v2 = vpop.f32.mrf.mxu1 }
 0x11d   : > { %v730_v63 = vadd.f32 %v729_v54, %v707_v59  ;;  %v708_v0 = vpop.f32.mrf.mxu0 }
 0x11e   : > { %751 = vst [vmem:[#allocation2 + $0x40] sm:$0xf] %v741_v62  ;;  %756 = sbr.rel (%p1087_p10) target bundleno = 306 (0x132), region = 66 }
 0x11f   : > { %v742_v1 = vadd.f32 %v730_v63, %v253_v61 }
 0x121   : > { %752 = vst [vmem:[#allocation2 + $0x38] sm:$0xf] %v742_v1  ;;  %v662_v3 = vpop.f32.mrf.mxu2 }
 0x122   : > { %v685_v4 = vpop.f32.mrf.mxu3 }
 0x123   : > { %v757_v58 = vld [vmem:[#allocation2 + $0x30] sm:$0xff]  ;;  %v758_v60 = vld [vmem:[#allocation2] sm:$0xff]  ;;  %v759_v6 = vld [vmem:[#allocation2 + $0x18] sm:$0xff] }
 0x124   : > { %v767_v22 = vld [vmem:[%s1453_s2] sm:$0x3]  ;;  %v760_v7 = vld [vmem:[#allocation2 + $0x10] sm:$0xff]  ;;  %v761_v8 = vld [vmem:[#allocation2 + $0x48] sm:$0xff] }
 0x125   : > { %v769_v5 = vperm.slane %v767_v22, 0  ;;  %v770_v23 = vperm.slane %v767_v22, 1  ;;  %v762_v9 = vld [vmem:[#allocation2 + $0x28] sm:$0xff]  ;;  %v764_v11 = vld [vmem:[#allocation2 + $0x20] sm:$0xff] }
 0x126   : > { %v763_v10 = vld [vmem:[#allocation2 + $0x8] sm:$0xff]  ;;  %v765_v24 = vld [vmem:[#allocation2 + $0x40] sm:$0xf] }
 0x127   : > { %v773_v12 = vadd.f32 %v769_v5, %v757_v58  ;;  %v774_v14 = vadd.f32 %v770_v23, %v758_v60  ;;  %v775_v15 = vadd.f32 %v769_v5, %v759_v6  ;;  %v776_v16 = vadd.f32 %v770_v23, %v760_v7 }
 0x128   : > { %v777_v17 = vadd.f32 %v769_v5, %v761_v8  ;;  %v778_v19 = vadd.f32 %v770_v23, %v762_v9  ;;  %v779_v20 = vadd.f32 %v769_v5, %v763_v10  ;;  %v780_v21 = vadd.f32 %v770_v23, %v764_v11  ;;  %v766_v25 = vld [vmem:[#allocation2 + $0x38] sm:$0xf] }
 0x129   : > { %v783_v26 = vmax.f32 %v773_v12, 0.0  ;;  %v784_v27 = vmax.f32 %v774_v14, 0.0  ;;  %v785_v28 = vmax.f32 %v775_v15, 0.0  ;;  %v786_v29 = vmax.f32 %v776_v16, 0.0 }
 0x12a   : > { %v787_v30 = vmax.f32 %v777_v17, 0.0  ;;  %v788_v31 = vmax.f32 %v778_v19, 0.0  ;;  %v789_v32 = vmax.f32 %v779_v20, 0.0  ;;  %v790_v33 = vmax.f32 %v780_v21, 0.0 }
 0x12b   : > { %v793_v34 = vpack.c.bf16 %v784_v27, %v783_v26  ;;  %v794_v35 = vpack.c.bf16 %v786_v29, %v785_v28  ;;  %v781_v36 = vadd.f32 %v769_v5, %v765_v24  ;;  %v782_v37 = vadd.f32 %v770_v23, %v766_v25 }
 0x12c   : > { %v795_v38 = vpack.c.bf16 %v788_v31, %v787_v30  ;;  %v796_v39 = vpack.c.bf16 %v790_v33, %v789_v32 }
 0x12d   : > { %798 = vst [vmem:[%s1454_s3] sm:$0xff] %v793_v34  ;;  %v791_v40 = vmax.f32 %v781_v36, 0.0  ;;  %v792_v41 = vmax.f32 %v782_v37, 0.0 }
 0x12e   : > { %799 = vst [vmem:[%s1454_s3 + $0x8] sm:$0xff] %v794_v35 }
 0x12f   : > { %800 = vst [vmem:[%s1454_s3 + $0x10] sm:$0xff] %v795_v38  ;;  %v797_v42 = vpack.c.bf16 %v792_v41, %v791_v40 }
 0x130   : > { %801 = vst [vmem:[%s1454_s3 + $0x18] sm:$0xff] %v796_v39 }
 0x131   : > { %802 = vst [vmem:[%s1454_s3 + $0x20] sm:$0x33] %v797_v42 }
 0x132 PF: > { %p10_p11 = scmp.ge.s32.totalorder %s1253_s16, 11   ;;  %s1455_s12 = smov %s1207_s13 }
 0x133   : > { %s1456_s13 = smov %s1262_s19  ;;  %s1457_s14 = smov %s1253_s16 }
 0x134   :  { %12 = sbr.rel (!%p10_p11) target bundleno = 2 (0x2), region = 106 }

// kernel: lpips_forward.11
= control target key start
LH: loop header
LB: loop body
LE: loop exit
PB: predicated region body
PF: predicated region fallthrough
CT: control target
= control target key end

     0   :  { %s1943_s12 = smov 0   ;;  %s1945_s13 = smov 0   ;;  %s2295_s0 = inlined_call_operand.vmem [shape: bf16[36,2304], index: 0, kind: input, shape index: {}]   ;;  %s2296_s1 = inlined_call_operand.vmem [shape: bf16[2304,256], index: 1, kind: input, shape index: {}]   ;;  %s2297_s2 = inlined_call_operand.vmem [shape: f32[1,256], index: 2, kind: input, shape index: {}]   ;;  %s2298_s3 = inlined_call_operand.vmem [shape: bf16[36,256], index: 3, kind: output, shape index: {}]  }
   0x1   :  { %s1947_s14 = smov 0  }
   0x2 LB: > { %s1959_s15 = sadd.s32 4294967295, %s1920_s14   ;;  %s1962_s16 = sadd.s32 1, %s1920_s14   ;;  %s1920_s14 = sphi %s1947_s14, %s2301_s14   ;;  %s1916_s13 = sphi %s1945_s13, %s2300_s13   ;;  %s1912_s12 = sphi %s1943_s12, %s2299_s12  }
   0x3   : > { %s17_s17 = ssub.s32 %s1920_s14, %s1962_s16  ;;  %s20_s18 = sadd.s32 1, %s1916_s13 }
   0x4   : > { %p18_p0 = scmp.eq.s32.totalorder %s17_s17, 0  ;;  %p27_p1 = scmp.ne.s32.totalorder %s1916_s13, %s1912_s12 }
   0x5   : > { %p28_p2 = scmp.eq.s32.totalorder %s1920_s14, 0  ;;  %p1320_p4 = scmp.ge.s32.totalorder %s1920_s14, 3 }
   0x6   : > { %s1971_s19 = scalar_select %p18_p0, %s1916_s13, %s20_s18  }
   0x7   : > { %p29_p3 = por %p28_p2, %p27_p1  ;;  %124 = sbr.rel (%p1320_p4) target bundleno = 32 (0x20), region = 20 }
   0xc   : > { %127 = sbr.rel (!%p29_p3) target bundleno = 32 (0x20), region = 24  ;;  %s129_s20 = sand.u32 (%p29_p3), 1, %s1916_s13  }
   0xd   : > { %s1761_s21 = smul.u32 (%p29_p3), 24, %s1920_s14 }
   0xe   : > { %s1871_s22 = smul.u32 (%p29_p3), 120, %s129_s20 }
   0xf   : > { %s134_s25 = scalar_lea.vmem (%p29_p3), %s2295_s0, %s1761_s21 }
  0x10   : > { %v147_v0 = vld [vmem:[%s134_s25] sm:$0xff] (%p29_p3)  ;;  %v149_v1 = vld [vmem:[%s134_s25 + $0x8] sm:$0xff] (%p29_p3)  ;;  %v151_v2 = vld [vmem:[%s134_s25 + $0x10] sm:$0xff] (%p29_p3)  ;;  %s131_s26 = scalar_lea.vmem (%p29_p3), [#allocation3], %s1871_s22 }
  0x11   : > { %148 = vst [vmem:[%s131_s26] sm:$0xff] %v147_v0  ;;  %v153_v3 = vld [vmem:[%s134_s25 + $0x48] sm:$0xff]  ;;  %v155_v4 = vld [vmem:[%s134_s25 + $0x50] sm:$0xff]  ;;  %v157_v5 = vld [vmem:[%s134_s25 + $0x58] sm:$0xff] }
  0x12   : > { %150 = vst [vmem:[%s131_s26 + $0x8] sm:$0xff] %v149_v1  ;;  %v159_v6 = vld [vmem:[%s134_s25 + $0x90] sm:$0xff]  ;;  %v161_v7 = vld [vmem:[%s134_s25 + $0x98] sm:$0xff]  ;;  %v163_v8 = vld [vmem:[%s134_s25 + $0xa0] sm:$0xff] }
  0x13   : > { %152 = vst [vmem:[%s131_s26 + $0x10] sm:$0xff] %v151_v2  ;;  %v165_v9 = vld [vmem:[%s134_s25 + $0xd8] sm:$0xff]  ;;  %v167_v10 = vld [vmem:[%s134_s25 + $0xe0] sm:$0xff]  ;;  %v169_v11 = vld [vmem:[%s134_s25 + $0xe8] sm:$0xff] }
  0x14   : > { %154 = vst [vmem:[%s131_s26 + $0x18] sm:$0xff] %v153_v3  ;;  %v171_v12 = vld [vmem:[%s134_s25 + $0x120] sm:$0xff]  ;;  %v173_v13 = vld [vmem:[%s134_s25 + $0x128] sm:$0xff]  ;;  %v175_v14 = vld [vmem:[%s134_s25 + $0x130] sm:$0xff] }
  0x15   : > { %156 = vst [vmem:[%s131_s26 + $0x20] sm:$0xff] %v155_v4 }
  0x16   : > { %158 = vst [vmem:[%s131_s26 + $0x28] sm:$0xff] %v157_v5 }
  0x17   : > { %160 = vst [vmem:[%s131_s26 + $0x30] sm:$0xff] %v159_v6 }
  0x18   : > { %162 = vst [vmem:[%s131_s26 + $0x38] sm:$0xff] %v161_v7 }
  0x19   : > { %164 = vst [vmem:[%s131_s26 + $0x40] sm:$0xff] %v163_v8 }
  0x1a   : > { %166 = vst [vmem:[%s131_s26 + $0x48] sm:$0xff] %v165_v9 }
  0x1b   : > { %168 = vst [vmem:[%s131_s26 + $0x50] sm:$0xff] %v167_v10 }
  0x1c   : > { %170 = vst [vmem:[%s131_s26 + $0x58] sm:$0xff] %v169_v11 }
  0x1d   : > { %172 = vst [vmem:[%s131_s26 + $0x60] sm:$0xff] %v171_v12 }
  0x1e   : > { %174 = vst [vmem:[%s131_s26 + $0x68] sm:$0xff] %v173_v13 }
  0x1f   : > { %176 = vst [vmem:[%s131_s26 + $0x70] sm:$0xff] %v175_v14 }
  0x20 PF: > { %p1322_p5 = scmp.ge.s32.totalorder %s1920_s14, 1  ;;  %p191_p6 = scmp.lt.s32.totalorder %s1920_s14, 4 }
  0x22   : > { %p192_p7 = pnand %p1322_p5, %p191_p6 }
  0x23   : > { %s198_s27 = sand.u32 (!%p192_p7), 1, %s1912_s12   ;;  %s223_s28 = smul.u32 (!%p192_p7), 96, %s1959_s15 }
  0x24   : > { %195 = sbr.rel (%p192_p7) target bundleno = 377 (0x179), region = 51  ;;  %p1325_p9 = scmp.ne.s32.totalorder (!%p192_p7), %s1959_s15, 0 }
  0x25   : > { %s1872_s29 = smul.u32 (!%p192_p7), 120, %s198_s27  ;;  %p224_p8 = scmp.lt.s32.totalorder (!%p192_p7), %s223_s28, 287 }
  0x27   : > { %s1988_s7 = scalar_lea.vmem (!%p192_p7), [#allocation3], %s1872_s29 }
  0x29   : > { %s2303_s28 = smov (!%p224_p8, %s223_s28), 287  ;;  %233 = sbr.rel (%p1325_p9) target bundleno = 57 (0x39), region = 59 }
  0x2a   : > { %s1762_s30 = sshll.u32 %s2303_s28, 3 }
  0x2b   : > { %s1986_s6 = scalar_lea.vmem %s2296_s1, %s1762_s30 }
  0x2e   : > { %v1922_v15 = vmov 0.0  }
  0x2f   : > { %234 = vst [vmem:[#allocation2 + $0x30] sm:$0xff] %v1922_v15 }
  0x30   : > { %235 = vst [vmem:[#allocation2] sm:$0xff] %v1922_v15 }
  0x31   : > { %236 = vst [vmem:[#allocation2 + $0x18] sm:$0xff] %v1922_v15 }
  0x32   : > { %237 = vst [vmem:[#allocation2 + $0x10] sm:$0xff] %v1922_v15 }
  0x33   : > { %238 = vst [vmem:[#allocation2 + $0x48] sm:$0xff] %v1922_v15 }
  0x34   : > { %239 = vst [vmem:[#allocation2 + $0x28] sm:$0xff] %v1922_v15 }
  0x35   : > { %240 = vst [vmem:[#allocation2 + $0x8] sm:$0xff] %v1922_v15 }
  0x36   : > { %241 = vst [vmem:[#allocation2 + $0x20] sm:$0xff] %v1922_v15 }
  0x37   : > { %242 = vst [vmem:[#allocation2 + $0x40] sm:$0xf] %v1922_v15 }
  0x38   : > { %243 = vst [vmem:[#allocation2 + $0x38] sm:$0xf] %v1922_v15 }
  0x39 PF: > { %v1432_v16 = vld [vmem:[%s1986_s6 + $0x70] sm:$0xf]  ;;  %v1790_v17 = vld [vmem:[%s1986_s6 + $0x74] sm:$0xf0]  ;;  %v1424_v27 = vld [vmem:[%s1986_s6 + $0x60] sm:$0xf] }
  0x3a   : > { %v1496_v18 = vld [vmem:[%s1986_s6 + $0xf0] sm:$0xf]  ;;  %v1433_v19 = vor.u32 %v1790_v17, %v1432_v16  ;;  %v1806_v20 = vld [vmem:[%s1986_s6 + $0xf4] sm:$0xf0]  ;;  %v1788_v29 = vld [vmem:[%s1986_s6 + $0x64] sm:$0xf0] }
  0x3b   : > { %v1560_v21 = vld [vmem:[%s1986_s6 + $0x170] sm:$0xf]  ;;  %v1822_v22 = vld [vmem:[%s1986_s6 + $0x174] sm:$0xf0]  ;;  %v1497_v23 = vor.u32 %v1806_v20, %v1496_v18  ;;  %v1488_v30 = vld [vmem:[%s1986_s6 + $0xe0] sm:$0xf]  ;;  %v1425_v32 = vor.u32 %v1788_v29, %v1424_v27 }
  0x3c   : > { %v1561_v24 = vor.u32 %v1822_v22, %v1560_v21  ;;  %v1624_v25 = vld [vmem:[%s1986_s6 + $0x1f0] sm:$0xf]  ;;  %v1838_v26 = vld [vmem:[%s1986_s6 + $0x1f4] sm:$0xf0]  ;;  %926 = vmatpush.bf16.msra.mxu0 %v1433_v19  ;;  %v1804_v31 = vld [vmem:[%s1986_s6 + $0xe4] sm:$0xf0] }
  0x3d   : > { %v1625_v28 = vor.u32 %v1838_v26, %v1624_v25  ;;  %949 = vmatpush.bf16.msra.mxu1 %v1497_v23  ;;  %v1489_v33 = vor.u32 %v1804_v31, %v1488_v30  ;;  %v1552_v34 = vld [vmem:[%s1986_s6 + $0x160] sm:$0xf]  ;;  %v1820_v35 = vld [vmem:[%s1986_s6 + $0x164] sm:$0xf0]  ;;  %v1416_v39 = vld [vmem:[%s1986_s6 + $0x50] sm:$0xf] }
  0x3e   : > { %972 = vmatpush.bf16.msra.mxu2 %v1561_v24  ;;  %v1616_v36 = vld [vmem:[%s1986_s6 + $0x1e0] sm:$0xf]  ;;  %v1553_v37 = vor.u32 %v1820_v35, %v1552_v34  ;;  %v1836_v38 = vld [vmem:[%s1986_s6 + $0x1e4] sm:$0xf0]  ;;  %v1786_v40 = vld [vmem:[%s1986_s6 + $0x54] sm:$0xf0] }
  0x3f   : > { %995 = vmatpush.bf16.msra.mxu3 %v1625_v28  ;;  %v1617_v41 = vor.u32 %v1836_v38, %v1616_v36  ;;  %v1480_v42 = vld [vmem:[%s1986_s6 + $0xd0] sm:$0xf]  ;;  %v1802_v43 = vld [vmem:[%s1986_s6 + $0xd4] sm:$0xf0]  ;;  %v1417_v45 = vor.u32 %v1786_v40, %v1416_v39  ;;  %v1408_v51 = vld [vmem:[%s1986_s6 + $0x40] sm:$0xf] }
  0x40   : > { %v1544_v44 = vld [vmem:[%s1986_s6 + $0x150] sm:$0xf]  ;;  %927 = vmatpush.bf16.msra.mxu0 %v1425_v32  ;;  %v1818_v46 = vld [vmem:[%s1986_s6 + $0x154] sm:$0xf0]  ;;  %v1481_v49 = vor.u32 %v1802_v43, %v1480_v42  ;;  %v1784_v52 = vld [vmem:[%s1986_s6 + $0x44] sm:$0xf0] }
  0x41   : > { %v1608_v47 = vld [vmem:[%s1986_s6 + $0x1d0] sm:$0xf]  ;;  %v1834_v48 = vld [vmem:[%s1986_s6 + $0x1d4] sm:$0xf0]  ;;  %950 = vmatpush.bf16.msra.mxu1 %v1489_v33  ;;  %v1545_v50 = vor.u32 %v1818_v46, %v1544_v44  ;;  %v1472_v53 = vld [vmem:[%s1986_s6 + $0xc0] sm:$0xf]  ;;  %v1409_v60 = vor.u32 %v1784_v52, %v1408_v51 }
  0x42   : > { %973 = vmatpush.bf16.msra.mxu2 %v1553_v37  ;;  %v1609_v54 = vor.u32 %v1834_v48, %v1608_v47  ;;  %v1800_v55 = vld [vmem:[%s1986_s6 + $0xc4] sm:$0xf0]  ;;  %v1536_v56 = vld [vmem:[%s1986_s6 + $0x140] sm:$0xf]  ;;  %v1400_v63 = vld [vmem:[%s1986_s6 + $0x30] sm:$0xf] }
  0x43   : > { %996 = vmatpush.bf16.msra.mxu3 %v1617_v41  ;;  %v1816_v57 = vld [vmem:[%s1986_s6 + $0x144] sm:$0xf0]  ;;  %v1600_v58 = vld [vmem:[%s1986_s6 + $0x1c0] sm:$0xf]  ;;  %v1473_v61 = vor.u32 %v1800_v55, %v1472_v53  ;;  %v1782_v0 = vld [vmem:[%s1986_s6 + $0x34] sm:$0xf0] }
  0x44   : > { %v1832_v59 = vld [vmem:[%s1986_s6 + $0x1c4] sm:$0xf0]  ;;  %928 = vmatpush.bf16.msra.mxu0 %v1417_v45  ;;  %v1537_v62 = vor.u32 %v1816_v57, %v1536_v56  ;;  %v1464_v1 = vld [vmem:[%s1986_s6 + $0xb0] sm:$0xf]  ;;  %v1798_v3 = vld [vmem:[%s1986_s6 + $0xb4] sm:$0xf0]  ;;  %v1401_v8 = vor.u32 %v1782_v0, %v1400_v63 }
  0x45   : > { %951 = vmatpush.bf16.msra.mxu1 %v1481_v49  ;;  %v1601_v2 = vor.u32 %v1832_v59, %v1600_v58  ;;  %v1528_v4 = vld [vmem:[%s1986_s6 + $0x130] sm:$0xf]  ;;  %v1814_v5 = vld [vmem:[%s1986_s6 + $0x134] sm:$0xf0]  ;;  %v1465_v9 = vor.u32 %v1798_v3, %v1464_v1  ;;  %v1392_v11 = vld [vmem:[%s1986_s6 + $0x20] sm:$0xf] }
  0x46   : > { %974 = vmatpush.bf16.msra.mxu2 %v1545_v50  ;;  %v1592_v6 = vld [vmem:[%s1986_s6 + $0x1b0] sm:$0xf]  ;;  %v1830_v7 = vld [vmem:[%s1986_s6 + $0x1b4] sm:$0xf0]  ;;  %v1529_v10 = vor.u32 %v1814_v5, %v1528_v4  ;;  %v1780_v12 = vld [vmem:[%s1986_s6 + $0x24] sm:$0xf0] }
  0x47   : > { %997 = vmatpush.bf16.msra.mxu3 %v1609_v54  ;;  %v1456_v13 = vld [vmem:[%s1986_s6 + $0xa0] sm:$0xf]  ;;  %v1593_v14 = vor.u32 %v1830_v7, %v1592_v6  ;;  %v1796_v15 = vld [vmem:[%s1986_s6 + $0xa4] sm:$0xf0]  ;;  %v1393_v20 = vor.u32 %v1780_v12, %v1392_v11  ;;  %v1384_v23 = vld [vmem:[%s1986_s6 + $0x10] sm:$0xf] }
  0x48   : > { %929 = vmatpush.bf16.msra.mxu0 %v1409_v60  ;;  %v1520_v16 = vld [vmem:[%s1986_s6 + $0x120] sm:$0xf]  ;;  %v1812_v17 = vld [vmem:[%s1986_s6 + $0x124] sm:$0xf0]  ;;  %v1457_v21 = vor.u32 %v1796_v15, %v1456_v13  ;;  %v1778_v24 = vld [vmem:[%s1986_s6 + $0x14] sm:$0xf0] }
  0x49   : > { %952 = vmatpush.bf16.msra.mxu1 %v1473_v61  ;;  %v1584_v18 = vld [vmem:[%s1986_s6 + $0x1a0] sm:$0xf]  ;;  %v1828_v19 = vld [vmem:[%s1986_s6 + $0x1a4] sm:$0xf0]  ;;  %v1521_v22 = vor.u32 %v1812_v17, %v1520_v16  ;;  %v1448_v25 = vld [vmem:[%s1986_s6 + $0x90] sm:$0xf]  ;;  %v1385_v33 = vor.u32 %v1778_v24, %v1384_v23 }
  0x4a   : > { %975 = vmatpush.bf16.msra.mxu2 %v1537_v62  ;;  %v1585_v26 = vor.u32 %v1828_v19, %v1584_v18  ;;  %v1794_v27 = vld [vmem:[%s1986_s6 + $0x94] sm:$0xf0]  ;;  %v1512_v28 = vld [vmem:[%s1986_s6 + $0x110] sm:$0xf]  ;;  %v1376_v32 = vld [vmem:[%s1986_s6] sm:$0xf] }
  0x4b   : > { %998 = vmatpush.bf16.msra.mxu3 %v1601_v2  ;;  %v1810_v29 = vld [vmem:[%s1986_s6 + $0x114] sm:$0xf0]  ;;  %v1576_v30 = vld [vmem:[%s1986_s6 + $0x190] sm:$0xf]  ;;  %v1776_v34 = vld [vmem:[%s1986_s6 + $0x4] sm:$0xf0]  ;;  %v1449_v37 = vor.u32 %v1794_v27, %v1448_v25 }
  0x4c   : > { %930 = vmatpush.bf16.msra.mxu0 %v1401_v8  ;;  %v1826_v31 = vld [vmem:[%s1986_s6 + $0x194] sm:$0xf0]  ;;  %v1440_v35 = vld [vmem:[%s1986_s6 + $0x80] sm:$0xf]  ;;  %v1792_v36 = vld [vmem:[%s1986_s6 + $0x84] sm:$0xf0]  ;;  %v1513_v38 = vor.u32 %v1810_v29, %v1512_v28  ;;  %v1377_v50 = vor.u32 %v1776_v34, %v1376_v32 }
  0x4d   : > { %953 = vmatpush.bf16.msra.mxu1 %v1465_v9  ;;  %v1504_v39 = vld [vmem:[%s1986_s6 + $0x100] sm:$0xf]  ;;  %v1808_v40 = vld [vmem:[%s1986_s6 + $0x104] sm:$0xf0]  ;;  %v1577_v42 = vor.u32 %v1826_v31, %v1576_v30  ;;  %v1763_v46 = vld [vmem:[%s1988_s7 + $0x4] sm:$0xf]  ;;  %v1441_v54 = vor.u32 %v1792_v36, %v1440_v35 }
  0x4e   : > { %976 = vmatpush.bf16.msra.mxu2 %v1529_v10  ;;  %v1568_v41 = vld [vmem:[%s1986_s6 + $0x180] sm:$0xf]  ;;  %v1824_v43 = vld [vmem:[%s1986_s6 + $0x184] sm:$0xf0]  ;;  %v1330_v47 = vld [vmem:[%s1988_s7 + $0x18] sm:$0xf0]  ;;  %v1505_v55 = vor.u32 %v1808_v40, %v1504_v39 }
  0x4f   : > { %999 = vmatpush.bf16.msra.mxu3 %v1593_v14  ;;  %v1328_v44 = vld [vmem:[%s1988_s7] sm:$0xf]  ;;  %v1766_v45 = vld [vmem:[%s1988_s7 + $0x14] sm:$0xf0]  ;;  %v1789_v48 = vld [vmem:[%s1986_s6 + $0x74] sm:$0xf]  ;;  %v1569_v59 = vor.u32 %v1824_v43, %v1568_v41  ;;  %v2075_v5 = vor.u32 %v1763_v46, %v1330_v47 }
  0x50   : > { %931 = vmatpush.bf16.msra.mxu0 %v1393_v20  ;;  %v1434_v49 = vld [vmem:[%s1986_s6 + $0x78] sm:$0xf0]  ;;  %v1336_v51 = vld [vmem:[%s1988_s7 + $0x8] sm:$0xf]  ;;  %v1805_v52 = vld [vmem:[%s1986_s6 + $0xf4] sm:$0xf]  ;;  %v2070_v0 = vor.u32 %v1766_v45, %v1328_v44 }
  0x51   : > { %954 = vmatpush.bf16.msra.mxu1 %v1457_v21  ;;  %v1498_v53 = vld [vmem:[%s1986_s6 + $0xf8] sm:$0xf0]  ;;  %v1767_v56 = vld [vmem:[%s1988_s7 + $0x1c] sm:$0xf0]  ;;  %v1338_v58 = vld [vmem:[%s1988_s7 + $0x20] sm:$0xf0]  ;;  %v1437_v60 = vor.u32 %v1789_v48, %v1434_v49 }
  0x52   : > { %977 = vmatpush.bf16.msra.mxu2 %v1521_v22  ;;  %v1764_v57 = vld [vmem:[%s1988_s7 + $0xc] sm:$0xf]  ;;  %v1688_v61 = vld [vmem:[%s1986_s6 + $0x270] sm:$0xf]  ;;  %v1854_v62 = vld [vmem:[%s1986_s6 + $0x274] sm:$0xf0]  ;;  %v1501_v1 = vor.u32 %v1805_v52, %v1498_v53  ;;  %v2077_v6 = vor.u32 %v1767_v56, %v1336_v51 }
  0x53   : > { %1000 = vmatpush.bf16.msra.mxu3 %v1585_v26  ;;  %v1752_v63 = vld [vmem:[%s1986_s6 + $0x2f0] sm:$0xf]  ;;  %v1870_v2 = vld [vmem:[%s1986_s6 + $0x2f4] sm:$0xf0]  ;;  %v1787_v3 = vld [vmem:[%s1986_s6 + $0x64] sm:$0xf]  ;;  %v2081_v9 = vor.u32 %v1764_v57, %v1338_v58  ;;  %v1689_v10 = vor.u32 %v1854_v62, %v1688_v61 }
  0x54   : > { %932 = vmatpush.bf16.msra.mxu0 %v1385_v33  ;;  %v1426_v4 = vld [vmem:[%s1986_s6 + $0x68] sm:$0xf0]  ;;  %v1803_v7 = vld [vmem:[%s1986_s6 + $0xe4] sm:$0xf]  ;;  %v1753_v11 = vor.u32 %v1870_v2, %v1752_v63  ;;  %v1680_v13 = vld [vmem:[%s1986_s6 + $0x260] sm:$0xf] }
  0x55   : > { %955 = vmatpush.bf16.msra.mxu1 %v1449_v37  ;;  %v1490_v8 = vld [vmem:[%s1986_s6 + $0xe8] sm:$0xf0]  ;;  %v1429_v12 = vor.u32 %v1787_v3, %v1426_v4  ;;  %v1852_v14 = vld [vmem:[%s1986_s6 + $0x264] sm:$0xf0]  ;;  %v1744_v15 = vld [vmem:[%s1986_s6 + $0x2e0] sm:$0xf] }
  0x56   : > { %978 = vmatpush.bf16.msra.mxu2 %v1513_v38  ;;  %v1493_v16 = vor.u32 %v1803_v7, %v1490_v8  ;;  %v1868_v17 = vld [vmem:[%s1986_s6 + $0x2e4] sm:$0xf0]  ;;  %v1785_v18 = vld [vmem:[%s1986_s6 + $0x54] sm:$0xf]  ;;  %v1418_v19 = vld [vmem:[%s1986_s6 + $0x58] sm:$0xf0]  ;;  %v1681_v22 = vor.u32 %v1852_v14, %v1680_v13 }
  0x57   : > { %1001 = vmatpush.bf16.msra.mxu3 %v1577_v42  ;;  %v1801_v20 = vld [vmem:[%s1986_s6 + $0xd4] sm:$0xf]  ;;  %v1482_v21 = vld [vmem:[%s1986_s6 + $0xd8] sm:$0xf0]  ;;  %v1745_v23 = vor.u32 %v1868_v17, %v1744_v15  ;;  %v1421_v24 = vor.u32 %v1785_v18, %v1418_v19  ;;  %v1672_v25 = vld [vmem:[%s1986_s6 + $0x250] sm:$0xf] }
  0x58   : > { %933 = vmatpush.bf16.msra.mxu0 %v1377_v50  ;;  %v1850_v26 = vld [vmem:[%s1986_s6 + $0x254] sm:$0xf0]  ;;  %v1736_v27 = vld [vmem:[%s1986_s6 + $0x2d0] sm:$0xf]  ;;  %v1485_v28 = vor.u32 %v1801_v20, %v1482_v21  ;;  %v1783_v30 = vld [vmem:[%s1986_s6 + $0x44] sm:$0xf] }
  0x59   : > { %956 = vmatpush.bf16.msra.mxu1 %v1441_v54  ;;  %v1866_v29 = vld [vmem:[%s1986_s6 + $0x2d4] sm:$0xf0]  ;;  %v1410_v31 = vld [vmem:[%s1986_s6 + $0x48] sm:$0xf0]  ;;  %v1799_v32 = vld [vmem:[%s1986_s6 + $0xc4] sm:$0xf]  ;;  %v1673_v34 = vor.u32 %v1850_v26, %v1672_v25 }
  0x5a   : > { %979 = vmatpush.bf16.msra.mxu2 %v1505_v55  ;;  %v1474_v33 = vld [vmem:[%s1986_s6 + $0xc8] sm:$0xf0]  ;;  %v1352_v35 = vld [vmem:[%s1988_s7 + $0x30] sm:$0xf]  ;;  %v1772_v36 = vld [vmem:[%s1988_s7 + $0x44] sm:$0xf0]  ;;  %v1737_v37 = vor.u32 %v1866_v29, %v1736_v27  ;;  %v1413_v38 = vor.u32 %v1783_v30, %v1410_v31 }
  0x5b   : > { %1002 = vmatpush.bf16.msra.mxu3 %v1569_v59  ;;  %934 = vmatmul.bf16.vlgmr.msra.gmra.mxu0 %v2070_v0  ;;  %v1664_v39 = vld [vmem:[%s1986_s6 + $0x240] sm:$0xf]  ;;  %v1848_v40 = vld [vmem:[%s1986_s6 + $0x244] sm:$0xf0]  ;;  %v1769_v42 = vld [vmem:[%s1988_s7 + $0x34] sm:$0xf]  ;;  %v1477_v44 = vor.u32 %v1799_v32, %v1474_v33 }
  0x5c   : > { %957 = vmatmul.bf16.vlgmr.msra.gmra.mxu1 %v2075_v5  ;;  %1018 = vmatpush.bf16.msrb.mxu0 %v1689_v10  ;;  %v1728_v41 = vld [vmem:[%s1986_s6 + $0x2c0] sm:$0xf]  ;;  %v1354_v43 = vld [vmem:[%s1988_s7 + $0x48] sm:$0xf0]  ;;  %v1864_v45 = vld [vmem:[%s1986_s6 + $0x2c4] sm:$0xf0]  ;;  %v1665_v54 = vor.u32 %v1848_v40, %v1664_v39 }
  0x5d   : > { %980 = vmatmul.bf16.vlgmr.msra.gmra.mxu2 %v2077_v6  ;;  %1041 = vmatpush.bf16.msrb.mxu1 %v1753_v11  ;;  %v1781_v46 = vld [vmem:[%s1986_s6 + $0x34] sm:$0xf]  ;;  %v1402_v47 = vld [vmem:[%s1986_s6 + $0x38] sm:$0xf0]  ;;  %v1360_v48 = vld [vmem:[%s1988_s7 + $0x38] sm:$0xf]  ;;  %v1729_v55 = vor.u32 %v1864_v45, %v1728_v41  ;;  %v2127_v2 = vor.u32 %v1769_v42, %v1354_v43 }
  0x5e   : > { %1064 = vmatpush.bf16.msrb.mxu2 %v1437_v60  ;;  %1003 = vmatmul.bf16.vlgmr.msra.gmra.mxu3 %v2081_v9  ;;  %v1797_v49 = vld [vmem:[%s1986_s6 + $0xb4] sm:$0xf]  ;;  %v1466_v50 = vld [vmem:[%s1986_s6 + $0xb8] sm:$0xf0]  ;;  %v1773_v51 = vld [vmem:[%s1988_s7 + $0x4c] sm:$0xf0]  ;;  %v1405_v56 = vor.u32 %v1781_v46, %v1402_v47  ;;  %v2122_v60 = vor.u32 %v1772_v36, %v1352_v35 }
  0x5f   : > { %1087 = vmatpush.bf16.msrb.mxu3 %v1501_v1  ;;  %v1770_v52 = vld [vmem:[%s1988_s7 + $0x3c] sm:$0xf]  ;;  %v1362_v53 = vld [vmem:[%s1988_s7 + $0x50] sm:$0xf0]  ;;  %v1656_v57 = vld [vmem:[%s1986_s6 + $0x230] sm:$0xf]  ;;  %v1469_v61 = vor.u32 %v1797_v49, %v1466_v50  ;;  %v2129_v3 = vor.u32 %v1773_v51, %v1360_v48 }
  0x60   : > { %1019 = vmatpush.bf16.msrb.mxu0 %v1681_v22  ;;  %v1846_v58 = vld [vmem:[%s1986_s6 + $0x234] sm:$0xf0]  ;;  %v1720_v59 = vld [vmem:[%s1986_s6 + $0x2b0] sm:$0xf]  ;;  %v1779_v63 = vld [vmem:[%s1986_s6 + $0x24] sm:$0xf]  ;;  %v2133_v8 = vor.u32 %v1770_v52, %v1362_v53 }
  0x61   : > { %1042 = vmatpush.bf16.msrb.mxu1 %v1745_v23  ;;  %v1862_v62 = vld [vmem:[%s1986_s6 + $0x2b4] sm:$0xf0]  ;;  %v1394_v1 = vld [vmem:[%s1986_s6 + $0x28] sm:$0xf0]  ;;  %v1795_v4 = vld [vmem:[%s1986_s6 + $0xa4] sm:$0xf]  ;;  %v1657_v10 = vor.u32 %v1846_v58, %v1656_v57 }
  0x62   : > { %1065 = vmatpush.bf16.msrb.mxu2 %v1429_v12  ;;  %v1458_v7 = vld [vmem:[%s1986_s6 + $0xa8] sm:$0xf0]  ;;  %v1721_v11 = vor.u32 %v1862_v62, %v1720_v59  ;;  %v1397_v12 = vor.u32 %v1779_v63, %v1394_v1  ;;  %v1648_v13 = vld [vmem:[%s1986_s6 + $0x220] sm:$0xf]  ;;  %v1844_v14 = vld [vmem:[%s1986_s6 + $0x224] sm:$0xf0] }
  0x63   : > { %1088 = vmatpush.bf16.msrb.mxu3 %v1493_v16  ;;  %v1712_v15 = vld [vmem:[%s1986_s6 + $0x2a0] sm:$0xf]  ;;  %v1461_v16 = vor.u32 %v1795_v4, %v1458_v7  ;;  %v1860_v17 = vld [vmem:[%s1986_s6 + $0x2a4] sm:$0xf0]  ;;  %v1777_v18 = vld [vmem:[%s1986_s6 + $0x14] sm:$0xf]  ;;  %v1649_v22 = vor.u32 %v1844_v14, %v1648_v13 }
  0x64   : > { %1020 = vmatpush.bf16.msrb.mxu0 %v1673_v34  ;;  %v1386_v19 = vld [vmem:[%s1986_s6 + $0x18] sm:$0xf0]  ;;  %v1793_v20 = vld [vmem:[%s1986_s6 + $0x94] sm:$0xf]  ;;  %v1640_v23 = vld [vmem:[%s1986_s6 + $0x210] sm:$0xf]  ;;  %v1713_v25 = vor.u32 %v1860_v17, %v1712_v15 }
  0x65   : > { %1043 = vmatpush.bf16.msrb.mxu1 %v1737_v37  ;;  %v1450_v21 = vld [vmem:[%s1986_s6 + $0x98] sm:$0xf0]  ;;  %v1389_v26 = vor.u32 %v1777_v18, %v1386_v19  ;;  %v1842_v27 = vld [vmem:[%s1986_s6 + $0x214] sm:$0xf0]  ;;  %v1775_v31 = vld [vmem:[%s1986_s6 + $0x4] sm:$0xf] }
  0x66   : > { %1066 = vmatpush.bf16.msrb.mxu2 %v1421_v24  ;;  %v266_v24 = vld [vmem:[%s1988_s7 + $0x60] sm:$0x33]  ;;  %v1858_v29 = vld [vmem:[%s1986_s6 + $0x294] sm:$0xf0]  ;;  %v1453_v30 = vor.u32 %v1793_v20, %v1450_v21  ;;  %v1791_v33 = vld [vmem:[%s1986_s6 + $0x84] sm:$0xf] }
  0x67   : > { %1089 = vmatpush.bf16.msrb.mxu3 %v1485_v28  ;;  %v1704_v28 = vld [vmem:[%s1986_s6 + $0x290] sm:$0xf]  ;;  %v1378_v32 = vld [vmem:[%s1986_s6 + $0x8] sm:$0xf0]  ;;  %v1853_v35 = vld [vmem:[%s1986_s6 + $0x274] sm:$0xf]  ;;  %v404_v46 = vunpack.c.l.b16 %v266_v24  ;;  %v405_v52 = vunpack.c.h.b16 %v266_v24 }
  0x68   : > { %1021 = vmatpush.bf16.msrb.mxu0 %v1665_v54  ;;  %v1442_v34 = vld [vmem:[%s1986_s6 + $0x88] sm:$0xf0]  ;;  %v1690_v36 = vld [vmem:[%s1986_s6 + $0x278] sm:$0xf0]  ;;  %v1869_v39 = vld [vmem:[%s1986_s6 + $0x2f4] sm:$0xf]  ;;  %v1705_v41 = vor.u32 %v1858_v29, %v1704_v28  ;;  %v1381_v42 = vor.u32 %v1775_v31, %v1378_v32 }
  0x69   : > { %1044 = vmatpush.bf16.msrb.mxu1 %v1729_v55  ;;  %v267_v37 = vld [vmem:[%s1988_s7 + $0x68] sm:$0x33]  ;;  %v1632_v43 = vld [vmem:[%s1986_s6 + $0x200] sm:$0xf]  ;;  %v1445_v47 = vor.u32 %v1791_v33, %v1442_v34  ;;  %v1856_v48 = vld [vmem:[%s1986_s6 + $0x284] sm:$0xf0]  ;;  %v1693_v49 = vor.u32 %v1853_v35, %v1690_v36  ;;  %v2172_v4 = vpack.c.b16 %v404_v46, %v404_v46  ;;  %v2177_v13 = vpack.c.b16 %v405_v52, %v405_v52 }
  0x6a   : > { %1067 = vmatpush.bf16.msrb.mxu2 %v1413_v38  ;;  %v1641_v38 = vor.u32 %v1842_v27, %v1640_v23  ;;  %v1754_v40 = vld [vmem:[%s1986_s6 + $0x2f8] sm:$0xf0]  ;;  %v1696_v45 = vld [vmem:[%s1986_s6 + $0x280] sm:$0xf]  ;;  %v1821_v50 = vld [vmem:[%s1986_s6 + $0x174] sm:$0xf]  ;;  %v406_v53 = vunpack.c.l.b16 %v267_v37  ;;  %v407_v57 = vunpack.c.h.b16 %v267_v37 }
  0x6b   : > { %1090 = vmatpush.bf16.msrb.mxu3 %v1477_v44  ;;  %939 = vmatmul.bf16.gmra.mxu0 %v2122_v60  ;;  %v1840_v44 = vld [vmem:[%s1986_s6 + $0x204] sm:$0xf0]  ;;  %v1562_v51 = vld [vmem:[%s1986_s6 + $0x178] sm:$0xf0]  ;;  %v1757_v54 = vor.u32 %v1869_v39, %v1754_v40  ;;  %v1837_v55 = vld [vmem:[%s1986_s6 + $0x1f4] sm:$0xf]  ;;  %v1697_v59 = vor.u32 %v1856_v48, %v1696_v45 }
  0x6c   : > { %962 = vmatmul.bf16.gmra.mxu1 %v2127_v2  ;;  %1022 = vmatpush.bf16.msrb.mxu0 %v1657_v10  ;;  %v1633_v58 = vor.u32 %v1840_v44, %v1632_v43  ;;  %v1851_v62 = vld [vmem:[%s1986_s6 + $0x264] sm:$0xf]  ;;  %v1682_v63 = vld [vmem:[%s1986_s6 + $0x268] sm:$0xf0]  ;;  %v2179_v14 = vpack.c.b16 %v406_v53, %v406_v53  ;;  %v2183_v17 = vpack.c.b16 %v407_v57, %v407_v57  ;;  %v1849_v21 = vld [vmem:[%s1986_s6 + $0x254] sm:$0xf] }
  0x6d   : > { %985 = vmatmul.bf16.gmra.mxu2 %v2129_v3  ;;  %1045 = vmatpush.bf16.msrb.mxu1 %v1721_v11  ;;  %v1867_v1 = vld [vmem:[%s1986_s6 + $0x2e4] sm:$0xf]  ;;  %v1746_v10 = vld [vmem:[%s1986_s6 + $0x2e8] sm:$0xf0]  ;;  %v1685_v18 = vor.u32 %v1851_v62, %v1682_v63  ;;  %v1865_v23 = vld [vmem:[%s1986_s6 + $0x2d4] sm:$0xf] }
  0x6e   : > { %1068 = vmatpush.bf16.msrb.mxu2 %v1405_v56  ;;  %1008 = vmatmul.bf16.gmra.mxu3 %v2133_v8  ;;  %v1626_v56 = vld [vmem:[%s1986_s6 + $0x1f8] sm:$0xf0]  ;;  %v1819_v11 = vld [vmem:[%s1986_s6 + $0x164] sm:$0xf]  ;;  %v1749_v19 = vor.u32 %v1867_v1, %v1746_v10  ;;  %v1833_v29 = vld [vmem:[%s1986_s6 + $0x1d4] sm:$0xf] }
  0x6f   : > { %1091 = vmatpush.bf16.msrb.mxu3 %v1469_v61  ;;  %v1565_v61 = vor.u32 %v1821_v50, %v1562_v51  ;;  %v1629_v7 = vor.u32 %v1837_v55, %v1626_v56  ;;  %v1835_v15 = vld [vmem:[%s1986_s6 + $0x1e4] sm:$0xf]  ;;  %v1546_v27 = vld [vmem:[%s1986_s6 + $0x158] sm:$0xf0]  ;;  %v1666_v34 = vld [vmem:[%s1986_s6 + $0x248] sm:$0xf0] }
  0x70   : > { %1023 = vmatpush.bf16.msrb.mxu0 %v1649_v22  ;;  %v1674_v22 = vld [vmem:[%s1986_s6 + $0x258] sm:$0xf0]  ;;  %v1847_v33 = vld [vmem:[%s1986_s6 + $0x244] sm:$0xf]  ;;  %v1730_v37 = vld [vmem:[%s1986_s6 + $0x2c8] sm:$0xf0] }
  0x71   : > { %1046 = vmatpush.bf16.msrb.mxu1 %v1713_v25  ;;  %v1738_v25 = vld [vmem:[%s1986_s6 + $0x2d8] sm:$0xf0]  ;;  %v1677_v28 = vor.u32 %v1849_v21, %v1674_v22  ;;  %v1863_v35 = vld [vmem:[%s1986_s6 + $0x2c4] sm:$0xf]  ;;  %v1538_v39 = vld [vmem:[%s1986_s6 + $0x148] sm:$0xf0] }
  0x72   : > { %1069 = vmatpush.bf16.msrb.mxu2 %v1397_v12  ;;  %v1554_v12 = vld [vmem:[%s1986_s6 + $0x168] sm:$0xf0]  ;;  %v1741_v31 = vor.u32 %v1865_v23, %v1738_v25  ;;  %v1831_v40 = vld [vmem:[%s1986_s6 + $0x1c4] sm:$0xf]  ;;  %v1344_v43 = vld [vmem:[%s1988_s7 + $0x10] sm:$0xf]  ;;  %v1733_v44 = vor.u32 %v1863_v35, %v1730_v37 }
  0x73   : > { %1092 = vmatpush.bf16.msrb.mxu3 %v1461_v16  ;;  %v1618_v16 = vld [vmem:[%s1986_s6 + $0x1e8] sm:$0xf0]  ;;  %v1557_v20 = vor.u32 %v1819_v11, %v1554_v12  ;;  %v1845_v46 = vld [vmem:[%s1986_s6 + $0x234] sm:$0xf]  ;;  %v1722_v50 = vld [vmem:[%s1986_s6 + $0x2b8] sm:$0xf0] }
  0x74   : > { %1024 = vmatpush.bf16.msrb.mxu0 %v1641_v38  ;;  %v1621_v24 = vor.u32 %v1835_v15, %v1618_v16  ;;  %v1815_v38 = vld [vmem:[%s1986_s6 + $0x144] sm:$0xf]  ;;  %v1861_v48 = vld [vmem:[%s1986_s6 + $0x2b4] sm:$0xf]  ;;  %v1530_v52 = vld [vmem:[%s1986_s6 + $0x138] sm:$0xf0] }
  0x75   : > { %1047 = vmatpush.bf16.msrb.mxu1 %v1705_v41  ;;  %v1602_v41 = vld [vmem:[%s1986_s6 + $0x1c8] sm:$0xf0]  ;;  %v1541_v45 = vor.u32 %v1815_v38, %v1538_v39  ;;  %v1813_v51 = vld [vmem:[%s1986_s6 + $0x134] sm:$0xf]  ;;  %v1768_v53 = vld [vmem:[%s1988_s7 + $0x24] sm:$0xf0] }
  0x76   : > { %1070 = vmatpush.bf16.msrb.mxu2 %v1389_v26  ;;  %v1817_v26 = vld [vmem:[%s1986_s6 + $0x154] sm:$0xf]  ;;  %v1594_v55 = vld [vmem:[%s1986_s6 + $0x1b8] sm:$0xf0]  ;;  %v1843_v62 = vld [vmem:[%s1986_s6 + $0x224] sm:$0xf]  ;;  %v2219_v1 = vor.u32 %v1768_v53, %v1344_v43 }
  0x77   : > { %1093 = vmatpush.bf16.msrb.mxu3 %v1453_v30  ;;  %v1610_v30 = vld [vmem:[%s1986_s6 + $0x1d8] sm:$0xf0]  ;;  %v1549_v32 = vor.u32 %v1817_v26, %v1546_v27  ;;  %v1650_v63 = vld [vmem:[%s1986_s6 + $0x228] sm:$0xf0]  ;;  %v1859_v10 = vld [vmem:[%s1986_s6 + $0x2a4] sm:$0xf] }
  0x78   : > { %1025 = vmatpush.bf16.msrb.mxu0 %v1633_v58  ;;  %v1613_v36 = vor.u32 %v1833_v29, %v1610_v30  ;;  %v1765_v56 = vld [vmem:[%s1988_s7 + $0x14] sm:$0xf]  ;;  %v1346_v57 = vld [vmem:[%s1988_s7 + $0x28] sm:$0xf0]  ;;  %v1714_v11 = vld [vmem:[%s1986_s6 + $0x2a8] sm:$0xf0]  ;;  %v1653_v15 = vor.u32 %v1843_v62, %v1650_v63 }
  0x79   : > { %1048 = vmatpush.bf16.msrb.mxu1 %v1697_v59  ;;  %v1725_v59 = vor.u32 %v1861_v48, %v1722_v50  ;;  %v2223_v12 = vor.u32 %v1765_v56, %v1346_v57  ;;  %v1717_v16 = vor.u32 %v1859_v10, %v1714_v11  ;;  %v1586_v22 = vld [vmem:[%s1986_s6 + $0x1a8] sm:$0xf0]  ;;  %v1841_v23 = vld [vmem:[%s1986_s6 + $0x214] sm:$0xf]  ;;  %v1706_v27 = vld [vmem:[%s1986_s6 + $0x298] sm:$0xf0] }
  0x7a   : > { %1071 = vmatpush.bf16.msrb.mxu2 %v1381_v42  ;;  %v1669_v42 = vor.u32 %v1847_v33, %v1666_v34  ;;  %v1514_v29 = vld [vmem:[%s1986_s6 + $0x118] sm:$0xf0]  ;;  %v1825_v30 = vld [vmem:[%s1986_s6 + $0x194] sm:$0xf]  ;;  %v1839_v34 = vld [vmem:[%s1986_s6 + $0x204] sm:$0xf] }
  0x7b   : > { %1094 = vmatpush.bf16.msrb.mxu3 %v1445_v47  ;;  %944 = vmatmul.bf16.gmra.mxu0 %v2172_v4  ;;  %v1658_v47 = vld [vmem:[%s1986_s6 + $0x238] sm:$0xf0]  ;;  %v1634_v35 = vld [vmem:[%s1986_s6 + $0x208] sm:$0xf0]  ;;  %v1807_v39 = vld [vmem:[%s1986_s6 + $0x104] sm:$0xf] }
  0x7c   : > { %1110 = vmatpush.bf16.msra.mxu0 %v1565_v61  ;;  %967 = vmatmul.bf16.gmra.mxu1 %v2177_v13  ;;  %v1661_v58 = vor.u32 %v1845_v46, %v1658_v47  ;;  %v1533_v61 = vor.u32 %v1813_v51, %v1530_v52  ;;  %v1637_v37 = vor.u32 %v1839_v34, %v1634_v35  ;;  %v1698_v38 = vld [vmem:[%s1986_s6 + $0x288] sm:$0xf0]  ;;  %v268_v52 = vld [vmem:[%s1988_s7 + $0x70] sm:$0x33]  ;;  %p1758_p10 = scmp.ne.s32.totalorder %s1959_s15, 2 }
  0x7d   : > { %1133 = vmatpush.bf16.msra.mxu1 %v1629_v7  ;;  %990 = vmatmul.bf16.gmra.mxu2 %v2179_v14  ;;  %v1570_v43 = vld [vmem:[%s1986_s6 + $0x188] sm:$0xf0]  ;;  %v408_v53 = vunpack.c.l.b16 %v268_v52  ;;  %v246_v35 = vld [vmem:[#allocation2 + $0x18] sm:$0xff] }
  0x7e   : > { %1156 = vmatpush.bf16.msra.mxu2 %v1693_v49  ;;  %1013 = vmatmul.bf16.gmra.mxu3 %v2183_v17  ;;  %v1605_v49 = vor.u32 %v1831_v40, %v1602_v41  ;;  %v1506_v40 = vld [vmem:[%s1986_s6 + $0x108] sm:$0xf0] }
  0x7f   : > { %1179 = vmatpush.bf16.msra.mxu3 %v1757_v54  ;;  %v1829_v54 = vld [vmem:[%s1986_s6 + $0x1b4] sm:$0xf]  ;;  %v1509_v46 = vor.u32 %v1807_v39, %v1506_v40  ;;  %v1370_v48 = vld [vmem:[%s1988_s7 + $0x58] sm:$0xf0] }
  0x80   : > { %1111 = vmatpush.bf16.msra.mxu0 %v1557_v20  ;;  %v1597_v7 = vor.u32 %v1829_v54, %v1594_v55  ;;  %v1827_v20 = vld [vmem:[%s1986_s6 + $0x1a4] sm:$0xf]  ;;  %v1771_v47 = vld [vmem:[%s1988_s7 + $0x44] sm:$0xf]  ;;  %v409_v54 = vunpack.c.h.b16 %v268_v52  ;;  %v426_v55 = vpack.c.b16 %v408_v53, %v408_v53 }
  0x81   : > { %1134 = vmatpush.bf16.msra.mxu1 %v1621_v24  ;;  %v1642_v24 = vld [vmem:[%s1986_s6 + $0x218] sm:$0xf0]  ;;  %v1589_v25 = vor.u32 %v1827_v20, %v1586_v22  ;;  %v1373_v51 = vor.u32 %v1771_v47, %v1370_v48 }
  0x82   : > { %1157 = vmatpush.bf16.msra.mxu2 %v1685_v18  ;;  %v1811_v18 = vld [vmem:[%s1986_s6 + $0x124] sm:$0xf]  ;;  %v1645_v26 = vor.u32 %v1841_v23, %v1642_v24  ;;  %v427_v56 = vpack.c.b16 %v409_v54, %v409_v54 }
  0x83   : > { %1180 = vmatpush.bf16.msra.mxu3 %v1749_v19  ;;  %v1522_v19 = vld [vmem:[%s1986_s6 + $0x128] sm:$0xf0] }
  0x84   : > { %1112 = vmatpush.bf16.msra.mxu0 %v1549_v32  ;;  %v1525_v21 = vor.u32 %v1811_v18, %v1522_v19 }
  0x85   : > { %1135 = vmatpush.bf16.msra.mxu1 %v1613_v36  ;;  %v1855_v36 = vld [vmem:[%s1986_s6 + $0x284] sm:$0xf] }
  0x86   : > { %1158 = vmatpush.bf16.msra.mxu2 %v1677_v28  ;;  %v1701_v41 = vor.u32 %v1855_v36, %v1698_v38 }
  0x87   : > { %1181 = vmatpush.bf16.msra.mxu3 %v1741_v31  ;;  %v1578_v31 = vld [vmem:[%s1986_s6 + $0x198] sm:$0xf0] }
  0x88   : > { %1113 = vmatpush.bf16.msra.mxu0 %v1541_v45  ;;  %v1581_v33 = vor.u32 %v1825_v30, %v1578_v31  ;;  %v1774_v45 = vld [vmem:[%s1988_s7 + $0x54] sm:$0xf0] }
  0x89   : > { %1136 = vmatpush.bf16.msra.mxu1 %v1605_v49 }
  0x8a   : > { %1159 = vmatpush.bf16.msra.mxu2 %v1669_v42  ;;  %v1823_v42 = vld [vmem:[%s1986_s6 + $0x184] sm:$0xf] }
  0x8b   : > { %1182 = vmatpush.bf16.msra.mxu3 %v1733_v44  ;;  %1026 = vmatmul.bf16.vlgmr.msrb.gmra.mxu0 %v2219_v1  ;;  %v1368_v44 = vld [vmem:[%s1988_s7 + $0x40] sm:$0xf]  ;;  %v1573_v49 = vor.u32 %v1823_v42, %v1570_v43 }
  0x8c   : > { %1114 = vmatpush.bf16.msra.mxu0 %v1533_v61  ;;  %1049 = vmatmul.bf16.vlgmr.msrb.gmra.mxu1 %v2223_v12  ;;  %v1369_v50 = vor.u32 %v1774_v45, %v1368_v44 }
  0x8d   : > { %1137 = vmatpush.bf16.msra.mxu1 %v1597_v7  ;;  %1072 = vmatmul.bf16.vlgmr.msrb.gmra.mxu2 %v2070_v0  ;;  %v1857_v0 = vld [vmem:[%s1986_s6 + $0x294] sm:$0xf] }
  0x8e   : > { %1160 = vmatpush.bf16.msra.mxu2 %v1661_v58  ;;  %1095 = vmatmul.bf16.vlgmr.msrb.gmra.mxu3 %v2075_v5  ;;  %v1809_v5 = vld [vmem:[%s1986_s6 + $0x114] sm:$0xf]  ;;  %v1709_v28 = vor.u32 %v1857_v0, %v1706_v27 }
  0x8f   : > { %1183 = vmatpush.bf16.msra.mxu3 %v1725_v59  ;;  %v1517_v32 = vor.u32 %v1809_v5, %v1514_v29 }
  0x90   : > { %1115 = vmatpush.bf16.msra.mxu0 %v1525_v21 }
  0x91   : > { %1138 = vmatpush.bf16.msra.mxu1 %v1589_v25 }
  0x92   : > { %1161 = vmatpush.bf16.msra.mxu2 %v1653_v15 }
  0x93   : > { %1184 = vmatpush.bf16.msra.mxu3 %v1717_v16 }
  0x94   : > { %1116 = vmatpush.bf16.msra.mxu0 %v1517_v32 }
  0x95   : > { %1139 = vmatpush.bf16.msra.mxu1 %v1581_v33 }
  0x96   : > { %1162 = vmatpush.bf16.msra.mxu2 %v1645_v26  ;;  %v244_v26 = vld [vmem:[#allocation2 + $0x30] sm:$0xff] }
  0x97   : > { %1185 = vmatpush.bf16.msra.mxu3 %v1709_v28 }
  0x98   : > { %1117 = vmatpush.bf16.msra.mxu0 %v1509_v46  ;;  %v248_v46 = vld [vmem:[#allocation2 + $0x48] sm:$0xff] }
  0x99   : > { %1140 = vmatpush.bf16.msra.mxu1 %v1573_v49 }
  0x9a   : > { %1163 = vmatpush.bf16.msra.mxu2 %v1637_v37 }
  0x9b   : > { %1186 = vmatpush.bf16.msra.mxu3 %v1701_v41  ;;  %1031 = vmatmul.bf16.gmra.mxu0 %v1369_v50 }
  0x9c   : > { %1054 = vmatmul.bf16.gmra.mxu1 %v1373_v51 }
  0x9d   : > { %1077 = vmatmul.bf16.gmra.mxu2 %v2122_v60 }
  0x9e   : > { %1100 = vmatmul.bf16.gmra.mxu3 %v2127_v2 }
  0xab   : > { %1036 = vmatmul.bf16.gmra.mxu0 %v426_v55 }
  0xac   : > { %1059 = vmatmul.bf16.gmra.mxu1 %v427_v56 }
  0xad   : > { %1082 = vmatmul.bf16.gmra.mxu2 %v2172_v4 }
  0xae   : > { %1105 = vmatmul.bf16.gmra.mxu3 %v2177_v13 }
  0xbb   : > { %1118 = vmatmul.bf16.vlgmr.msra.gmra.mxu0 %v2077_v6 }
  0xbc   : > { %1141 = vmatmul.bf16.vlgmr.msra.gmra.mxu1 %v2081_v9 }
  0xbd   : > { %1164 = vmatmul.bf16.vlgmr.msra.gmra.mxu2 %v2219_v1 }
  0xbe   : > { %1187 = vmatmul.bf16.vlgmr.msra.gmra.mxu3 %v2223_v12 }
  0xcb   : > { %1123 = vmatmul.bf16.gmra.mxu0 %v2129_v3 }
  0xcc   : > { %1146 = vmatmul.bf16.gmra.mxu1 %v2133_v8 }
  0xcd   : > { %1169 = vmatmul.bf16.gmra.mxu2 %v1369_v50 }
  0xce   : > { %1192 = vmatmul.bf16.gmra.mxu3 %v1373_v51 }
  0xd8   : > { %v935_v60 = vpop.f32.mrf.mxu0 }
  0xd9   : > { %v958_v2 = vpop.f32.mrf.mxu1 }
  0xda   : > { %v959_v11 = vadd.f32 %v958_v2, %v935_v60  ;;  %v250_v60 = vld [vmem:[#allocation2 + $0x8] sm:$0xff] }
  0xdb   : > { %1128 = vmatmul.bf16.gmra.mxu0 %v2179_v14 }
  0xdc   : > { %1151 = vmatmul.bf16.gmra.mxu1 %v2183_v17 }
  0xdd   : > { %1174 = vmatmul.bf16.gmra.mxu2 %v426_v55 }
  0xde   : > { %1197 = vmatmul.bf16.gmra.mxu3 %v427_v56 }
  0xe0   : > { %v981_v6 = vpop.f32.mrf.mxu2  ;;  %v937_v4 = vpop.f32.mrf.mxu0 }
  0xe1   : > { %v1004_v9 = vpop.f32.mrf.mxu3  ;;  %v960_v13 = vpop.f32.mrf.mxu1  ;;  %v982_v18 = vadd.f32 %v981_v6, %v959_v11 }
  0xe2   : > { %v961_v23 = vadd.f32 %v960_v13, %v937_v4 }
  0xe3   : > { %v1005_v19 = vadd.f32 %v1004_v9, %v982_v18 }
  0xe8   : > { %v983_v57 = vpop.f32.mrf.mxu2  ;;  %v940_v59 = vpop.f32.mrf.mxu0 }
  0xe9   : > { %v1006_v58 = vpop.f32.mrf.mxu3  ;;  %v963_v3 = vpop.f32.mrf.mxu1  ;;  %v984_v0 = vadd.f32 %v983_v57, %v961_v23 }
  0xea   : > { %v964_v29 = vadd.f32 %v963_v3, %v940_v59 }
  0xeb   : > { %v1007_v28 = vadd.f32 %v1006_v58, %v984_v0 }
  0xf0   : > { %v986_v61 = vpop.f32.mrf.mxu2  ;;  %v942_v62 = vpop.f32.mrf.mxu0 }
  0xf1   : > { %v1009_v8 = vpop.f32.mrf.mxu3  ;;  %v965_v63 = vpop.f32.mrf.mxu1  ;;  %v987_v36 = vadd.f32 %v986_v61, %v964_v29  ;;  %v252_v61 = vld [vmem:[#allocation2 + $0x40] sm:$0xf] }
  0xf2   : > { %v966_v43 = vadd.f32 %v965_v63, %v942_v62 }
  0xf3   : > { %v1010_v39 = vadd.f32 %v1009_v8, %v987_v36 }
  0xf8   : > { %v988_v1 = vpop.f32.mrf.mxu2  ;;  %v945_v10 = vpop.f32.mrf.mxu0 }
  0xf9   : > { %v1011_v7 = vpop.f32.mrf.mxu3  ;;  %v968_v14 = vpop.f32.mrf.mxu1  ;;  %v989_v47 = vadd.f32 %v988_v1, %v966_v43 }
  0xfa   : > { %v969_v51 = vadd.f32 %v968_v14, %v945_v10 }
  0xfb   : > { %v1012_v50 = vadd.f32 %v1011_v7, %v989_v47 }
 0x100   : > { %v991_v17 = vpop.f32.mrf.mxu2  ;;  %v947_v15 = vpop.f32.mrf.mxu0 }
 0x101   : > { %v1014_v12 = vpop.f32.mrf.mxu3  ;;  %v970_v16 = vpop.f32.mrf.mxu1  ;;  %v992_v2 = vadd.f32 %v991_v17, %v969_v51 }
 0x103   : > { %v1015_v4 = vadd.f32 %v1014_v12, %v992_v2 }
 0x108   : > { %v993_v20 = vpop.f32.mrf.mxu2  ;;  %v1027_v22 = vpop.f32.mrf.mxu0 }
 0x109   : > { %v1016_v21 = vpop.f32.mrf.mxu3  ;;  %v1028_v24 = vadd.f32 %v1027_v22, %v1005_v19  ;;  %v1050_v25 = vpop.f32.mrf.mxu1 }
 0x10b   : > { %v1051_v27 = vadd.f32 %v1050_v25, %v1028_v24  ;;  %v245_v24 = vld [vmem:[#allocation2] sm:$0xff] }
 0x10d   : > { %v1202_v5 = vadd.f32 %v1051_v27, %v244_v26 }
 0x10f   : > { %1212 = vst [vmem:[#allocation2 + $0x30] sm:$0xff] %v1202_v5 }
 0x110   : > { %v1073_v30 = vpop.f32.mrf.mxu2  ;;  %v1029_v32 = vpop.f32.mrf.mxu0 }
 0x111   : > { %v1096_v31 = vpop.f32.mrf.mxu3  ;;  %v1030_v33 = vadd.f32 %v1029_v32, %v1007_v28  ;;  %v1052_v34 = vpop.f32.mrf.mxu1 }
 0x112   : > { %v1097_v11 = vadd.f32 %v1096_v31, %v1073_v30 }
 0x113   : > { %v1053_v37 = vadd.f32 %v1052_v34, %v1030_v33  ;;  %v247_v33 = vld [vmem:[#allocation2 + $0x10] sm:$0xff] }
 0x115   : > { %v1204_v38 = vadd.f32 %v1053_v37, %v246_v35 }
 0x117   : > { %1214 = vst [vmem:[#allocation2 + $0x18] sm:$0xff] %v1204_v38 }
 0x118   : > { %v1075_v40 = vpop.f32.mrf.mxu2  ;;  %v1032_v42 = vpop.f32.mrf.mxu0 }
 0x119   : > { %v1098_v41 = vpop.f32.mrf.mxu3  ;;  %v1033_v44 = vadd.f32 %v1032_v42, %v1010_v39  ;;  %v1055_v45 = vpop.f32.mrf.mxu1 }
 0x11a   : > { %v1099_v20 = vadd.f32 %v1098_v41, %v1075_v40 }
 0x11b   : > { %v1056_v48 = vadd.f32 %v1055_v45, %v1033_v44  ;;  %v249_v44 = vld [vmem:[#allocation2 + $0x28] sm:$0xff] }
 0x11d   : > { %v1206_v49 = vadd.f32 %v1056_v48, %v248_v46 }
 0x11f   : > { %1216 = vst [vmem:[#allocation2 + $0x48] sm:$0xff] %v1206_v49 }
 0x120   : > { %v1078_v52 = vpop.f32.mrf.mxu2  ;;  %v1034_v54 = vpop.f32.mrf.mxu0 }
 0x121   : > { %v1101_v53 = vpop.f32.mrf.mxu3  ;;  %v1035_v55 = vadd.f32 %v1034_v54, %v1012_v50  ;;  %v1057_v56 = vpop.f32.mrf.mxu1 }
 0x122   : > { %v1102_v29 = vadd.f32 %v1101_v53, %v1078_v52 }
 0x123   : > { %v1058_v6 = vadd.f32 %v1057_v56, %v1035_v55  ;;  %v251_v55 = vld [vmem:[#allocation2 + $0x20] sm:$0xff] }
 0x125   : > { %v1208_v9 = vadd.f32 %v1058_v6, %v250_v60 }
 0x127   : > { %1218 = vst [vmem:[#allocation2 + $0x8] sm:$0xff] %v1208_v9 }
 0x128   : > { %v1080_v13 = vpop.f32.mrf.mxu2  ;;  %v1037_v58 = vpop.f32.mrf.mxu0 }
 0x129   : > { %v1103_v57 = vpop.f32.mrf.mxu3  ;;  %v1038_v59 = vadd.f32 %v1037_v58, %v1015_v4  ;;  %v1060_v3 = vpop.f32.mrf.mxu1 }
 0x12a   : > { %v1104_v40 = vadd.f32 %v1103_v57, %v1080_v13 }
 0x12b   : > { %v1061_v8 = vadd.f32 %v1060_v3, %v1038_v59  ;;  %v253_v59 = vld [vmem:[#allocation2 + $0x38] sm:$0xf] }
 0x12d   : > { %v1210_v62 = vadd.f32 %v1061_v8, %v252_v61 }
 0x12f   : > { %1220 = vst [vmem:[#allocation2 + $0x40] sm:$0xf] %v1210_v62 }
 0x130   : > { %v1083_v63 = vpop.f32.mrf.mxu2  ;;  %v1039_v7 = vpop.f32.mrf.mxu0 }
 0x131   : > { %v1106_v1 = vpop.f32.mrf.mxu3  ;;  %v1062_v10 = vpop.f32.mrf.mxu1 }
 0x132   : > { %v1107_v51 = vadd.f32 %v1106_v1, %v1083_v63 }
 0x138   : > { %v1085_v14 = vpop.f32.mrf.mxu2  ;;  %v1119_v15 = vpop.f32.mrf.mxu0 }
 0x139   : > { %v1108_v17 = vpop.f32.mrf.mxu3  ;;  %v1142_v16 = vpop.f32.mrf.mxu1  ;;  %v1120_v12 = vadd.f32 %v1119_v15, %v1097_v11 }
 0x13b   : > { %v1143_v18 = vadd.f32 %v1142_v16, %v1120_v12 }
 0x140   : > { %v1165_v19 = vpop.f32.mrf.mxu2  ;;  %v1121_v23 = vpop.f32.mrf.mxu0 }
 0x141   : > { %v1166_v21 = vadd.f32 %v1165_v19, %v1143_v18  ;;  %v1188_v22 = vpop.f32.mrf.mxu3  ;;  %v1144_v25 = vpop.f32.mrf.mxu1  ;;  %v1122_v0 = vadd.f32 %v1121_v23, %v1099_v20 }
 0x143   : > { %v1189_v26 = vadd.f32 %v1188_v22, %v1166_v21  ;;  %v1145_v5 = vadd.f32 %v1144_v25, %v1122_v0 }
 0x145   : > { %v1203_v27 = vadd.f32 %v1189_v26, %v245_v24 }
 0x147   : > { %1213 = vst [vmem:[#allocation2] sm:$0xff] %v1203_v27 }
 0x148   : > { %v1167_v28 = vpop.f32.mrf.mxu2  ;;  %v1124_v32 = vpop.f32.mrf.mxu0 }
 0x149   : > { %v1168_v30 = vadd.f32 %v1167_v28, %v1145_v5  ;;  %v1190_v31 = vpop.f32.mrf.mxu3  ;;  %v1147_v34 = vpop.f32.mrf.mxu1  ;;  %v1125_v36 = vadd.f32 %v1124_v32, %v1102_v29 }
 0x14b   : > { %v1191_v35 = vadd.f32 %v1190_v31, %v1168_v30  ;;  %v1148_v38 = vadd.f32 %v1147_v34, %v1125_v36 }
 0x14d   : > { %v1205_v37 = vadd.f32 %v1191_v35, %v247_v33 }
 0x14f   : > { %1215 = vst [vmem:[#allocation2 + $0x10] sm:$0xff] %v1205_v37 }
 0x150   : > { %v1170_v39 = vpop.f32.mrf.mxu2  ;;  %v1126_v43 = vpop.f32.mrf.mxu0 }
 0x151   : > { %v1171_v41 = vadd.f32 %v1170_v39, %v1148_v38  ;;  %v1193_v42 = vpop.f32.mrf.mxu3  ;;  %v1149_v45 = vpop.f32.mrf.mxu1  ;;  %v1127_v47 = vadd.f32 %v1126_v43, %v1104_v40 }
 0x153   : > { %v1194_v46 = vadd.f32 %v1193_v42, %v1171_v41  ;;  %v1150_v49 = vadd.f32 %v1149_v45, %v1127_v47 }
 0x155   : > { %v1207_v48 = vadd.f32 %v1194_v46, %v249_v44 }
 0x157   : > { %1217 = vst [vmem:[#allocation2 + $0x28] sm:$0xff] %v1207_v48 }
 0x158   : > { %v1172_v50 = vpop.f32.mrf.mxu2  ;;  %v1129_v54 = vpop.f32.mrf.mxu0 }
 0x159   : > { %v1173_v52 = vadd.f32 %v1172_v50, %v1150_v49  ;;  %v1195_v53 = vpop.f32.mrf.mxu3  ;;  %v1152_v56 = vpop.f32.mrf.mxu1  ;;  %v1130_v2 = vadd.f32 %v1129_v54, %v1107_v51 }
 0x15b   : > { %v1196_v60 = vadd.f32 %v1195_v53, %v1173_v52  ;;  %v1153_v9 = vadd.f32 %v1152_v56, %v1130_v2 }
 0x15d   : > { %v1209_v6 = vadd.f32 %v1196_v60, %v251_v55 }
 0x15f   : > { %1219 = vst [vmem:[#allocation2 + $0x20] sm:$0xff] %v1209_v6 }
 0x160   : > { %v1175_v4 = vpop.f32.mrf.mxu2  ;;  %v1131_v58 = vpop.f32.mrf.mxu0 }
 0x161   : > { %v1176_v13 = vadd.f32 %v1175_v4, %v1153_v9  ;;  %v1198_v57 = vpop.f32.mrf.mxu3  ;;  %v1154_v3 = vpop.f32.mrf.mxu1 }
 0x163   : > { %v1199_v61 = vadd.f32 %v1198_v57, %v1176_v13 }
 0x165   : > { %v1211_v8 = vadd.f32 %v1199_v61, %v253_v59  ;;  %1225 = sbr.rel (%p1758_p10) target bundleno = 377 (0x179), region = 63 }
 0x167   : > { %1221 = vst [vmem:[#allocation2 + $0x38] sm:$0xf] %v1211_v8 }
 0x168   : > { %v1177_v62 = vpop.f32.mrf.mxu2 }
 0x169   : > { %v1200_v63 = vpop.f32.mrf.mxu3 }
 0x16a   : > { %v1226_v1 = vld [vmem:[#allocation2 + $0x30] sm:$0xff]  ;;  %v1227_v7 = vld [vmem:[#allocation2] sm:$0xff]  ;;  %v1228_v17 = vld [vmem:[#allocation2 + $0x18] sm:$0xff] }
 0x16b   : > { %v1236_v10 = vld [vmem:[%s2297_s2] sm:$0x3]  ;;  %v1229_v15 = vld [vmem:[#allocation2 + $0x10] sm:$0xff]  ;;  %v1230_v16 = vld [vmem:[#allocation2 + $0x48] sm:$0xff] }
 0x16c   : > { %v1238_v14 = vperm.slane %v1236_v10, 0  ;;  %v1239_v11 = vperm.slane %v1236_v10, 1  ;;  %v1231_v12 = vld [vmem:[#allocation2 + $0x28] sm:$0xff]  ;;  %v1233_v19 = vld [vmem:[#allocation2 + $0x20] sm:$0xff] }
 0x16d   : > { %v1232_v18 = vld [vmem:[#allocation2 + $0x8] sm:$0xff]  ;;  %v1234_v27 = vld [vmem:[#allocation2 + $0x40] sm:$0xf] }
 0x16e   : > { %v1242_v20 = vadd.f32 %v1238_v14, %v1226_v1  ;;  %v1243_v21 = vadd.f32 %v1239_v11, %v1227_v7  ;;  %v1244_v22 = vadd.f32 %v1238_v14, %v1228_v17  ;;  %v1245_v23 = vadd.f32 %v1239_v11, %v1229_v15  ;;  %v1235_v5 = vld [vmem:[#allocation2 + $0x38] sm:$0xf] }
 0x16f   : > { %v1246_v24 = vadd.f32 %v1238_v14, %v1230_v16  ;;  %v1247_v25 = vadd.f32 %v1239_v11, %v1231_v12  ;;  %v1248_v26 = vadd.f32 %v1238_v14, %v1232_v18  ;;  %v1249_v0 = vadd.f32 %v1239_v11, %v1233_v19 }
 0x170   : > { %v1252_v28 = vmax.f32 %v1242_v20, 0.0  ;;  %v1253_v29 = vmax.f32 %v1243_v21, 0.0  ;;  %v1254_v30 = vmax.f32 %v1244_v22, 0.0  ;;  %v1255_v31 = vmax.f32 %v1245_v23, 0.0 }
 0x171   : > { %v1256_v32 = vmax.f32 %v1246_v24, 0.0  ;;  %v1257_v33 = vmax.f32 %v1247_v25, 0.0  ;;  %v1258_v34 = vmax.f32 %v1248_v26, 0.0  ;;  %v1259_v35 = vmax.f32 %v1249_v0, 0.0 }
 0x172   : > { %v1262_v36 = vpack.c.bf16 %v1253_v29, %v1252_v28  ;;  %v1263_v37 = vpack.c.bf16 %v1255_v31, %v1254_v30  ;;  %v1250_v38 = vadd.f32 %v1238_v14, %v1234_v27  ;;  %v1251_v39 = vadd.f32 %v1239_v11, %v1235_v5 }
 0x173   : > { %v1264_v40 = vpack.c.bf16 %v1257_v33, %v1256_v32  ;;  %v1265_v41 = vpack.c.bf16 %v1259_v35, %v1258_v34 }
 0x174   : > { %1267 = vst [vmem:[%s2298_s3] sm:$0xff] %v1262_v36  ;;  %v1260_v42 = vmax.f32 %v1250_v38, 0.0  ;;  %v1261_v43 = vmax.f32 %v1251_v39, 0.0 }
 0x175   : > { %1268 = vst [vmem:[%s2298_s3 + $0x8] sm:$0xff] %v1263_v37 }
 0x176   : > { %1269 = vst [vmem:[%s2298_s3 + $0x10] sm:$0xff] %v1264_v40  ;;  %v1266_v44 = vpack.c.bf16 %v1261_v43, %v1260_v42 }
 0x177   : > { %1270 = vst [vmem:[%s2298_s3 + $0x18] sm:$0xff] %v1265_v41 }
 0x178   : > { %1271 = vst [vmem:[%s2298_s3 + $0x20] sm:$0x33] %v1266_v44 }
 0x179 PF: > { %p10_p11 = scmp.ge.s32.totalorder %s1962_s16, 5   ;;  %s2299_s12 = smov %s1916_s13 }
 0x17a   : > { %s2300_s13 = smov %s1971_s19  ;;  %s2301_s14 = smov %s1962_s16 }
 0x17b   :  { %12 = sbr.rel (!%p10_p11) target bundleno = 2 (0x2), region = 97 }

// kernel: lpips_forward.13
= control target key start
LH: loop header
LB: loop body
LE: loop exit
PB: predicated region body
PF: predicated region fallthrough
CT: control target
= control target key end

     0   :  { %s875_s12 = smov 0   ;;  %s877_s13 = smov 0   ;;  %s1295_s0 = inlined_call_operand.vmem [shape: bf16[2,49,192], index: 0, kind: input, shape index: {}]   ;;  %s1296_s1 = inlined_call_operand.vmem [shape: bf16[2,49,192], index: 1, kind: input, shape index: {}]   ;;  %s1297_s2 = inlined_call_operand.vmem [shape: f32[1,1,192], index: 2, kind: input, shape index: {}]   ;;  %s1298_s3 = inlined_call_operand.vmem [shape: f32[2,1,1], index: 3, kind: output, shape index: {}]  }
   0x1   :  { %s879_s14 = smov 0  }
   0x2 LB: > { %s25_s15 = sadd.s32 1, %s848_s13  ;;  %p771_p0 = scmp.ge.s32.totalorder %s852_s14, 1  ;;  %s852_s14 = sphi %s879_s14, %s13_s14   ;;  %s848_s13 = sphi %s877_s13, %s1302_s13   ;;  %s844_s12 = sphi %s875_s12, %s1301_s12  }
   0x3   : > { %p27_p1 = scmp.ge.s32.totalorder %s25_s15, 2  ;;  %p175_p2 = scmp.lt.s32.totalorder %s852_s14, 3 }
   0x5   : > { %s1304_s15 = smov (%p27_p1, %s25_s15), 0  ;;  %p176_p3 = pnand %p771_p0, %p175_p2 }
   0x6   : > { %p213_p4 = scmp.lt.s32.totalorder (!%p176_p3), %s844_s12, 1 }
   0x7   : > { %179 = sbr.rel (%p176_p3) target bundleno = 461 (0x1cd), region = 32 }
   0xc   : > { %s1306_s12 = smov (!%p213_p4, %s844_s12), 1  ;;  %vm299_vm0 = vcmask 523264  }
   0xd   : > { %s776_s16 = smul.u32 56, %s1306_s12  ;;  %s236_s27 = scalar_lea.vmem %s1298_s3, %s1306_s12 }
   0xf   : > { %s899_s19 = scalar_lea.vmem %s1296_s1, %s776_s16  ;;  %s904_s22 = scalar_lea.vmem %s1295_s0, %s776_s16 }
  0x10   : > { %v264_v0 = vld [vmem:[%s899_s19] sm:$0xff]  ;;  %v245_v1 = vld [vmem:[%s904_s22 + $0x10] sm:$0xff]  ;;  %v265_v7 = vld [vmem:[%s899_s19 + $0x8] sm:$0xff] }
  0x11   : > { %v243_v2 = vld [vmem:[%s904_s22] sm:$0xff]  ;;  %v909_v3 = vunpack.c.l.bf16 %v264_v0  ;;  %v911_v4 = vunpack.c.h.bf16 %v264_v0  ;;  %v913_v5 = vunpack.c.l.bf16 %v245_v1  ;;  %v915_v6 = vunpack.c.h.bf16 %v245_v1  ;;  %v266_v12 = vld [vmem:[%s899_s19 + $0x10] sm:$0xff]  ;;  %v244_v24 = vld [vmem:[%s904_s22 + $0x8] sm:$0xff] }
  0x12   : > { %v918_v8 = vunpack.c.l.bf16 %v243_v2  ;;  %v920_v9 = vunpack.c.h.bf16 %v243_v2  ;;  %v922_v10 = vunpack.c.l.bf16 %v265_v7  ;;  %v924_v11 = vunpack.c.h.bf16 %v265_v7  ;;  %v267_v28 = vld [vmem:[%s899_s19 + $0x18] sm:$0xff]  ;;  %v247_v29 = vld [vmem:[%s904_s22 + $0x20] sm:$0xff]  ;;  %v248_v54 = vld [vmem:[%s904_s22 + $0x28] sm:$0xff] }
  0x13   : > { %v419_v13 = vmul.f32 %v909_v3, %v909_v3  ;;  %v420_v14 = vmul.f32 %v911_v4, %v911_v4  ;;  %v289_v15 = vmul.f32 %v913_v5, %v913_v5  ;;  %v290_v16 = vmul.f32 %v915_v6, %v915_v6  ;;  %v246_v37 = vld [vmem:[%s904_s22 + $0x18] sm:$0xff]  ;;  %v269_v55 = vld [vmem:[%s899_s19 + $0x28] sm:$0xff]  ;;  %v268_v56 = vld [vmem:[%s899_s19 + $0x20] sm:$0xff] }
  0x14   : > { %v285_v17 = vmul.f32 %v918_v8, %v918_v8  ;;  %v286_v18 = vmul.f32 %v920_v9, %v920_v9  ;;  %v422_v19 = vmul.f32 %v924_v11, %v924_v11  ;;  %v943_v22 = vunpack.c.l.bf16 %v266_v12 }
  0x15   : > { %v433_v20 = vsel %vm299_vm0, %v420_v14, 0.0  ;;  %v308_v21 = vsel %vm299_vm0, %v290_v16, 0.0  ;;  %v945_v23 = vunpack.c.h.bf16 %v266_v12  ;;  %v421_v31 = vmul.f32 %v922_v10, %v922_v10 }
  0x16   : > { %v434_v25 = vadd.f32 %v433_v20, %v419_v13  ;;  %v309_v26 = vadd.f32 %v308_v21, %v289_v15  ;;  %v300_v27 = vsel %vm299_vm0, %v286_v18, 0.0  ;;  %v437_v33 = vsel %vm299_vm0, %v422_v19, 0.0  ;;  %v270_v19 = vld [vmem:[%s899_s19 + $0x30] sm:$0xff] }
  0x17   : > { %v301_v30 = vadd.f32 %v300_v27, %v285_v17  ;;  %v424_v32 = vmul.f32 %v945_v23, %v945_v23  ;;  %v423_v34 = vmul.f32 %v943_v22, %v943_v22  ;;  %v958_v35 = vunpack.c.l.bf16 %v244_v24  ;;  %v249_v20 = vld [vmem:[%s904_s22 + $0x30] sm:$0xff] }
  0x18   : > { %435 = vadd.xlane.f32.xlu1 %v434_v25  ;;  %310 = vadd.xlane.f32.xlu2 %v309_v26  ;;  %v960_v36 = vunpack.c.h.bf16 %v244_v24  ;;  %v964_v39 = vunpack.c.h.bf16 %v267_v28  ;;  %v966_v40 = vunpack.c.h.bf16 %v247_v29  ;;  %v438_v43 = vadd.f32 %v437_v33, %v421_v31 }
  0x19   : > { %302 = vadd.xlane.f32.xlu0 %v301_v30  ;;  %v441_v38 = vsel %vm299_vm0, %v424_v32, 0.0  ;;  %v287_v41 = vmul.f32 %v958_v35, %v958_v35  ;;  %v972_v44 = vunpack.c.l.bf16 %v267_v28  ;;  %v974_v45 = vunpack.c.h.bf16 %v246_v37 }
  0x1a   : > { %v288_v42 = vmul.f32 %v960_v36, %v960_v36  ;;  %v442_v46 = vadd.f32 %v441_v38, %v423_v34  ;;  %v977_v48 = vunpack.c.l.bf16 %v247_v29  ;;  %v979_v49 = vunpack.c.l.bf16 %v246_v37 }
  0x1b   : > { %v426_v51 = vmul.f32 %v964_v39, %v964_v39  ;;  %v294_v52 = vmul.f32 %v966_v40, %v966_v40  ;;  %v292_v53 = vmul.f32 %v974_v45, %v974_v45  ;;  %v425_v57 = vmul.f32 %v972_v44, %v972_v44 }
  0x1c   : > { %v304_v47 = vsel %vm299_vm0, %v288_v42, 0.0  ;;  %v293_v58 = vmul.f32 %v977_v48, %v977_v48  ;;  %v291_v59 = vmul.f32 %v979_v49, %v979_v49  ;;  %v998_v62 = vunpack.c.h.bf16 %v248_v54 }
  0x1d   : > { %v305_v50 = vadd.f32 %v304_v47, %v287_v41  ;;  %v445_v60 = vsel %vm299_vm0, %v426_v51, 0.0  ;;  %v316_v61 = vsel %vm299_vm0, %v294_v52, 0.0  ;;  %v1000_v63 = vunpack.c.h.bf16 %v269_v55 }
  0x1e   : > { %v312_v0 = vsel %vm299_vm0, %v292_v53, 0.0  ;;  %v1003_v1 = vunpack.c.h.bf16 %v268_v56  ;;  %v446_v2 = vadd.f32 %v445_v60, %v425_v57  ;;  %v317_v7 = vadd.f32 %v316_v61, %v293_v58 }
  0x1f   : > { %v1005_v12 = vunpack.c.l.bf16 %v248_v54  ;;  %v1007_v13 = vunpack.c.l.bf16 %v269_v55  ;;  %v313_v14 = vadd.f32 %v312_v0, %v291_v59  ;;  %v296_v15 = vmul.f32 %v998_v62, %v998_v62 }
  0x20   : > { %439 = vadd.xlane.f32.xlu1 %v438_v43  ;;  %443 = vadd.xlane.f32.xlu2 %v442_v46  ;;  %v430_v16 = vmul.f32 %v1000_v63, %v1000_v63  ;;  %v1013_v17 = vunpack.c.l.bf16 %v268_v56  ;;  %v428_v18 = vmul.f32 %v1003_v1, %v1003_v1  ;;  %v1027_v28 = vunpack.c.h.bf16 %v270_v19 }
  0x21   : > { %306 = vadd.xlane.f32.xlu0 %v305_v50  ;;  %v295_v21 = vmul.f32 %v1005_v12, %v1005_v12  ;;  %v429_v24 = vmul.f32 %v1007_v13, %v1007_v13  ;;  %v320_v25 = vsel %vm299_vm0, %v296_v15, 0.0  ;;  %v1030_v30 = vunpack.c.h.bf16 %v249_v20 }
  0x22   : > { %v453_v26 = vsel %vm299_vm0, %v430_v16, 0.0  ;;  %v427_v27 = vmul.f32 %v1013_v17, %v1013_v17  ;;  %v449_v29 = vsel %vm299_vm0, %v428_v18, 0.0  ;;  %v1032_v33 = vunpack.c.l.bf16 %v270_v19 }
  0x23   : > { %v321_v31 = vadd.f32 %v320_v25, %v295_v21  ;;  %v454_v32 = vadd.f32 %v453_v26, %v429_v24  ;;  %v432_v37 = vmul.f32 %v1027_v28, %v1027_v28  ;;  %v1036_v38 = vunpack.c.l.bf16 %v249_v20  ;;  %v580_v24 = vld [vmem:[%s1297_s2] sm:$0x3] }
  0x24   : > { %v450_v34 = vadd.f32 %v449_v29, %v427_v27  ;;  %v298_v41 = vmul.f32 %v1030_v30, %v1030_v30  ;;  %v431_v42 = vmul.f32 %v1032_v33, %v1032_v33 }
  0x25   : > { %v457_v43 = vsel %vm299_vm0, %v432_v37, 0.0  ;;  %v297_v46 = vmul.f32 %v1036_v38, %v1036_v38  ;;  %v1067_v37 = vperm.slane %v580_v24, 0 }
  0x26   : > { %v324_v47 = vsel %vm299_vm0, %v298_v41, 0.0  ;;  %v458_v50 = vadd.f32 %v457_v43, %v431_v42 }
  0x27   : > { %v325_v51 = vadd.f32 %v324_v47, %v297_v46 }
  0x28   : > { %447 = vadd.xlane.f32.xlu1 %v446_v2  ;;  %318 = vadd.xlane.f32.xlu2 %v317_v7 }
  0x29   : > { %314 = vadd.xlane.f32.xlu0 %v313_v14 }
  0x30   : > { %322 = vadd.xlane.f32.xlu1 %v321_v31  ;;  %455 = vadd.xlane.f32.xlu2 %v454_v32 }
  0x31   : > { %451 = vadd.xlane.f32.xlu0 %v450_v34 }
  0x38   : > { %459 = vadd.xlane.f32.xlu1 %v458_v50 }
  0x39   : > { %326 = vadd.xlane.f32.xlu0 %v325_v51 }
  0x8b   : > { %v436_v52 = vpop.xlane.xlu1 %435  ;;  %v311_v53 = vpop.xlane.xlu2 %310 }
  0x8c   : > { %v461_v54 = vadd.f32 1e-10, %v436_v52  ;;  %v1046_v55 = vadd.f32 1e-10, %v311_v53  ;;  %v303_v56 = vpop.xlane.xlu0 %302 }
  0x8d   : > { %v328_v57 = vadd.f32 1e-10, %v303_v56 }
  0x8e   : > { %802 = vrsqrt.f32 %v461_v54  ;;  %vm474_vm1 = vweird.f32 %v461_v54  ;;  %vm361_vm2 = vweird.f32 %v1046_v55 }
  0x8f   : > { %804 = vrsqrt.f32 %v1046_v55  ;;  %vm341_vm4 = vweird.f32 %v328_v57 }
  0x90   : > { %806 = vrsqrt.f32 %v328_v57 }
  0x93   : > { %v440_v58 = vpop.xlane.xlu1 %439  ;;  %v444_v59 = vpop.xlane.xlu2 %443 }
  0x94   : > { %v1049_v60 = vpop.eup %802  ;;  %v1051_v61 = vadd.f32 1e-10, %v440_v58  ;;  %v1053_v0 = vadd.f32 1e-10, %v444_v59  ;;  %v307_v2 = vpop.xlane.xlu0 %306 }
  0x95   : > { %v805_v7 = vpop.eup %804  ;;  %v469_v14 = vmul.f32 %v1049_v60, %v461_v54  ;;  %v1056_v15 = vadd.f32 1e-10, %v307_v2  ;;  %vm475_vm3 = vweird.f32 %v1049_v60 }
  0x96   : > { %v807_v16 = vpop.eup %806  ;;  %v356_v18 = vmul.f32 %v805_v7, %v1046_v55  ;;  %808 = vrsqrt.f32 %v1051_v61  ;;  %vm362_vm5 = vweird.f32 %v805_v7  ;;  %vm1092_vm7 = vmor %vm474_vm1, %vm475_vm3  ;;  %vm484_vm8 = vweird.f32 %v1051_v61 }
  0x97   : > { %v470_v19 = vmul.f32 %v1049_v60, %v469_v14  ;;  %v336_v20 = vmul.f32 %v807_v16, %v328_v57  ;;  %810 = vrsqrt.f32 %v1053_v0  ;;  %vm342_vm6 = vweird.f32 %v807_v16  ;;  %vm363_vm13 = vmor %vm361_vm2, %vm362_vm5 }
  0x98   : > { %v357_v21 = vmul.f32 %v805_v7, %v356_v18  ;;  %812 = vrsqrt.f32 %v1056_v15  ;;  %vm494_vm9 = vweird.f32 %v1053_v0  ;;  %vm343_vm10 = vmor %vm341_vm4, %vm342_vm6  ;;  %vm351_vm12 = vweird.f32 %v1056_v15 }
  0x99   : > { %v471_v25 = vmul.f32 0.5, %v470_v19  ;;  %v337_v26 = vmul.f32 %v807_v16, %v336_v20 }
  0x9a   : > { %v358_v27 = vmul.f32 0.5, %v357_v21  ;;  %v1099_v21 = vperm.slane %v580_v24, 1 }
  0x9b   : > { %v472_v29 = vsub.f32 1.5, %v471_v25  ;;  %v338_v31 = vmul.f32 0.5, %v337_v26  ;;  %v448_v32 = vpop.xlane.xlu1 %447  ;;  %v319_v34 = vpop.xlane.xlu2 %318 }
  0x9c   : > { %v1069_v41 = vpop.eup %808  ;;  %v359_v42 = vsub.f32 1.5, %v358_v27  ;;  %v1072_v43 = vadd.f32 1e-10, %v448_v32  ;;  %v315_v46 = vpop.xlane.xlu0 %314  ;;  %v1078_v52 = vadd.f32 1e-10, %v319_v34 }
  0x9d   : > { %v1074_v47 = vpop.eup %810  ;;  %v339_v50 = vsub.f32 1.5, %v338_v31  ;;  %v479_v51 = vmul.f32 %v1069_v41, %v1051_v61  ;;  %v473_v56 = vmul.f32 %v1049_v60, %v472_v29  ;;  %vm485_vm11 = vweird.f32 %v1069_v41 }
  0x9e   : > { %v1080_v53 = vpop.eup %812  ;;  %v489_v58 = vmul.f32 %v1074_v47, %v1053_v0  ;;  %814 = vrsqrt.f32 %v1072_v43  ;;  %v360_v59 = vmul.f32 %v805_v7, %v359_v42  ;;  %vm495_vm14 = vweird.f32 %v1074_v47  ;;  %vm486_vm2 = vmor %vm484_vm8, %vm485_vm11 }
  0x9f   : > { %v340_v2 = vmul.f32 %v807_v16, %v339_v50  ;;  %v480_v14 = vmul.f32 %v1069_v41, %v479_v51  ;;  %v346_v18 = vmul.f32 %v1080_v53, %v1056_v15  ;;  %816 = vrsqrt.f32 %v1078_v52  ;;  %vm496_vm4 = vmor %vm494_vm9, %vm495_vm14 }
  0xa0   : > { %v490_v20 = vmul.f32 %v1074_v47, %v489_v58  ;;  %v1110_v24 = vadd.f32 1e-10, %v315_v46  ;;  %v477_v57 = vsel %vm1092_vm7, %v1049_v60, %v473_v56  ;;  %v1115_v29 = vsel %vm363_vm13, %v805_v7, %v360_v59 }
  0xa1   : > { %v481_v25 = vmul.f32 0.5, %v480_v14  ;;  %v347_v26 = vmul.f32 %v1080_v53, %v346_v18  ;;  %v344_v54 = vsel %vm343_vm10, %v807_v16, %v340_v2  ;;  %vm352_vm15 = vweird.f32 %v1080_v53 }
  0xa2   : > { %v491_v27 = vmul.f32 0.5, %v490_v20  ;;  %818 = vrsqrt.f32 %v1110_v24  ;;  %v405_v7 = vmul.f32 %v344_v54, %v918_v8  ;;  %v538_v2 = vmul.f32 %v477_v57, %v909_v3  ;;  %vm353_vm6 = vmor %vm351_vm12, %vm352_vm15 }
  0xa3   : > { %v482_v31 = vsub.f32 1.5, %v481_v25  ;;  %v348_v32 = vmul.f32 0.5, %v347_v26  ;;  %v323_v34 = vpop.xlane.xlu1 %322  ;;  %v456_v42 = vpop.xlane.xlu2 %455  ;;  %vm504_vm1 = vweird.f32 %v1072_v43  ;;  %vm381_vm3 = vweird.f32 %v1078_v52 }
  0xa4   : > { %v1117_v50 = vpop.eup %814  ;;  %v492_v55 = vsub.f32 1.5, %v491_v27  ;;  %v1121_v16 = vadd.f32 1e-10, %v323_v34  ;;  %v452_v46 = vpop.xlane.xlu0 %451  ;;  %v1129_v59 = vadd.f32 1e-10, %v456_v42  ;;  %v406_v3 = vmul.f32 %v344_v54, %v920_v9 }
  0xa5   : > { %v483_v51 = vmul.f32 %v1069_v41, %v482_v31  ;;  %v349_v58 = vsub.f32 1.5, %v348_v32  ;;  %v499_v60 = vmul.f32 %v1117_v50, %v1072_v43  ;;  %v1132_v14 = vpop.eup %816  ;;  %v1137_v20 = vadd.f32 1e-10, %v452_v46 }
  0xa6   : > { %v493_v56 = vmul.f32 %v1074_v47, %v492_v55  ;;  %820 = vrsqrt.f32 %v1121_v16  ;;  %v376_v8 = vmul.f32 %v1132_v14, %v1078_v52  ;;  %vm505_vm5 = vweird.f32 %v1117_v50 }
  0xa7   : > { %v350_v18 = vmul.f32 %v1080_v53, %v349_v58  ;;  %v500_v19 = vmul.f32 %v1117_v50, %v499_v60  ;;  %822 = vrsqrt.f32 %v1129_v59  ;;  %v1149_v25 = vsel %vm486_vm2, %v1069_v41, %v483_v51  ;;  %vm506_vm12 = vmor %vm504_vm1, %vm505_vm5 }
  0xa8   : > { %824 = vrsqrt.f32 %v1137_v20  ;;  %v819_v61 = vpop.eup %818  ;;  %v1158_v27 = vsel %vm496_vm4, %v1074_v47, %v493_v56  ;;  %v377_v9 = vmul.f32 %v1132_v14, %v376_v8  ;;  %v539_v41 = vmul.f32 %v477_v57, %v911_v4 }
  0xa9   : > { %v501_v26 = vmul.f32 0.5, %v500_v19  ;;  %v552_v0 = vsub.f32 %v405_v7, %v538_v2  ;;  %v1167_v54 = vsel %vm353_vm6, %v1080_v53, %v350_v18  ;;  %vm382_vm7 = vweird.f32 %v1132_v14 }
  0xaa   : > { %v366_v32 = vmul.f32 %v819_v61, %v1110_v24  ;;  %vm371_vm8 = vweird.f32 %v1110_v24  ;;  %v378_v42 = vmul.f32 0.5, %v377_v9  ;;  %vm372_vm9 = vweird.f32 %v819_v61  ;;  %vm383_vm2 = vmor %vm381_vm3, %vm382_vm7 }
  0xab   : > { %v502_v31 = vsub.f32 1.5, %v501_v26  ;;  %v460_v47 = vpop.xlane.xlu1 %459  ;;  %v553_v55 = vsub.f32 %v406_v3, %v539_v41  ;;  %vm391_vm10 = vweird.f32 %v1121_v16  ;;  %vm524_vm11 = vweird.f32 %v1129_v59  ;;  %vm373_vm4 = vmor %vm371_vm8, %vm372_vm9 }
  0xac   : > { %v821_v34 = vpop.eup %820  ;;  %v1172_v15 = vadd.f32 1e-10, %v460_v47  ;;  %v367_v57 = vmul.f32 %v819_v61, %v366_v32  ;;  %v409_v46 = vmul.f32 %v1115_v29, %v913_v5  ;;  %v379_v58 = vsub.f32 1.5, %v378_v42  ;;  %v327_v8 = vpop.xlane.xlu0 %326 }
  0xad   : > { %v503_v4 = vmul.f32 %v1117_v50, %v502_v31  ;;  %v386_v53 = vmul.f32 %v821_v34, %v1121_v16  ;;  %v823_v51 = vpop.eup %822  ;;  %v566_v60 = vmul.f32 %v552_v0, %v552_v0  ;;  %v567_v7 = vmul.f32 %v553_v55, %v553_v55 }
  0xae   : > { %826 = vrsqrt.f32 %v1172_v15  ;;  %v825_v56 = vpop.eup %824  ;;  %v368_v2 = vmul.f32 0.5, %v367_v57  ;;  %vm392_vm13 = vweird.f32 %v821_v34  ;;  %v519_v19 = vmul.f32 %v823_v51, %v1129_v59 }
  0xaf   : > { %v387_v18 = vmul.f32 %v821_v34, %v386_v53  ;;  %v1187_v5 = vsel %vm506_vm12, %v1117_v50, %v503_v4  ;;  %v380_v3 = vmul.f32 %v1132_v14, %v379_v58  ;;  %vm525_vm14 = vweird.f32 %v823_v51  ;;  %vm393_vm5 = vmor %vm391_vm10, %vm392_vm13 }
  0xb0   : > { %v509_v26 = vmul.f32 %v825_v56, %v1137_v20  ;;  %vm514_vm15 = vweird.f32 %v1137_v20  ;;  %v369_v9 = vsub.f32 1.5, %v368_v2  ;;  %v520_v43 = vmul.f32 %v823_v51, %v519_v19  ;;  %vm526_vm7 = vmor %vm524_vm11, %vm525_vm14 }
  0xb1   : > { %v388_v41 = vmul.f32 0.5, %v387_v18  ;;  %vm515_vm1 = vweird.f32 %v825_v56  ;;  %v586_v50 = vmul.f32 %v1067_v37, %v566_v60  ;;  %v587_v31 = vmul.f32 %v1099_v21, %v567_v7 }
  0xb2   : > { %v510_v0 = vmul.f32 %v825_v56, %v509_v26  ;;  %v1198_v32 = vadd.f32 1e-10, %v327_v8  ;;  %v1201_v47 = vsel %vm383_vm2, %v1132_v14, %v380_v3  ;;  %v370_v42 = vmul.f32 %v819_v61, %v369_v9  ;;  %vm516_vm8 = vmor %vm514_vm15, %vm515_vm1 }
  0xb3   : > { %v389_v55 = vsub.f32 1.5, %v388_v41  ;;  %v521_v4 = vmul.f32 0.5, %v520_v43  ;;  %v600_v53 = vsel %vm299_vm0, %v587_v31, 0.0  ;;  %v410_v58 = vmul.f32 %v1115_v29, %v915_v6 }
  0xb4   : > { %v827_v57 = vpop.eup %826  ;;  %v511_v52 = vmul.f32 0.5, %v510_v0  ;;  %828 = vrsqrt.f32 %v1198_v32  ;;  %v374_v60 = vsel %vm373_vm4, %v819_v61, %v370_v42  ;;  %vm534_vm3 = vweird.f32 %v1172_v15 }
  0xb5   : > { %v390_v7 = vmul.f32 %v821_v34, %v389_v55  ;;  %v522_v14 = vsub.f32 1.5, %v521_v4  ;;  %v529_v2 = vmul.f32 %v827_v57, %v1172_v15  ;;  %vm535_vm6 = vweird.f32 %v827_v57 }
  0xb6   : > { %v512_v24 = vsub.f32 1.5, %v511_v52  ;;  %v601_v18 = vadd.f32 %v600_v53, %v586_v50  ;;  %v542_v19 = vmul.f32 %v1158_v27, %v943_v22  ;;  %v543_v29 = vmul.f32 %v1158_v27, %v945_v23  ;;  %vm536_vm11 = vmor %vm534_vm3, %vm535_vm6 }
  0xb7   : > { %v394_v8 = vsel %vm393_vm5, %v821_v34, %v390_v7  ;;  %v523_v3 = vmul.f32 %v823_v51, %v522_v14  ;;  %v530_v6 = vmul.f32 %v827_v57, %v529_v2  ;;  %v407_v26 = vmul.f32 %v1167_v54, %v958_v35 }
  0xb8   : > { %v513_v61 = vmul.f32 %v825_v56, %v512_v24  ;;  %602 = vadd.xlane.f32.xlu2 %v601_v18  ;;  %v556_v16 = vsub.f32 %v409_v46, %v542_v19  ;;  %v408_v9 = vmul.f32 %v1167_v54, %v960_v36  ;;  %v557_v23 = vsub.f32 %v410_v58, %v543_v29 }
  0xb9   : > { %v527_v22 = vsel %vm526_vm7, %v823_v51, %v523_v3  ;;  %v531_v34 = vmul.f32 0.5, %v530_v6  ;;  %v540_v59 = vmul.f32 %v1149_v25, %v922_v10  ;;  %v541_v46 = vmul.f32 %v1149_v25, %v924_v11 }
  0xba   : > { %v829_v27 = vpop.eup %828  ;;  %v517_v41 = vsel %vm516_vm8, %v825_v56, %v513_v61  ;;  %v570_v43 = vmul.f32 %v556_v16, %v556_v16  ;;  %v411_v35 = vmul.f32 %v374_v60, %v979_v49  ;;  %vm401_vm9 = vweird.f32 %v1198_v32 }
  0xbb   : > { %v532_v0 = vsub.f32 1.5, %v531_v34  ;;  %v396_v36 = vmul.f32 %v829_v27, %v1198_v32  ;;  %vm402_vm10 = vweird.f32 %v829_v27  ;;  %v571_v20 = vmul.f32 %v557_v23, %v557_v23 }
  0xbc   : > { %v590_v54 = vmul.f32 %v1067_v37, %v570_v43  ;;  %v554_v51 = vsub.f32 %v407_v26, %v540_v59  ;;  %v555_v50 = vsub.f32 %v408_v9, %v541_v46  ;;  %v412_v10 = vmul.f32 %v374_v60, %v974_v45  ;;  %vm403_vm12 = vmor %vm401_vm9, %vm402_vm10 }
  0xbd   : > { %v533_v56 = vmul.f32 %v827_v57, %v532_v0  ;;  %v397_v31 = vmul.f32 %v829_v27, %v396_v36  ;;  %v591_v42 = vmul.f32 %v1099_v21, %v571_v20  ;;  %v544_v11 = vmul.f32 %v1187_v5, %v972_v44 }
  0xbe   : > { %v568_v49 = vmul.f32 %v554_v51, %v554_v51  ;;  %v569_v25 = vmul.f32 %v555_v50, %v555_v50  ;;  %v545_v55 = vmul.f32 %v1187_v5, %v964_v39  ;;  %v415_v4 = vmul.f32 %v394_v8, %v1005_v12 }
  0xbf   : > { %v537_v52 = vsel %vm536_vm11, %v827_v57, %v533_v56  ;;  %v398_v45 = vmul.f32 0.5, %v397_v31  ;;  %v608_v53 = vsel %vm299_vm0, %v591_v42, 0.0  ;;  %v558_v58 = vsub.f32 %v411_v35, %v544_v11 }
  0xc0   : > { %v609_v60 = vadd.f32 %v608_v53, %v590_v54  ;;  %v588_v7 = vmul.f32 %v1067_v37, %v568_v49  ;;  %v589_v44 = vmul.f32 %v1099_v21, %v569_v25  ;;  %v559_v14 = vsub.f32 %v412_v10, %v545_v55 }
  0xc1   : > { %v399_v15 = vsub.f32 1.5, %v398_v45  ;;  %v572_v2 = vmul.f32 %v558_v58, %v558_v58  ;;  %v416_v24 = vmul.f32 %v394_v8, %v998_v62  ;;  %v548_v18 = vmul.f32 %v527_v22, %v1007_v13 }
  0xc2   : > { %610 = vadd.xlane.f32.xlu1 %v609_v60  ;;  %v604_v39 = vsel %vm299_vm0, %v589_v44, 0.0  ;;  %v573_v12 = vmul.f32 %v559_v14, %v559_v14  ;;  %v549_v5 = vmul.f32 %v527_v22, %v1000_v63  ;;  %v413_v57 = vmul.f32 %v1201_v47, %v977_v48 }
  0xc3   : > { %v400_v19 = vmul.f32 %v829_v27, %v399_v15  ;;  %v605_v3 = vadd.f32 %v604_v39, %v588_v7  ;;  %v592_v6 = vmul.f32 %v1067_v37, %v572_v2  ;;  %v562_v29 = vsub.f32 %v415_v4, %v548_v18 }
  0xc4   : > { %v593_v62 = vmul.f32 %v1099_v21, %v573_v12  ;;  %v563_v13 = vsub.f32 %v416_v24, %v549_v5  ;;  %v414_v8 = vmul.f32 %v1201_v47, %v966_v40  ;;  %v546_v63 = vmul.f32 %v517_v41, %v1013_v17 }
  0xc5   : > { %v404_v61 = vsel %vm403_vm12, %v829_v27, %v400_v19  ;;  %606 = vadd.xlane.f32.xlu0 %v605_v3  ;;  %v576_v48 = vmul.f32 %v562_v29, %v562_v29  ;;  %v547_v16 = vmul.f32 %v517_v41, %v1003_v1  ;;  %v550_v26 = vmul.f32 %v537_v52, %v1032_v33 }
  0xc6   : > { %v612_v9 = vsel %vm299_vm0, %v593_v62, 0.0  ;;  %v577_v22 = vmul.f32 %v563_v13, %v563_v13  ;;  %v560_v32 = vsub.f32 %v413_v57, %v546_v63  ;;  %v417_v34 = vmul.f32 %v404_v61, %v1036_v38 }
  0xc7   : > { %v613_v23 = vadd.f32 %v612_v9, %v592_v6  ;;  %v596_v59 = vmul.f32 %v1067_v37, %v576_v48  ;;  %v561_v43 = vsub.f32 %v414_v8, %v547_v16  ;;  %v418_v40 = vmul.f32 %v404_v61, %v1030_v30 }
  0xc8   : > { %v597_v17 = vmul.f32 %v1099_v21, %v577_v22  ;;  %v574_v47 = vmul.f32 %v560_v32, %v560_v32  ;;  %v551_v27 = vmul.f32 %v537_v52, %v1027_v28  ;;  %v564_v1 = vsub.f32 %v417_v34, %v550_v26 }
  0xc9   : > { %614 = vadd.xlane.f32.xlu2 %v613_v23  ;;  %v575_v33 = vmul.f32 %v561_v43, %v561_v43  ;;  %vm241_vm13 = vcmask 0   ;;  %v854_v56 = vmov 0.0   ;;  %v629_v31 = vlaneseq }
  0xca   : > { %v620_v41 = vsel %vm299_vm0, %v597_v17, 0.0  ;;  %v594_v46 = vmul.f32 %v1067_v37, %v574_v47  ;;  %v565_v35 = vsub.f32 %v418_v40, %v551_v27  ;;  %v578_v38 = vmul.f32 %v564_v1, %v564_v1  ;;  %242 = vst.msk [vmem:[#allocation2] sm:$0x1] %vm241_vm13, %v854_v56 }
  0xcb   : > { %v621_v0 = vadd.f32 %v620_v41, %v596_v59  ;;  %v595_v36 = vmul.f32 %v1099_v21, %v575_v33  ;;  %v630_v11 = vand.u32 127, %v629_v31  ;;  %vm644_vm14 = vcmask 130112  }
  0xcc   : > { %v579_v20 = vmul.f32 %v565_v35, %v565_v35  ;;  %v598_v54 = vmul.f32 %v1067_v37, %v578_v38  ;;  %vm652_vm15 = vcmask 261312   ;;  %vm656_vm1 = vcmask 326912  }
  0xcd   : > { %622 = vadd.xlane.f32.xlu1 %v621_v0  ;;  %v616_v30 = vsel %vm299_vm0, %v595_v36, 0.0  ;;  %v642_v25 = vadd.s32 4294967288, %v630_v11  ;;  %v646_v4 = vadd.s32 4294967280, %v630_v11  ;;  %v650_v52 = vadd.s32 4294967272, %v630_v11 }
  0xce   : > { %v617_v51 = vadd.f32 %v616_v30, %v594_v46  ;;  %v599_v28 = vmul.f32 %v1099_v21, %v579_v20  ;;  %v658_v58 = vadd.s32 4294967256, %v630_v11  ;;  %v654_v60 = vadd.s32 4294967264, %v630_v11 }
  0xcf   : > { %v662_v2 = vadd.s32 4294967248, %v630_v11  ;;  %vm660_vm2 = vcmask 392512   ;;  %vm664_vm4 = vcmask 458112   ;;  %vm633_vm3 = vcmp.lt.s32.totalorder %v630_v11, 49 }
  0xd0   : > { %618 = vadd.xlane.f32.xlu0 %v617_v51  ;;  %v624_v50 = vsel %vm299_vm0, %v599_v28, 0.0  ;;  %vm648_vm0 = vcmask 195712   ;;  %vm669_vm5 = vcmask 450560  }
  0xd1   : > { %v625_v10 = vadd.f32 %v624_v50, %v598_v54  ;;  %v668_v13 = vld [vmem:[#allocation2] sm:$0x1] }
  0xd3   : > { %626 = vadd.xlane.f32.xlu2 %v625_v10 }
 0x12b   : > { %v603_v42 = vpop.xlane.xlu2 %602 }
 0x12c   : > { %v641_v45 = vperm.slane %v603_v42, %v630_v11 }
 0x135   : > { %v611_v49 = vpop.xlane.xlu1 %610 }
 0x136   : > { %v647_v53 = vperm.slane %v611_v49, %v646_v4 }
 0x138   : > { %v607_v55 = vpop.xlane.xlu0 %606 }
 0x139   : > { %v643_v37 = vperm.slane %v607_v55, %v642_v25 }
 0x13b   : > { %v645_v7 = vsel %vm644_vm14, %v643_v37, %v641_v45 }
 0x13c   : > { %v615_v21 = vpop.xlane.xlu2 %614  ;;  %v649_v24 = vsel %vm648_vm0, %v647_v53, %v645_v7 }
 0x13d   : > { %v651_v44 = vperm.slane %v615_v21, %v650_v52 }
 0x13f   : > { %v653_v12 = vsel %vm652_vm15, %v651_v44, %v649_v24 }
 0x140   : > { %v623_v14 = vpop.xlane.xlu1 %622 }
 0x141   : > { %v659_v18 = vperm.slane %v623_v14, %v658_v58 }
 0x143   : > { %v619_v15 = vpop.xlane.xlu0 %618 }
 0x144   : > { %v655_v39 = vperm.slane %v619_v15, %v654_v60 }
 0x146   : > { %v657_v5 = vsel %vm656_vm1, %v655_v39, %v653_v12  ;;  %v627_v57 = vpop.xlane.xlu2 %626 }
 0x147   : > { %v663_v19 = vperm.slane %v627_v57, %v662_v2  ;;  %v661_v3 = vsel %vm660_vm2, %v659_v18, %v657_v5 }
 0x149   : > { %v665_v6 = vsel %vm664_vm4, %v663_v19, %v661_v3 }
 0x14a   : > { %v667_v29 = vsel %vm633_vm3, %v665_v6, 0.0 }
 0x14b   : > { %v670_v62 = vsel %vm669_vm5, %v667_v29, 0.0 }
 0x14c   : > { %671 = vadd.xlane.f32.xlu0 %v670_v62 }
 0x1bf   : > { %v672_v8 = vpop.xlane.xlu0 %671 }
 0x1c0   : > { %v673_v63 = vadd.f32 %v672_v8, %v668_v13 }
 0x1c2   : > { %675 = vst.msk [vmem:[#allocation2] sm:$0x1] %vm241_vm13, %v673_v63 }
 0x1c9   : > { %v679_v61 = vld [vmem:[#allocation2] sm:$0x1] }
 0x1ca   : > { %v680_v48 = vmul.f32 0.020408163, %v679_v61 }
 0x1cc   : > { %681 = vst.msk [vmem:[%s236_s27] sm:$0x1] %vm241_vm13, %v680_v48 }
 0x1cd PF: > { %s13_s14 = sadd.s32 1, %s852_s14   ;;  %s1301_s12 = smov %s848_s13 }
 0x1ce   : > { %p10_p5 = scmp.ge.s32.totalorder %s13_s14, 4   ;;  %s1302_s13 = smov %s1304_s15 }
 0x1d0   :  { %12 = sbr.rel (!%p10_p5) target bundleno = 2 (0x2), region = 73 }

// kernel: lpips_forward.12
= control target key start
LH: loop header
LB: loop body
LE: loop exit
PB: predicated region body
PF: predicated region fallthrough
CT: control target
= control target key end

     0   :  { %s1931_s12 = smov 0   ;;  %s1933_s13 = smov 0   ;;  %s3726_s0 = inlined_call_operand.vmem [shape: bf16[2,225,128], index: 0, kind: input, shape index: {}]   ;;  %s3727_s1 = inlined_call_operand.vmem [shape: bf16[2,225,128], index: 1, kind: input, shape index: {}]   ;;  %s3728_s2 = inlined_call_operand.vmem [shape: f32[1,1,128], index: 2, kind: input, shape index: {}]   ;;  %s3729_s3 = inlined_call_operand.vmem [shape: f32[2,1,1], index: 3, kind: output, shape index: {}]  }
   0x1   :  { %s1935_s14 = smov 0  }
   0x2 LB: > { %s25_s15 = sadd.s32 1, %s1904_s13  ;;  %p1600_p0 = scmp.ge.s32.totalorder %s1908_s14, 1  ;;  %s1908_s14 = sphi %s1935_s14, %s13_s14   ;;  %s1904_s13 = sphi %s1933_s13, %s3976_s13   ;;  %s1900_s12 = sphi %s1931_s12, %s3975_s12  }
   0x3   : > { %p27_p1 = scmp.ge.s32.totalorder %s25_s15, 2  ;;  %p173_p2 = scmp.lt.s32.totalorder %s1908_s14, 3 }
   0x5   : > { %s3978_s15 = smov (%p27_p1, %s25_s15), 0  ;;  %p174_p3 = pnand %p1600_p0, %p173_p2 }
   0x7   : > { %177 = sbr.rel (%p174_p3) target bundleno = 595 (0x253), region = 32 }
   0xc   : > { %p209_p4 = scmp.lt.s32.totalorder %s1900_s12, 1 }
   0xe   : > { %s3980_s12 = smov (!%p209_p4, %s1900_s12), 1 }
   0xf   : > { %s1743_s16 = smul.u32 116, %s3980_s12  ;;  %s230_s27 = scalar_lea.vmem %s3729_s3, %s3980_s12 }
  0x11   : > { %s1957_s19 = scalar_lea.vmem %s3726_s0, %s1743_s16  ;;  %s2080_s22 = scalar_lea.vmem %s3727_s1, %s1743_s16 }
  0x12   : > { %v1718_v0 = vld [vmem:[%s1957_s19 + $0x10] sm:$0xff]   ;;  %v1717_v1 = vld [vmem:[%s1957_s19 + $0x8] sm:$0xff]   ;;  %v1606_v2 = vld [vmem:[%s1957_s19] sm:$0xff]  }
  0x13   : > { %v1962_v3 = vunpack.c.l.bf16 %v1718_v0  ;;  %v1964_v4 = vunpack.c.l.bf16 %v1717_v1  ;;  %v1966_v5 = vunpack.c.l.bf16 %v1606_v2  ;;  %v1974_v9 = vunpack.c.h.bf16 %v1718_v0  ;;  %v1720_v15 = vld [vmem:[%s1957_s19 + $0x20] sm:$0xff]   ;;  %v1719_v16 = vld [vmem:[%s1957_s19 + $0x18] sm:$0xff]   ;;  %v1721_v23 = vld [vmem:[%s1957_s19 + $0x28] sm:$0xff]  }
  0x14   : > { %v1976_v10 = vunpack.c.h.bf16 %v1717_v1  ;;  %v1978_v11 = vunpack.c.h.bf16 %v1606_v2  ;;  %v1988_v17 = vunpack.c.l.bf16 %v1720_v15  ;;  %v1990_v18 = vunpack.c.h.bf16 %v1719_v16  ;;  %v1723_v30 = vld [vmem:[%s1957_s19 + $0x38] sm:$0xff]   ;;  %v1722_v31 = vld [vmem:[%s1957_s19 + $0x30] sm:$0xff]   ;;  %v1724_v38 = vld [vmem:[%s1957_s19 + $0x40] sm:$0xff]  }
  0x15   : > { %v357_v6 = vmul.f32 %v1962_v3, %v1962_v3  ;;  %v355_v7 = vmul.f32 %v1964_v4, %v1964_v4  ;;  %v353_v8 = vmul.f32 %v1966_v5, %v1966_v5  ;;  %v358_v12 = vmul.f32 %v1974_v9, %v1974_v9  ;;  %v1726_v45 = vld [vmem:[%s1957_s19 + $0x50] sm:$0xff]   ;;  %v1725_v46 = vld [vmem:[%s1957_s19 + $0x48] sm:$0xff]   ;;  %v1727_v53 = vld [vmem:[%s1957_s19 + $0x58] sm:$0xff]  }
  0x16   : > { %v356_v13 = vmul.f32 %v1976_v10, %v1976_v10  ;;  %v354_v14 = vmul.f32 %v1978_v11, %v1978_v11  ;;  %v1992_v19 = vunpack.c.l.bf16 %v1719_v16  ;;  %v361_v20 = vmul.f32 %v1988_v17, %v1988_v17  ;;  %v1729_v60 = vld [vmem:[%s1957_s19 + $0x68] sm:$0xff]   ;;  %v1728_v61 = vld [vmem:[%s1957_s19 + $0x60] sm:$0xff]  }
  0x17   : > { %390 = vadd.xlane.f32.xlu2 %v357_v6  ;;  %386 = vadd.xlane.f32.xlu1 %v355_v7  ;;  %v360_v21 = vmul.f32 %v1990_v18, %v1990_v18  ;;  %v2001_v24 = vunpack.c.h.bf16 %v1721_v23  ;;  %v2003_v25 = vunpack.c.l.bf16 %v1721_v23  ;;  %v2005_v26 = vunpack.c.h.bf16 %v1720_v15  ;;  %v1662_v7 = vld [vmem:[%s2080_s22] sm:$0xff]  }
  0x18   : > { %382 = vadd.xlane.f32.xlu0 %v353_v8  ;;  %v359_v22 = vmul.f32 %v1992_v19, %v1992_v19  ;;  %v2015_v32 = vunpack.c.l.bf16 %v1723_v30  ;;  %v2017_v33 = vunpack.c.h.bf16 %v1722_v31  ;;  %v2019_v34 = vunpack.c.l.bf16 %v1722_v31  ;;  %v1738_v31 = vld [vmem:[%s2080_s22 + $0x48] sm:$0xff]  }
  0x19   : > { %v364_v27 = vmul.f32 %v2001_v24, %v2001_v24  ;;  %v363_v28 = vmul.f32 %v2003_v25, %v2003_v25  ;;  %v362_v29 = vmul.f32 %v2005_v26, %v2005_v26  ;;  %v2028_v39 = vunpack.c.h.bf16 %v1724_v38 }
  0x1a   : > { %3773 = vst [vmem:[#allocation3_spill] sm:$0xff] %v2015_v32  ;;  %v367_v35 = vmul.f32 %v2015_v32, %v2015_v32  ;;  %v366_v36 = vmul.f32 %v2017_v33, %v2017_v33  ;;  %v365_v37 = vmul.f32 %v2019_v34, %v2019_v34  ;;  %v2030_v40 = vunpack.c.l.bf16 %v1724_v38 }
  0x1b   : > { %v2032_v41 = vunpack.c.h.bf16 %v1723_v30  ;;  %v370_v42 = vmul.f32 %v2028_v39, %v2028_v39  ;;  %v2042_v47 = vunpack.c.l.bf16 %v1726_v45  ;;  %v2044_v48 = vunpack.c.h.bf16 %v1725_v46 }
  0x1c   : > { %v369_v43 = vmul.f32 %v2030_v40, %v2030_v40  ;;  %v2046_v49 = vunpack.c.l.bf16 %v1725_v46  ;;  %v2055_v54 = vunpack.c.h.bf16 %v1727_v53  ;;  %v2057_v55 = vunpack.c.l.bf16 %v1727_v53 }
  0x1d   : > { %3774 = vst [vmem:[#allocation4_spill] sm:$0xff] %v2032_v41  ;;  %v368_v44 = vmul.f32 %v2032_v41, %v2032_v41  ;;  %v373_v50 = vmul.f32 %v2042_v47, %v2042_v47  ;;  %v372_v51 = vmul.f32 %v2044_v48, %v2044_v48  ;;  %v2059_v56 = vunpack.c.h.bf16 %v1726_v45  ;;  %v1732_v45 = vld [vmem:[%s2080_s22 + $0x18] sm:$0xff]  }
  0x1e   : > { %v371_v52 = vmul.f32 %v2046_v49, %v2046_v49  ;;  %3775 = vst [vmem:[#allocation5_spill] sm:$0xff] %v2055_v54  ;;  %v376_v57 = vmul.f32 %v2055_v54, %v2055_v54  ;;  %v375_v58 = vmul.f32 %v2057_v55, %v2057_v55  ;;  %v2069_v62 = vunpack.c.l.bf16 %v1729_v60 }
  0x1f   : > { %392 = vadd.xlane.f32.xlu2 %v358_v12  ;;  %388 = vadd.xlane.f32.xlu1 %v356_v13  ;;  %3776 = vst [vmem:[#allocation6_spill] sm:$0xff] %v2057_v55  ;;  %v374_v59 = vmul.f32 %v2059_v56, %v2059_v56  ;;  %v2071_v63 = vunpack.c.h.bf16 %v1728_v61  ;;  %v2073_v0 = vunpack.c.l.bf16 %v1728_v61  ;;  %v2089_v8 = vunpack.c.h.bf16 %v1662_v7 }
  0x20   : > { %384 = vadd.xlane.f32.xlu0 %v354_v14  ;;  %3777 = vst [vmem:[#allocation7_spill] sm:$0xff] %v2059_v56  ;;  %v379_v1 = vmul.f32 %v2069_v62, %v2069_v62  ;;  %v2091_v12 = vunpack.c.l.bf16 %v1662_v7  ;;  %v2093_v13 = vunpack.c.h.bf16 %v1729_v60  ;;  %v2130_v46 = vunpack.c.l.bf16 %v1732_v45  ;;  %v1733_v7 = vld [vmem:[%s2080_s22 + $0x20] sm:$0xff]  }
  0x21   : > { %3778 = vst [vmem:[#allocation8_spill] sm:$0xff] %v2069_v62  ;;  %v378_v2 = vmul.f32 %v2071_v63, %v2071_v63  ;;  %v377_v6 = vmul.f32 %v2073_v0, %v2073_v0  ;;  %v789_v14 = vmul.f32 %v2089_v8, %v2089_v8  ;;  %v2145_v60 = vunpack.c.h.bf16 %v1732_v45 }
  0x22   : > { %3779 = vst [vmem:[#allocation9_spill] sm:$0xff] %v2071_v63  ;;  %v788_v15 = vmul.f32 %v2091_v12, %v2091_v12  ;;  %v380_v16 = vmul.f32 %v2093_v13, %v2093_v13 }
  0x23   : > { %3780 = vst [vmem:[#allocation10_spill] sm:$0xff] %v2073_v0 }
  0x24   : > { %3781 = vst [vmem:[#allocation11_spill] sm:$0xff] %v2089_v8 }
  0x25   : > { %3782 = vst [vmem:[#allocation12_spill] sm:$0xff] %v2091_v12 }
  0x26   : > { %3783 = vst [vmem:[#allocation13_spill] sm:$0xff] %v2093_v13 }
  0x27   : > { %398 = vadd.xlane.f32.xlu2 %v361_v20  ;;  %396 = vadd.xlane.f32.xlu1 %v360_v21  ;;  %v1737_v20 = vld [vmem:[%s2080_s22 + $0x40] sm:$0xff]   ;;  %v1730_v21 = vld [vmem:[%s2080_s22 + $0x8] sm:$0xff]   ;;  %3790 = vst [vmem:[#allocation20_spill] sm:$0xff] %v2130_v46 }
  0x28   : > { %394 = vadd.xlane.f32.xlu0 %v359_v22  ;;  %v2103_v22 = vunpack.c.l.bf16 %v1737_v20  ;;  %v2105_v23 = vunpack.c.h.bf16 %v1730_v21  ;;  %v2121_v38 = vunpack.c.h.bf16 %v1737_v20  ;;  %3794 = vst [vmem:[#allocation24_spill] sm:$0xff] %v2145_v60  ;;  %v2161_v20 = vunpack.c.l.bf16 %v1733_v7 }
  0x2a   : > { %3784 = vst [vmem:[#allocation14_spill] sm:$0xff] %v2103_v22 }
  0x2b   : > { %3785 = vst [vmem:[#allocation15_spill] sm:$0xff] %v2105_v23 }
  0x2c   : > { %3789 = vst [vmem:[#allocation19_spill] sm:$0xff] %v2121_v38 }
  0x2d   : > { %3798 = vst [vmem:[#allocation28_spill] sm:$0xff] %v2161_v20 }
  0x2f   : > { %404 = vadd.xlane.f32.xlu2 %v364_v27  ;;  %402 = vadd.xlane.f32.xlu1 %v363_v28  ;;  %v2107_v27 = vunpack.c.l.bf16 %v1730_v21  ;;  %v804_v28 = vmul.f32 %v2103_v22, %v2103_v22 }
  0x30   : > { %400 = vadd.xlane.f32.xlu0 %v362_v29  ;;  %v791_v29 = vmul.f32 %v2105_v23, %v2105_v23 }
  0x31   : > { %3786 = vst [vmem:[#allocation16_spill] sm:$0xff] %v2107_v27  ;;  %v790_v30 = vmul.f32 %v2107_v27, %v2107_v27 }
  0x37   : > { %410 = vadd.xlane.f32.xlu2 %v367_v35  ;;  %408 = vadd.xlane.f32.xlu1 %v366_v36  ;;  %v1731_v35 = vld [vmem:[%s2080_s22 + $0x10] sm:$0xff]   ;;  %v2117_v36 = vunpack.c.l.bf16 %v1738_v31 }
  0x38   : > { %406 = vadd.xlane.f32.xlu0 %v365_v37  ;;  %v2119_v37 = vunpack.c.l.bf16 %v1731_v35 }
  0x39   : > { %3787 = vst [vmem:[#allocation17_spill] sm:$0xff] %v2117_v36 }
  0x3a   : > { %3788 = vst [vmem:[#allocation18_spill] sm:$0xff] %v2119_v37 }
  0x3f   : > { %416 = vadd.xlane.f32.xlu2 %v370_v42  ;;  %414 = vadd.xlane.f32.xlu1 %v369_v43  ;;  %v806_v42 = vmul.f32 %v2117_v36, %v2117_v36  ;;  %v792_v43 = vmul.f32 %v2119_v37, %v2119_v37 }
  0x40   : > { %412 = vadd.xlane.f32.xlu0 %v368_v44  ;;  %v805_v44 = vmul.f32 %v2121_v38, %v2121_v38 }
  0x47   : > { %422 = vadd.xlane.f32.xlu2 %v373_v50  ;;  %420 = vadd.xlane.f32.xlu1 %v372_v51  ;;  %v2132_v50 = vunpack.c.h.bf16 %v1738_v31  ;;  %v2134_v51 = vunpack.c.h.bf16 %v1731_v35  ;;  %v1734_v31 = vld [vmem:[%s2080_s22 + $0x28] sm:$0xff]  }
  0x48   : > { %418 = vadd.xlane.f32.xlu0 %v371_v52  ;;  %v794_v52 = vmul.f32 %v2130_v46, %v2130_v46 }
  0x49   : > { %3791 = vst [vmem:[#allocation21_spill] sm:$0xff] %v2132_v50  ;;  %v807_v53 = vmul.f32 %v2132_v50, %v2132_v50 }
  0x4a   : > { %3792 = vst [vmem:[#allocation22_spill] sm:$0xff] %v2134_v51 }
  0x4f   : > { %428 = vadd.xlane.f32.xlu2 %v376_v57  ;;  %426 = vadd.xlane.f32.xlu1 %v375_v58  ;;  %v793_v57 = vmul.f32 %v2134_v51, %v2134_v51  ;;  %v1739_v58 = vld [vmem:[%s2080_s22 + $0x50] sm:$0xff]  }
  0x50   : > { %424 = vadd.xlane.f32.xlu0 %v374_v59  ;;  %v2143_v59 = vunpack.c.h.bf16 %v1739_v58  ;;  %v2147_v61 = vunpack.c.l.bf16 %v1739_v58 }
  0x52   : > { %3793 = vst [vmem:[#allocation23_spill] sm:$0xff] %v2143_v59 }
  0x53   : > { %3795 = vst [vmem:[#allocation25_spill] sm:$0xff] %v2147_v61 }
  0x57   : > { %434 = vadd.xlane.f32.xlu2 %v379_v1  ;;  %432 = vadd.xlane.f32.xlu1 %v378_v2  ;;  %v809_v1 = vmul.f32 %v2143_v59, %v2143_v59  ;;  %v795_v2 = vmul.f32 %v2145_v60, %v2145_v60 }
  0x58   : > { %430 = vadd.xlane.f32.xlu0 %v377_v6  ;;  %v808_v6 = vmul.f32 %v2147_v61, %v2147_v61 }
  0x5f   : > { %819 = vadd.xlane.f32.xlu2 %v789_v14  ;;  %817 = vadd.xlane.f32.xlu1 %v788_v15  ;;  %v1740_v14 = vld [vmem:[%s2080_s22 + $0x58] sm:$0xff]   ;;  %v2157_v15 = vunpack.c.h.bf16 %v1733_v7  ;;  %v2188_v7 = vunpack.c.h.bf16 %v1734_v31 }
  0x60   : > { %436 = vadd.xlane.f32.xlu0 %v380_v16  ;;  %v2159_v16 = vunpack.c.l.bf16 %v1740_v14 }
  0x61   : > { %3796 = vst [vmem:[#allocation26_spill] sm:$0xff] %v2157_v15  ;;  %v797_v21 = vmul.f32 %v2157_v15, %v2157_v15 }
  0x62   : > { %3797 = vst [vmem:[#allocation27_spill] sm:$0xff] %v2159_v16 }
  0x63   : > { %3804 = vst [vmem:[#allocation34_spill] sm:$0xff] %v2188_v7 }
  0x67   : > { %849 = vadd.xlane.f32.xlu2 %v804_v28  ;;  %823 = vadd.xlane.f32.xlu1 %v791_v29  ;;  %v810_v28 = vmul.f32 %v2159_v16, %v2159_v16  ;;  %v796_v29 = vmul.f32 %v2161_v20, %v2161_v20 }
  0x68   : > { %821 = vadd.xlane.f32.xlu0 %v790_v30  ;;  %v1741_v30 = vld [vmem:[%s2080_s22 + $0x60] sm:$0xff]  }
  0x69   : > { %v2171_v35 = vunpack.c.l.bf16 %v1741_v30 }
  0x6b   : > { %3799 = vst [vmem:[#allocation29_spill] sm:$0xff] %v2171_v35 }
  0x6f   : > { %853 = vadd.xlane.f32.xlu2 %v806_v42  ;;  %825 = vadd.xlane.f32.xlu1 %v792_v43  ;;  %v2173_v42 = vunpack.c.l.bf16 %v1734_v31  ;;  %v2175_v43 = vunpack.c.h.bf16 %v1740_v14  ;;  %v1742_v31 = vld [vmem:[%s2080_s22 + $0x68] sm:$0xff]  }
  0x70   : > { %851 = vadd.xlane.f32.xlu0 %v805_v44  ;;  %v2214_v62 = vunpack.c.l.bf16 %v1742_v31 }
  0x71   : > { %3800 = vst [vmem:[#allocation30_spill] sm:$0xff] %v2173_v42  ;;  %v811_v58 = vmul.f32 %v2175_v43, %v2175_v43 }
  0x72   : > { %3801 = vst [vmem:[#allocation31_spill] sm:$0xff] %v2175_v43 }
  0x73   : > { %3807 = vst [vmem:[#allocation37_spill] sm:$0xff] %v2214_v62 }
  0x77   : > { %829 = vadd.xlane.f32.xlu2 %v794_v52  ;;  %855 = vadd.xlane.f32.xlu1 %v807_v53  ;;  %v812_v53 = vmul.f32 %v2171_v35, %v2171_v35  ;;  %v265_v35 = vld [vmem:[%s1957_s19 + $0x70] sm:$0xf] }
  0x78   : > { %827 = vadd.xlane.f32.xlu0 %v793_v57  ;;  %v798_v57 = vmul.f32 %v2173_v42, %v2173_v42  ;;  %v2248_v15 = vunpack.c.l.bf16 %v265_v35 }
  0x7a   : > { %3810 = vst [vmem:[#allocation40_spill] sm:$0xff] %v2248_v15 }
  0x7f   : > { %859 = vadd.xlane.f32.xlu2 %v809_v1  ;;  %831 = vadd.xlane.f32.xlu1 %v795_v2  ;;  %v1735_v1 = vld [vmem:[%s2080_s22 + $0x30] sm:$0xff]  }
  0x80   : > { %857 = vadd.xlane.f32.xlu0 %v808_v6  ;;  %v2184_v2 = vunpack.c.l.bf16 %v1735_v1  ;;  %v2186_v6 = vunpack.c.h.bf16 %v1741_v30  ;;  %v799_v30 = vmul.f32 %v2188_v7, %v2188_v7 }
  0x82   : > { %3802 = vst [vmem:[#allocation32_spill] sm:$0xff] %v2184_v2 }
  0x83   : > { %3803 = vst [vmem:[#allocation33_spill] sm:$0xff] %v2186_v6 }
  0x87   : > { %835 = vadd.xlane.f32.xlu2 %v797_v21  ;;  %861 = vadd.xlane.f32.xlu1 %v810_v28 }
  0x88   : > { %833 = vadd.xlane.f32.xlu0 %v796_v29 }
  0x8a   : > { %v391_v44 = vpop.xlane.xlu2 %390  ;;  %v387_v45 = vpop.xlane.xlu1 %386 }
  0x8b   : > { %v383_v52 = vpop.xlane.xlu0 %382  ;;  %v2190_v14 = vadd.f32 1e-10, %v387_v45  ;;  %v2194_v41 = vadd.f32 1e-10, %v391_v44  ;;  %v2208_v44 = vunpack.c.h.bf16 %v1742_v31  ;;  %v323_v31 = vld [vmem:[%s2080_s22 + $0x70] sm:$0xf] }
  0x8c   : > { %v2192_v21 = vadd.f32 1e-10, %v383_v52  ;;  %v2210_v52 = vunpack.c.h.bf16 %v1735_v1 }
  0x8d   : > { %1770 = vrsqrt.f32 %v2190_v14  ;;  %3805 = vst [vmem:[#allocation35_spill] sm:$0xff] %v2208_v44  ;;  %vm515_vm0 = vweird.f32 %v2194_v41  ;;  %vm495_vm1 = vweird.f32 %v2190_v14 }
  0x8e   : > { %1772 = vrsqrt.f32 %v2192_v21  ;;  %3806 = vst [vmem:[#allocation36_spill] sm:$0xff] %v2210_v52  ;;  %v801_v1 = vmul.f32 %v2210_v52, %v2210_v52  ;;  %vm475_vm2 = vweird.f32 %v2192_v21 }
  0x8f   : > { %865 = vadd.xlane.f32.xlu2 %v812_v53  ;;  %837 = vadd.xlane.f32.xlu1 %v798_v57  ;;  %v800_v53 = vmul.f32 %v2184_v2, %v2184_v2  ;;  %v813_v57 = vmul.f32 %v2186_v6, %v2186_v6  ;;  %1774 = vrsqrt.f32 %v2194_v41  ;;  %v1736_v6 = vld [vmem:[%s2080_s22 + $0x38] sm:$0xff]  }
  0x90   : > { %863 = vadd.xlane.f32.xlu0 %v811_v58  ;;  %v2241_v42 = vunpack.c.l.bf16 %v1736_v6  ;;  %v2279_v36 = vunpack.c.h.bf16 %v1736_v6 }
  0x92   : > { %v393_v28 = vpop.xlane.xlu2 %392  ;;  %v389_v29 = vpop.xlane.xlu1 %388  ;;  %3809 = vst [vmem:[#allocation39_spill] sm:$0xff] %v2241_v42  ;;  %v802_v35 = vmul.f32 %v2241_v42, %v2241_v42 }
  0x93   : > { %v385_v32 = vpop.xlane.xlu0 %384  ;;  %v2206_v45 = vadd.f32 1e-10, %v389_v29  ;;  %v2216_v2 = vpop.eup %1770  ;;  %3811 = vst [vmem:[#allocation41_spill] sm:$0xff] %v2279_v36 }
  0x94   : > { %v2212_v58 = vadd.f32 1e-10, %v385_v32  ;;  %v2225_v32 = vadd.f32 1e-10, %v393_v28  ;;  %v2239_v28 = vunpack.c.l.bf16 %v323_v31  ;;  %vm496_vm4 = vweird.f32 %v2216_v2 }
  0x95   : > { %1776 = vrsqrt.f32 %v2206_v45  ;;  %vm505_vm6 = vweird.f32 %v2206_v45  ;;  %vm2328_vm9 = vmor %vm495_vm1, %vm496_vm4 }
  0x96   : > { %1778 = vrsqrt.f32 %v2212_v58  ;;  %3808 = vst [vmem:[#allocation38_spill] sm:$0xff] %v2239_v28  ;;  %vm485_vm8 = vweird.f32 %v2212_v58  ;;  %vm525_vm11 = vweird.f32 %v2225_v32 }
  0x97   : > { %841 = vadd.xlane.f32.xlu2 %v800_v53  ;;  %867 = vadd.xlane.f32.xlu1 %v813_v57  ;;  %v815_v53 = vmul.f32 %v2208_v44, %v2208_v44  ;;  %v2223_v57 = vpop.eup %1772  ;;  %v490_v44 = vmul.f32 %v2216_v2, %v2190_v14  ;;  %1780 = vrsqrt.f32 %v2225_v32 }
  0x98   : > { %839 = vadd.xlane.f32.xlu0 %v799_v30  ;;  %v814_v30 = vmul.f32 %v2214_v62, %v2214_v62  ;;  %v2232_v43 = vpop.eup %1774  ;;  %v470_v52 = vmul.f32 %v2223_v57, %v2192_v21  ;;  %vm476_vm5 = vweird.f32 %v2223_v57 }
  0x99   : > { %v510_v62 = vmul.f32 %v2232_v43, %v2194_v41  ;;  %v491_v59 = vmul.f32 %v2216_v2, %v490_v44  ;;  %vm516_vm3 = vweird.f32 %v2232_v43  ;;  %vm2336_vm10 = vmor %vm475_vm2, %vm476_vm5 }
  0x9a   : > { %v399_v13 = vpop.xlane.xlu2 %398  ;;  %v397_v7 = vpop.xlane.xlu1 %396  ;;  %v471_v60 = vmul.f32 %v2223_v57, %v470_v52  ;;  %vm2373_vm14 = vmor %vm515_vm0, %vm516_vm3 }
  0x9b   : > { %v395_v29 = vpop.xlane.xlu0 %394  ;;  %v2246_v20 = vadd.f32 1e-10, %v399_v13  ;;  %v2250_v16 = vpop.eup %1776  ;;  %v2252_v61 = vadd.f32 1e-10, %v397_v7  ;;  %v816_v13 = vmul.f32 %v2239_v28, %v2239_v28  ;;  %v381_v7 = vmul.f32 %v2248_v15, %v2248_v15 }
  0x9c   : > { %v500_v46 = vmul.f32 %v2250_v16, %v2206_v45  ;;  %v2271_v52 = vadd.f32 1e-10, %v395_v29  ;;  %v472_v50 = vmul.f32 0.5, %v471_v60  ;;  %vm506_vm7 = vweird.f32 %v2250_v16 }
  0x9d   : > { %1782 = vrsqrt.f32 %v2246_v20  ;;  %vm555_vm15 = vweird.f32 %v2246_v20  ;;  %vm545_vm1 = vweird.f32 %v2252_v61  ;;  %vm2395_vm0 = vmor %vm505_vm6, %vm506_vm7 }
  0x9e   : > { %1784 = vrsqrt.f32 %v2252_v61  ;;  %v501_v29 = vmul.f32 %v2250_v16, %v500_v46  ;;  %vm535_vm5 = vweird.f32 %v2271_v52 }
  0x9f   : > { %871 = vadd.xlane.f32.xlu2 %v815_v53  ;;  %843 = vadd.xlane.f32.xlu1 %v801_v1  ;;  %v2254_v53 = vpop.eup %1778  ;;  %1786 = vrsqrt.f32 %v2271_v52 }
  0xa0   : > { %869 = vadd.xlane.f32.xlu0 %v814_v30  ;;  %v511_v30 = vmul.f32 %v2232_v43, %v510_v62  ;;  %v480_v44 = vmul.f32 %v2254_v53, %v2212_v58  ;;  %v2273_v28 = vpop.eup %1780  ;;  %v492_v62 = vmul.f32 0.5, %v491_v59  ;;  %vm486_vm13 = vweird.f32 %v2254_v53 }
  0xa1   : > { %v520_v37 = vmul.f32 %v2273_v28, %v2225_v32  ;;  %vm526_vm12 = vweird.f32 %v2273_v28  ;;  %vm2410_vm2 = vmor %vm485_vm8, %vm486_vm13 }
  0xa2   : > { %v405_v1 = vpop.xlane.xlu2 %404  ;;  %v403_v31 = vpop.xlane.xlu1 %402  ;;  %v512_v15 = vmul.f32 0.5, %v511_v30  ;;  %v481_v27 = vmul.f32 %v2254_v53, %v480_v44  ;;  %v493_v6 = vsub.f32 1.5, %v492_v62  ;;  %v502_v44 = vmul.f32 0.5, %v501_v29  ;;  %vm2449_vm7 = vmor %vm525_vm11, %vm526_vm12 }
  0xa3   : > { %v401_v51 = vpop.xlane.xlu0 %400  ;;  %v2275_v42 = vadd.f32 1e-10, %v403_v31  ;;  %v2286_v31 = vpop.eup %1782  ;;  %v2288_v59 = vadd.f32 1e-10, %v405_v1  ;;  %v803_v1 = vmul.f32 %v2279_v36, %v2279_v36 }
  0xa4   : > { %v2277_v38 = vadd.f32 1e-10, %v401_v51  ;;  %v513_v30 = vsub.f32 1.5, %v512_v15  ;;  %v482_v63 = vmul.f32 0.5, %v481_v27  ;;  %v494_v36 = vmul.f32 %v2216_v2, %v493_v6 }
  0xa5   : > { %1788 = vrsqrt.f32 %v2275_v42  ;;  %vm556_vm3 = vweird.f32 %v2286_v31  ;;  %vm575_vm6 = vweird.f32 %v2275_v42  ;;  %vm585_vm13 = vweird.f32 %v2288_v59 }
  0xa6   : > { %1790 = vrsqrt.f32 %v2277_v38  ;;  %v483_v0 = vsub.f32 1.5, %v482_v63 }
  0xa7   : > { %873 = vadd.xlane.f32.xlu2 %v816_v13  ;;  %845 = vadd.xlane.f32.xlu1 %v802_v35  ;;  %v2291_v13 = vpop.eup %1784  ;;  %v473_v35 = vsub.f32 1.5, %v472_v50  ;;  %v550_v50 = vmul.f32 %v2286_v31, %v2246_v20  ;;  %1792 = vrsqrt.f32 %v2288_v59 }
  0xa8   : > { %438 = vadd.xlane.f32.xlu0 %v381_v7  ;;  %v521_v7 = vmul.f32 %v2273_v28, %v520_v37  ;;  %v540_v15 = vmul.f32 %v2291_v13, %v2252_v61  ;;  %v2307_v62 = vpop.eup %1786  ;;  %v2316_v37 = vmul.f32 %v2232_v43, %v513_v30  ;;  %v503_v30 = vsub.f32 1.5, %v502_v44 }
  0xa9   : > { %v474_v22 = vmul.f32 %v2223_v57, %v473_v35  ;;  %v551_v14 = vmul.f32 %v2286_v31, %v550_v50  ;;  %v498_v50 = vsel %vm2328_vm9, %v2216_v2, %v494_v36  ;;  %vm546_vm4 = vweird.f32 %v2291_v13 }
  0xaa   : > { %v411_v51 = vpop.xlane.xlu2 %410  ;;  %v409_v60 = vpop.xlane.xlu1 %408  ;;  %v522_v35 = vmul.f32 0.5, %v521_v7  ;;  %v530_v7 = vmul.f32 %v2307_v62, %v2271_v52  ;;  %vm536_vm8 = vweird.f32 %v2307_v62  ;;  %vm565_vm9 = vweird.f32 %v2277_v38  ;;  %vm2494_vm11 = vmor %vm545_vm1, %vm546_vm4 }
  0xab   : > { %v407_v46 = vpop.xlane.xlu0 %406  ;;  %v2313_v27 = vpop.eup %1788  ;;  %v2320_v29 = vadd.f32 1e-10, %v411_v51  ;;  %v2332_v54 = vadd.f32 1e-10, %v409_v60  ;;  %v478_v55 = vsel %vm2336_vm10, %v2223_v57, %v474_v22  ;;  %v504_v51 = vmul.f32 %v2250_v16, %v503_v30  ;;  %vm2480_vm10 = vmor %vm555_vm15, %vm556_vm3 }
  0xac   : > { %v2322_v23 = vpop.eup %1790  ;;  %v2346_v63 = vadd.f32 1e-10, %v407_v46  ;;  %v570_v46 = vmul.f32 %v2313_v27, %v2275_v42  ;;  %v523_v12 = vsub.f32 1.5, %v522_v35  ;;  %v484_v22 = vmul.f32 %v2254_v53, %v483_v0  ;;  %vm2527_vm1 = vmor %vm535_vm5, %vm536_vm8 }
  0xad   : > { %3812 = vst [vmem:[#allocation42_spill] sm:$0xff] %v2320_v29  ;;  %v560_v56 = vmul.f32 %v2322_v23, %v2277_v38  ;;  %1794 = vrsqrt.f32 %v2320_v29  ;;  %v552_v2 = vmul.f32 0.5, %v551_v14  ;;  %v531_v6 = vmul.f32 %v2307_v62, %v530_v7 }
  0xae   : > { %1796 = vrsqrt.f32 %v2332_v54  ;;  %v2385_v41 = vmul.f32 %v1966_v5, %v478_v55  ;;  %v518_v35 = vsel %vm2373_vm14, %v2232_v43, %v2316_v37  ;;  %v571_v14 = vmul.f32 %v2313_v27, %v570_v46 }
  0xaf   : > { %1798 = vrsqrt.f32 %v2346_v63  ;;  %v2403_v5 = vmul.f32 %v1964_v4, %v498_v50  ;;  %v524_v55 = vmul.f32 %v2273_v28, %v523_v12  ;;  %v553_v45 = vsub.f32 1.5, %v552_v2 }
  0xb0   : > { %847 = vadd.xlane.f32.xlu0 %v803_v1  ;;  %v541_v1 = vmul.f32 %v2291_v13, %v540_v15  ;;  %v2357_v15 = vpop.eup %1792  ;;  %v532_v37 = vmul.f32 0.5, %v531_v6  ;;  %v488_v58 = vsel %vm2410_vm2, %v2254_v53, %v484_v22  ;;  %vm576_vm12 = vweird.f32 %v2313_v27 }
  0xb1   : > { %v580_v0 = vmul.f32 %v2357_v15, %v2288_v59  ;;  %3821 = vst [vmem:[#allocation43_spill] sm:$0xff] %v2403_v5  ;;  %v554_v30 = vmul.f32 %v2286_v31, %v553_v45  ;;  %vm586_vm14 = vweird.f32 %v2357_v15  ;;  %vm566_vm15 = vweird.f32 %v2322_v23 }
  0xb2   : > { %v417_v60 = vpop.xlane.xlu2 %416  ;;  %v415_v44 = vpop.xlane.xlu1 %414  ;;  %v542_v57 = vmul.f32 0.5, %v541_v1  ;;  %v561_v1 = vmul.f32 %v2322_v23, %v560_v56  ;;  %v508_v56 = vsel %vm2395_vm0, %v2250_v16, %v504_v51  ;;  %v2432_v51 = vmul.f32 %v1962_v3, %v518_v35  ;;  %vm2556_vm0 = vmor %vm575_vm6, %vm576_vm12 }
  0xb3   : > { %v2349_v21 = vadd.f32 1e-10, %v417_v60  ;;  %v413_v8 = vpop.xlane.xlu0 %412  ;;  %v2364_v60 = vadd.f32 1e-10, %v415_v44  ;;  %v2419_v4 = vpop.eup %1794  ;;  %v581_v46 = vmul.f32 %v2357_v15, %v580_v0  ;;  %v2441_v6 = vmul.f32 %v1976_v10, %v508_v56  ;;  %vm2568_vm3 = vmor %vm565_vm9, %vm566_vm15 }
  0xb4   : > { %v543_v12 = vsub.f32 1.5, %v542_v57  ;;  %v2424_v50 = vpop.eup %1796  ;;  %v2427_v36 = vadd.f32 1e-10, %v413_v8  ;;  %3825 = vst [vmem:[#allocation45_spill] sm:$0xff] %v2432_v51  ;;  %v572_v57 = vmul.f32 0.5, %v571_v14  ;;  %v562_v53 = vmul.f32 0.5, %v561_v1 }
  0xb5   : > { %1800 = vrsqrt.f32 %v2349_v21  ;;  %v2434_v2 = vpop.eup %1798  ;;  %v610_v0 = vmul.f32 %v2419_v4, %v2320_v29  ;;  %v2458_v10 = vmul.f32 %v1978_v11, %v488_v58  ;;  %v533_v14 = vsub.f32 1.5, %v532_v37 }
  0xb6   : > { %1802 = vrsqrt.f32 %v2364_v60  ;;  %3824 = vst [vmem:[#allocation44_spill] sm:$0xff] %v2427_v36  ;;  %v544_v32 = vmul.f32 %v2291_v13, %v543_v12  ;;  %v528_v1 = vsel %vm2449_vm7, %v2273_v28, %v524_v55  ;;  %v582_v43 = vmul.f32 0.5, %v581_v46 }
  0xb7   : > { %v600_v56 = vmul.f32 %v2424_v50, %v2332_v54  ;;  %v590_v45 = vmul.f32 %v2434_v2, %v2346_v63  ;;  %v611_v55 = vmul.f32 %v2419_v4, %v610_v0  ;;  %v534_v58 = vmul.f32 %v2307_v62, %v533_v14 }
  0xb8   : > { %v583_v61 = vsub.f32 1.5, %v582_v43  ;;  %v548_v14 = vsel %vm2494_vm11, %v2291_v13, %v544_v32  ;;  %vm605_vm2 = vweird.f32 %v2332_v54  ;;  %vm645_vm4 = vweird.f32 %v2349_v21 }
  0xb9   : > { %v601_v0 = vmul.f32 %v2424_v50, %v600_v56  ;;  %v612_v43 = vmul.f32 0.5, %v611_v55  ;;  %v538_v52 = vsel %vm2527_vm1, %v2307_v62, %v534_v58  ;;  %v2542_v20 = vmul.f32 %v1990_v18, %v548_v14 }
  0xba   : > { %v423_v7 = vpop.xlane.xlu2 %422  ;;  %v421_v44 = vpop.xlane.xlu1 %420  ;;  %v2550_v55 = vmul.f32 %v2357_v15, %v583_v61  ;;  %vm595_vm5 = vweird.f32 %v2346_v63  ;;  %vm635_vm6 = vweird.f32 %v2364_v60  ;;  %vm606_vm7 = vweird.f32 %v2424_v50 }
  0xbb   : > { %v2429_v5 = vadd.f32 1e-10, %v423_v7  ;;  %v419_v16 = vpop.xlane.xlu0 %418  ;;  %v2438_v22 = vadd.f32 1e-10, %v421_v44  ;;  %v2443_v8 = vpop.eup %1800  ;;  %v573_v7 = vsub.f32 1.5, %v572_v57  ;;  %v563_v44 = vsub.f32 1.5, %v562_v53 }
  0xbc   : > { %v2460_v35 = vpop.eup %1802  ;;  %v2471_v11 = vadd.f32 1e-10, %v419_v16  ;;  %v640_v12 = vmul.f32 %v2443_v8, %v2349_v21  ;;  %v2501_v57 = vmul.f32 %v1974_v9, %v528_v1  ;;  %v558_v53 = vsel %vm2480_vm10, %v2286_v31, %v554_v30  ;;  %vm2618_vm10 = vmor %vm585_vm13, %vm586_vm14 }
  0xbd   : > { %1804 = vrsqrt.f32 %v2429_v5  ;;  %v630_v37 = vmul.f32 %v2460_v35, %v2364_v60  ;;  %v574_v9 = vmul.f32 %v2313_v27, %v573_v7  ;;  %v591_v31 = vmul.f32 %v2434_v2, %v590_v45  ;;  %vm2648_vm13 = vmor %vm605_vm2, %vm606_vm7 }
  0xbe   : > { %1806 = vrsqrt.f32 %v2427_v36  ;;  %v564_v32 = vmul.f32 %v2322_v23, %v563_v44  ;;  %v641_v56 = vmul.f32 %v2443_v8, %v640_v12  ;;  %v602_v62 = vmul.f32 0.5, %v601_v0 }
  0xbf   : > { %1808 = vrsqrt.f32 %v2438_v22  ;;  %v631_v7 = vmul.f32 %v2460_v35, %v630_v37  ;;  %v592_v42 = vmul.f32 0.5, %v591_v31  ;;  %v578_v58 = vsel %vm2556_vm0, %v2313_v27, %v574_v9 }
  0xc0   : > { %1810 = vrsqrt.f32 %v2471_v11  ;;  %v568_v38 = vsel %vm2568_vm3, %v2322_v23, %v564_v32  ;;  %v603_v31 = vsub.f32 1.5, %v602_v62  ;;  %vm596_vm8 = vweird.f32 %v2434_v2 }
  0xc1   : > { %v2593_v13 = vmul.f32 %v1992_v19, %v538_v52  ;;  %v593_v32 = vsub.f32 1.5, %v592_v42  ;;  %vm646_vm9 = vweird.f32 %v2443_v8  ;;  %vm636_vm11 = vweird.f32 %v2460_v35  ;;  %vm2657_vm14 = vmor %vm595_vm5, %vm596_vm8 }
  0xc2   : > { %v429_v46 = vpop.xlane.xlu2 %428  ;;  %v427_v16 = vpop.xlane.xlu1 %426  ;;  %vm675_vm12 = vweird.f32 %v2429_v5  ;;  %v588_v59 = vsel %vm2618_vm10, %v2357_v15, %v2550_v55  ;;  %vm665_vm15 = vweird.f32 %v2438_v22  ;;  %vm2673_vm1 = vmor %vm645_vm4, %vm646_vm9  ;;  %vm655_vm0 = vweird.f32 %v2471_v11 }
  0xc3   : > { %v2506_v3 = vpop.eup %1804  ;;  %v2509_v29 = vadd.f32 1e-10, %v429_v46  ;;  %v425_v51 = vpop.xlane.xlu0 %424  ;;  %v2519_v30 = vadd.f32 1e-10, %v427_v16  ;;  %v2545_v46 = vmul.f32 %v1988_v17, %v558_v53  ;;  %v642_v16 = vmul.f32 0.5, %v641_v56  ;;  %vm2689_vm2 = vmor %vm635_vm6, %vm636_vm11 }
  0xc4   : > { %v2521_v1 = vpop.eup %1806  ;;  %v670_v28 = vmul.f32 %v2506_v3, %v2429_v5  ;;  %v2562_v17 = vadd.f32 1e-10, %v425_v51  ;;  %v613_v51 = vsub.f32 1.5, %v612_v43  ;;  %v632_v53 = vmul.f32 0.5, %v631_v7 }
  0xc5   : > { %v2534_v45 = vpop.eup %1808  ;;  %1812 = vrsqrt.f32 %v2509_v29  ;;  %v620_v37 = vmul.f32 %v2521_v1, %v2427_v36  ;;  %v2597_v56 = vmul.f32 %v2005_v26, %v568_v38  ;;  %v2600_v7 = vmul.f32 %v2003_v25, %v578_v58 }
  0xc6   : > { %v2547_v44 = vpop.eup %1810  ;;  %1814 = vrsqrt.f32 %v2519_v30  ;;  %v671_v61 = vmul.f32 %v2506_v3, %v670_v28  ;;  %v660_v0 = vmul.f32 %v2534_v45, %v2438_v22  ;;  %v2605_v12 = vmul.f32 %v2419_v4, %v613_v51 }
  0xc7   : > { %v650_v27 = vmul.f32 %v2547_v44, %v2471_v11  ;;  %1816 = vrsqrt.f32 %v2562_v17  ;;  %v621_v43 = vmul.f32 %v2521_v1, %v620_v37  ;;  %v643_v62 = vsub.f32 1.5, %v642_v16 }
  0xc8   : > { %3838 = vst [vmem:[#allocation46_spill] sm:$0xff] %v2605_v12  ;;  %v633_v18 = vsub.f32 1.5, %v632_v53  ;;  %v672_v52 = vmul.f32 0.5, %v671_v61  ;;  %v661_v42 = vmul.f32 %v2534_v45, %v660_v0  ;;  %v2623_v58 = vmul.f32 %v2424_v50, %v603_v31 }
  0xc9   : > { %v651_v26 = vmul.f32 %v2547_v44, %v650_v27  ;;  %v594_v53 = vmul.f32 %v2434_v2, %v593_v32  ;;  %v622_v38 = vmul.f32 0.5, %v621_v43  ;;  %v644_v0 = vmul.f32 %v2443_v8, %v643_v62 }
  0xca   : > { %v435_v14 = vpop.xlane.xlu2 %434  ;;  %v433_v9 = vpop.xlane.xlu1 %432  ;;  %v634_v27 = vmul.f32 %v2460_v35, %v633_v18  ;;  %v662_v15 = vmul.f32 0.5, %v661_v42  ;;  %vm676_vm3 = vweird.f32 %v2506_v3  ;;  %vm666_vm4 = vweird.f32 %v2534_v45 }
  0xcb   : > { %v431_v23 = vpop.xlane.xlu0 %430  ;;  %v2602_v28 = vpop.eup %1812  ;;  %v2612_v37 = vadd.f32 1e-10, %v435_v14  ;;  %v2627_v51 = vadd.f32 1e-10, %v433_v9  ;;  %v652_v55 = vmul.f32 0.5, %v651_v26  ;;  %v623_v26 = vsub.f32 1.5, %v622_v38  ;;  %vm2737_vm7 = vmor %vm675_vm12, %vm676_vm3 }
  0xcc   : > { %v2608_v19 = vpop.eup %1814  ;;  %v2632_v61 = vadd.f32 1e-10, %v431_v23  ;;  %v700_v14 = vmul.f32 %v2602_v28, %v2509_v29  ;;  %v673_v23 = vsub.f32 1.5, %v672_v52  ;;  %v598_v25 = vsel %vm2657_vm14, %v2434_v2, %v594_v53  ;;  %vm2781_vm11 = vmor %vm665_vm15, %vm666_vm4 }
  0xcd   : > { %v2629_v16 = vpop.eup %1816  ;;  %v690_v9 = vmul.f32 %v2608_v19, %v2519_v30  ;;  %1818 = vrsqrt.f32 %v2612_v37  ;;  %v663_v2 = vsub.f32 1.5, %v662_v15  ;;  %v653_v53 = vsub.f32 1.5, %v652_v55 }
  0xce   : > { %v680_v54 = vmul.f32 %v2629_v16, %v2562_v17  ;;  %1820 = vrsqrt.f32 %v2627_v51  ;;  %v701_v38 = vmul.f32 %v2602_v28, %v700_v14  ;;  %v638_v60 = vsel %vm2689_vm2, %v2460_v35, %v634_v27 }
  0xcf   : > { %1822 = vrsqrt.f32 %v2632_v61  ;;  %v2707_v14 = vmul.f32 %v2506_v3, %v673_v23  ;;  %vm656_vm5 = vweird.f32 %v2547_v44  ;;  %vm695_vm6 = vweird.f32 %v2519_v30 }
  0xd0   : > { %v2726_v31 = vmul.f32 %v2030_v40, %v638_v60  ;;  %v664_v55 = vmul.f32 %v2534_v45, %v663_v2  ;;  %v654_v62 = vmul.f32 %v2547_v44, %v653_v53  ;;  %vm696_vm8 = vweird.f32 %v2608_v19  ;;  %vm2770_vm10 = vmor %vm655_vm0, %vm656_vm5 }
  0xd1   : > { %vm686_vm9 = vweird.f32 %v2629_v16  ;;  %vm685_vm12 = vweird.f32 %v2562_v17  ;;  %vm705_vm14 = vweird.f32 %v2509_v29  ;;  %vm706_vm15 = vweird.f32 %v2602_v28  ;;  %v3868_v17 = vld [vmem:[#allocation12_spill] sm:$0xff] }
  0xd2   : > { %v820_v32 = vpop.xlane.xlu2 %819  ;;  %v818_v43 = vpop.xlane.xlu1 %817  ;;  %vm2858_vm3 = vmor %vm685_vm12, %vm686_vm9  ;;  %vm715_vm4 = vweird.f32 %v2632_v61 }
  0xd3   : > { %v2665_v18 = vadd.f32 1e-10, %v820_v32  ;;  %v2667_v52 = vadd.f32 1e-10, %v818_v43  ;;  %v437_v42 = vpop.xlane.xlu0 %436  ;;  %v2683_v32 = vmul.f32 %v2001_v24, %v588_v59  ;;  %v691_v43 = vmul.f32 %v2608_v19, %v690_v9 }
  0xd4   : > { %v608_v24 = vsel %vm2648_vm13, %v2424_v50, %v2623_v58  ;;  %v648_v59 = vsel %vm2673_vm1, %v2443_v8, %v644_v0  ;;  %v681_v9 = vmul.f32 %v2629_v16, %v680_v54  ;;  %v2712_v50 = vpop.eup %1818  ;;  %v2715_v58 = vmul.f32 %v2521_v1, %v623_v26  ;;  %vm2831_vm1 = vmor %vm695_vm6, %vm696_vm8 }
  0xd5   : > { %3847 = vst [vmem:[#allocation47_spill] sm:$0xff] %v2683_v32  ;;  %1824 = vrsqrt.f32 %v2665_v18  ;;  %v2720_v8 = vmul.f32 %v2019_v34, %v598_v25  ;;  %v2722_v35 = vpop.eup %1820  ;;  %v702_v0 = vmul.f32 0.5, %v701_v38  ;;  %v692_v27 = vmul.f32 0.5, %v691_v43 }
  0xd6   : > { %1826 = vrsqrt.f32 %v2667_v52  ;;  %3850 = vst [vmem:[#allocation48_spill] sm:$0xff] %v2715_v58  ;;  %v2729_v23 = vmul.f32 %v2028_v39, %v648_v59  ;;  %v2731_v15 = vpop.eup %1822  ;;  %v2745_v39 = vmul.f32 %v2017_v33, %v608_v24  ;;  %v682_v26 = vmul.f32 0.5, %v681_v9 }
  0xd7   : > { %3851 = vst [vmem:[#allocation49_spill] sm:$0xff] %v2720_v8  ;;  %v730_v43 = vmul.f32 %v2712_v50, %v2612_v37  ;;  %v2762_v24 = vadd.f32 1e-10, %v437_v42  ;;  %v703_v60 = vsub.f32 1.5, %v702_v0  ;;  %v693_v59 = vsub.f32 1.5, %v692_v27 }
  0xd8   : > { %3854 = vst [vmem:[#allocation50_spill] sm:$0xff] %v2745_v39  ;;  %v710_v9 = vmul.f32 %v2731_v15, %v2632_v61  ;;  %v720_v11 = vmul.f32 %v2722_v35, %v2627_v51  ;;  %v668_v38 = vsel %vm2781_vm11, %v2534_v45, %v664_v55  ;;  %vm920_vm13 = vweird.f32 %v2665_v18 }
  0xd9   : > { %v731_v58 = vmul.f32 %v2712_v50, %v730_v43  ;;  %v2804_v39 = vmul.f32 %v2608_v19, %v693_v59  ;;  %v2816_v53 = vmul.f32 %v2044_v48, %v668_v38  ;;  %vm910_vm0 = vweird.f32 %v2667_v52 }
  0xda   : > { %v850_v40 = vpop.xlane.xlu2 %849  ;;  %v824_v54 = vpop.xlane.xlu1 %823  ;;  %v721_v45 = vmul.f32 %v2722_v35, %v720_v11  ;;  %vm725_vm8 = vweird.f32 %v2627_v51  ;;  %vm726_vm9 = vweird.f32 %v2722_v35 }
  0xdb   : > { %v2747_v63 = vpop.eup %1824  ;;  %v2749_v25 = vadd.f32 1e-10, %v850_v40  ;;  %v2751_v5 = vadd.f32 1e-10, %v824_v54  ;;  %v822_v21 = vpop.xlane.xlu0 %821  ;;  %v658_v40 = vsel %vm2770_vm10, %v2547_v44, %v654_v62  ;;  %v683_v54 = vsub.f32 1.5, %v682_v26 }
  0xdc   : > { %v915_v33 = vmul.f32 %v2747_v63, %v2665_v18  ;;  %v2764_v2 = vpop.eup %1826  ;;  %v2795_v22 = vadd.f32 1e-10, %v822_v21  ;;  %v711_v44 = vmul.f32 %v2731_v15, %v710_v9  ;;  %v2809_v62 = vmul.f32 %v2046_v49, %v658_v40 }
  0xdd   : > { %1828 = vrsqrt.f32 %v2749_v25  ;;  %v905_v27 = vmul.f32 %v2764_v2, %v2667_v52  ;;  %v2812_v26 = vmul.f32 %v2602_v28, %v703_v60  ;;  %v732_v38 = vmul.f32 0.5, %v731_v58 }
  0xde   : > { %v916_v0 = vmul.f32 %v2747_v63, %v915_v33  ;;  %1830 = vrsqrt.f32 %v2751_v5  ;;  %vm911_vm2 = vweird.f32 %v2764_v2  ;;  %v698_v30 = vsel %vm2831_vm1, %v2608_v19, %v2804_v39 }
  0xdf   : > { %v906_v33 = vmul.f32 %v2764_v2, %v905_v27  ;;  %1832 = vrsqrt.f32 %v2762_v24  ;;  %v712_v27 = vmul.f32 0.5, %v711_v44  ;;  %vm921_vm5 = vweird.f32 %v2747_v63  ;;  %vm2872_vm6 = vmor %vm910_vm0, %vm911_vm2 }
  0xe0   : > { %v917_v12 = vmul.f32 0.5, %v916_v0  ;;  %1834 = vrsqrt.f32 %v2795_v22  ;;  %vm2893_vm10 = vmor %vm920_vm13, %vm921_vm5  ;;  %vm1070_vm11 = vweird.f32 %v2749_v25  ;;  %vm940_vm12 = vweird.f32 %v2751_v5 }
  0xe1   : > { %v907_v55 = vmul.f32 0.5, %v906_v33  ;;  %vm2943_vm13 = vmor %vm705_vm14, %vm706_vm15  ;;  %vm930_vm15 = vweird.f32 %v2795_v22 }
  0xe2   : > { %v854_v21 = vpop.xlane.xlu2 %853  ;;  %v826_v43 = vpop.xlane.xlu1 %825  ;;  %v918_v42 = vsub.f32 1.5, %v917_v12  ;;  %v684_v12 = vmul.f32 %v2629_v16, %v683_v54  ;;  %v722_v54 = vmul.f32 0.5, %v721_v45  ;;  %v733_v45 = vsub.f32 1.5, %v732_v38  ;;  %vm2991_vm0 = vmor %vm725_vm8, %vm726_vm9 }
  0xe3   : > { %v2818_v59 = vpop.eup %1828  ;;  %v2821_v9 = vadd.f32 1e-10, %v854_v21  ;;  %v2823_v49 = vadd.f32 1e-10, %v826_v43  ;;  %v852_v0 = vpop.xlane.xlu0 %851  ;;  %v908_v60 = vsub.f32 1.5, %v907_v55 }
  0xe4   : > { %v2837_v11 = vpop.eup %1830  ;;  %v1065_v40 = vmul.f32 %v2818_v59, %v2749_v25  ;;  %v919_v19 = vmul.f32 %v2747_v63, %v918_v42  ;;  %v2866_v39 = vadd.f32 1e-10, %v852_v0  ;;  %v688_v48 = vsel %vm2858_vm3, %v2629_v16, %v684_v12 }
  0xe5   : > { %v2846_v33 = vpop.eup %1832  ;;  %v909_v58 = vmul.f32 %v2764_v2, %v908_v60  ;;  %v935_v55 = vmul.f32 %v2837_v11, %v2751_v5  ;;  %1836 = vrsqrt.f32 %v2821_v9  ;;  %v713_v0 = vsub.f32 1.5, %v712_v27 }
  0xe6   : > { %v2852_v44 = vpop.eup %1834  ;;  %1838 = vrsqrt.f32 %v2823_v49  ;;  %v1066_v52 = vmul.f32 %v2818_v59, %v1065_v40  ;;  %v723_v60 = vsub.f32 1.5, %v722_v54  ;;  %v740_v12 = vmul.f32 %v2846_v33, %v2762_v24 }
  0xe7   : > { %v936_v43 = vmul.f32 %v2837_v11, %v935_v55  ;;  %v925_v42 = vmul.f32 %v2852_v44, %v2795_v22  ;;  %1840 = vrsqrt.f32 %v2866_v39  ;;  %v913_v38 = vsel %vm2872_vm6, %v2764_v2, %v909_v58 }
  0xe8   : > { %v3867_v2 = vsel %vm2737_vm7, %v2506_v3, %v2707_v14  ;;  %v1194_v32 = vmul.f32 %v3868_v17, %v913_v38  ;;  %v2917_v34 = vmul.f32 %v2712_v50, %v733_v45  ;;  %vm716_vm7 = vweird.f32 %v2731_v15  ;;  %v3871_v14 = vld [vmem:[#allocation6_spill] sm:$0xff] }
  0xe9   : > { %v937_v27 = vmul.f32 0.5, %v936_v43  ;;  %v2905_v54 = vmul.f32 %v2042_v47, %v3867_v2  ;;  %v926_v18 = vmul.f32 %v2852_v44, %v925_v42  ;;  %v923_v43 = vsel %vm2893_vm10, %v2747_v63, %v919_v19  ;;  %v3870_v47 = vld [vmem:[#allocation7_spill] sm:$0xff]  ;;  %vm2959_vm14 = vmor %vm715_vm4, %vm716_vm7 }
  0xea   : > { %v830_v40 = vpop.xlane.xlu2 %829  ;;  %v856_v55 = vpop.xlane.xlu1 %855  ;;  %3869 = vst [vmem:[#allocation12_spill] sm:$0xff] %v2917_v34  ;;  %v2921_v3 = vmul.f32 %v3870_v47, %v688_v48  ;;  %v2924_v42 = vmul.f32 %v3871_v14, %v698_v30  ;;  %v714_v38 = vmul.f32 %v2731_v15, %v713_v0  ;;  %v1067_v2 = vmul.f32 0.5, %v1066_v52  ;;  %v3872_v48 = vld [vmem:[#allocation11_spill] sm:$0xff]  ;;  %v3877_v34 = vld [vmem:[#allocation5_spill] sm:$0xff] }
  0xeb   : > { %v2908_v58 = vadd.f32 1e-10, %v830_v40  ;;  %v828_v21 = vpop.xlane.xlu0 %827  ;;  %v2914_v36 = vpop.eup %1836  ;;  %v2930_v63 = vadd.f32 1e-10, %v856_v55  ;;  %v2933_v19 = vmul.f32 %v2722_v35, %v723_v60  ;;  %v938_v45 = vsub.f32 1.5, %v937_v27 }
  0xec   : > { %v2926_v40 = vpop.eup %1838  ;;  %v1195_v16 = vmul.f32 %v3872_v48, %v923_v43  ;;  %v741_v0 = vmul.f32 %v2846_v33, %v740_v12  ;;  %v927_v52 = vmul.f32 0.5, %v926_v18  ;;  %v1223_v60 = vsub.f32 %v2385_v41, %v1194_v32  ;;  %v2953_v27 = vld [vmem:[%s3728_s2] ss:$0 sm:$0xff] }
  0xed   : > { %v2937_v17 = vpop.eup %1840  ;;  %1842 = vrsqrt.f32 %v2908_v58  ;;  %v1085_v12 = vmul.f32 %v2914_v36, %v2821_v9  ;;  %v945_v55 = vmul.f32 %v2926_v40, %v2823_v49  ;;  %v2967_v41 = vadd.f32 1e-10, %v828_v21 }
  0xee   : > { %v708_v32 = vsel %vm2943_vm13, %v2602_v28, %v2812_v26  ;;  %v1068_v18 = vsub.f32 1.5, %v1067_v2  ;;  %1844 = vrsqrt.f32 %v2930_v63  ;;  %v1252_v61 = vmul.f32 %v1223_v60, %v1223_v60 }
  0xef   : > { %v718_v43 = vsel %vm2959_vm14, %v2731_v15, %v714_v38  ;;  %v939_v47 = vmul.f32 %v2837_v11, %v938_v45  ;;  %vm941_vm1 = vweird.f32 %v2837_v11  ;;  %v1075_v21 = vmul.f32 %v2937_v17, %v2866_v39  ;;  %v3880_v45 = vld [vmem:[#allocation10_spill] sm:$0xff] }
  0xf0   : > { %v1224_v14 = vsub.f32 %v2458_v10, %v1195_v16  ;;  %v742_v2 = vmul.f32 0.5, %v741_v0  ;;  %v928_v48 = vsub.f32 1.5, %v927_v52  ;;  %v1285_v30 = vmul.f32 %v2953_v27, %v1252_v61  ;;  %vm3009_vm3 = vmor %vm940_vm12, %vm941_vm1 }
  0xf1   : > { %v2985_v8 = vmul.f32 %v3877_v34, %v708_v32  ;;  %v1086_v10 = vmul.f32 %v2914_v36, %v1085_v12  ;;  %v946_v38 = vmul.f32 %v2926_v40, %v945_v55  ;;  %1846 = vrsqrt.f32 %v2967_v41 }
  0xf2   : > { %v860_v28 = vpop.xlane.xlu2 %859  ;;  %v832_v26 = vpop.xlane.xlu1 %831  ;;  %v2999_v16 = vmul.f32 %v3880_v45, %v718_v43  ;;  %v1069_v34 = vmul.f32 %v2818_v59, %v1068_v18  ;;  %vm1071_vm2 = vweird.f32 %v2818_v59  ;;  %1314 = vadd.xlane.f32.xlu1 %v1285_v30  ;;  %v1253_v52 = vmul.f32 %v1224_v14, %v1224_v14 }
  0xf3   : > { %v858_v60 = vpop.xlane.xlu0 %857  ;;  %v3001_v0 = vpop.eup %1842  ;;  %v3013_v29 = vadd.f32 1e-10, %v860_v28  ;;  %v1076_v12 = vmul.f32 %v2937_v17, %v1075_v21  ;;  %v3016_v55 = vadd.f32 1e-10, %v832_v26  ;;  %v943_v32 = vsel %vm3009_vm3, %v2837_v11, %v939_v47  ;;  %vm3032_vm5 = vmor %vm1070_vm11, %vm1071_vm2  ;;  %v3885_v28 = vld [vmem:[#allocation15_spill] sm:$0xff] }
  0xf4   : > { %v728_v5 = vsel %vm2991_vm0, %v2722_v35, %v2933_v19  ;;  %v3025_v18 = vpop.eup %1844  ;;  %v743_v61 = vsub.f32 1.5, %v742_v2  ;;  %v929_v43 = vmul.f32 %v2852_v44, %v928_v48  ;;  %vm931_vm4 = vweird.f32 %v2852_v44 }
  0xf5   : > { %v1286_v21 = vmul.f32 %v2953_v27, %v1253_v52  ;;  %v1087_v11 = vmul.f32 0.5, %v1086_v10  ;;  %vm1090_vm6 = vweird.f32 %v2821_v9  ;;  %v947_v47 = vmul.f32 0.5, %v946_v38  ;;  %vm3051_vm9 = vmor %vm930_vm15, %vm931_vm4 }
  0xf6   : > { %v965_v35 = vmul.f32 %v3001_v0, %v2908_v58  ;;  %vm950_vm8 = vweird.f32 %v2823_v49  ;;  %1848 = vrsqrt.f32 %v3013_v29  ;;  %v3041_v19 = vadd.f32 1e-10, %v858_v60  ;;  %v3888_v60 = vld [vmem:[#allocation14_spill] sm:$0xff] }
  0xf7   : > { %1316 = vadd.xlane.f32.xlu2 %v1286_v21  ;;  %v1197_v25 = vmul.f32 %v3885_v28, %v943_v32  ;;  %v1073_v26 = vsel %vm3032_vm5, %v2818_v59, %v1069_v34  ;;  %v3047_v2 = vpop.eup %1846  ;;  %v1077_v30 = vmul.f32 0.5, %v1076_v12  ;;  %v1095_v15 = vmul.f32 %v3025_v18, %v2930_v63  ;;  %v3889_v21 = vld [vmem:[#allocation9_spill] sm:$0xff] }
  0xf8   : > { %1850 = vrsqrt.f32 %v3016_v55  ;;  %v1210_v10 = vmul.f32 %v3888_v60, %v1073_v26  ;;  %v3060_v38 = vmul.f32 %v2846_v33, %v743_v61  ;;  %v933_v22 = vsel %vm3051_vm9, %v2852_v44, %v929_v43  ;;  %v3891_v26 = vld [vmem:[#allocation43_spill] sm:$0xff] }
  0xf9   : > { %1852 = vrsqrt.f32 %v3041_v19  ;;  %v1226_v59 = vsub.f32 %v2441_v6, %v1197_v25  ;;  %v1088_v34 = vsub.f32 1.5, %v1087_v11  ;;  %v948_v51 = vsub.f32 1.5, %v947_v47  ;;  %v3890_v25 = vld [vmem:[#allocation16_spill] sm:$0xff] }
  0xfa   : > { %v836_v45 = vpop.xlane.xlu2 %835  ;;  %v966_v52 = vmul.f32 %v3001_v0, %v965_v35  ;;  %v862_v12 = vpop.xlane.xlu1 %861  ;;  %v3069_v14 = vmul.f32 %v3889_v21, %v728_v5  ;;  %vm1080_vm10 = vweird.f32 %v2866_v39  ;;  %v955_v61 = vmul.f32 %v3047_v2, %v2967_v41 }
  0xfb   : > { %v834_v32 = vpop.xlane.xlu0 %833  ;;  %v1255_v6 = vmul.f32 %v1226_v59, %v1226_v59  ;;  %v1239_v28 = vsub.f32 %v2726_v31, %v1210_v10  ;;  %v1196_v44 = vmul.f32 %v3890_v25, %v933_v22  ;;  %vm1091_vm7 = vweird.f32 %v2914_v36 }
  0xfc   : > { %vm951_vm11 = vweird.f32 %v2926_v40  ;;  %v1078_v43 = vsub.f32 1.5, %v1077_v30  ;;  %v1096_v11 = vmul.f32 %v3025_v18, %v1095_v15  ;;  %v3079_v47 = vpop.eup %1848  ;;  %vm1081_vm12 = vweird.f32 %v2937_v17  ;;  %vm3105_vm13 = vmor %vm1090_vm6, %vm1091_vm7 }
  0xfd   : > { %v1288_v5 = vmul.f32 %v2953_v27, %v1255_v6  ;;  %v1268_v35 = vmul.f32 %v1239_v28, %v1239_v28  ;;  %v1225_v48 = vsub.f32 %v3891_v26, %v1196_v44  ;;  %v1089_v31 = vmul.f32 %v2914_v36, %v1088_v34  ;;  %vm952_vm15 = vmor %vm950_vm8, %vm951_vm11 }
  0xfe   : > { %v3084_v60 = vpop.eup %1850  ;;  %v949_v10 = vmul.f32 %v2926_v40, %v948_v51  ;;  %v967_v59 = vmul.f32 0.5, %v966_v52  ;;  %v3088_v22 = vadd.f32 1e-10, %v836_v45  ;;  %v956_v15 = vmul.f32 %v3047_v2, %v955_v61  ;;  %vm1082_vm3 = vmor %vm1080_vm10, %vm1081_vm12  ;;  %v3897_v45 = vld [vmem:[#allocation19_spill] sm:$0xff] }
  0xff   : > { %v3090_v30 = vpop.eup %1852  ;;  %1320 = vadd.xlane.f32.xlu1 %v1288_v5  ;;  %v1301_v21 = vmul.f32 %v2953_v27, %v1268_v35  ;;  %v1254_v6 = vmul.f32 %v1225_v48, %v1225_v48  ;;  %v3094_v28 = vadd.f32 1e-10, %v862_v12  ;;  %v1079_v25 = vmul.f32 %v2937_v17, %v1078_v43  ;;  %v3894_v35 = vld [vmem:[#allocation18_spill] sm:$0xff]  ;;  %v3895_v48 = vld [vmem:[#allocation17_spill] sm:$0xff] }
 0x100   : > { %v1097_v44 = vmul.f32 0.5, %v1096_v11  ;;  %v1115_v34 = vmul.f32 %v3079_v47, %v3013_v29  ;;  %v3099_v51 = vadd.f32 1e-10, %v834_v32  ;;  %vm970_vm14 = vweird.f32 %v2908_v58 }
 0x101   : > { %v975_v52 = vmul.f32 %v3084_v60, %v3016_v55  ;;  %v1105_v12 = vmul.f32 %v3090_v30, %v3041_v19  ;;  %1346 = vadd.xlane.f32.xlu2 %v1301_v21  ;;  %v1287_v32 = vmul.f32 %v2953_v27, %v1254_v6  ;;  %1854 = vrsqrt.f32 %v3088_v22 }
 0x102   : > { %vm971_vm1 = vweird.f32 %v3001_v0  ;;  %vm1100_vm0 = vweird.f32 %v2930_v63  ;;  %vm1101_vm2 = vweird.f32 %v3025_v18  ;;  %1856 = vrsqrt.f32 %v3094_v28  ;;  %v866_v5 = vpop.xlane.xlu2 %865 }
 0x103   : > { %v968_v9 = vsub.f32 1.5, %v967_v59  ;;  %v957_v61 = vmul.f32 0.5, %v956_v15  ;;  %1318 = vadd.xlane.f32.xlu0 %v1287_v32  ;;  %v953_v43 = vsel %vm952_vm15, %v2926_v40, %v949_v10  ;;  %v1093_v11 = vsel %vm3105_vm13, %v2914_v36, %v1089_v31  ;;  %v838_v15 = vpop.xlane.xlu1 %837  ;;  %v864_v21 = vpop.xlane.xlu0 %863  ;;  %v3896_v10 = vld [vmem:[#allocation45_spill] sm:$0xff]  ;;  %vm1102_vm6 = vmor %vm1100_vm0, %vm1101_vm2 }
 0x104   : > { %v1098_v49 = vsub.f32 1.5, %v1097_v44  ;;  %1858 = vrsqrt.f32 %v3099_v51  ;;  %v1198_v26 = vmul.f32 %v3894_v35, %v953_v43  ;;  %v1212_v59 = vmul.f32 %v3895_v48, %v1093_v11  ;;  %vm3176_vm8 = vmor %vm970_vm14, %vm971_vm1 }
 0x105   : > { %vm960_vm4 = vweird.f32 %v2967_v41  ;;  %v1116_v40 = vmul.f32 %v3079_v47, %v1115_v34  ;;  %v976_v36 = vmul.f32 %v3084_v60, %v975_v52  ;;  %v1106_v31 = vmul.f32 %v3090_v30, %v1105_v12 }
 0x106   : > { %v1083_v39 = vsel %vm1082_vm3, %v2937_v17, %v1079_v25  ;;  %v1227_v6 = vsub.f32 %v3896_v10, %v1198_v26  ;;  %v1241_v44 = vsub.f32 %v2809_v62, %v1212_v59  ;;  %v3143_v43 = vadd.f32 1e-10, %v866_v5 }
 0x107   : > { %v1211_v32 = vmul.f32 %v3897_v45, %v1083_v39  ;;  %v3145_v11 = vpop.eup %1854  ;;  %v969_v35 = vmul.f32 %v3001_v0, %v968_v9  ;;  %v958_v48 = vsub.f32 1.5, %v957_v61  ;;  %vm961_vm5 = vweird.f32 %v3047_v2 }
 0x108   : > { %v3149_v34 = vadd.f32 1e-10, %v838_v15  ;;  %v3151_v52 = vpop.eup %1856  ;;  %v1099_v17 = vmul.f32 %v3025_v18, %v1098_v49  ;;  %v995_v62 = vmul.f32 %v3145_v11, %v3088_v22  ;;  %v1256_v25 = vmul.f32 %v1227_v6, %v1227_v6  ;;  %v3900_v6 = vld [vmem:[#allocation21_spill] sm:$0xff]  ;;  %vm3196_vm7 = vmor %vm960_vm4, %vm961_vm5 }
 0x109   : > { %v3156_v12 = vadd.f32 1e-10, %v864_v21  ;;  %v1117_v5 = vmul.f32 0.5, %v1116_v40  ;;  %v977_v26 = vmul.f32 0.5, %v976_v36  ;;  %v1270_v59 = vmul.f32 %v1241_v44, %v1241_v44 }
 0x10a   : > { %v1240_v9 = vsub.f32 %v2729_v23, %v1211_v32  ;;  %v3159_v61 = vpop.eup %1858  ;;  %v1107_v39 = vmul.f32 0.5, %v1106_v31  ;;  %v1125_v15 = vmul.f32 %v3151_v52, %v3094_v28  ;;  %v1289_v10 = vmul.f32 %v2953_v27, %v1256_v25  ;;  %v842_v32 = vpop.xlane.xlu2 %841 }
 0x10b   : > { %1860 = vrsqrt.f32 %v3143_v43  ;;  %v959_v49 = vmul.f32 %v3047_v2, %v958_v48  ;;  %v1303_v21 = vmul.f32 %v2953_v27, %v1270_v59  ;;  %vm1120_vm9 = vweird.f32 %v3013_v29  ;;  %v840_v59 = vpop.xlane.xlu0 %839 }
 0x10c   : > { %v1269_v23 = vmul.f32 %v1240_v9, %v1240_v9  ;;  %1862 = vrsqrt.f32 %v3149_v34  ;;  %vm980_vm10 = vweird.f32 %v3016_v55  ;;  %v996_v63 = vmul.f32 %v3145_v11, %v995_v62  ;;  %1322 = vadd.xlane.f32.xlu1 %v1289_v10 }
 0x10d   : > { %1864 = vrsqrt.f32 %v3156_v12  ;;  %v1103_v36 = vsel %vm1102_vm6, %v3025_v18, %v1099_v17  ;;  %v985_v31 = vmul.f32 %v3159_v61, %v3099_v51  ;;  %1350 = vadd.xlane.f32.xlu2 %v1303_v21  ;;  %v973_v45 = vsel %vm3176_vm8, %v3001_v0, %v969_v35  ;;  %v3903_v35 = vld [vmem:[#allocation20_spill] sm:$0xff] }
 0x10e   : > { %v1302_v58 = vmul.f32 %v2953_v27, %v1269_v23  ;;  %v1213_v44 = vmul.f32 %v3900_v6, %v1103_v36  ;;  %v1118_v18 = vsub.f32 1.5, %v1117_v5  ;;  %v978_v17 = vsub.f32 1.5, %v977_v26  ;;  %v3904_v26 = vld [vmem:[#allocation22_spill] sm:$0xff] }
 0x10f   : > { %v1108_v62 = vsub.f32 1.5, %v1107_v39  ;;  %v1126_v25 = vmul.f32 %v3151_v52, %v1125_v15  ;;  %vm1121_vm11 = vweird.f32 %v3079_v47  ;;  %vm1110_vm12 = vweird.f32 %v3041_v19  ;;  %v868_v15 = vpop.xlane.xlu1 %867 }
 0x110   : > { %1348 = vadd.xlane.f32.xlu0 %v1302_v58  ;;  %v1242_v0 = vsub.f32 %v2816_v53, %v1213_v44  ;;  %v1200_v9 = vmul.f32 %v3903_v35, %v973_v45  ;;  %v963_v41 = vsel %vm3196_vm7, %v3047_v2, %v959_v49  ;;  %vm981_vm13 = vweird.f32 %v3084_v60  ;;  %vm3254_vm4 = vmor %vm1120_vm9, %vm1121_vm11 }
 0x111   : > { %v3208_v10 = vpop.eup %1860  ;;  %vm1111_vm14 = vweird.f32 %v3090_v30  ;;  %v997_v5 = vmul.f32 0.5, %v996_v63  ;;  %v1199_v39 = vmul.f32 %v3904_v26, %v963_v41  ;;  %v986_v53 = vmul.f32 %v3159_v61, %v985_v31  ;;  %vm3242_vm0 = vmor %vm980_vm10, %vm981_vm13 }
 0x112   : > { %v3213_v21 = vpop.eup %1862  ;;  %v1271_v23 = vmul.f32 %v1242_v0, %v1242_v0  ;;  %v1229_v40 = vsub.f32 %v2593_v13, %v1200_v9  ;;  %v3217_v36 = vadd.f32 1e-10, %v842_v32  ;;  %v1119_v49 = vmul.f32 %v3079_v47, %v1118_v18  ;;  %v872_v26 = vpop.xlane.xlu2 %871  ;;  %vm3268_vm5 = vmor %vm1110_vm12, %vm1111_vm14 }
 0x113   : > { %v3219_v2 = vpop.eup %1864  ;;  %v979_v58 = vmul.f32 %v3084_v60, %v978_v17  ;;  %v1109_v63 = vmul.f32 %v3090_v30, %v1108_v62  ;;  %v1127_v6 = vmul.f32 0.5, %v1126_v25  ;;  %v1145_v44 = vmul.f32 %v3208_v10, %v3143_v43 }
 0x114   : > { %v1005_v31 = vmul.f32 %v3213_v21, %v3149_v34  ;;  %v1304_v45 = vmul.f32 %v2953_v27, %v1271_v23  ;;  %v1258_v13 = vmul.f32 %v1229_v40, %v1229_v40  ;;  %v998_v32 = vsub.f32 1.5, %v997_v5  ;;  %v3911_v40 = vld [vmem:[#allocation24_spill] sm:$0xff] }
 0x115   : > { %v1135_v48 = vmul.f32 %v3219_v2, %v3156_v12  ;;  %v1228_v18 = vsub.f32 %v2501_v57, %v1199_v39  ;;  %1866 = vrsqrt.f32 %v3217_v36  ;;  %vm1000_vm15 = vweird.f32 %v3088_v22 }
 0x116   : > { %vm1001_vm1 = vweird.f32 %v3145_v11  ;;  %v987_v17 = vmul.f32 0.5, %v986_v53  ;;  %1352 = vadd.xlane.f32.xlu1 %v1304_v45  ;;  %v1291_v62 = vmul.f32 %v2953_v27, %v1258_v13  ;;  %v3236_v25 = vadd.f32 1e-10, %v868_v15  ;;  %v3912_v45 = vld [vmem:[#allocation23_spill] sm:$0xff] }
 0x117   : > { %v1128_v57 = vsub.f32 1.5, %v1127_v6  ;;  %vm1130_vm2 = vweird.f32 %v3094_v28  ;;  %vm1131_vm3 = vweird.f32 %v3151_v52  ;;  %v1257_v35 = vmul.f32 %v1228_v18, %v1228_v18  ;;  %vm3319_vm9 = vmor %vm1000_vm15, %vm1001_vm1 }
 0x118   : > { %v3248_v9 = vadd.f32 1e-10, %v840_v59  ;;  %v1146_v55 = vmul.f32 %v3208_v10, %v1145_v44  ;;  %v1006_v5 = vmul.f32 %v3213_v21, %v1005_v31  ;;  %1326 = vadd.xlane.f32.xlu2 %v1291_v62  ;;  %1868 = vrsqrt.f32 %v3236_v25  ;;  %vm3330_vm10 = vmor %vm1130_vm2, %vm1131_vm3 }
 0x119   : > { %v983_v59 = vsel %vm3242_vm0, %v3084_v60, %v979_v58  ;;  %v3273_v39 = vmul.f32 %v3145_v11, %v998_v32  ;;  %vm991_vm6 = vweird.f32 %v3159_v61  ;;  %v1136_v15 = vmul.f32 %v3219_v2, %v1135_v48  ;;  %v870_v60 = vpop.xlane.xlu0 %869  ;;  %v3913_v32 = vld [vmem:[#allocation25_spill] sm:$0xff] }
 0x11a   : > { %v1290_v53 = vmul.f32 %v2953_v27, %v1257_v35  ;;  %1870 = vrsqrt.f32 %v3248_v9  ;;  %v988_v23 = vsub.f32 1.5, %v987_v17  ;;  %v1201_v58 = vmul.f32 %v3911_v40, %v983_v59  ;;  %v844_v17 = vpop.xlane.xlu1 %843 }
 0x11b   : > { %v1123_v19 = vsel %vm3254_vm4, %v3079_v47, %v1119_v49  ;;  %v1113_v6 = vsel %vm3268_vm5, %v3090_v30, %v1109_v63  ;;  %v3286_v44 = vpop.eup %1866  ;;  %v1129_v31 = vmul.f32 %v3151_v52, %v1128_v57  ;;  %vm990_vm8 = vweird.f32 %v3099_v51 }
 0x11c   : > { %1324 = vadd.xlane.f32.xlu0 %v1290_v53  ;;  %v1215_v13 = vmul.f32 %v3912_v45, %v1123_v19  ;;  %v1214_v48 = vmul.f32 %v3913_v32, %v1113_v6  ;;  %v3292_v18 = vadd.f32 1e-10, %v872_v26  ;;  %v1147_v62 = vmul.f32 0.5, %v1146_v55  ;;  %vm992_vm14 = vmor %vm990_vm8, %vm991_vm6 }
 0x11d   : > { %v1007_v47 = vmul.f32 0.5, %v1006_v5  ;;  %v1025_v49 = vmul.f32 %v3286_v44, %v3217_v36  ;;  %v1230_v30 = vsub.f32 %v2542_v20, %v1201_v58  ;;  %v1137_v63 = vmul.f32 0.5, %v1136_v15 }
 0x11e   : > { %v1244_v0 = vsub.f32 %v2921_v3, %v1215_v13  ;;  %v1243_v57 = vsub.f32 %v2905_v54, %v1214_v48  ;;  %1872 = vrsqrt.f32 %v3292_v18  ;;  %v3300_v35 = vpop.eup %1868  ;;  %v3303_v26 = vadd.f32 1e-10, %v844_v17  ;;  %v874_v17 = vpop.xlane.xlu2 %873 }
 0x11f   : > { %v1026_v41 = vmul.f32 %v3286_v44, %v1025_v49  ;;  %v1259_v59 = vmul.f32 %v1230_v30, %v1230_v30  ;;  %v3305_v55 = vadd.f32 1e-10, %v870_v60  ;;  %v989_v20 = vmul.f32 %v3159_v61, %v988_v23 }
 0x120   : > { %v3307_v5 = vpop.eup %1870  ;;  %v1155_v3 = vmul.f32 %v3300_v35, %v3236_v25  ;;  %v1273_v29 = vmul.f32 %v1244_v0, %v1244_v0  ;;  %v1272_v54 = vmul.f32 %v1243_v57, %v1243_v57  ;;  %v1148_v15 = vsub.f32 1.5, %v1147_v62 }
 0x121   : > { %v1008_v53 = vsub.f32 1.5, %v1007_v47  ;;  %v1015_v40 = vmul.f32 %v3307_v5, %v3248_v9  ;;  %v1292_v58 = vmul.f32 %v2953_v27, %v1259_v59  ;;  %v1138_v23 = vsub.f32 1.5, %v1137_v63  ;;  %v439_v62 = vpop.xlane.xlu0 %438  ;;  %v3919_v63 = vld [vmem:[#allocation26_spill] sm:$0xff] }
 0x122   : > { %v1306_v19 = vmul.f32 %v2953_v27, %v1273_v29  ;;  %v1305_v6 = vmul.f32 %v2953_v27, %v1272_v54  ;;  %1874 = vrsqrt.f32 %v3303_v26  ;;  %vm1150_vm7 = vweird.f32 %v3143_v43  ;;  %v846_v57 = vpop.xlane.xlu1 %845 }
 0x123   : > { %vm1151_vm11 = vweird.f32 %v3208_v10  ;;  %vm1010_vm12 = vweird.f32 %v3149_v34  ;;  %v1027_v22 = vmul.f32 0.5, %v1026_v41  ;;  %1328 = vadd.xlane.f32.xlu1 %v1292_v58  ;;  %1876 = vrsqrt.f32 %v3305_v55 }
 0x124   : > { %v3338_v13 = vpop.eup %1872  ;;  %vm1011_vm13 = vweird.f32 %v3213_v21  ;;  %v1156_v28 = vmul.f32 %v3300_v35, %v1155_v3  ;;  %1356 = vadd.xlane.f32.xlu2 %v1306_v19  ;;  %1354 = vadd.xlane.f32.xlu0 %v1305_v6  ;;  %v1133_v32 = vsel %vm3330_vm10, %v3151_v52, %v1129_v31  ;;  %v1003_v48 = vsel %vm3319_vm9, %v3145_v11, %v3273_v39  ;;  %v3918_v39 = vld [vmem:[#allocation27_spill] sm:$0xff]  ;;  %v3920_v3 = vld [vmem:[#allocation28_spill] sm:$0xff]  ;;  %vm3411_vm8 = vmor %vm1150_vm7, %vm1151_vm11 }
 0x125   : > { %v3354_v47 = vmul.f32 %v3208_v10, %v1148_v15  ;;  %v1009_v49 = vmul.f32 %v3213_v21, %v1008_v53  ;;  %vm1141_vm15 = vweird.f32 %v3219_v2  ;;  %v1016_v52 = vmul.f32 %v3307_v5, %v1015_v40  ;;  %vm3402_vm6 = vmor %vm1010_vm12, %vm1011_vm13 }
 0x126   : > { %v1175_v31 = vmul.f32 %v3338_v13, %v3292_v18  ;;  %v3362_v11 = vmul.f32 %v3219_v2, %v1138_v23  ;;  %v1216_v30 = vmul.f32 %v3918_v39, %v1133_v32  ;;  %v1203_v51 = vmul.f32 %v3919_v63, %v1003_v48 }
 0x127   : > { %v993_v0 = vsel %vm992_vm14, %v3159_v61, %v989_v20  ;;  %vm1140_vm1 = vweird.f32 %v3156_v12  ;;  %v1028_v41 = vsub.f32 1.5, %v1027_v22  ;;  %v3370_v54 = vadd.f32 1e-10, %v874_v17 }
 0x128   : > { %v1176_v59 = vmul.f32 %v3338_v13, %v1175_v31  ;;  %v1202_v29 = vmul.f32 %v3920_v3, %v993_v0  ;;  %v3372_v15 = vpop.eup %1874  ;;  %vm1030_vm0 = vweird.f32 %v3217_v36  ;;  %vm1031_vm2 = vweird.f32 %v3286_v44  ;;  %v3925_v3 = vld [vmem:[#allocation30_spill] sm:$0xff]  ;;  %vm3432_vm7 = vmor %vm1140_vm1, %vm1141_vm15 }
 0x129   : > { %v1157_v53 = vmul.f32 0.5, %v1156_v28  ;;  %v1245_v40 = vsub.f32 %v2924_v42, %v1216_v30  ;;  %v1232_v61 = vsub.f32 %v2597_v56, %v1203_v51  ;;  %v3378_v20 = vpop.eup %1876  ;;  %vm1160_vm3 = vweird.f32 %v3236_v25  ;;  %vm3470_vm15 = vmor %vm1030_vm0, %vm1031_vm2 }
 0x12a   : > { %vm1161_vm4 = vweird.f32 %v3300_v35  ;;  %v1017_v58 = vmul.f32 0.5, %v1016_v52  ;;  %v1035_v60 = vmul.f32 %v3372_v15, %v3303_v26  ;;  %v3384_v23 = vadd.f32 1e-10, %v846_v57 }
 0x12b   : > { %v1177_v19 = vmul.f32 0.5, %v1176_v59  ;;  %v1165_v6 = vmul.f32 %v3378_v20, %v3305_v55  ;;  %v1274_v45 = vmul.f32 %v1245_v40, %v1245_v40  ;;  %v1261_v42 = vmul.f32 %v1232_v61, %v1232_v61  ;;  %v3928_v40 = vld [vmem:[#allocation29_spill] sm:$0xff] }
 0x12c   : > { %v3389_v56 = vmul.f32 %v3286_v44, %v1028_v41  ;;  %v1036_v22 = vmul.f32 %v3372_v15, %v1035_v60  ;;  %v1231_v28 = vsub.f32 %v2545_v46, %v1202_v29  ;;  %1878 = vrsqrt.f32 %v3370_v54  ;;  %v848_v41 = vpop.xlane.xlu0 %847 }
 0x12d   : > { %v1158_v32 = vsub.f32 1.5, %v1157_v53  ;;  %vm1021_vm5 = vweird.f32 %v3307_v5  ;;  %v1166_v48 = vmul.f32 %v3378_v20, %v1165_v6  ;;  %v1307_v17 = vmul.f32 %v2953_v27, %v1274_v45 }
 0x12e   : > { %v1294_v52 = vmul.f32 %v2953_v27, %v1261_v42  ;;  %v1018_v46 = vsub.f32 1.5, %v1017_v58  ;;  %v1037_v39 = vmul.f32 0.5, %v1036_v22  ;;  %v1260_v30 = vmul.f32 %v1231_v28, %v1231_v28  ;;  %v3932_v28 = vld [vmem:[#allocation31_spill] sm:$0xff] }
 0x12f   : > { %1880 = vrsqrt.f32 %v3384_v23  ;;  %vm1020_vm9 = vweird.f32 %v3248_v9  ;;  %v1178_v34 = vsub.f32 1.5, %v1177_v19  ;;  %v1167_v51 = vmul.f32 0.5, %v1166_v48  ;;  %1358 = vadd.xlane.f32.xlu1 %v1307_v17 }
 0x130   : > { %1332 = vadd.xlane.f32.xlu2 %v1294_v52  ;;  %v3416_v0 = vadd.f32 1e-10, %v439_v62  ;;  %v1013_v57 = vsel %vm3402_vm6, %v3213_v21, %v1009_v49  ;;  %vm746_vm10 = vweird.f32 %v2846_v33  ;;  %v1038_v43 = vsub.f32 1.5, %v1037_v39 }
 0x131   : > { %v1293_v59 = vmul.f32 %v2953_v27, %v1260_v30  ;;  %v1204_v29 = vmul.f32 %v3925_v3, %v1013_v57  ;;  %v1153_v53 = vsel %vm3411_vm8, %v3208_v10, %v3354_v47  ;;  %v1159_v21 = vmul.f32 %v3300_v35, %v1158_v32  ;;  %v3929_v10 = vld [vmem:[#allocation42_spill] sm:$0xff]  ;;  %vm3483_vm8 = vmor %vm1160_vm3, %vm1161_vm4 }
 0x132   : > { %vm1040_vm11 = vweird.f32 %v3303_v26  ;;  %v1168_v49 = vsub.f32 1.5, %v1167_v51  ;;  %1882 = vrsqrt.f32 %v3416_v0  ;;  %v1218_v61 = vmul.f32 %v3928_v40, %v1153_v53  ;;  %v3440_v58 = vpop.eup %1878  ;;  %v3935_v51 = vld [vmem:[#allocation33_spill] sm:$0xff] }
 0x133   : > { %vm615_vm12 = vweird.f32 %v3929_v10  ;;  %vm616_vm13 = vweird.f32 %v2419_v4  ;;  %vm745_vm14 = vweird.f32 %v2762_v24  ;;  %v1019_v12 = vmul.f32 %v3307_v5, %v1018_v46  ;;  %1330 = vadd.xlane.f32.xlu0 %v1293_v59 }
 0x134   : > { %v1233_v47 = vsub.f32 %v2600_v7, %v1204_v29  ;;  %v1143_v60 = vsel %vm3432_vm7, %v3219_v2, %v3362_v11  ;;  %v3451_v19 = vadd.f32 1e-10, %v848_v41  ;;  %v3454_v6 = vmul.f32 %v3338_v13, %v1178_v34  ;;  %v3938_v41 = vld [vmem:[#allocation32_spill] sm:$0xff]  ;;  %vm3542_vm4 = vmor %vm745_vm14, %vm746_vm10 }
 0x135   : > { %vm1181_vm1 = vweird.f32 %v3338_v13  ;;  %vm1041_vm6 = vweird.f32 %v3372_v15  ;;  %v1185_v45 = vmul.f32 %v3440_v58, %v3370_v54  ;;  %v1247_v7 = vsub.f32 %v2999_v16, %v1218_v61  ;;  %v3462_v42 = vpop.eup %1880  ;;  %v3940_v61 = vld [vmem:[#allocation34_spill] sm:$0xff]  ;;  %vm3563_vm10 = vmor %vm615_vm12, %vm616_vm13 }
 0x136   : > { %v3475_v11 = vmul.f32 %v3372_v15, %v1038_v43  ;;  %v1262_v22 = vmul.f32 %v1233_v47, %v1233_v47  ;;  %v1217_v16 = vmul.f32 %v3932_v28, %v1143_v60  ;;  %1884 = vrsqrt.f32 %v3451_v19  ;;  %v3941_v60 = vld [vmem:[#allocation44_spill] sm:$0xff]  ;;  %v3946_v28 = vld [vmem:[#allocation47_spill] sm:$0xff] }
 0x137   : > { %v3488_v36 = vmul.f32 %v3378_v20, %v1168_v49  ;;  %vm1171_vm0 = vweird.f32 %v3378_v20  ;;  %v1186_v48 = vmul.f32 %v3440_v58, %v1185_v45  ;;  %v1045_v17 = vmul.f32 %v3462_v42, %v3384_v23  ;;  %v3939_v49 = vld [vmem:[#allocation49_spill] sm:$0xff] }
 0x138   : > { %v1276_v52 = vmul.f32 %v1247_v7, %v1247_v7  ;;  %vm1051_vm7 = vweird.f32 %v3462_v42  ;;  %v1295_v25 = vmul.f32 %v2953_v27, %v1262_v22  ;;  %v1246_v31 = vsub.f32 %v2985_v8, %v1217_v16  ;;  %v3505_v30 = vpop.eup %1882  ;;  %v3972_v7 = vld [vmem:[#allocation48_spill] sm:$0xff] }
 0x139   : > { %v1163_v46 = vsel %vm3483_vm8, %v3300_v35, %v1159_v21  ;;  %v1033_v39 = vsel %vm3470_vm15, %v3286_v44, %v3389_v56  ;;  %vm1170_vm3 = vweird.f32 %v3305_v55  ;;  %v1187_v63 = vmul.f32 0.5, %v1186_v48  ;;  %vm3517_vm15 = vmor %vm1020_vm9, %vm1021_vm5  ;;  %v3958_v44 = vld [vmem:[#allocation8_spill] sm:$0xff] }
 0x13a   : > { %vm1191_vm2 = vweird.f32 %v3440_v58  ;;  %v1046_v8 = vmul.f32 %v3462_v42, %v1045_v17  ;;  %v1309_v34 = vmul.f32 %v2953_v27, %v1276_v52  ;;  %v1219_v35 = vmul.f32 %v3935_v51, %v1163_v46  ;;  %1334 = vadd.xlane.f32.xlu1 %v1295_v25  ;;  %vm3554_vm9 = vmor %vm1040_vm11, %vm1041_vm6  ;;  %v3955_v51 = vld [vmem:[#allocation12_spill] sm:$0xff] }
 0x13b   : > { %v750_v56 = vmul.f32 %v3505_v30, %v3416_v0  ;;  %vm756_vm8 = vweird.f32 %v3505_v30  ;;  %v1275_v57 = vmul.f32 %v1246_v31, %v1246_v31  ;;  %v1206_v43 = vmul.f32 %v3938_v41, %v1033_v39 }
 0x13c   : > { %v1188_v59 = vsub.f32 1.5, %v1187_v63  ;;  %v1047_v3 = vmul.f32 0.5, %v1046_v8  ;;  %1362 = vadd.xlane.f32.xlu2 %v1309_v34  ;;  %v1248_v9 = vsub.f32 %v3069_v14, %v1219_v35  ;;  %v1023_v29 = vsel %vm3517_vm15, %v3307_v5, %v1019_v12  ;;  %v3530_v53 = vpop.eup %1884 }
 0x13d   : > { %v751_v62 = vmul.f32 %v3505_v30, %v750_v56  ;;  %vm755_vm5 = vweird.f32 %v3416_v0  ;;  %v1308_v21 = vmul.f32 %v2953_v27, %v1275_v57  ;;  %v1235_v40 = vsub.f32 %v3939_v49, %v1206_v43  ;;  %v3969_v49 = vld [vmem:[#allocation3_spill] sm:$0xff] }
 0x13e   : > { %v1205_v47 = vmul.f32 %v3940_v61, %v1023_v29  ;;  %v1189_v5 = vmul.f32 %v3440_v58, %v1188_v59  ;;  %v1048_v12 = vsub.f32 1.5, %v1047_v3  ;;  %v1055_v45 = vmul.f32 %v3530_v53, %v3451_v19  ;;  %v3963_v59 = vld [vmem:[#allocation46_spill] sm:$0xff]  ;;  %v3970_v61 = vld [vmem:[#allocation40_spill] sm:$0xff] }
 0x13f   : > { %vm1061_vm15 = vweird.f32 %v3530_v53  ;;  %v752_v24 = vmul.f32 0.5, %v751_v62  ;;  %1360 = vadd.xlane.f32.xlu0 %v1308_v21  ;;  %v1277_v2 = vmul.f32 %v1248_v9, %v1248_v9  ;;  %v1264_v22 = vmul.f32 %v1235_v40, %v1235_v40 }
 0x140   : > { %v1234_v16 = vsub.f32 %v3946_v28, %v1205_v47  ;;  %v1049_v26 = vmul.f32 %v3462_v42, %v1048_v12  ;;  %v1056_v48 = vmul.f32 %v3530_v53, %v1055_v45  ;;  %v1043_v17 = vsel %vm3554_vm9, %v3372_v15, %v3475_v11  ;;  %v3952_v11 = vld [vmem:[#allocation36_spill] sm:$0xff] }
 0x141   : > { %v748_v52 = vsel %vm3542_vm4, %v2846_v33, %v3060_v38  ;;  %vm3949_vm11 = vweird.f32 %v3292_v18  ;;  %v753_v10 = vsub.f32 1.5, %v752_v24  ;;  %v1310_v25 = vmul.f32 %v2953_v27, %v1277_v2  ;;  %v3953_v33 = vld [vmem:[#allocation13_spill] sm:$0xff]  ;;  %v3973_v24 = vld [vmem:[#allocation4_spill] sm:$0xff] }
 0x142   : > { %vm1182_vm12 = vmor %vm3949_vm11, %vm1181_vm1  ;;  %v1297_v31 = vmul.f32 %v2953_v27, %v1264_v22  ;;  %v1263_v46 = vmul.f32 %v1234_v16, %v1234_v16  ;;  %vm3950_vm13 = vweird.f32 %v2712_v50  ;;  %vm3951_vm14 = vweird.f32 %v2612_v37  ;;  %v3954_v37 = vld [vmem:[#allocation35_spill] sm:$0xff]  ;;  %v3974_v22 = vld [vmem:[#allocation41_spill] sm:$0xff] }
 0x143   : > { %vm737_vm6 = vmor %vm3951_vm14, %vm3950_vm13  ;;  %v1057_v15 = vmul.f32 0.5, %v1056_v48  ;;  %v1207_v39 = vmul.f32 %v3952_v11, %v1043_v17  ;;  %v786_v38 = vmul.f32 %v3953_v33, %v748_v52  ;;  %v1183_v18 = vsel %vm1182_vm12, %v3338_v13, %v3454_v6  ;;  %1364 = vadd.xlane.f32.xlu1 %v1310_v25  ;;  %v3957_v6 = vld [vmem:[#allocation50_spill] sm:$0xff] }
 0x144   : > { %vm1172_vm1 = vmor %vm1170_vm3, %vm1171_vm0  ;;  %v754_v63 = vmul.f32 %v3505_v30, %v753_v10  ;;  %v1296_v8 = vmul.f32 %v2953_v27, %v1263_v46  ;;  %v1221_v34 = vmul.f32 %v3954_v37, %v1183_v18  ;;  %v738_v35 = vsel %vm737_vm6, %v2712_v50, %v3955_v51  ;;  %1338 = vadd.xlane.f32.xlu2 %v1297_v31 }
 0x145   : > { %vm3956_vm4 = vweird.f32 %v3384_v23  ;;  %v1058_v13 = vsub.f32 1.5, %v1057_v15  ;;  %v1236_v55 = vsub.f32 %v3957_v6, %v1207_v39  ;;  %v785_v56 = vmul.f32 %v3958_v44, %v738_v35  ;;  %v3962_v23 = vld [vmem:[#allocation37_spill] sm:$0xff] }
 0x146   : > { %vm1052_vm9 = vmor %vm3956_vm4, %vm1051_vm7  ;;  %v1173_v57 = vsel %vm1172_vm1, %v3378_v20, %v3488_v36  ;;  %vm3959_vm0 = vweird.f32 %v3370_v54  ;;  %v1250_v41 = vsub.f32 %v786_v38, %v1221_v34  ;;  %v618_v3 = vsel %vm3563_vm10, %v2419_v4, %v3963_v59  ;;  %v3964_v36 = vld [vmem:[#allocation39_spill] sm:$0xff] }
 0x147   : > { %vm3612_vm3 = vmor %vm3959_vm0, %vm1191_vm2  ;;  %v1220_v43 = vmul.f32 %v3962_v23, %v1173_v57  ;;  %v1053_v9 = vsel %vm1052_vm9, %v3462_v42, %v1049_v26  ;;  %v1059_v54 = vmul.f32 %v3530_v53, %v1058_v13  ;;  %vm1060_vm2 = vweird.f32 %v3451_v19  ;;  %1336 = vadd.xlane.f32.xlu0 %v1296_v8 }
 0x148   : > { %vm757_vm7 = vmor %vm755_vm5, %vm756_vm8  ;;  %v1265_v20 = vmul.f32 %v1236_v55, %v1236_v55  ;;  %v1208_v29 = vmul.f32 %v3964_v36, %v1053_v9  ;;  %vm3965_vm11 = vweird.f32 %v2521_v1  ;;  %vm3966_vm12 = vweird.f32 %v3941_v60  ;;  %v3971_v60 = vld [vmem:[#allocation38_spill] sm:$0xff] }
 0x149   : > { %vm3633_vm13 = vmor %vm3966_vm12, %vm3965_vm11  ;;  %v1279_v42 = vmul.f32 %v1250_v41, %v1250_v41  ;;  %v1249_v62 = vsub.f32 %v785_v56, %v1220_v43  ;;  %v758_v0 = vsel %vm757_vm7, %v3505_v30, %v754_v63  ;;  %v1193_v19 = vsel %vm3612_vm3, %v3440_v58, %v1189_v5 }
 0x14a   : > { %vm1062_vm8 = vmor %vm1060_vm2, %vm1061_vm15  ;;  %v1298_v21 = vmul.f32 %v2953_v27, %v1265_v20  ;;  %v773_v40 = vmul.f32 %v3969_v49, %v618_v3  ;;  %v787_v47 = vmul.f32 %v758_v0, %v3970_v61  ;;  %v1222_v14 = vmul.f32 %v1193_v19, %v3971_v60 }
 0x14b   : > { %v1312_v12 = vmul.f32 %v2953_v27, %v1279_v42  ;;  %v1278_v45 = vmul.f32 %v1249_v62, %v1249_v62  ;;  %v628_v30 = vsel %vm3633_vm13, %v2521_v1, %v3972_v7  ;;  %v1063_v58 = vsel %vm1062_vm8, %v3530_v53, %v1059_v54 }
 0x14c   : > { %v1251_v5 = vsub.f32 %v787_v47, %v1222_v14  ;;  %v774_v2 = vmul.f32 %v3973_v24, %v628_v30  ;;  %v1209_v28 = vmul.f32 %v3974_v22, %v1063_v58  ;;  %1340 = vadd.xlane.f32.xlu1 %v1298_v21  ;;  %v1237_v32 = vsub.f32 %v773_v40, %v1208_v29 }
 0x14d   : > { %v1311_v16 = vmul.f32 %v2953_v27, %v1278_v45  ;;  %1368 = vadd.xlane.f32.xlu2 %v1312_v12  ;;  %v1373_v13 = vlaneseq  ;;  %vm235_vm5 = vcmask 0   ;;  %v1910_v43 = vmov 0.0  }
 0x14e   : > { %v1280_v26 = vmul.f32 %v1251_v5, %v1251_v5  ;;  %v1238_v48 = vsub.f32 %v774_v2, %v1209_v28  ;;  %v1266_v52 = vmul.f32 %v1237_v32, %v1237_v32  ;;  %236 = vst.msk [vmem:[#allocation2] sm:$0x1] %vm235_vm5, %v1910_v43  ;;  %vm1413_vm15 = vcmask 130112  }
 0x14f   : > { %1366 = vadd.xlane.f32.xlu0 %v1311_v16  ;;  %v3667_v55 = vand.u32 127, %v1373_v13  ;;  %vm1417_vm10 = vcmask 195712   ;;  %vm1421_vm14 = vcmask 261312   ;;  %vm1425_vm6 = vcmask 326912  }
 0x150   : > { %v1267_v17 = vmul.f32 %v1238_v48, %v1238_v48  ;;  %v1313_v10 = vmul.f32 %v2953_v27, %v1280_v26  ;;  %v1299_v53 = vmul.f32 %v2953_v27, %v1266_v52  ;;  %vm1429_vm1 = vcmask 392512  }
 0x151   : > { %v1411_v57 = vadd.s32 4294967288, %v3667_v55  ;;  %v1415_v50 = vadd.s32 4294967280, %v3667_v55  ;;  %v1419_v9 = vadd.s32 4294967272, %v3667_v55  ;;  %v1423_v36 = vadd.s32 4294967264, %v3667_v55 }
 0x152   : > { %v1300_v1 = vmul.f32 %v2953_v27, %v1267_v17  ;;  %v1427_v62 = vadd.s32 4294967256, %v3667_v55  ;;  %v1431_v14 = vadd.s32 4294967248, %v3667_v55  ;;  %v1435_v7 = vadd.s32 4294967240, %v3667_v55 }
 0x153   : > { %v1439_v2 = vadd.s32 4294967232, %v3667_v55  ;;  %vm1433_vm4 = vcmask 458112   ;;  %vm1437_vm9 = vcmask 523712   ;;  %v1443_v52 = vadd.s32 4294967224, %v3667_v55 }
 0x154   : > { %1370 = vadd.xlane.f32.xlu1 %v1313_v10  ;;  %vm1441_vm0 = vcmask 589312   ;;  %vm1445_vm3 = vcmask 654912   ;;  %vm1449_vm7 = vcmask 720512   ;;  %vm1453_vm2 = vcmask 786112  }
 0x155   : > { %1344 = vadd.xlane.f32.xlu2 %v1300_v1  ;;  %v1467_v43 = vadd.s32 4294967176, %v3667_v55  ;;  %vm1457_vm11 = vcmask 851712   ;;  %vm1461_vm12 = vcmask 917312   ;;  %vm1465_vm8 = vcmask 982912  }
 0x157   : > { %1342 = vadd.xlane.f32.xlu0 %v1299_v53 }
 0x165   : > { %v1315_v25 = vpop.xlane.xlu1 %1314 }
 0x166   : > { %v1410_v59 = vperm.slane %v1315_v25, %v3667_v55  ;;  %v1447_v25 = vadd.s32 4294967216, %v3667_v55 }
 0x16a   : > { %v1317_v31 = vpop.xlane.xlu2 %1316 }
 0x16b   : > { %v1412_v3 = vperm.slane %v1317_v31, %v1411_v57 }
 0x16d   : > { %v1414_v49 = vsel %vm1413_vm15, %v1412_v3, %v1410_v59 }
 0x172   : > { %v1321_v46 = vpop.xlane.xlu1 %1320 }
 0x173   : > { %v1420_v40 = vperm.slane %v1321_v46, %v1419_v9 }
 0x174   : > { %v1347_v15 = vpop.xlane.xlu2 %1346 }
 0x175   : > { %v1471_v54 = vperm.slane %v1347_v15, %v3667_v55 }
 0x176   : > { %v1319_v11 = vpop.xlane.xlu0 %1318 }
 0x177   : > { %v1416_v20 = vperm.slane %v1319_v11, %v1415_v50 }
 0x179   : > { %v1418_v61 = vsel %vm1417_vm10, %v1416_v20, %v1414_v49 }
 0x17a   : > { %v1422_v22 = vsel %vm1421_vm14, %v1420_v40, %v1418_v61 }
 0x17f   : > { %v1323_v39 = vpop.xlane.xlu1 %1322 }
 0x180   : > { %v1351_v33 = vpop.xlane.xlu2 %1350  ;;  %v1424_v47 = vperm.slane %v1323_v39, %v1423_v36  ;;  %v1451_v39 = vadd.s32 4294967208, %v3667_v55 }
 0x181   : > { %v1474_v29 = vperm.slane %v1351_v33, %v1415_v50 }
 0x182   : > { %v1426_v16 = vsel %vm1425_vm6, %v1424_v47, %v1422_v22 }
 0x183   : > { %v1349_v38 = vpop.xlane.xlu0 %1348 }
 0x184   : > { %v1472_v41 = vperm.slane %v1349_v38, %v1411_v57 }
 0x186   : > { %v1473_v4 = vsel %vm1413_vm15, %v1472_v41, %v1471_v54  ;;  %vm1469_vm15 = vcmask 1048512  }
 0x187   : > { %v1475_v60 = vsel %vm1417_vm10, %v1474_v29, %v1473_v4  ;;  %vm1501_vm10 = vcmask 1040384  }
 0x189   : > { %v1353_v18 = vpop.xlane.xlu1 %1352 }
 0x18a   : > { %v1476_v42 = vperm.slane %v1353_v18, %v1419_v9  ;;  %v1463_v9 = vadd.s32 4294967184, %v3667_v55 }
 0x18b   : > { %v3659_v63 = vpop.xlane.xlu2 %1326 }
 0x18c   : > { %v1477_v12 = vsel %vm1421_vm14, %v1476_v42, %v1475_v60  ;;  %v1432_v32 = vperm.slane %v3659_v63, %v1431_v14  ;;  %v1455_v63 = vadd.s32 4294967200, %v3667_v55  ;;  %vm1503_vm14 = vcmask 843776  }
 0x18f   : > { %v1325_v8 = vpop.xlane.xlu0 %1324 }
 0x190   : > { %v1428_v45 = vperm.slane %v1325_v8, %v1427_v62 }
 0x192   : > { %v1430_v26 = vsel %vm1429_vm1, %v1428_v45, %v1426_v16 }
 0x193   : > { %v1434_v33 = vsel %vm1433_vm4, %v1432_v32, %v1430_v26 }
 0x196   : > { %v3661_v37 = vpop.xlane.xlu1 %1328 }
 0x197   : > { %v1357_v34 = vpop.xlane.xlu2 %1356  ;;  %v1355_v51 = vpop.xlane.xlu0 %1354  ;;  %v1436_v48 = vperm.slane %v3661_v37, %v1435_v7 }
 0x198   : > { %v1478_v19 = vperm.slane %v1355_v51, %v1423_v36  ;;  %v1480_v30 = vperm.slane %v1357_v34, %v1427_v62 }
 0x199   : > { %v1438_v38 = vsel %vm1437_vm9, %v1436_v48, %v1434_v33 }
 0x19a   : > { %v1479_v5 = vsel %vm1425_vm6, %v1478_v19, %v1477_v12 }
 0x19b   : > { %v1481_v17 = vsel %vm1429_vm1, %v1480_v30, %v1479_v5 }
 0x1a2   : > { %v1359_v27 = vpop.xlane.xlu1 %1358 }
 0x1a3   : > { %v3663_v35 = vpop.xlane.xlu2 %1332  ;;  %v1482_v24 = vperm.slane %v1359_v27, %v1431_v14  ;;  %v1500_v14 = vld [vmem:[#allocation2] sm:$0x1] }
 0x1a4   : > { %v1444_v18 = vperm.slane %v3663_v35, %v1443_v52  ;;  %v1375_v35 = vadd.s32 128, %v3667_v55 }
 0x1a5   : > { %v1483_v1 = vsel %vm1433_vm4, %v1482_v24, %v1481_v17 }
 0x1a6   : > { %v3665_v6 = vpop.xlane.xlu0 %1330  ;;  %vm1380_vm13 = vcmp.lt.s32.totalorder %v1375_v35, 225 }
 0x1a7   : > { %v1440_v53 = vperm.slane %v3665_v6, %v1439_v2 }
 0x1a9   : > { %v1442_v37 = vsel %vm1441_vm0, %v1440_v53, %v1438_v38 }
 0x1aa   : > { %v1446_v41 = vsel %vm1445_vm3, %v1444_v18, %v1442_v37 }
 0x1ad   : > { %v3669_v44 = vpop.xlane.xlu1 %1334 }
 0x1ae   : > { %v1448_v34 = vperm.slane %v3669_v44, %v1447_v25 }
 0x1af   : > { %v3671_v56 = vpop.xlane.xlu2 %1362 }
 0x1b0   : > { %v1486_v31 = vperm.slane %v3671_v56, %v1439_v2  ;;  %v1459_v56 = vadd.s32 4294967192, %v3667_v55  ;;  %v1450_v44 = vsel %vm1449_vm7, %v1448_v34, %v1446_v41 }
 0x1b2   : > { %v1361_v23 = vpop.xlane.xlu0 %1360 }
 0x1b3   : > { %v1484_v28 = vperm.slane %v1361_v23, %v1435_v7 }
 0x1b5   : > { %v1485_v15 = vsel %vm1437_vm9, %v1484_v28, %v1483_v1 }
 0x1b6   : > { %v1365_v0 = vpop.xlane.xlu1 %1364  ;;  %v1487_v51 = vsel %vm1441_vm0, %v1486_v31, %v1485_v15 }
 0x1b7   : > { %v3681_v21 = vpop.xlane.xlu2 %1338  ;;  %v1488_v11 = vperm.slane %v1365_v0, %v1443_v52 }
 0x1b8   : > { %v1456_v59 = vperm.slane %v3681_v21, %v1455_v63 }
 0x1b9   : > { %v1489_v13 = vsel %vm1445_vm3, %v1488_v11, %v1487_v51 }
 0x1ba   : > { %v1337_v58 = vpop.xlane.xlu0 %1336 }
 0x1bb   : > { %v1452_v6 = vperm.slane %v1337_v58, %v1451_v39 }
 0x1bd   : > { %v1454_v20 = vsel %vm1453_vm2, %v1452_v6, %v1450_v44 }
 0x1be   : > { %v1458_v0 = vsel %vm1457_vm11, %v1456_v59, %v1454_v20 }
 0x1bf   : > { %v1341_v10 = vpop.xlane.xlu1 %1340 }
 0x1c0   : > { %v1369_v46 = vpop.xlane.xlu2 %1368  ;;  %v1460_v36 = vperm.slane %v1341_v10, %v1459_v56 }
 0x1c1   : > { %v1492_v57 = vperm.slane %v1369_v46, %v1451_v39 }
 0x1c2   : > { %v1367_v8 = vpop.xlane.xlu0 %1366  ;;  %v1462_v49 = vsel %vm1461_vm12, %v1460_v36, %v1458_v0 }
 0x1c3   : > { %v1490_v27 = vperm.slane %v1367_v8, %v1447_v25 }
 0x1c5   : > { %v1491_v50 = vsel %vm1449_vm7, %v1490_v27, %v1489_v13 }
 0x1c6   : > { %v1493_v29 = vsel %vm1453_vm2, %v1492_v57, %v1491_v50 }
 0x1c7   : > { %v1371_v23 = vpop.xlane.xlu1 %1370 }
 0x1c8   : > { %v1494_v3 = vperm.slane %v1371_v23, %v1455_v63  ;;  %v1345_v54 = vpop.xlane.xlu2 %1344 }
 0x1c9   : > { %v1468_v62 = vperm.slane %v1345_v54, %v1467_v43 }
 0x1ca   : > { %v1495_v4 = vsel %vm1457_vm11, %v1494_v3, %v1493_v29  ;;  %v1343_v42 = vpop.xlane.xlu0 %1342 }
 0x1cb   : > { %v1464_v19 = vperm.slane %v1343_v42, %v1463_v9  ;;  %v1499_v21 = vsel %vm1380_vm13, %v1495_v4, 0.0 }
 0x1cc   : > { %v1504_v47 = vsel %vm1503_vm14, %v1499_v21, 0.0 }
 0x1cd   : > { %v1466_v55 = vsel %vm1465_vm8, %v1464_v19, %v1462_v49 }
 0x1ce   : > { %v1470_v40 = vsel %vm1469_vm15, %v1468_v62, %v1466_v55 }
 0x1cf   : > { %v1502_v61 = vsel %vm1501_vm10, %v1470_v40, 0.0 }
 0x1d0   : > { %v1505_v60 = vadd.f32 %v1504_v47, %v1502_v61 }
 0x1d2   : > { %1506 = vadd.xlane.f32.xlu0 %v1505_v60 }
 0x245   : > { %v1507_v12 = vpop.xlane.xlu0 %1506 }
 0x246   : > { %v1508_v45 = vadd.f32 %v1507_v12, %v1500_v14 }
 0x248   : > { %1510 = vst.msk [vmem:[#allocation2] sm:$0x1] %vm235_vm5, %v1508_v45 }
 0x24f   : > { %v1514_v7 = vld [vmem:[#allocation2] sm:$0x1] }
 0x250   : > { %v1515_v30 = vmul.f32 0.0044444446, %v1514_v7 }
 0x252   : > { %1516 = vst.msk [vmem:[%s230_s27] sm:$0x1] %vm235_vm5, %v1515_v30 }
 0x253 PF: > { %s13_s14 = sadd.s32 1, %s1908_s14   ;;  %s3975_s12 = smov %s1904_s13 }
 0x254   : > { %p10_p5 = scmp.ge.s32.totalorder %s13_s14, 4   ;;  %s3976_s13 = smov %s3978_s15 }
 0x256   :  { %12 = sbr.rel (!%p10_p5) target bundleno = 2 (0x2), region = 73 }

</bundles_post_ra>
